<compile_context>
chip_gen: v5e
topology: v5e:2x2
jax: 0.10.0
libtpu: 0.0.40
codegen_flags: <defaults>
</compile_context>

<pallas_src>
import functools

import jax
import jax.numpy as jnp
from jax.experimental import pallas as pl
from jax.experimental.pallas import tpu as pltpu

F32 = jnp.float32
BF16 = jnp.bfloat16


def _sigmoid(v):
    # sigma(x) = 0.5*tanh(0.5*x) + 0.5 : one EUP push + two cheap VALU ops,
    # saturates (no NaN) even for extreme pre-activations on padded lanes.
    return 0.5 * jnp.tanh(0.5 * v) + 0.5


def lstm_kernel(T, Bt, x_ref, wih1_ref, whh1_ref, b1_ref,
                wih2_ref, whh2_ref, b2_ref, wfc_ref, bfc_ref,
                out_ref, pre_ref, h1seq_ref):
    H = whh1_ref.shape[1]

    # ---- Layer-1 input projection, hoisted out of the recurrence ----------
    # (4H, D) @ (D, T*Bt) -> (4H, T*Bt); bias broadcast/added once per layer.
    x2d = x_ref[0]                                        # (D, T*Bt) bf16
    pre_ref[...] = (jnp.dot(wih1_ref[...], x2d, preferred_element_type=F32)
                    + b1_ref[...])

    def recurrence(whh_ref, out_seq_ref):
        h = jnp.zeros((H, Bt), F32)
        c = jnp.zeros((H, Bt), F32)
        for t in range(T):                                # static unroll (T small)
            g = (pre_ref[:, pl.ds(t * Bt, Bt)]            # per-chunk load at use
                 + jnp.dot(whh_ref[...], h, preferred_element_type=F32))
            i_g = _sigmoid(g[0 * H:1 * H])
            f_g = _sigmoid(g[1 * H:2 * H])
            g_g = jnp.tanh(g[2 * H:3 * H])
            o_g = _sigmoid(g[3 * H:4 * H])
            c = f_g * c + i_g * g_g
            h = o_g * jnp.tanh(c)
            if out_seq_ref is not None:
                out_seq_ref[:, pl.ds(t * Bt, Bt)] = h
        return h

    # ---- Layer-1 recurrence: only whh1 @ h is on the sequential chain -----
    recurrence(whh1_ref, h1seq_ref)

    # ---- Layer-2 input projection: one bulk matmul over the h1 sequence ---
    pre_ref[...] = (jnp.dot(wih2_ref[...], h1seq_ref[...],
                            preferred_element_type=F32) + b2_ref[...])

    # ---- Layer-2 recurrence -------------------------------------------------
    h2 = recurrence(whh2_ref, None)

    # ---- Classifier on the last hidden state (lane-dense (C, Bt) store) ---
    out_ref[...] = (jnp.dot(wfc_ref[...], h2, preferred_element_type=F32)
                    + bfc_ref[...])


def _choose_batch_tiling(B, batch_tile=256):
    # Pad lanes to >=128 (unmasked lane-dense stores).  Prefer >=2 grid steps
    # so both v7x TensorCores get a tile; tiles are multiples of 128 (MXU N).
    B128 = max(128, pl.cdiv(B, 128) * 128)
    if B128 <= 128:
        Bt = 128
    else:
        Bt = min(batch_tile, max(128, (B128 // 2 // 128) * 128))
    B_pad = pl.cdiv(B128, Bt) * Bt
    return Bt, B_pad


def lstm_forward(x, params, *, batch_tile=256):
    """x: (B, T, input_size). params follow PyTorch nn.LSTM / nn.Linear layouts."""
    (wih1, whh1, bih1, bhh1, wih2, whh2, bih2, bhh2, wfc, bfc) = params
    B, T, D = x.shape
    H = whh1.shape[1]
    C = wfc.shape[0]

    Bt, B_pad = _choose_batch_tiling(B, batch_tile)
    n_tiles = B_pad // Bt
    TB = T * Bt

    # Rearrange x to the bulk-projection layout (n_tiles, D, T*Bt): batch on
    # lanes, timesteps as consecutive 128-aligned lane chunks.  bf16 halves
    # the x DMA; the MXU accumulates in f32.
    x_p = x.astype(BF16)
    if B_pad != B:
        x_p = jnp.pad(x_p, ((0, B_pad - B), (0, 0), (0, 0)))
    x_p = x_p.reshape(n_tiles, Bt, T, D)
    x_p = jnp.transpose(x_p, (0, 3, 2, 1))               # (n_tiles, D, T, Bt)
    x_p = x_p.reshape(n_tiles, D, TB)                     # (n_tiles, D, T*Bt)

    b1 = (bih1 + bhh1).astype(F32)[:, None]               # (4H, 1) pre-summed
    b2 = (bih2 + bhh2).astype(F32)[:, None]               # (4H, 1)
    bfc_c = bfc.astype(F32)[:, None]                      # (C, 1)

    weights = (wih1.astype(BF16), whh1.astype(F32), b1,
               wih2.astype(F32), whh2.astype(F32), b2,
               wfc.astype(F32), bfc_c)

    def full_spec(arr):
        nd = arr.ndim
        return pl.BlockSpec(arr.shape, lambda i, _nd=nd: (0,) * _nd)

    kernel = functools.partial(lstm_kernel, T, Bt)

    out = pl.pallas_call(
        kernel,
        out_shape=jax.ShapeDtypeStruct((C, B_pad), F32),
        grid=(n_tiles,),
        in_specs=[pl.BlockSpec((1, D, TB), lambda i: (i, 0, 0))]
                 + [full_spec(w) for w in weights],
        out_specs=pl.BlockSpec((C, Bt), lambda i: (0, i)),
        scratch_shapes=[pltpu.VMEM((4 * H, TB), F32),     # gate pre-activations
                        pltpu.VMEM((H, TB), F32)],        # layer-1 h sequence
        compiler_params=pltpu.CompilerParams(
            dimension_semantics=("parallel",)),
    )(x_p, *weights)

    return out.T[:B]                                      # (B, n_classes)


def lstm_reference(x, params):
    """Pure-JAX reference matching PyTorch nn.LSTM(2 layers) + Linear (eval)."""
    (wih1, whh1, bih1, bhh1, wih2, whh2, bih2, bhh2, wfc, bfc) = params
    B, T, D = x.shape
    H = whh1.shape[1]

    def cell(x_t, h, c, wih, whh, b):
        g = x_t @ wih.T + h @ whh.T + b                   # (B, 4H)
        ig = jax.nn.sigmoid(g[:, 0 * H:1 * H])
        fg = jax.nn.sigmoid(g[:, 1 * H:2 * H])
        gg = jnp.tanh(g[:, 2 * H:3 * H])
        og = jax.nn.sigmoid(g[:, 3 * H:4 * H])
        c = fg * c + ig * gg
        h = og * jnp.tanh(c)
        return h, c

    h1 = c1 = jnp.zeros((B, H), F32)
    h2 = c2 = jnp.zeros((B, H), F32)
    b1 = bih1 + bhh1
    b2 = bih2 + bhh2
    for t in range(T):
        h1, c1 = cell(x[:, t], h1, c1, wih1, whh1, b1)
        h2, c2 = cell(h1, h2, c2, wih2, whh2, b2)
    return h2 @ wfc.T + bfc


if __name__ == "__main__":
    B, T, D, H, C = 2, 8, 4, 32, 2
    keys = jax.random.split(jax.random.PRNGKey(0), 11)
    s = 0.1
    x = jax.random.normal(keys[0], (B, T, D), F32)
    wih1 = jax.random.normal(keys[1], (4 * H, D), F32) * s
    whh1 = jax.random.normal(keys[2], (4 * H, H), F32) * s
    bih1 = jax.random.normal(keys[3], (4 * H,), F32) * s
    bhh1 = jax.random.normal(keys[4], (4 * H,), F32) * s
    wih2 = jax.random.normal(keys[5], (4 * H, H), F32) * s
    whh2 = jax.random.normal(keys[6], (4 * H, H), F32) * s
    bih2 = jax.random.normal(keys[7], (4 * H,), F32) * s
    bhh2 = jax.random.normal(keys[8], (4 * H,), F32) * s
    wfc = jax.random.normal(keys[9], (C, H), F32) * s
    bfc = jax.random.normal(keys[10], (C,), F32) * s
    params = (wih1, whh1, bih1, bhh1, wih2, whh2, bih2, bhh2, wfc, bfc)

    out = jax.block_until_ready(lstm_forward(x, params))
    ref = jax.block_until_ready(lstm_reference(x, params))
    assert out.shape == (B, C), out.shape
    assert jnp.allclose(out, ref, rtol=2e-2, atol=2e-2), (out, ref)
    print("KERNEL_OK")
</pallas_src>

<mosaic_0001>
module attributes {stable_mosaic.version = 11 : i64} {
  func.func @lstm_kernel(%arg0: i32, %arg1: memref<1x4x1024xbf16, #tpu.memory_space<vmem>>, %arg2: memref<128x4xbf16, #tpu.memory_space<vmem>>, %arg3: memref<128x32xf32, #tpu.memory_space<vmem>>, %arg4: memref<128x1xf32, #tpu.memory_space<vmem>>, %arg5: memref<128x32xf32, #tpu.memory_space<vmem>>, %arg6: memref<128x32xf32, #tpu.memory_space<vmem>>, %arg7: memref<128x1xf32, #tpu.memory_space<vmem>>, %arg8: memref<2x32xf32, #tpu.memory_space<vmem>>, %arg9: memref<2x1xf32, #tpu.memory_space<vmem>>, %arg10: memref<2x128xf32, #tpu.memory_space<vmem>>, %arg11: memref<128x1024xf32, #tpu.memory_space<vmem>>, %arg12: memref<32x1024xf32, #tpu.memory_space<vmem>>) attributes {dimension_semantics = [#tpu.dimension_semantics<parallel>], iteration_bounds = array<i64: 1>, scalar_prefetch = 0 : i64, scratch_operands = 2 : i64, tpu.core_type = #tpu.core_type<tc>, window_params = [{transform_indices = @transform_0, window_bounds = array<i64: 1, 4, 1024>}, {pipeline_mode = #tpu.pipeline_mode<synchronous>, transform_indices = @transform_1, window_bounds = array<i64: 128, 4>}, {pipeline_mode = #tpu.pipeline_mode<synchronous>, transform_indices = @transform_2, window_bounds = array<i64: 128, 32>}, {pipeline_mode = #tpu.pipeline_mode<synchronous>, transform_indices = @transform_3, window_bounds = array<i64: 128, 1>}, {pipeline_mode = #tpu.pipeline_mode<synchronous>, transform_indices = @transform_4, window_bounds = array<i64: 128, 32>}, {pipeline_mode = #tpu.pipeline_mode<synchronous>, transform_indices = @transform_5, window_bounds = array<i64: 128, 32>}, {pipeline_mode = #tpu.pipeline_mode<synchronous>, transform_indices = @transform_6, window_bounds = array<i64: 128, 1>}, {pipeline_mode = #tpu.pipeline_mode<synchronous>, transform_indices = @transform_7, window_bounds = array<i64: 2, 32>}, {pipeline_mode = #tpu.pipeline_mode<synchronous>, transform_indices = @transform_8, window_bounds = array<i64: 2, 1>}, {transform_indices = @transform_9, window_bounds = array<i64: 2, 128>}]} {
    %c0 = arith.constant 0 : index
    %c0_0 = arith.constant 0 : index
    %c0_1 = arith.constant 0 : index
    %0 = vector.load %arg1[%c0, %c0_0, %c0_1] : memref<1x4x1024xbf16, #tpu.memory_space<vmem>>, vector<1x4x1024xbf16>
    %1 = vector.shape_cast %0 : vector<1x4x1024xbf16> to vector<4x1024xbf16>
    %c0_2 = arith.constant 0 : index
    %c0_3 = arith.constant 0 : index
    %2 = vector.load %arg2[%c0_2, %c0_3] : memref<128x4xbf16, #tpu.memory_space<vmem>>, vector<128x4xbf16>
    %cst = arith.constant dense<0.000000e+00> : vector<128x1024xf32>
    %3 = tpu.matmul %2, %1, %cst {dimension_numbers = #tpu.dot_dimension_numbers<[1], [0], [0], [1], [0, 0, 1, 1], [], []>} : vector<128x4xbf16>, vector<4x1024xbf16>, vector<128x1024xf32> -> vector<128x1024xf32>
    %c0_4 = arith.constant 0 : index
    %c0_5 = arith.constant 0 : index
    %4 = vector.load %arg4[%c0_4, %c0_5] : memref<128x1xf32, #tpu.memory_space<vmem>>, vector<128x1xf32>
    %5 = vector.broadcast %4 : vector<128x1xf32> to vector<128x1024xf32>
    %6 = arith.addf %3, %5 : vector<128x1024xf32>
    %c0_6 = arith.constant 0 : index
    %c0_7 = arith.constant 0 : index
    %7 = vector.load %arg11[%c0_6, %c0_7] : memref<128x1024xf32, #tpu.memory_space<vmem>>, vector<128x1024xf32>
    tpu.vector_store %arg11[%c0_6, %c0_7], %6 {strides = array<i32>} : memref<128x1024xf32, #tpu.memory_space<vmem>>, vector<128x1024xf32>,
    %cst_8 = arith.constant 0.000000e+00 : f32
    %8 = vector.broadcast %cst_8 : f32 to vector<32x128xf32>
    %cst_9 = arith.constant 0.000000e+00 : f32
    %9 = vector.broadcast %cst_9 : f32 to vector<32x128xf32>
    %c0_10 = arith.constant 0 : index
    %c0_11 = arith.constant 0 : index
    %10 = vector.load %arg11[%c0_10, %c0_11] : memref<128x1024xf32, #tpu.memory_space<vmem>>, vector<128x128xf32>
    %c0_12 = arith.constant 0 : index
    %c0_13 = arith.constant 0 : index
    %11 = vector.load %arg3[%c0_12, %c0_13] : memref<128x32xf32, #tpu.memory_space<vmem>>, vector<128x32xf32>
    %cst_14 = arith.constant dense<0.000000e+00> : vector<128x128xf32>
    %12 = tpu.matmul %11, %8, %cst_14 {dimension_numbers = #tpu.dot_dimension_numbers<[1], [0], [0], [1], [0, 0, 1, 1], [], []>} : vector<128x32xf32>, vector<32x128xf32>, vector<128x128xf32> -> vector<128x128xf32>
    %13 = arith.addf %10, %12 : vector<128x128xf32>
    %14 = vector.extract_strided_slice %13 {offsets = [0, 0], sizes = [32, 128], strides = [1, 1]} : vector<128x128xf32> to vector<32x128xf32>
    %cst_15 = arith.constant 5.000000e-01 : f32
    %15 = vector.broadcast %cst_15 : f32 to vector<32x128xf32>
    %16 = arith.mulf %15, %14 : vector<32x128xf32>
    %17 = math.tanh %16 : vector<32x128xf32>
    %cst_16 = arith.constant 5.000000e-01 : f32
    %18 = vector.broadcast %cst_16 : f32 to vector<32x128xf32>
    %19 = arith.mulf %18, %17 : vector<32x128xf32>
    %cst_17 = arith.constant 5.000000e-01 : f32
    %20 = vector.broadcast %cst_17 : f32 to vector<32x128xf32>
    %21 = arith.addf %19, %20 : vector<32x128xf32>
    %22 = vector.extract_strided_slice %13 {offsets = [32, 0], sizes = [32, 128], strides = [1, 1]} : vector<128x128xf32> to vector<32x128xf32>
    %cst_18 = arith.constant 5.000000e-01 : f32
    %23 = vector.broadcast %cst_18 : f32 to vector<32x128xf32>
    %24 = arith.mulf %23, %22 : vector<32x128xf32>
    %25 = math.tanh %24 : vector<32x128xf32>
    %cst_19 = arith.constant 5.000000e-01 : f32
    %26 = vector.broadcast %cst_19 : f32 to vector<32x128xf32>
    %27 = arith.mulf %26, %25 : vector<32x128xf32>
    %cst_20 = arith.constant 5.000000e-01 : f32
    %28 = vector.broadcast %cst_20 : f32 to vector<32x128xf32>
    %29 = arith.addf %27, %28 : vector<32x128xf32>
    %30 = vector.extract_strided_slice %13 {offsets = [64, 0], sizes = [32, 128], strides = [1, 1]} : vector<128x128xf32> to vector<32x128xf32>
    %31 = math.tanh %30 : vector<32x128xf32>
    %32 = vector.extract_strided_slice %13 {offsets = [96, 0], sizes = [32, 128], strides = [1, 1]} : vector<128x128xf32> to vector<32x128xf32>
    %cst_21 = arith.constant 5.000000e-01 : f32
    %33 = vector.broadcast %cst_21 : f32 to vector<32x128xf32>
    %34 = arith.mulf %33, %32 : vector<32x128xf32>
    %35 = math.tanh %34 : vector<32x128xf32>
    %cst_22 = arith.constant 5.000000e-01 : f32
    %36 = vector.broadcast %cst_22 : f32 to vector<32x128xf32>
    %37 = arith.mulf %36, %35 : vector<32x128xf32>
    %cst_23 = arith.constant 5.000000e-01 : f32
    %38 = vector.broadcast %cst_23 : f32 to vector<32x128xf32>
    %39 = arith.addf %37, %38 : vector<32x128xf32>
    %40 = arith.mulf %29, %9 : vector<32x128xf32>
    %41 = arith.mulf %21, %31 : vector<32x128xf32>
    %42 = arith.addf %40, %41 : vector<32x128xf32>
    %43 = math.tanh %42 : vector<32x128xf32>
    %44 = arith.mulf %39, %43 : vector<32x128xf32>
    %c0_24 = arith.constant 0 : index
    %c0_25 = arith.constant 0 : index
    %45 = vector.load %arg12[%c0_24, %c0_25] : memref<32x1024xf32, #tpu.memory_space<vmem>>, vector<32x128xf32>
    tpu.vector_store %arg12[%c0_24, %c0_25], %44 {strides = array<i32>} : memref<32x1024xf32, #tpu.memory_space<vmem>>, vector<32x128xf32>,
    %c0_26 = arith.constant 0 : index
    %c128 = arith.constant 128 : index
    %46 = vector.load %arg11[%c0_26, %c128] : memref<128x1024xf32, #tpu.memory_space<vmem>>, vector<128x128xf32>
    %c0_27 = arith.constant 0 : index
    %c0_28 = arith.constant 0 : index
    %47 = vector.load %arg3[%c0_27, %c0_28] : memref<128x32xf32, #tpu.memory_space<vmem>>, vector<128x32xf32>
    %cst_29 = arith.constant dense<0.000000e+00> : vector<128x128xf32>
    %48 = tpu.matmul %47, %44, %cst_29 {dimension_numbers = #tpu.dot_dimension_numbers<[1], [0], [0], [1], [0, 0, 1, 1], [], []>} : vector<128x32xf32>, vector<32x128xf32>, vector<128x128xf32> -> vector<128x128xf32>
    %49 = arith.addf %46, %48 : vector<128x128xf32>
    %50 = vector.extract_strided_slice %49 {offsets = [0, 0], sizes = [32, 128], strides = [1, 1]} : vector<128x128xf32> to vector<32x128xf32>
    %cst_30 = arith.constant 5.000000e-01 : f32
    %51 = vector.broadcast %cst_30 : f32 to vector<32x128xf32>
    %52 = arith.mulf %51, %50 : vector<32x128xf32>
    %53 = math.tanh %52 : vector<32x128xf32>
    %cst_31 = arith.constant 5.000000e-01 : f32
    %54 = vector.broadcast %cst_31 : f32 to vector<32x128xf32>
    %55 = arith.mulf %54, %53 : vector<32x128xf32>
    %cst_32 = arith.constant 5.000000e-01 : f32
    %56 = vector.broadcast %cst_32 : f32 to vector<32x128xf32>
    %57 = arith.addf %55, %56 : vector<32x128xf32>
    %58 = vector.extract_strided_slice %49 {offsets = [32, 0], sizes = [32, 128], strides = [1, 1]} : vector<128x128xf32> to vector<32x128xf32>
    %cst_33 = arith.constant 5.000000e-01 : f32
    %59 = vector.broadcast %cst_33 : f32 to vector<32x128xf32>
    %60 = arith.mulf %59, %58 : vector<32x128xf32>
    %61 = math.tanh %60 : vector<32x128xf32>
    %cst_34 = arith.constant 5.000000e-01 : f32
    %62 = vector.broadcast %cst_34 : f32 to vector<32x128xf32>
    %63 = arith.mulf %62, %61 : vector<32x128xf32>
    %cst_35 = arith.constant 5.000000e-01 : f32
    %64 = vector.broadcast %cst_35 : f32 to vector<32x128xf32>
    %65 = arith.addf %63, %64 : vector<32x128xf32>
    %66 = vector.extract_strided_slice %49 {offsets = [64, 0], sizes = [32, 128], strides = [1, 1]} : vector<128x128xf32> to vector<32x128xf32>
    %67 = math.tanh %66 : vector<32x128xf32>
    %68 = vector.extract_strided_slice %49 {offsets = [96, 0], sizes = [32, 128], strides = [1, 1]} : vector<128x128xf32> to vector<32x128xf32>
    %cst_36 = arith.constant 5.000000e-01 : f32
    %69 = vector.broadcast %cst_36 : f32 to vector<32x128xf32>
    %70 = arith.mulf %69, %68 : vector<32x128xf32>
    %71 = math.tanh %70 : vector<32x128xf32>
    %cst_37 = arith.constant 5.000000e-01 : f32
    %72 = vector.broadcast %cst_37 : f32 to vector<32x128xf32>
    %73 = arith.mulf %72, %71 : vector<32x128xf32>
    %cst_38 = arith.constant 5.000000e-01 : f32
    %74 = vector.broadcast %cst_38 : f32 to vector<32x128xf32>
    %75 = arith.addf %73, %74 : vector<32x128xf32>
    %76 = arith.mulf %65, %42 : vector<32x128xf32>
    %77 = arith.mulf %57, %67 : vector<32x128xf32>
    %78 = arith.addf %76, %77 : vector<32x128xf32>
    %79 = math.tanh %78 : vector<32x128xf32>
    %80 = arith.mulf %75, %79 : vector<32x128xf32>
    %c0_39 = arith.constant 0 : index
    %c128_40 = arith.constant 128 : index
    %81 = vector.load %arg12[%c0_39, %c128_40] : memref<32x1024xf32, #tpu.memory_space<vmem>>, vector<32x128xf32>
    tpu.vector_store %arg12[%c0_39, %c128_40], %80 {strides = array<i32>} : memref<32x1024xf32, #tpu.memory_space<vmem>>, vector<32x128xf32>,
    %c0_41 = arith.constant 0 : index
    %c256 = arith.constant 256 : index
    %82 = vector.load %arg11[%c0_41, %c256] : memref<128x1024xf32, #tpu.memory_space<vmem>>, vector<128x128xf32>
    %c0_42 = arith.constant 0 : index
    %c0_43 = arith.constant 0 : index
    %83 = vector.load %arg3[%c0_42, %c0_43] : memref<128x32xf32, #tpu.memory_space<vmem>>, vector<128x32xf32>
    %cst_44 = arith.constant dense<0.000000e+00> : vector<128x128xf32>
    %84 = tpu.matmul %83, %80, %cst_44 {dimension_numbers = #tpu.dot_dimension_numbers<[1], [0], [0], [1], [0, 0, 1, 1], [], []>} : vector<128x32xf32>, vector<32x128xf32>, vector<128x128xf32> -> vector<128x128xf32>
    %85 = arith.addf %82, %84 : vector<128x128xf32>
    %86 = vector.extract_strided_slice %85 {offsets = [0, 0], sizes = [32, 128], strides = [1, 1]} : vector<128x128xf32> to vector<32x128xf32>
    %cst_45 = arith.constant 5.000000e-01 : f32
    %87 = vector.broadcast %cst_45 : f32 to vector<32x128xf32>
    %88 = arith.mulf %87, %86 : vector<32x128xf32>
    %89 = math.tanh %88 : vector<32x128xf32>
    %cst_46 = arith.constant 5.000000e-01 : f32
    %90 = vector.broadcast %cst_46 : f32 to vector<32x128xf32>
    %91 = arith.mulf %90, %89 : vector<32x128xf32>
    %cst_47 = arith.constant 5.000000e-01 : f32
    %92 = vector.broadcast %cst_47 : f32 to vector<32x128xf32>
    %93 = arith.addf %91, %92 : vector<32x128xf32>
    %94 = vector.extract_strided_slice %85 {offsets = [32, 0], sizes = [32, 128], strides = [1, 1]} : vector<128x128xf32> to vector<32x128xf32>
    %cst_48 = arith.constant 5.000000e-01 : f32
    %95 = vector.broadcast %cst_48 : f32 to vector<32x128xf32>
    %96 = arith.mulf %95, %94 : vector<32x128xf32>
    %97 = math.tanh %96 : vector<32x128xf32>
    %cst_49 = arith.constant 5.000000e-01 : f32
    %98 = vector.broadcast %cst_49 : f32 to vector<32x128xf32>
    %99 = arith.mulf %98, %97 : vector<32x128xf32>
    %cst_50 = arith.constant 5.000000e-01 : f32
    %100 = vector.broadcast %cst_50 : f32 to vector<32x128xf32>
    %101 = arith.addf %99, %100 : vector<32x128xf32>
    %102 = vector.extract_strided_slice %85 {offsets = [64, 0], sizes = [32, 128], strides = [1, 1]} : vector<128x128xf32> to vector<32x128xf32>
    %103 = math.tanh %102 : vector<32x128xf32>
    %104 = vector.extract_strided_slice %85 {offsets = [96, 0], sizes = [32, 128], strides = [1, 1]} : vector<128x128xf32> to vector<32x128xf32>
    %cst_51 = arith.constant 5.000000e-01 : f32
    %105 = vector.broadcast %cst_51 : f32 to vector<32x128xf32>
    %106 = arith.mulf %105, %104 : vector<32x128xf32>
    %107 = math.tanh %106 : vector<32x128xf32>
    %cst_52 = arith.constant 5.000000e-01 : f32
    %108 = vector.broadcast %cst_52 : f32 to vector<32x128xf32>
    %109 = arith.mulf %108, %107 : vector<32x128xf32>
    %cst_53 = arith.constant 5.000000e-01 : f32
    %110 = vector.broadcast %cst_53 : f32 to vector<32x128xf32>
    %111 = arith.addf %109, %110 : vector<32x128xf32>
    %112 = arith.mulf %101, %78 : vector<32x128xf32>
    %113 = arith.mulf %93, %103 : vector<32x128xf32>
    %114 = arith.addf %112, %113 : vector<32x128xf32>
    %115 = math.tanh %114 : vector<32x128xf32>
    %116 = arith.mulf %111, %115 : vector<32x128xf32>
    %c0_54 = arith.constant 0 : index
    %c256_55 = arith.constant 256 : index
    %117 = vector.load %arg12[%c0_54, %c256_55] : memref<32x1024xf32, #tpu.memory_space<vmem>>, vector<32x128xf32>
    tpu.vector_store %arg12[%c0_54, %c256_55], %116 {strides = array<i32>} : memref<32x1024xf32, #tpu.memory_space<vmem>>, vector<32x128xf32>,
    %c0_56 = arith.constant 0 : index
    %c384 = arith.constant 384 : index
    %118 = vector.load %arg11[%c0_56, %c384] : memref<128x1024xf32, #tpu.memory_space<vmem>>, vector<128x128xf32>
    %c0_57 = arith.constant 0 : index
    %c0_58 = arith.constant 0 : index
    %119 = vector.load %arg3[%c0_57, %c0_58] : memref<128x32xf32, #tpu.memory_space<vmem>>, vector<128x32xf32>
    %cst_59 = arith.constant dense<0.000000e+00> : vector<128x128xf32>
    %120 = tpu.matmul %119, %116, %cst_59 {dimension_numbers = #tpu.dot_dimension_numbers<[1], [0], [0], [1], [0, 0, 1, 1], [], []>} : vector<128x32xf32>, vector<32x128xf32>, vector<128x128xf32> -> vector<128x128xf32>
    %121 = arith.addf %118, %120 : vector<128x128xf32>
    %122 = vector.extract_strided_slice %121 {offsets = [0, 0], sizes = [32, 128], strides = [1, 1]} : vector<128x128xf32> to vector<32x128xf32>
    %cst_60 = arith.constant 5.000000e-01 : f32
    %123 = vector.broadcast %cst_60 : f32 to vector<32x128xf32>
    %124 = arith.mulf %123, %122 : vector<32x128xf32>
    %125 = math.tanh %124 : vector<32x128xf32>
    %cst_61 = arith.constant 5.000000e-01 : f32
    %126 = vector.broadcast %cst_61 : f32 to vector<32x128xf32>
    %127 = arith.mulf %126, %125 : vector<32x128xf32>
    %cst_62 = arith.constant 5.000000e-01 : f32
    %128 = vector.broadcast %cst_62 : f32 to vector<32x128xf32>
    %129 = arith.addf %127, %128 : vector<32x128xf32>
    %130 = vector.extract_strided_slice %121 {offsets = [32, 0], sizes = [32, 128], strides = [1, 1]} : vector<128x128xf32> to vector<32x128xf32>
    %cst_63 = arith.constant 5.000000e-01 : f32
    %131 = vector.broadcast %cst_63 : f32 to vector<32x128xf32>
    %132 = arith.mulf %131, %130 : vector<32x128xf32>
    %133 = math.tanh %132 : vector<32x128xf32>
    %cst_64 = arith.constant 5.000000e-01 : f32
    %134 = vector.broadcast %cst_64 : f32 to vector<32x128xf32>
    %135 = arith.mulf %134, %133 : vector<32x128xf32>
    %cst_65 = arith.constant 5.000000e-01 : f32
    %136 = vector.broadcast %cst_65 : f32 to vector<32x128xf32>
    %137 = arith.addf %135, %136 : vector<32x128xf32>
    %138 = vector.extract_strided_slice %121 {offsets = [64, 0], sizes = [32, 128], strides = [1, 1]} : vector<128x128xf32> to vector<32x128xf32>
    %139 = math.tanh %138 : vector<32x128xf32>
    %140 = vector.extract_strided_slice %121 {offsets = [96, 0], sizes = [32, 128], strides = [1, 1]} : vector<128x128xf32> to vector<32x128xf32>
    %cst_66 = arith.constant 5.000000e-01 : f32
    %141 = vector.broadcast %cst_66 : f32 to vector<32x128xf32>
    %142 = arith.mulf %141, %140 : vector<32x128xf32>
    %143 = math.tanh %142 : vector<32x128xf32>
    %cst_67 = arith.constant 5.000000e-01 : f32
    %144 = vector.broadcast %cst_67 : f32 to vector<32x128xf32>
    %145 = arith.mulf %144, %143 : vector<32x128xf32>
    %cst_68 = arith.constant 5.000000e-01 : f32
    %146 = vector.broadcast %cst_68 : f32 to vector<32x128xf32>
    %147 = arith.addf %145, %146 : vector<32x128xf32>
    %148 = arith.mulf %137, %114 : vector<32x128xf32>
    %149 = arith.mulf %129, %139 : vector<32x128xf32>
    %150 = arith.addf %148, %149 : vector<32x128xf32>
    %151 = math.tanh %150 : vector<32x128xf32>
    %152 = arith.mulf %147, %151 : vector<32x128xf32>
    %c0_69 = arith.constant 0 : index
    %c384_70 = arith.constant 384 : index
    %153 = vector.load %arg12[%c0_69, %c384_70] : memref<32x1024xf32, #tpu.memory_space<vmem>>, vector<32x128xf32>
    tpu.vector_store %arg12[%c0_69, %c384_70], %152 {strides = array<i32>} : memref<32x1024xf32, #tpu.memory_space<vmem>>, vector<32x128xf32>,
    %c0_71 = arith.constant 0 : index
    %c512 = arith.constant 512 : index
    %154 = vector.load %arg11[%c0_71, %c512] : memref<128x1024xf32, #tpu.memory_space<vmem>>, vector<128x128xf32>
    %c0_72 = arith.constant 0 : index
    %c0_73 = arith.constant 0 : index
    %155 = vector.load %arg3[%c0_72, %c0_73] : memref<128x32xf32, #tpu.memory_space<vmem>>, vector<128x32xf32>
    %cst_74 = arith.constant dense<0.000000e+00> : vector<128x128xf32>
    %156 = tpu.matmul %155, %152, %cst_74 {dimension_numbers = #tpu.dot_dimension_numbers<[1], [0], [0], [1], [0, 0, 1, 1], [], []>} : vector<128x32xf32>, vector<32x128xf32>, vector<128x128xf32> -> vector<128x128xf32>
    %157 = arith.addf %154, %156 : vector<128x128xf32>
    %158 = vector.extract_strided_slice %157 {offsets = [0, 0], sizes = [32, 128], strides = [1, 1]} : vector<128x128xf32> to vector<32x128xf32>
    %cst_75 = arith.constant 5.000000e-01 : f32
    %159 = vector.broadcast %cst_75 : f32 to vector<32x128xf32>
    %160 = arith.mulf %159, %158 : vector<32x128xf32>
    %161 = math.tanh %160 : vector<32x128xf32>
    %cst_76 = arith.constant 5.000000e-01 : f32
    %162 = vector.broadcast %cst_76 : f32 to vector<32x128xf32>
    %163 = arith.mulf %162, %161 : vector<32x128xf32>
    %cst_77 = arith.constant 5.000000e-01 : f32
    %164 = vector.broadcast %cst_77 : f32 to vector<32x128xf32>
    %165 = arith.addf %163, %164 : vector<32x128xf32>
    %166 = vector.extract_strided_slice %157 {offsets = [32, 0], sizes = [32, 128], strides = [1, 1]} : vector<128x128xf32> to vector<32x128xf32>
    %cst_78 = arith.constant 5.000000e-01 : f32
    %167 = vector.broadcast %cst_78 : f32 to vector<32x128xf32>
    %168 = arith.mulf %167, %166 : vector<32x128xf32>
    %169 = math.tanh %168 : vector<32x128xf32>
    %cst_79 = arith.constant 5.000000e-01 : f32
    %170 = vector.broadcast %cst_79 : f32 to vector<32x128xf32>
    %171 = arith.mulf %170, %169 : vector<32x128xf32>
    %cst_80 = arith.constant 5.000000e-01 : f32
    %172 = vector.broadcast %cst_80 : f32 to vector<32x128xf32>
    %173 = arith.addf %171, %172 : vector<32x128xf32>
    %174 = vector.extract_strided_slice %157 {offsets = [64, 0], sizes = [32, 128], strides = [1, 1]} : vector<128x128xf32> to vector<32x128xf32>
    %175 = math.tanh %174 : vector<32x128xf32>
    %176 = vector.extract_strided_slice %157 {offsets = [96, 0], sizes = [32, 128], strides = [1, 1]} : vector<128x128xf32> to vector<32x128xf32>
    %cst_81 = arith.constant 5.000000e-01 : f32
    %177 = vector.broadcast %cst_81 : f32 to vector<32x128xf32>
    %178 = arith.mulf %177, %176 : vector<32x128xf32>
    %179 = math.tanh %178 : vector<32x128xf32>
    %cst_82 = arith.constant 5.000000e-01 : f32
    %180 = vector.broadcast %cst_82 : f32 to vector<32x128xf32>
    %181 = arith.mulf %180, %179 : vector<32x128xf32>
    %cst_83 = arith.constant 5.000000e-01 : f32
    %182 = vector.broadcast %cst_83 : f32 to vector<32x128xf32>
    %183 = arith.addf %181, %182 : vector<32x128xf32>
    %184 = arith.mulf %173, %150 : vector<32x128xf32>
    %185 = arith.mulf %165, %175 : vector<32x128xf32>
    %186 = arith.addf %184, %185 : vector<32x128xf32>
    %187 = math.tanh %186 : vector<32x128xf32>
    %188 = arith.mulf %183, %187 : vector<32x128xf32>
    %c0_84 = arith.constant 0 : index
    %c512_85 = arith.constant 512 : index
    %189 = vector.load %arg12[%c0_84, %c512_85] : memref<32x1024xf32, #tpu.memory_space<vmem>>, vector<32x128xf32>
    tpu.vector_store %arg12[%c0_84, %c512_85], %188 {strides = array<i32>} : memref<32x1024xf32, #tpu.memory_space<vmem>>, vector<32x128xf32>,
    %c0_86 = arith.constant 0 : index
    %c640 = arith.constant 640 : index
    %190 = vector.load %arg11[%c0_86, %c640] : memref<128x1024xf32, #tpu.memory_space<vmem>>, vector<128x128xf32>
    %c0_87 = arith.constant 0 : index
    %c0_88 = arith.constant 0 : index
    %191 = vector.load %arg3[%c0_87, %c0_88] : memref<128x32xf32, #tpu.memory_space<vmem>>, vector<128x32xf32>
    %cst_89 = arith.constant dense<0.000000e+00> : vector<128x128xf32>
    %192 = tpu.matmul %191, %188, %cst_89 {dimension_numbers = #tpu.dot_dimension_numbers<[1], [0], [0], [1], [0, 0, 1, 1], [], []>} : vector<128x32xf32>, vector<32x128xf32>, vector<128x128xf32> -> vector<128x128xf32>
    %193 = arith.addf %190, %192 : vector<128x128xf32>
    %194 = vector.extract_strided_slice %193 {offsets = [0, 0], sizes = [32, 128], strides = [1, 1]} : vector<128x128xf32> to vector<32x128xf32>
    %cst_90 = arith.constant 5.000000e-01 : f32
    %195 = vector.broadcast %cst_90 : f32 to vector<32x128xf32>
    %196 = arith.mulf %195, %194 : vector<32x128xf32>
    %197 = math.tanh %196 : vector<32x128xf32>
    %cst_91 = arith.constant 5.000000e-01 : f32
    %198 = vector.broadcast %cst_91 : f32 to vector<32x128xf32>
    %199 = arith.mulf %198, %197 : vector<32x128xf32>
    %cst_92 = arith.constant 5.000000e-01 : f32
    %200 = vector.broadcast %cst_92 : f32 to vector<32x128xf32>
    %201 = arith.addf %199, %200 : vector<32x128xf32>
    %202 = vector.extract_strided_slice %193 {offsets = [32, 0], sizes = [32, 128], strides = [1, 1]} : vector<128x128xf32> to vector<32x128xf32>
    %cst_93 = arith.constant 5.000000e-01 : f32
    %203 = vector.broadcast %cst_93 : f32 to vector<32x128xf32>
    %204 = arith.mulf %203, %202 : vector<32x128xf32>
    %205 = math.tanh %204 : vector<32x128xf32>
    %cst_94 = arith.constant 5.000000e-01 : f32
    %206 = vector.broadcast %cst_94 : f32 to vector<32x128xf32>
    %207 = arith.mulf %206, %205 : vector<32x128xf32>
    %cst_95 = arith.constant 5.000000e-01 : f32
    %208 = vector.broadcast %cst_95 : f32 to vector<32x128xf32>
    %209 = arith.addf %207, %208 : vector<32x128xf32>
    %210 = vector.extract_strided_slice %193 {offsets = [64, 0], sizes = [32, 128], strides = [1, 1]} : vector<128x128xf32> to vector<32x128xf32>
    %211 = math.tanh %210 : vector<32x128xf32>
    %212 = vector.extract_strided_slice %193 {offsets = [96, 0], sizes = [32, 128], strides = [1, 1]} : vector<128x128xf32> to vector<32x128xf32>
    %cst_96 = arith.constant 5.000000e-01 : f32
    %213 = vector.broadcast %cst_96 : f32 to vector<32x128xf32>
    %214 = arith.mulf %213, %212 : vector<32x128xf32>
    %215 = math.tanh %214 : vector<32x128xf32>
    %cst_97 = arith.constant 5.000000e-01 : f32
    %216 = vector.broadcast %cst_97 : f32 to vector<32x128xf32>
    %217 = arith.mulf %216, %215 : vector<32x128xf32>
    %cst_98 = arith.constant 5.000000e-01 : f32
    %218 = vector.broadcast %cst_98 : f32 to vector<32x128xf32>
    %219 = arith.addf %217, %218 : vector<32x128xf32>
    %220 = arith.mulf %209, %186 : vector<32x128xf32>
    %221 = arith.mulf %201, %211 : vector<32x128xf32>
    %222 = arith.addf %220, %221 : vector<32x128xf32>
    %223 = math.tanh %222 : vector<32x128xf32>
    %224 = arith.mulf %219, %223 : vector<32x128xf32>
    %c0_99 = arith.constant 0 : index
    %c640_100 = arith.constant 640 : index
    %225 = vector.load %arg12[%c0_99, %c640_100] : memref<32x1024xf32, #tpu.memory_space<vmem>>, vector<32x128xf32>
    tpu.vector_store %arg12[%c0_99, %c640_100], %224 {strides = array<i32>} : memref<32x1024xf32, #tpu.memory_space<vmem>>, vector<32x128xf32>,
    %c0_101 = arith.constant 0 : index
    %c768 = arith.constant 768 : index
    %226 = vector.load %arg11[%c0_101, %c768] : memref<128x1024xf32, #tpu.memory_space<vmem>>, vector<128x128xf32>
    %c0_102 = arith.constant 0 : index
    %c0_103 = arith.constant 0 : index
    %227 = vector.load %arg3[%c0_102, %c0_103] : memref<128x32xf32, #tpu.memory_space<vmem>>, vector<128x32xf32>
    %cst_104 = arith.constant dense<0.000000e+00> : vector<128x128xf32>
    %228 = tpu.matmul %227, %224, %cst_104 {dimension_numbers = #tpu.dot_dimension_numbers<[1], [0], [0], [1], [0, 0, 1, 1], [], []>} : vector<128x32xf32>, vector<32x128xf32>, vector<128x128xf32> -> vector<128x128xf32>
    %229 = arith.addf %226, %228 : vector<128x128xf32>
    %230 = vector.extract_strided_slice %229 {offsets = [0, 0], sizes = [32, 128], strides = [1, 1]} : vector<128x128xf32> to vector<32x128xf32>
    %cst_105 = arith.constant 5.000000e-01 : f32
    %231 = vector.broadcast %cst_105 : f32 to vector<32x128xf32>
    %232 = arith.mulf %231, %230 : vector<32x128xf32>
    %233 = math.tanh %232 : vector<32x128xf32>
    %cst_106 = arith.constant 5.000000e-01 : f32
    %234 = vector.broadcast %cst_106 : f32 to vector<32x128xf32>
    %235 = arith.mulf %234, %233 : vector<32x128xf32>
    %cst_107 = arith.constant 5.000000e-01 : f32
    %236 = vector.broadcast %cst_107 : f32 to vector<32x128xf32>
    %237 = arith.addf %235, %236 : vector<32x128xf32>
    %238 = vector.extract_strided_slice %229 {offsets = [32, 0], sizes = [32, 128], strides = [1, 1]} : vector<128x128xf32> to vector<32x128xf32>
    %cst_108 = arith.constant 5.000000e-01 : f32
    %239 = vector.broadcast %cst_108 : f32 to vector<32x128xf32>
    %240 = arith.mulf %239, %238 : vector<32x128xf32>
    %241 = math.tanh %240 : vector<32x128xf32>
    %cst_109 = arith.constant 5.000000e-01 : f32
    %242 = vector.broadcast %cst_109 : f32 to vector<32x128xf32>
    %243 = arith.mulf %242, %241 : vector<32x128xf32>
    %cst_110 = arith.constant 5.000000e-01 : f32
    %244 = vector.broadcast %cst_110 : f32 to vector<32x128xf32>
    %245 = arith.addf %243, %244 : vector<32x128xf32>
    %246 = vector.extract_strided_slice %229 {offsets = [64, 0], sizes = [32, 128], strides = [1, 1]} : vector<128x128xf32> to vector<32x128xf32>
    %247 = math.tanh %246 : vector<32x128xf32>
    %248 = vector.extract_strided_slice %229 {offsets = [96, 0], sizes = [32, 128], strides = [1, 1]} : vector<128x128xf32> to vector<32x128xf32>
    %cst_111 = arith.constant 5.000000e-01 : f32
    %249 = vector.broadcast %cst_111 : f32 to vector<32x128xf32>
    %250 = arith.mulf %249, %248 : vector<32x128xf32>
    %251 = math.tanh %250 : vector<32x128xf32>
    %cst_112 = arith.constant 5.000000e-01 : f32
    %252 = vector.broadcast %cst_112 : f32 to vector<32x128xf32>
    %253 = arith.mulf %252, %251 : vector<32x128xf32>
    %cst_113 = arith.constant 5.000000e-01 : f32
    %254 = vector.broadcast %cst_113 : f32 to vector<32x128xf32>
    %255 = arith.addf %253, %254 : vector<32x128xf32>
    %256 = arith.mulf %245, %222 : vector<32x128xf32>
    %257 = arith.mulf %237, %247 : vector<32x128xf32>
    %258 = arith.addf %256, %257 : vector<32x128xf32>
    %259 = math.tanh %258 : vector<32x128xf32>
    %260 = arith.mulf %255, %259 : vector<32x128xf32>
    %c0_114 = arith.constant 0 : index
    %c768_115 = arith.constant 768 : index
    %261 = vector.load %arg12[%c0_114, %c768_115] : memref<32x1024xf32, #tpu.memory_space<vmem>>, vector<32x128xf32>
    tpu.vector_store %arg12[%c0_114, %c768_115], %260 {strides = array<i32>} : memref<32x1024xf32, #tpu.memory_space<vmem>>, vector<32x128xf32>,
    %c0_116 = arith.constant 0 : index
    %c896 = arith.constant 896 : index
    %262 = vector.load %arg11[%c0_116, %c896] : memref<128x1024xf32, #tpu.memory_space<vmem>>, vector<128x128xf32>
    %c0_117 = arith.constant 0 : index
    %c0_118 = arith.constant 0 : index
    %263 = vector.load %arg3[%c0_117, %c0_118] : memref<128x32xf32, #tpu.memory_space<vmem>>, vector<128x32xf32>
    %cst_119 = arith.constant dense<0.000000e+00> : vector<128x128xf32>
    %264 = tpu.matmul %263, %260, %cst_119 {dimension_numbers = #tpu.dot_dimension_numbers<[1], [0], [0], [1], [0, 0, 1, 1], [], []>} : vector<128x32xf32>, vector<32x128xf32>, vector<128x128xf32> -> vector<128x128xf32>
    %265 = arith.addf %262, %264 : vector<128x128xf32>
    %266 = vector.extract_strided_slice %265 {offsets = [0, 0], sizes = [32, 128], strides = [1, 1]} : vector<128x128xf32> to vector<32x128xf32>
    %cst_120 = arith.constant 5.000000e-01 : f32
    %267 = vector.broadcast %cst_120 : f32 to vector<32x128xf32>
    %268 = arith.mulf %267, %266 : vector<32x128xf32>
    %269 = math.tanh %268 : vector<32x128xf32>
    %cst_121 = arith.constant 5.000000e-01 : f32
    %270 = vector.broadcast %cst_121 : f32 to vector<32x128xf32>
    %271 = arith.mulf %270, %269 : vector<32x128xf32>
    %cst_122 = arith.constant 5.000000e-01 : f32
    %272 = vector.broadcast %cst_122 : f32 to vector<32x128xf32>
    %273 = arith.addf %271, %272 : vector<32x128xf32>
    %274 = vector.extract_strided_slice %265 {offsets = [32, 0], sizes = [32, 128], strides = [1, 1]} : vector<128x128xf32> to vector<32x128xf32>
    %cst_123 = arith.constant 5.000000e-01 : f32
    %275 = vector.broadcast %cst_123 : f32 to vector<32x128xf32>
    %276 = arith.mulf %275, %274 : vector<32x128xf32>
    %277 = math.tanh %276 : vector<32x128xf32>
    %cst_124 = arith.constant 5.000000e-01 : f32
    %278 = vector.broadcast %cst_124 : f32 to vector<32x128xf32>
    %279 = arith.mulf %278, %277 : vector<32x128xf32>
    %cst_125 = arith.constant 5.000000e-01 : f32
    %280 = vector.broadcast %cst_125 : f32 to vector<32x128xf32>
    %281 = arith.addf %279, %280 : vector<32x128xf32>
    %282 = vector.extract_strided_slice %265 {offsets = [64, 0], sizes = [32, 128], strides = [1, 1]} : vector<128x128xf32> to vector<32x128xf32>
    %283 = math.tanh %282 : vector<32x128xf32>
    %284 = vector.extract_strided_slice %265 {offsets = [96, 0], sizes = [32, 128], strides = [1, 1]} : vector<128x128xf32> to vector<32x128xf32>
    %cst_126 = arith.constant 5.000000e-01 : f32
    %285 = vector.broadcast %cst_126 : f32 to vector<32x128xf32>
    %286 = arith.mulf %285, %284 : vector<32x128xf32>
    %287 = math.tanh %286 : vector<32x128xf32>
    %cst_127 = arith.constant 5.000000e-01 : f32
    %288 = vector.broadcast %cst_127 : f32 to vector<32x128xf32>
    %289 = arith.mulf %288, %287 : vector<32x128xf32>
    %cst_128 = arith.constant 5.000000e-01 : f32
    %290 = vector.broadcast %cst_128 : f32 to vector<32x128xf32>
    %291 = arith.addf %289, %290 : vector<32x128xf32>
    %292 = arith.mulf %281, %258 : vector<32x128xf32>
    %293 = arith.mulf %273, %283 : vector<32x128xf32>
    %294 = arith.addf %292, %293 : vector<32x128xf32>
    %295 = math.tanh %294 : vector<32x128xf32>
    %296 = arith.mulf %291, %295 : vector<32x128xf32>
    %c0_129 = arith.constant 0 : index
    %c896_130 = arith.constant 896 : index
    %297 = vector.load %arg12[%c0_129, %c896_130] : memref<32x1024xf32, #tpu.memory_space<vmem>>, vector<32x128xf32>
    tpu.vector_store %arg12[%c0_129, %c896_130], %296 {strides = array<i32>} : memref<32x1024xf32, #tpu.memory_space<vmem>>, vector<32x128xf32>,
    %c0_131 = arith.constant 0 : index
    %c0_132 = arith.constant 0 : index
    %298 = vector.load %arg5[%c0_131, %c0_132] : memref<128x32xf32, #tpu.memory_space<vmem>>, vector<128x32xf32>
    %c0_133 = arith.constant 0 : index
    %c0_134 = arith.constant 0 : index
    %299 = vector.load %arg12[%c0_133, %c0_134] : memref<32x1024xf32, #tpu.memory_space<vmem>>, vector<32x1024xf32>
    %cst_135 = arith.constant dense<0.000000e+00> : vector<128x1024xf32>
    %300 = tpu.matmul %298, %299, %cst_135 {dimension_numbers = #tpu.dot_dimension_numbers<[1], [0], [0], [1], [0, 0, 1, 1], [], []>} : vector<128x32xf32>, vector<32x1024xf32>, vector<128x1024xf32> -> vector<128x1024xf32>
    %c0_136 = arith.constant 0 : index
    %c0_137 = arith.constant 0 : index
    %301 = vector.load %arg7[%c0_136, %c0_137] : memref<128x1xf32, #tpu.memory_space<vmem>>, vector<128x1xf32>
    %302 = vector.broadcast %301 : vector<128x1xf32> to vector<128x1024xf32>
    %303 = arith.addf %300, %302 : vector<128x1024xf32>
    %c0_138 = arith.constant 0 : index
    %c0_139 = arith.constant 0 : index
    %304 = vector.load %arg11[%c0_138, %c0_139] : memref<128x1024xf32, #tpu.memory_space<vmem>>, vector<128x1024xf32>
    tpu.vector_store %arg11[%c0_138, %c0_139], %303 {strides = array<i32>} : memref<128x1024xf32, #tpu.memory_space<vmem>>, vector<128x1024xf32>,
    %cst_140 = arith.constant 0.000000e+00 : f32
    %305 = vector.broadcast %cst_140 : f32 to vector<32x128xf32>
    %cst_141 = arith.constant 0.000000e+00 : f32
    %306 = vector.broadcast %cst_141 : f32 to vector<32x128xf32>
    %c0_142 = arith.constant 0 : index
    %c0_143 = arith.constant 0 : index
    %307 = vector.load %arg11[%c0_142, %c0_143] : memref<128x1024xf32, #tpu.memory_space<vmem>>, vector<128x128xf32>
    %c0_144 = arith.constant 0 : index
    %c0_145 = arith.constant 0 : index
    %308 = vector.load %arg6[%c0_144, %c0_145] : memref<128x32xf32, #tpu.memory_space<vmem>>, vector<128x32xf32>
    %cst_146 = arith.constant dense<0.000000e+00> : vector<128x128xf32>
    %309 = tpu.matmul %308, %305, %cst_146 {dimension_numbers = #tpu.dot_dimension_numbers<[1], [0], [0], [1], [0, 0, 1, 1], [], []>} : vector<128x32xf32>, vector<32x128xf32>, vector<128x128xf32> -> vector<128x128xf32>
    %310 = arith.addf %307, %309 : vector<128x128xf32>
    %311 = vector.extract_strided_slice %310 {offsets = [0, 0], sizes = [32, 128], strides = [1, 1]} : vector<128x128xf32> to vector<32x128xf32>
    %cst_147 = arith.constant 5.000000e-01 : f32
    %312 = vector.broadcast %cst_147 : f32 to vector<32x128xf32>
    %313 = arith.mulf %312, %311 : vector<32x128xf32>
    %314 = math.tanh %313 : vector<32x128xf32>
    %cst_148 = arith.constant 5.000000e-01 : f32
    %315 = vector.broadcast %cst_148 : f32 to vector<32x128xf32>
    %316 = arith.mulf %315, %314 : vector<32x128xf32>
    %cst_149 = arith.constant 5.000000e-01 : f32
    %317 = vector.broadcast %cst_149 : f32 to vector<32x128xf32>
    %318 = arith.addf %316, %317 : vector<32x128xf32>
    %319 = vector.extract_strided_slice %310 {offsets = [32, 0], sizes = [32, 128], strides = [1, 1]} : vector<128x128xf32> to vector<32x128xf32>
    %cst_150 = arith.constant 5.000000e-01 : f32
    %320 = vector.broadcast %cst_150 : f32 to vector<32x128xf32>
    %321 = arith.mulf %320, %319 : vector<32x128xf32>
    %322 = math.tanh %321 : vector<32x128xf32>
    %cst_151 = arith.constant 5.000000e-01 : f32
    %323 = vector.broadcast %cst_151 : f32 to vector<32x128xf32>
    %324 = arith.mulf %323, %322 : vector<32x128xf32>
    %cst_152 = arith.constant 5.000000e-01 : f32
    %325 = vector.broadcast %cst_152 : f32 to vector<32x128xf32>
    %326 = arith.addf %324, %325 : vector<32x128xf32>
    %327 = vector.extract_strided_slice %310 {offsets = [64, 0], sizes = [32, 128], strides = [1, 1]} : vector<128x128xf32> to vector<32x128xf32>
    %328 = math.tanh %327 : vector<32x128xf32>
    %329 = vector.extract_strided_slice %310 {offsets = [96, 0], sizes = [32, 128], strides = [1, 1]} : vector<128x128xf32> to vector<32x128xf32>
    %cst_153 = arith.constant 5.000000e-01 : f32
    %330 = vector.broadcast %cst_153 : f32 to vector<32x128xf32>
    %331 = arith.mulf %330, %329 : vector<32x128xf32>
    %332 = math.tanh %331 : vector<32x128xf32>
    %cst_154 = arith.constant 5.000000e-01 : f32
    %333 = vector.broadcast %cst_154 : f32 to vector<32x128xf32>
    %334 = arith.mulf %333, %332 : vector<32x128xf32>
    %cst_155 = arith.constant 5.000000e-01 : f32
    %335 = vector.broadcast %cst_155 : f32 to vector<32x128xf32>
    %336 = arith.addf %334, %335 : vector<32x128xf32>
    %337 = arith.mulf %326, %306 : vector<32x128xf32>
    %338 = arith.mulf %318, %328 : vector<32x128xf32>
    %339 = arith.addf %337, %338 : vector<32x128xf32>
    %340 = math.tanh %339 : vector<32x128xf32>
    %341 = arith.mulf %336, %340 : vector<32x128xf32>
    %c0_156 = arith.constant 0 : index
    %c128_157 = arith.constant 128 : index
    %342 = vector.load %arg11[%c0_156, %c128_157] : memref<128x1024xf32, #tpu.memory_space<vmem>>, vector<128x128xf32>
    %c0_158 = arith.constant 0 : index
    %c0_159 = arith.constant 0 : index
    %343 = vector.load %arg6[%c0_158, %c0_159] : memref<128x32xf32, #tpu.memory_space<vmem>>, vector<128x32xf32>
    %cst_160 = arith.constant dense<0.000000e+00> : vector<128x128xf32>
    %344 = tpu.matmul %343, %341, %cst_160 {dimension_numbers = #tpu.dot_dimension_numbers<[1], [0], [0], [1], [0, 0, 1, 1], [], []>} : vector<128x32xf32>, vector<32x128xf32>, vector<128x128xf32> -> vector<128x128xf32>
    %345 = arith.addf %342, %344 : vector<128x128xf32>
    %346 = vector.extract_strided_slice %345 {offsets = [0, 0], sizes = [32, 128], strides = [1, 1]} : vector<128x128xf32> to vector<32x128xf32>
    %cst_161 = arith.constant 5.000000e-01 : f32
    %347 = vector.broadcast %cst_161 : f32 to vector<32x128xf32>
    %348 = arith.mulf %347, %346 : vector<32x128xf32>
    %349 = math.tanh %348 : vector<32x128xf32>
    %cst_162 = arith.constant 5.000000e-01 : f32
    %350 = vector.broadcast %cst_162 : f32 to vector<32x128xf32>
    %351 = arith.mulf %350, %349 : vector<32x128xf32>
    %cst_163 = arith.constant 5.000000e-01 : f32
    %352 = vector.broadcast %cst_163 : f32 to vector<32x128xf32>
    %353 = arith.addf %351, %352 : vector<32x128xf32>
    %354 = vector.extract_strided_slice %345 {offsets = [32, 0], sizes = [32, 128], strides = [1, 1]} : vector<128x128xf32> to vector<32x128xf32>
    %cst_164 = arith.constant 5.000000e-01 : f32
    %355 = vector.broadcast %cst_164 : f32 to vector<32x128xf32>
    %356 = arith.mulf %355, %354 : vector<32x128xf32>
    %357 = math.tanh %356 : vector<32x128xf32>
    %cst_165 = arith.constant 5.000000e-01 : f32
    %358 = vector.broadcast %cst_165 : f32 to vector<32x128xf32>
    %359 = arith.mulf %358, %357 : vector<32x128xf32>
    %cst_166 = arith.constant 5.000000e-01 : f32
    %360 = vector.broadcast %cst_166 : f32 to vector<32x128xf32>
    %361 = arith.addf %359, %360 : vector<32x128xf32>
    %362 = vector.extract_strided_slice %345 {offsets = [64, 0], sizes = [32, 128], strides = [1, 1]} : vector<128x128xf32> to vector<32x128xf32>
    %363 = math.tanh %362 : vector<32x128xf32>
    %364 = vector.extract_strided_slice %345 {offsets = [96, 0], sizes = [32, 128], strides = [1, 1]} : vector<128x128xf32> to vector<32x128xf32>
    %cst_167 = arith.constant 5.000000e-01 : f32
    %365 = vector.broadcast %cst_167 : f32 to vector<32x128xf32>
    %366 = arith.mulf %365, %364 : vector<32x128xf32>
    %367 = math.tanh %366 : vector<32x128xf32>
    %cst_168 = arith.constant 5.000000e-01 : f32
    %368 = vector.broadcast %cst_168 : f32 to vector<32x128xf32>
    %369 = arith.mulf %368, %367 : vector<32x128xf32>
    %cst_169 = arith.constant 5.000000e-01 : f32
    %370 = vector.broadcast %cst_169 : f32 to vector<32x128xf32>
    %371 = arith.addf %369, %370 : vector<32x128xf32>
    %372 = arith.mulf %361, %339 : vector<32x128xf32>
    %373 = arith.mulf %353, %363 : vector<32x128xf32>
    %374 = arith.addf %372, %373 : vector<32x128xf32>
    %375 = math.tanh %374 : vector<32x128xf32>
    %376 = arith.mulf %371, %375 : vector<32x128xf32>
    %c0_170 = arith.constant 0 : index
    %c256_171 = arith.constant 256 : index
    %377 = vector.load %arg11[%c0_170, %c256_171] : memref<128x1024xf32, #tpu.memory_space<vmem>>, vector<128x128xf32>
    %c0_172 = arith.constant 0 : index
    %c0_173 = arith.constant 0 : index
    %378 = vector.load %arg6[%c0_172, %c0_173] : memref<128x32xf32, #tpu.memory_space<vmem>>, vector<128x32xf32>
    %cst_174 = arith.constant dense<0.000000e+00> : vector<128x128xf32>
    %379 = tpu.matmul %378, %376, %cst_174 {dimension_numbers = #tpu.dot_dimension_numbers<[1], [0], [0], [1], [0, 0, 1, 1], [], []>} : vector<128x32xf32>, vector<32x128xf32>, vector<128x128xf32> -> vector<128x128xf32>
    %380 = arith.addf %377, %379 : vector<128x128xf32>
    %381 = vector.extract_strided_slice %380 {offsets = [0, 0], sizes = [32, 128], strides = [1, 1]} : vector<128x128xf32> to vector<32x128xf32>
    %cst_175 = arith.constant 5.000000e-01 : f32
    %382 = vector.broadcast %cst_175 : f32 to vector<32x128xf32>
    %383 = arith.mulf %382, %381 : vector<32x128xf32>
    %384 = math.tanh %383 : vector<32x128xf32>
    %cst_176 = arith.constant 5.000000e-01 : f32
    %385 = vector.broadcast %cst_176 : f32 to vector<32x128xf32>
    %386 = arith.mulf %385, %384 : vector<32x128xf32>
    %cst_177 = arith.constant 5.000000e-01 : f32
    %387 = vector.broadcast %cst_177 : f32 to vector<32x128xf32>
    %388 = arith.addf %386, %387 : vector<32x128xf32>
    %389 = vector.extract_strided_slice %380 {offsets = [32, 0], sizes = [32, 128], strides = [1, 1]} : vector<128x128xf32> to vector<32x128xf32>
    %cst_178 = arith.constant 5.000000e-01 : f32
    %390 = vector.broadcast %cst_178 : f32 to vector<32x128xf32>
    %391 = arith.mulf %390, %389 : vector<32x128xf32>
    %392 = math.tanh %391 : vector<32x128xf32>
    %cst_179 = arith.constant 5.000000e-01 : f32
    %393 = vector.broadcast %cst_179 : f32 to vector<32x128xf32>
    %394 = arith.mulf %393, %392 : vector<32x128xf32>
    %cst_180 = arith.constant 5.000000e-01 : f32
    %395 = vector.broadcast %cst_180 : f32 to vector<32x128xf32>
    %396 = arith.addf %394, %395 : vector<32x128xf32>
    %397 = vector.extract_strided_slice %380 {offsets = [64, 0], sizes = [32, 128], strides = [1, 1]} : vector<128x128xf32> to vector<32x128xf32>
    %398 = math.tanh %397 : vector<32x128xf32>
    %399 = vector.extract_strided_slice %380 {offsets = [96, 0], sizes = [32, 128], strides = [1, 1]} : vector<128x128xf32> to vector<32x128xf32>
    %cst_181 = arith.constant 5.000000e-01 : f32
    %400 = vector.broadcast %cst_181 : f32 to vector<32x128xf32>
    %401 = arith.mulf %400, %399 : vector<32x128xf32>
    %402 = math.tanh %401 : vector<32x128xf32>
    %cst_182 = arith.constant 5.000000e-01 : f32
    %403 = vector.broadcast %cst_182 : f32 to vector<32x128xf32>
    %404 = arith.mulf %403, %402 : vector<32x128xf32>
    %cst_183 = arith.constant 5.000000e-01 : f32
    %405 = vector.broadcast %cst_183 : f32 to vector<32x128xf32>
    %406 = arith.addf %404, %405 : vector<32x128xf32>
    %407 = arith.mulf %396, %374 : vector<32x128xf32>
    %408 = arith.mulf %388, %398 : vector<32x128xf32>
    %409 = arith.addf %407, %408 : vector<32x128xf32>
    %410 = math.tanh %409 : vector<32x128xf32>
    %411 = arith.mulf %406, %410 : vector<32x128xf32>
    %c0_184 = arith.constant 0 : index
    %c384_185 = arith.constant 384 : index
    %412 = vector.load %arg11[%c0_184, %c384_185] : memref<128x1024xf32, #tpu.memory_space<vmem>>, vector<128x128xf32>
    %c0_186 = arith.constant 0 : index
    %c0_187 = arith.constant 0 : index
    %413 = vector.load %arg6[%c0_186, %c0_187] : memref<128x32xf32, #tpu.memory_space<vmem>>, vector<128x32xf32>
    %cst_188 = arith.constant dense<0.000000e+00> : vector<128x128xf32>
    %414 = tpu.matmul %413, %411, %cst_188 {dimension_numbers = #tpu.dot_dimension_numbers<[1], [0], [0], [1], [0, 0, 1, 1], [], []>} : vector<128x32xf32>, vector<32x128xf32>, vector<128x128xf32> -> vector<128x128xf32>
    %415 = arith.addf %412, %414 : vector<128x128xf32>
    %416 = vector.extract_strided_slice %415 {offsets = [0, 0], sizes = [32, 128], strides = [1, 1]} : vector<128x128xf32> to vector<32x128xf32>
    %cst_189 = arith.constant 5.000000e-01 : f32
    %417 = vector.broadcast %cst_189 : f32 to vector<32x128xf32>
    %418 = arith.mulf %417, %416 : vector<32x128xf32>
    %419 = math.tanh %418 : vector<32x128xf32>
    %cst_190 = arith.constant 5.000000e-01 : f32
    %420 = vector.broadcast %cst_190 : f32 to vector<32x128xf32>
    %421 = arith.mulf %420, %419 : vector<32x128xf32>
    %cst_191 = arith.constant 5.000000e-01 : f32
    %422 = vector.broadcast %cst_191 : f32 to vector<32x128xf32>
    %423 = arith.addf %421, %422 : vector<32x128xf32>
    %424 = vector.extract_strided_slice %415 {offsets = [32, 0], sizes = [32, 128], strides = [1, 1]} : vector<128x128xf32> to vector<32x128xf32>
    %cst_192 = arith.constant 5.000000e-01 : f32
    %425 = vector.broadcast %cst_192 : f32 to vector<32x128xf32>
    %426 = arith.mulf %425, %424 : vector<32x128xf32>
    %427 = math.tanh %426 : vector<32x128xf32>
    %cst_193 = arith.constant 5.000000e-01 : f32
    %428 = vector.broadcast %cst_193 : f32 to vector<32x128xf32>
    %429 = arith.mulf %428, %427 : vector<32x128xf32>
    %cst_194 = arith.constant 5.000000e-01 : f32
    %430 = vector.broadcast %cst_194 : f32 to vector<32x128xf32>
    %431 = arith.addf %429, %430 : vector<32x128xf32>
    %432 = vector.extract_strided_slice %415 {offsets = [64, 0], sizes = [32, 128], strides = [1, 1]} : vector<128x128xf32> to vector<32x128xf32>
    %433 = math.tanh %432 : vector<32x128xf32>
    %434 = vector.extract_strided_slice %415 {offsets = [96, 0], sizes = [32, 128], strides = [1, 1]} : vector<128x128xf32> to vector<32x128xf32>
    %cst_195 = arith.constant 5.000000e-01 : f32
    %435 = vector.broadcast %cst_195 : f32 to vector<32x128xf32>
    %436 = arith.mulf %435, %434 : vector<32x128xf32>
    %437 = math.tanh %436 : vector<32x128xf32>
    %cst_196 = arith.constant 5.000000e-01 : f32
    %438 = vector.broadcast %cst_196 : f32 to vector<32x128xf32>
    %439 = arith.mulf %438, %437 : vector<32x128xf32>
    %cst_197 = arith.constant 5.000000e-01 : f32
    %440 = vector.broadcast %cst_197 : f32 to vector<32x128xf32>
    %441 = arith.addf %439, %440 : vector<32x128xf32>
    %442 = arith.mulf %431, %409 : vector<32x128xf32>
    %443 = arith.mulf %423, %433 : vector<32x128xf32>
    %444 = arith.addf %442, %443 : vector<32x128xf32>
    %445 = math.tanh %444 : vector<32x128xf32>
    %446 = arith.mulf %441, %445 : vector<32x128xf32>
    %c0_198 = arith.constant 0 : index
    %c512_199 = arith.constant 512 : index
    %447 = vector.load %arg11[%c0_198, %c512_199] : memref<128x1024xf32, #tpu.memory_space<vmem>>, vector<128x128xf32>
    %c0_200 = arith.constant 0 : index
    %c0_201 = arith.constant 0 : index
    %448 = vector.load %arg6[%c0_200, %c0_201] : memref<128x32xf32, #tpu.memory_space<vmem>>, vector<128x32xf32>
    %cst_202 = arith.constant dense<0.000000e+00> : vector<128x128xf32>
    %449 = tpu.matmul %448, %446, %cst_202 {dimension_numbers = #tpu.dot_dimension_numbers<[1], [0], [0], [1], [0, 0, 1, 1], [], []>} : vector<128x32xf32>, vector<32x128xf32>, vector<128x128xf32> -> vector<128x128xf32>
    %450 = arith.addf %447, %449 : vector<128x128xf32>
    %451 = vector.extract_strided_slice %450 {offsets = [0, 0], sizes = [32, 128], strides = [1, 1]} : vector<128x128xf32> to vector<32x128xf32>
    %cst_203 = arith.constant 5.000000e-01 : f32
    %452 = vector.broadcast %cst_203 : f32 to vector<32x128xf32>
    %453 = arith.mulf %452, %451 : vector<32x128xf32>
    %454 = math.tanh %453 : vector<32x128xf32>
    %cst_204 = arith.constant 5.000000e-01 : f32
    %455 = vector.broadcast %cst_204 : f32 to vector<32x128xf32>
    %456 = arith.mulf %455, %454 : vector<32x128xf32>
    %cst_205 = arith.constant 5.000000e-01 : f32
    %457 = vector.broadcast %cst_205 : f32 to vector<32x128xf32>
    %458 = arith.addf %456, %457 : vector<32x128xf32>
    %459 = vector.extract_strided_slice %450 {offsets = [32, 0], sizes = [32, 128], strides = [1, 1]} : vector<128x128xf32> to vector<32x128xf32>
    %cst_206 = arith.constant 5.000000e-01 : f32
    %460 = vector.broadcast %cst_206 : f32 to vector<32x128xf32>
    %461 = arith.mulf %460, %459 : vector<32x128xf32>
    %462 = math.tanh %461 : vector<32x128xf32>
    %cst_207 = arith.constant 5.000000e-01 : f32
    %463 = vector.broadcast %cst_207 : f32 to vector<32x128xf32>
    %464 = arith.mulf %463, %462 : vector<32x128xf32>
    %cst_208 = arith.constant 5.000000e-01 : f32
    %465 = vector.broadcast %cst_208 : f32 to vector<32x128xf32>
    %466 = arith.addf %464, %465 : vector<32x128xf32>
    %467 = vector.extract_strided_slice %450 {offsets = [64, 0], sizes = [32, 128], strides = [1, 1]} : vector<128x128xf32> to vector<32x128xf32>
    %468 = math.tanh %467 : vector<32x128xf32>
    %469 = vector.extract_strided_slice %450 {offsets = [96, 0], sizes = [32, 128], strides = [1, 1]} : vector<128x128xf32> to vector<32x128xf32>
    %cst_209 = arith.constant 5.000000e-01 : f32
    %470 = vector.broadcast %cst_209 : f32 to vector<32x128xf32>
    %471 = arith.mulf %470, %469 : vector<32x128xf32>
    %472 = math.tanh %471 : vector<32x128xf32>
    %cst_210 = arith.constant 5.000000e-01 : f32
    %473 = vector.broadcast %cst_210 : f32 to vector<32x128xf32>
    %474 = arith.mulf %473, %472 : vector<32x128xf32>
    %cst_211 = arith.constant 5.000000e-01 : f32
    %475 = vector.broadcast %cst_211 : f32 to vector<32x128xf32>
    %476 = arith.addf %474, %475 : vector<32x128xf32>
    %477 = arith.mulf %466, %444 : vector<32x128xf32>
    %478 = arith.mulf %458, %468 : vector<32x128xf32>
    %479 = arith.addf %477, %478 : vector<32x128xf32>
    %480 = math.tanh %479 : vector<32x128xf32>
    %481 = arith.mulf %476, %480 : vector<32x128xf32>
    %c0_212 = arith.constant 0 : index
    %c640_213 = arith.constant 640 : index
    %482 = vector.load %arg11[%c0_212, %c640_213] : memref<128x1024xf32, #tpu.memory_space<vmem>>, vector<128x128xf32>
    %c0_214 = arith.constant 0 : index
    %c0_215 = arith.constant 0 : index
    %483 = vector.load %arg6[%c0_214, %c0_215] : memref<128x32xf32, #tpu.memory_space<vmem>>, vector<128x32xf32>
    %cst_216 = arith.constant dense<0.000000e+00> : vector<128x128xf32>
    %484 = tpu.matmul %483, %481, %cst_216 {dimension_numbers = #tpu.dot_dimension_numbers<[1], [0], [0], [1], [0, 0, 1, 1], [], []>} : vector<128x32xf32>, vector<32x128xf32>, vector<128x128xf32> -> vector<128x128xf32>
    %485 = arith.addf %482, %484 : vector<128x128xf32>
    %486 = vector.extract_strided_slice %485 {offsets = [0, 0], sizes = [32, 128], strides = [1, 1]} : vector<128x128xf32> to vector<32x128xf32>
    %cst_217 = arith.constant 5.000000e-01 : f32
    %487 = vector.broadcast %cst_217 : f32 to vector<32x128xf32>
    %488 = arith.mulf %487, %486 : vector<32x128xf32>
    %489 = math.tanh %488 : vector<32x128xf32>
    %cst_218 = arith.constant 5.000000e-01 : f32
    %490 = vector.broadcast %cst_218 : f32 to vector<32x128xf32>
    %491 = arith.mulf %490, %489 : vector<32x128xf32>
    %cst_219 = arith.constant 5.000000e-01 : f32
    %492 = vector.broadcast %cst_219 : f32 to vector<32x128xf32>
    %493 = arith.addf %491, %492 : vector<32x128xf32>
    %494 = vector.extract_strided_slice %485 {offsets = [32, 0], sizes = [32, 128], strides = [1, 1]} : vector<128x128xf32> to vector<32x128xf32>
    %cst_220 = arith.constant 5.000000e-01 : f32
    %495 = vector.broadcast %cst_220 : f32 to vector<32x128xf32>
    %496 = arith.mulf %495, %494 : vector<32x128xf32>
    %497 = math.tanh %496 : vector<32x128xf32>
    %cst_221 = arith.constant 5.000000e-01 : f32
    %498 = vector.broadcast %cst_221 : f32 to vector<32x128xf32>
    %499 = arith.mulf %498, %497 : vector<32x128xf32>
    %cst_222 = arith.constant 5.000000e-01 : f32
    %500 = vector.broadcast %cst_222 : f32 to vector<32x128xf32>
    %501 = arith.addf %499, %500 : vector<32x128xf32>
    %502 = vector.extract_strided_slice %485 {offsets = [64, 0], sizes = [32, 128], strides = [1, 1]} : vector<128x128xf32> to vector<32x128xf32>
    %503 = math.tanh %502 : vector<32x128xf32>
    %504 = vector.extract_strided_slice %485 {offsets = [96, 0], sizes = [32, 128], strides = [1, 1]} : vector<128x128xf32> to vector<32x128xf32>
    %cst_223 = arith.constant 5.000000e-01 : f32
    %505 = vector.broadcast %cst_223 : f32 to vector<32x128xf32>
    %506 = arith.mulf %505, %504 : vector<32x128xf32>
    %507 = math.tanh %506 : vector<32x128xf32>
    %cst_224 = arith.constant 5.000000e-01 : f32
    %508 = vector.broadcast %cst_224 : f32 to vector<32x128xf32>
    %509 = arith.mulf %508, %507 : vector<32x128xf32>
    %cst_225 = arith.constant 5.000000e-01 : f32
    %510 = vector.broadcast %cst_225 : f32 to vector<32x128xf32>
    %511 = arith.addf %509, %510 : vector<32x128xf32>
    %512 = arith.mulf %501, %479 : vector<32x128xf32>
    %513 = arith.mulf %493, %503 : vector<32x128xf32>
    %514 = arith.addf %512, %513 : vector<32x128xf32>
    %515 = math.tanh %514 : vector<32x128xf32>
    %516 = arith.mulf %511, %515 : vector<32x128xf32>
    %c0_226 = arith.constant 0 : index
    %c768_227 = arith.constant 768 : index
    %517 = vector.load %arg11[%c0_226, %c768_227] : memref<128x1024xf32, #tpu.memory_space<vmem>>, vector<128x128xf32>
    %c0_228 = arith.constant 0 : index
    %c0_229 = arith.constant 0 : index
    %518 = vector.load %arg6[%c0_228, %c0_229] : memref<128x32xf32, #tpu.memory_space<vmem>>, vector<128x32xf32>
    %cst_230 = arith.constant dense<0.000000e+00> : vector<128x128xf32>
    %519 = tpu.matmul %518, %516, %cst_230 {dimension_numbers = #tpu.dot_dimension_numbers<[1], [0], [0], [1], [0, 0, 1, 1], [], []>} : vector<128x32xf32>, vector<32x128xf32>, vector<128x128xf32> -> vector<128x128xf32>
    %520 = arith.addf %517, %519 : vector<128x128xf32>
    %521 = vector.extract_strided_slice %520 {offsets = [0, 0], sizes = [32, 128], strides = [1, 1]} : vector<128x128xf32> to vector<32x128xf32>
    %cst_231 = arith.constant 5.000000e-01 : f32
    %522 = vector.broadcast %cst_231 : f32 to vector<32x128xf32>
    %523 = arith.mulf %522, %521 : vector<32x128xf32>
    %524 = math.tanh %523 : vector<32x128xf32>
    %cst_232 = arith.constant 5.000000e-01 : f32
    %525 = vector.broadcast %cst_232 : f32 to vector<32x128xf32>
    %526 = arith.mulf %525, %524 : vector<32x128xf32>
    %cst_233 = arith.constant 5.000000e-01 : f32
    %527 = vector.broadcast %cst_233 : f32 to vector<32x128xf32>
    %528 = arith.addf %526, %527 : vector<32x128xf32>
    %529 = vector.extract_strided_slice %520 {offsets = [32, 0], sizes = [32, 128], strides = [1, 1]} : vector<128x128xf32> to vector<32x128xf32>
    %cst_234 = arith.constant 5.000000e-01 : f32
    %530 = vector.broadcast %cst_234 : f32 to vector<32x128xf32>
    %531 = arith.mulf %530, %529 : vector<32x128xf32>
    %532 = math.tanh %531 : vector<32x128xf32>
    %cst_235 = arith.constant 5.000000e-01 : f32
    %533 = vector.broadcast %cst_235 : f32 to vector<32x128xf32>
    %534 = arith.mulf %533, %532 : vector<32x128xf32>
    %cst_236 = arith.constant 5.000000e-01 : f32
    %535 = vector.broadcast %cst_236 : f32 to vector<32x128xf32>
    %536 = arith.addf %534, %535 : vector<32x128xf32>
    %537 = vector.extract_strided_slice %520 {offsets = [64, 0], sizes = [32, 128], strides = [1, 1]} : vector<128x128xf32> to vector<32x128xf32>
    %538 = math.tanh %537 : vector<32x128xf32>
    %539 = vector.extract_strided_slice %520 {offsets = [96, 0], sizes = [32, 128], strides = [1, 1]} : vector<128x128xf32> to vector<32x128xf32>
    %cst_237 = arith.constant 5.000000e-01 : f32
    %540 = vector.broadcast %cst_237 : f32 to vector<32x128xf32>
    %541 = arith.mulf %540, %539 : vector<32x128xf32>
    %542 = math.tanh %541 : vector<32x128xf32>
    %cst_238 = arith.constant 5.000000e-01 : f32
    %543 = vector.broadcast %cst_238 : f32 to vector<32x128xf32>
    %544 = arith.mulf %543, %542 : vector<32x128xf32>
    %cst_239 = arith.constant 5.000000e-01 : f32
    %545 = vector.broadcast %cst_239 : f32 to vector<32x128xf32>
    %546 = arith.addf %544, %545 : vector<32x128xf32>
    %547 = arith.mulf %536, %514 : vector<32x128xf32>
    %548 = arith.mulf %528, %538 : vector<32x128xf32>
    %549 = arith.addf %547, %548 : vector<32x128xf32>
    %550 = math.tanh %549 : vector<32x128xf32>
    %551 = arith.mulf %546, %550 : vector<32x128xf32>
    %c0_240 = arith.constant 0 : index
    %c896_241 = arith.constant 896 : index
    %552 = vector.load %arg11[%c0_240, %c896_241] : memref<128x1024xf32, #tpu.memory_space<vmem>>, vector<128x128xf32>
    %c0_242 = arith.constant 0 : index
    %c0_243 = arith.constant 0 : index
    %553 = vector.load %arg6[%c0_242, %c0_243] : memref<128x32xf32, #tpu.memory_space<vmem>>, vector<128x32xf32>
    %cst_244 = arith.constant dense<0.000000e+00> : vector<128x128xf32>
    %554 = tpu.matmul %553, %551, %cst_244 {dimension_numbers = #tpu.dot_dimension_numbers<[1], [0], [0], [1], [0, 0, 1, 1], [], []>} : vector<128x32xf32>, vector<32x128xf32>, vector<128x128xf32> -> vector<128x128xf32>
    %555 = arith.addf %552, %554 : vector<128x128xf32>
    %556 = vector.extract_strided_slice %555 {offsets = [0, 0], sizes = [32, 128], strides = [1, 1]} : vector<128x128xf32> to vector<32x128xf32>
    %cst_245 = arith.constant 5.000000e-01 : f32
    %557 = vector.broadcast %cst_245 : f32 to vector<32x128xf32>
    %558 = arith.mulf %557, %556 : vector<32x128xf32>
    %559 = math.tanh %558 : vector<32x128xf32>
    %cst_246 = arith.constant 5.000000e-01 : f32
    %560 = vector.broadcast %cst_246 : f32 to vector<32x128xf32>
    %561 = arith.mulf %560, %559 : vector<32x128xf32>
    %cst_247 = arith.constant 5.000000e-01 : f32
    %562 = vector.broadcast %cst_247 : f32 to vector<32x128xf32>
    %563 = arith.addf %561, %562 : vector<32x128xf32>
    %564 = vector.extract_strided_slice %555 {offsets = [32, 0], sizes = [32, 128], strides = [1, 1]} : vector<128x128xf32> to vector<32x128xf32>
    %cst_248 = arith.constant 5.000000e-01 : f32
    %565 = vector.broadcast %cst_248 : f32 to vector<32x128xf32>
    %566 = arith.mulf %565, %564 : vector<32x128xf32>
    %567 = math.tanh %566 : vector<32x128xf32>
    %cst_249 = arith.constant 5.000000e-01 : f32
    %568 = vector.broadcast %cst_249 : f32 to vector<32x128xf32>
    %569 = arith.mulf %568, %567 : vector<32x128xf32>
    %cst_250 = arith.constant 5.000000e-01 : f32
    %570 = vector.broadcast %cst_250 : f32 to vector<32x128xf32>
    %571 = arith.addf %569, %570 : vector<32x128xf32>
    %572 = vector.extract_strided_slice %555 {offsets = [64, 0], sizes = [32, 128], strides = [1, 1]} : vector<128x128xf32> to vector<32x128xf32>
    %573 = math.tanh %572 : vector<32x128xf32>
    %574 = vector.extract_strided_slice %555 {offsets = [96, 0], sizes = [32, 128], strides = [1, 1]} : vector<128x128xf32> to vector<32x128xf32>
    %cst_251 = arith.constant 5.000000e-01 : f32
    %575 = vector.broadcast %cst_251 : f32 to vector<32x128xf32>
    %576 = arith.mulf %575, %574 : vector<32x128xf32>
    %577 = math.tanh %576 : vector<32x128xf32>
    %cst_252 = arith.constant 5.000000e-01 : f32
    %578 = vector.broadcast %cst_252 : f32 to vector<32x128xf32>
    %579 = arith.mulf %578, %577 : vector<32x128xf32>
    %cst_253 = arith.constant 5.000000e-01 : f32
    %580 = vector.broadcast %cst_253 : f32 to vector<32x128xf32>
    %581 = arith.addf %579, %580 : vector<32x128xf32>
    %582 = arith.mulf %571, %549 : vector<32x128xf32>
    %583 = arith.mulf %563, %573 : vector<32x128xf32>
    %584 = arith.addf %582, %583 : vector<32x128xf32>
    %585 = math.tanh %584 : vector<32x128xf32>
    %586 = arith.mulf %581, %585 : vector<32x128xf32>
    %c0_254 = arith.constant 0 : index
    %c0_255 = arith.constant 0 : index
    %587 = vector.load %arg8[%c0_254, %c0_255] : memref<2x32xf32, #tpu.memory_space<vmem>>, vector<2x32xf32>
    %cst_256 = arith.constant dense<0.000000e+00> : vector<2x128xf32>
    %588 = tpu.matmul %587, %586, %cst_256 {dimension_numbers = #tpu.dot_dimension_numbers<[1], [0], [0], [1], [0, 0, 1, 1], [], []>} : vector<2x32xf32>, vector<32x128xf32>, vector<2x128xf32> -> vector<2x128xf32>
    %c0_257 = arith.constant 0 : index
    %c0_258 = arith.constant 0 : index
    %589 = vector.load %arg9[%c0_257, %c0_258] : memref<2x1xf32, #tpu.memory_space<vmem>>, vector<2x1xf32>
    %590 = vector.broadcast %589 : vector<2x1xf32> to vector<2x128xf32>
    %591 = arith.addf %588, %590 : vector<2x128xf32>
    %c0_259 = arith.constant 0 : index
    %c0_260 = arith.constant 0 : index
    %592 = vector.load %arg10[%c0_259, %c0_260] : memref<2x128xf32, #tpu.memory_space<vmem>>, vector<2x128xf32>
    tpu.vector_store %arg10[%c0_259, %c0_260], %591 {strides = array<i32>} : memref<2x128xf32, #tpu.memory_space<vmem>>, vector<2x128xf32>,
    return
  }
  func.func @transform_0(%arg0: i32) -> (i32, i32, i32) {
    %c0_i32 = arith.constant 0 : i32
    %c0_i32_0 = arith.constant 0 : i32
    %c0_i32_1 = arith.constant 0 : i32
    return %arg0, %c0_i32, %c0_i32_0 : i32, i32, i32
  }
  func.func @transform_1(%arg0: i32) -> (i32, i32) {
    %c0_i32 = arith.constant 0 : i32
    %c0_i32_0 = arith.constant 0 : i32
    %c0_i32_1 = arith.constant 0 : i32
    return %c0_i32, %c0_i32_0 : i32, i32
  }
  func.func @transform_2(%arg0: i32) -> (i32, i32) {
    %c0_i32 = arith.constant 0 : i32
    %c0_i32_0 = arith.constant 0 : i32
    %c0_i32_1 = arith.constant 0 : i32
    return %c0_i32, %c0_i32_0 : i32, i32
  }
  func.func @transform_3(%arg0: i32) -> (i32, i32) {
    %c0_i32 = arith.constant 0 : i32
    %c0_i32_0 = arith.constant 0 : i32
    %c0_i32_1 = arith.constant 0 : i32
    return %c0_i32, %c0_i32_0 : i32, i32
  }
  func.func @transform_4(%arg0: i32) -> (i32, i32) {
    %c0_i32 = arith.constant 0 : i32
    %c0_i32_0 = arith.constant 0 : i32
    %c0_i32_1 = arith.constant 0 : i32
    return %c0_i32, %c0_i32_0 : i32, i32
  }
  func.func @transform_5(%arg0: i32) -> (i32, i32) {
    %c0_i32 = arith.constant 0 : i32
    %c0_i32_0 = arith.constant 0 : i32
    %c0_i32_1 = arith.constant 0 : i32
    return %c0_i32, %c0_i32_0 : i32, i32
  }
  func.func @transform_6(%arg0: i32) -> (i32, i32) {
    %c0_i32 = arith.constant 0 : i32
    %c0_i32_0 = arith.constant 0 : i32
    %c0_i32_1 = arith.constant 0 : i32
    return %c0_i32, %c0_i32_0 : i32, i32
  }
  func.func @transform_7(%arg0: i32) -> (i32, i32) {
    %c0_i32 = arith.constant 0 : i32
    %c0_i32_0 = arith.constant 0 : i32
    %c0_i32_1 = arith.constant 0 : i32
    return %c0_i32, %c0_i32_0 : i32, i32
  }
  func.func @transform_8(%arg0: i32) -> (i32, i32) {
    %c0_i32 = arith.constant 0 : i32
    %c0_i32_0 = arith.constant 0 : i32
    %c0_i32_1 = arith.constant 0 : i32
    return %c0_i32, %c0_i32_0 : i32, i32
  }
  func.func @transform_9(%arg0: i32) -> (i32, i32) {
    %c0_i32 = arith.constant 0 : i32
    %c0_i32_0 = arith.constant 0 : i32
    return %c0_i32, %arg0 : i32, i32
  }
}

</mosaic_0001>

<bundles_post_ra>
// kernel: tpu_custom_call.1
= control target key start
LH: loop header
LB: loop body
LE: loop exit
PB: predicated region body
PF: predicated region fallthrough
CT: control target
= control target key end

     0   :  { %v6192_v2 = vmov 0   ;;  %s9476_s0 = inlined_call_operand.vmem [shape: bf16[1,4,1024], index: 0, kind: input, shape index: {}]   ;;  %s9477_s1 = inlined_call_operand.vmem [shape: bf16[128,4], index: 1, kind: input, shape index: {}]   ;;  %s9478_s2 = inlined_call_operand.vmem [shape: f32[128,32], index: 2, kind: input, shape index: {}]   ;;  %s9479_s3 = inlined_call_operand.vmem [shape: f32[128,1], index: 3, kind: input, shape index: {}]   ;;  %s9480_s4 = inlined_call_operand.vmem [shape: f32[128,32], index: 4, kind: input, shape index: {}]   ;;  %s9481_s5 = inlined_call_operand.vmem [shape: f32[128,32], index: 5, kind: input, shape index: {}]   ;;  %s9482_s6 = inlined_call_operand.vmem [shape: f32[128,1], index: 6, kind: input, shape index: {}]   ;;  %s9483_s7 = inlined_call_operand.vmem [shape: f32[2,32], index: 7, kind: input, shape index: {}]   ;;  %s9484_s8 = inlined_call_operand.vmem [shape: f32[2,1], index: 8, kind: input, shape index: {}]   ;;  %s9485_s9 = inlined_call_operand.hbm [shape: f32[2,128], index: 9, kind: output, shape index: {}]  }
   0x1   :  { %v55_v0 = vld [vmem:[%s9479_s3 + $0x18] sm:$0xff]  ;;  %v34_v1 = vld [vmem:[%s9476_s0] sm:$0xff]  ;;  %5455 = vset.pattern.permute.xlu0 %v6192_v2  ;;  %5456 = vset.pattern.permute.xlu1 %v6192_v2  ;;  %v54_v3 = vld [vmem:[%s9479_s3 + $0x10] sm:$0xff] }
   0x2   :  { %189 = vst [vmem:[#allocation1] ss:$4 sm:$0xff] %v34_v1  ;;  %85 = vperm.xlu0 %5455, %v55_v0   ;;  %5457 = vset.pattern.permute.xlu2 %v6192_v2 }
   0x3   :  { %14 = vsyncpa [#allocation5], 0  ;;  %80 = vperm.xlu1 %5456, %v54_v3   ;;  %vm226_vm0 = vcmask 1041408   ;;  %v59_v4 = vld [vmem:[%s9479_s3 + $0x38] sm:$0xff]  ;;  %v6261_v7 = vld [vmem:[%s9477_s1] sm:$0xff]  ;;  %vm201_vm1 = vcmask 31744  }
   0x4   :  { %v58_v8 = vld [vmem:[%s9479_s3 + $0x30] sm:$0xff]  ;;  %v53_v9 = vld [vmem:[%s9479_s3 + $0x8] sm:$0xff]  ;;  %v52_v10 = vld [vmem:[%s9479_s3] sm:$0xff]  ;;  %v9486_v55 = vmov 0.0   ;;  %vm795_vm2 = vcmask 261120   ;;  %s6194_s30 = smov [#allocation4]  }
   0x5   :  { %75 = vperm.xlu2 %5457, %v53_v9   ;;  %v56_v11 = vld [vmem:[%s9479_s3 + $0x20] sm:$0xff]  ;;  %v6280_v12 = vld [vmem:[%s9477_s1 + $0x8] sm:$0xff]  ;;  %v6287_v13 = vld [vmem:[%s9477_s1 + $0x10] sm:$0xff]  ;;  %s4952_s10 = sshll.u32 %s6194_s30, 4  ;;  %s4954_s12 = sshll.u32 %s9485_s9, 4  ;;  %s4953_s10 = int_to_ptr.vmem [resolvable:$true] %s4952_s10  ;;  %s4955_s12 = int_to_ptr.hbm [resolvable:$true] %s4954_s12 }
   0x6   :  { %v62_v14 = vld [vmem:[%s9479_s3 + $0x50] sm:$0xff]  ;;  %v57_v15 = vld [vmem:[%s9479_s3 + $0x28] sm:$0xff]  ;;  %v60_v16 = vld [vmem:[%s9479_s3 + $0x40] sm:$0xff] }
   0x7   :  { %v6303_v17 = vld [vmem:[%s9477_s1 + $0x18] sm:$0xff]  ;;  %v61_v18 = vld [vmem:[%s9479_s3 + $0x48] sm:$0xff]  ;;  %v6322_v25 = vld [vmem:[%s9477_s1 + $0x20] sm:$0xff] }
   0x8   :  { %v64_v26 = vld [vmem:[%s9479_s3 + $0x60] sm:$0xff]  ;;  %v6338_v27 = vld [vmem:[%s9477_s1 + $0x28] sm:$0xff]  ;;  %v66_v29 = vld [vmem:[%s9479_s3 + $0x70] sm:$0xff] }
   0x9   :  { %v193_v5 = vld.sshfl [vmem:[#allocation1] sm:$0xff pattern:$0x73625140]  ;;  %v195_v19 = vld.sshfl [vmem:[#allocation1 + $0x10] sm:$0xff pattern:$0x73625140] }
   0xa   :  { %v227_v6 = vsel %vm226_vm0, %v193_v5, 0  ;;  %105 = vperm.xlu0 %5455, %v59_v4   ;;  %v231_v20 = vsel %vm226_vm0, %v195_v19, 0  ;;  %v196_v21 = vld.sshfl [vmem:[#allocation1 + $0x18] sm:$0xff pattern:$0x73625140]  ;;  %v35_v28 = vld [vmem:[%s9476_s0 + $0x8] sm:$0xff] }
   0xb   :  { %250 = vmatpush.bf16.msra.mxu0 %v227_v6  ;;  %100 = vperm.xlu1 %5456, %v58_v8   ;;  %v233_v22 = vsel %vm226_vm0, %v196_v21, 0  ;;  %v194_v23 = vld.sshfl [vmem:[#allocation1 + $0x8] sm:$0xff pattern:$0x73625140]  ;;  %v63_v30 = vld [vmem:[%s9479_s3 + $0x58] sm:$0xff]  ;;  %v6361_v33 = vld [vmem:[%s9477_s1 + $0x30] sm:$0xff] }
   0xc   :  { %348 = vmatpush.bf16.msra.mxu2 %v231_v20  ;;  %397 = vmatpush.bf16.msra.mxu3 %v233_v22  ;;  %v229_v24 = vsel %vm226_vm0, %v194_v23, 0  ;;  %192 = vst [vmem:[#allocation1 + $0x20] ss:$4 sm:$0xff] %v35_v28  ;;  %v67_v34 = vld [vmem:[%s9479_s3 + $0x78] sm:$0xff]  ;;  %v65_v35 = vld [vmem:[%s9479_s3 + $0x68] sm:$0xff]  ;;  %v6509_v5 = vld [vmem:[%s9478_s2] sm:$0xff] }
   0xd   :  { %95 = vperm.xlu2 %5457, %v57_v15   ;;  %299 = vmatpush.bf16.msra.mxu1 %v229_v24  ;;  %v6380_v36 = vld [vmem:[%s9477_s1 + $0x38] sm:$0xff]  ;;  %v6545_v15 = vld [vmem:[%s9478_s2 + $0x10] sm:$0xff]  ;;  %v6578_v23 = vld [vmem:[%s9478_s2 + $0x20] sm:$0xff] }
   0xe   :  { %4995 = vmatmul.msk.bf16.vlgmr.msra.gmra.mxu0 %vm201_vm1, %v6261_v7  ;;  %v2711_v21 = vld [vmem:[%s9482_s6 + $0x18] sm:$0xff] }
   0xf   :  { %5011 = vmatmul.msk.bf16.vlgmr.msra.gmra.mxu2 %vm201_vm1, %v6261_v7  ;;  %5019 = vmatmul.msk.bf16.vlgmr.msra.gmra.mxu3 %vm201_vm1, %v6261_v7 }
  0x10   :  { %5003 = vmatmul.msk.bf16.vlgmr.msra.gmra.mxu1 %vm201_vm1, %v6261_v7 }
  0x12   :  { %70 = vperm.xlu0 %5455, %v52_v10   ;;  %v6526_v10 = vld [vmem:[%s9478_s2 + $0x8] sm:$0xff] }
  0x13   :  { %90 = vperm.xlu1 %5456, %v56_v11   ;;  %v197_v31 = vld.sshfl [vmem:[#allocation1 + $0x20] sm:$0xff pattern:$0x73625140]  ;;  %v199_v45 = vld.sshfl [vmem:[#allocation1 + $0x30] sm:$0xff pattern:$0x73625140] }
  0x14   :  { %v235_v32 = vsel %vm226_vm0, %v197_v31, 0  ;;  %v200_v46 = vld.sshfl [vmem:[#allocation1 + $0x38] sm:$0xff pattern:$0x73625140]  ;;  %v239_v47 = vsel %vm226_vm0, %v199_v45, 0  ;;  %v2713_v31 = vld [vmem:[%s9482_s6 + $0x28] sm:$0xff] }
  0x15   :  { %125 = vperm.xlu2 %5457, %v63_v30   ;;  %446 = vmatpush.bf16.msrb.mxu0 %v235_v32  ;;  %v241_v48 = vsel %vm226_vm0, %v200_v46, 0  ;;  %v198_v50 = vld.sshfl [vmem:[#allocation1 + $0x28] sm:$0xff pattern:$0x73625140]  ;;  %v6626_v46 = vld [vmem:[%s9478_s2 + $0x30] sm:$0xff] }
  0x16   :  { %544 = vmatpush.bf16.msrb.mxu2 %v239_v47  ;;  %593 = vmatpush.bf16.msrb.mxu3 %v241_v48  ;;  %v237_v51 = vsel %vm226_vm0, %v198_v50, 0  ;;  %v6601_v30 = vld [vmem:[%s9478_s2 + $0x28] sm:$0xff]  ;;  %v2719_v47 = vld [vmem:[%s9482_s6 + $0x58] sm:$0xff]  ;;  %v2718_v48 = vld [vmem:[%s9482_s6 + $0x50] sm:$0xff] }
  0x17   :  { %495 = vmatpush.bf16.msrb.mxu1 %v237_v51  ;;  %v2715_v50 = vld [vmem:[%s9482_s6 + $0x38] sm:$0xff] }
  0x19   :  { %859 = vmatpush.msra.mxu0 %v9486_v55 }
  0x1a   :  { %120 = vperm.xlu0 %5455, %v62_v14  }
  0x1b   :  { %115 = vperm.xlu1 %5456, %v61_v18   ;;  %v6558_v18 = vld [vmem:[%s9478_s2 + $0x18] sm:$0xff] }
  0x1d   :  { %145 = vperm.xlu2 %5457, %v67_v34  }
  0x1e   :  { %4996 = vmatmul.msk.bf16.gmra.mxu0 %vm201_vm1, %v6280_v12 }
  0x1f   :  { %5012 = vmatmul.msk.bf16.gmra.mxu2 %vm201_vm1, %v6280_v12  ;;  %5020 = vmatmul.msk.bf16.gmra.mxu3 %vm201_vm1, %v6280_v12 }
  0x20   :  { %5004 = vmatmul.msk.bf16.gmra.mxu1 %vm201_vm1, %v6280_v12 }
  0x22   :  { %110 = vperm.xlu0 %5455, %v60_v16  }
  0x23   :  { %140 = vperm.xlu1 %5456, %v66_v29  }
  0x25   :  { %135 = vperm.xlu2 %5457, %v65_v35  }
  0x2a   :  { %130 = vperm.xlu0 %5455, %v64_v26   ;;  %v2714_v26 = vld [vmem:[%s9482_s6 + $0x30] sm:$0xff] }
  0x2b   :  { %2741 = vperm.xlu1 %5456, %v2711_v21  }
  0x2d   :  { %2761 = vperm.xlu2 %5457, %v2715_v50   ;;  %v2720_v50 = vld [vmem:[%s9482_s6 + $0x60] sm:$0xff] }
  0x2e   :  { %4997 = vmatmul.msk.bf16.gmra.mxu0 %vm201_vm1, %v6287_v13 }
  0x2f   :  { %5013 = vmatmul.msk.bf16.gmra.mxu2 %vm201_vm1, %v6287_v13  ;;  %5021 = vmatmul.msk.bf16.gmra.mxu3 %vm201_vm1, %v6287_v13 }
  0x30   :  { %5005 = vmatmul.msk.bf16.gmra.mxu1 %vm201_vm1, %v6287_v13 }
  0x33   :  { %2756 = vperm.xlu1 %5456, %v2714_v26   ;;  %v2723_v26 = vld [vmem:[%s9482_s6 + $0x78] sm:$0xff] }
  0x3e   :  { %4998 = vmatmul.msk.bf16.gmra.mxu0 %vm201_vm1, %v6303_v17 }
  0x3f   :  { %5014 = vmatmul.msk.bf16.gmra.mxu2 %vm201_vm1, %v6303_v17  ;;  %5022 = vmatmul.msk.bf16.gmra.mxu3 %vm201_vm1, %v6303_v17 }
  0x40   :  { %5006 = vmatmul.msk.bf16.gmra.mxu1 %vm201_vm1, %v6303_v17 }
  0x4e   :  { %4999 = vmatmul.msk.bf16.gmra.mxu0 %vm201_vm1, %v6322_v25 }
  0x4f   :  { %5015 = vmatmul.msk.bf16.gmra.mxu2 %vm201_vm1, %v6322_v25  ;;  %5023 = vmatmul.msk.bf16.gmra.mxu3 %vm201_vm1, %v6322_v25 }
  0x50   :  { %5007 = vmatmul.msk.bf16.gmra.mxu1 %vm201_vm1, %v6322_v25 }
  0x5e   :  { %5000 = vmatmul.msk.bf16.gmra.mxu0 %vm201_vm1, %v6338_v27 }
  0x5f   :  { %5016 = vmatmul.msk.bf16.gmra.mxu2 %vm201_vm1, %v6338_v27  ;;  %5024 = vmatmul.msk.bf16.gmra.mxu3 %vm201_vm1, %v6338_v27 }
  0x60   :  { %5008 = vmatmul.msk.bf16.gmra.mxu1 %vm201_vm1, %v6338_v27 }
  0x6e   :  { %5001 = vmatmul.msk.bf16.gmra.mxu0 %vm201_vm1, %v6361_v33 }
  0x6f   :  { %5017 = vmatmul.msk.bf16.gmra.mxu2 %vm201_vm1, %v6361_v33  ;;  %5025 = vmatmul.msk.bf16.gmra.mxu3 %vm201_vm1, %v6361_v33 }
  0x70   :  { %5009 = vmatmul.msk.bf16.gmra.mxu1 %vm201_vm1, %v6361_v33 }
  0x7e   :  { %5002 = vmatmul.msk.bf16.gmra.mxu0 %vm201_vm1, %v6380_v36 }
  0x7f   :  { %5018 = vmatmul.msk.bf16.gmra.mxu2 %vm201_vm1, %v6380_v36  ;;  %5026 = vmatmul.msk.bf16.gmra.mxu3 %vm201_vm1, %v6380_v36 }
  0x80   :  { %5010 = vmatmul.msk.bf16.gmra.mxu1 %vm201_vm1, %v6380_v36 }
  0x8b   :  { %v6390_v37 = vpop.f32.mrf.mxu0 }
  0x8d   :  { %v6480_v60 = vpop.f32.mrf.mxu1 }
  0x8e   :  { %5027 = vmatmul.msk.bf16.vlgmr.msrb.gmra.mxu0 %vm201_vm1, %v6261_v7 }
  0x8f   :  { %5043 = vmatmul.msk.bf16.vlgmr.msrb.gmra.mxu2 %vm201_vm1, %v6261_v7  ;;  %5051 = vmatmul.msk.bf16.vlgmr.msrb.gmra.mxu3 %vm201_vm1, %v6261_v7 }
  0x90   :  { %5035 = vmatmul.msk.bf16.vlgmr.msrb.gmra.mxu1 %vm201_vm1, %v6261_v7 }
  0x92   :  { %v6470_v57 = vpop.f32.mrf.mxu2  ;;  %v6472_v58 = vpop.f32.mrf.mxu3 }
  0x93   :  { %v6394_v38 = vpop.f32.mrf.mxu0  ;;  %9589 = vst [vmem:[#allocation7_spill] sm:$0xff] %v6470_v57 }
  0x94   :  { %9590 = vst [vmem:[#allocation8_spill] sm:$0xff] %v6472_v58 }
  0x95   :  { %v6494_v1 = vpop.f32.mrf.mxu1 }
  0x9a   :  { %v6484_v62 = vpop.f32.mrf.mxu2  ;;  %v6486_v63 = vpop.f32.mrf.mxu3 }
  0x9b   :  { %v6402_v39 = vpop.f32.mrf.mxu0  ;;  %9591 = vst [vmem:[#allocation9_spill] sm:$0xff] %v6484_v62 }
  0x9c   :  { %9592 = vst [vmem:[#allocation10_spill] sm:$0xff] %v6486_v63 }
  0x9d   :  { %v6511_v6 = vpop.f32.mrf.mxu1 }
  0x9e   :  { %5028 = vmatmul.msk.bf16.gmra.mxu0 %vm201_vm1, %v6280_v12 }
  0x9f   :  { %5044 = vmatmul.msk.bf16.gmra.mxu2 %vm201_vm1, %v6280_v12  ;;  %5052 = vmatmul.msk.bf16.gmra.mxu3 %vm201_vm1, %v6280_v12 }
  0xa0   :  { %5036 = vmatmul.msk.bf16.gmra.mxu1 %vm201_vm1, %v6280_v12 }
  0xa2   :  { %v6496_v2 = vpop.f32.mrf.mxu2  ;;  %v6498_v3 = vpop.f32.mrf.mxu3 }
  0xa3   :  { %v6406_v40 = vpop.f32.mrf.mxu0  ;;  %9593 = vst [vmem:[#allocation11_spill] sm:$0xff] %v6496_v2 }
  0xa4   :  { %9594 = vst [vmem:[#allocation12_spill] sm:$0xff] %v6498_v3 }
  0xa5   :  { %v6530_v11 = vpop.f32.mrf.mxu1 }
  0xa6   :  { %9599 = vst [vmem:[#allocation17_spill] sm:$0xff] %v6530_v11 }
  0xaa   :  { %v6515_v7 = vpop.f32.mrf.mxu2  ;;  %v6519_v8 = vpop.f32.mrf.mxu3 }
  0xab   :  { %v6414_v41 = vpop.f32.mrf.mxu0  ;;  %9596 = vst [vmem:[#allocation14_spill] sm:$0xff] %v6515_v7 }
  0xac   :  { %9597 = vst [vmem:[#allocation15_spill] sm:$0xff] %v6519_v8 }
  0xad   :  { %v6551_v16 = vpop.f32.mrf.mxu1 }
  0xae   :  { %5029 = vmatmul.msk.bf16.gmra.mxu0 %vm201_vm1, %v6287_v13 }
  0xaf   :  { %5045 = vmatmul.msk.bf16.gmra.mxu2 %vm201_vm1, %v6287_v13  ;;  %5053 = vmatmul.msk.bf16.gmra.mxu3 %vm201_vm1, %v6287_v13 }
  0xb0   :  { %5037 = vmatmul.msk.bf16.gmra.mxu1 %vm201_vm1, %v6287_v13 }
  0xb2   :  { %v6536_v12 = vpop.f32.mrf.mxu2  ;;  %v6538_v13 = vpop.f32.mrf.mxu3 }
  0xb3   :  { %v6418_v42 = vpop.f32.mrf.mxu0  ;;  %9600 = vst [vmem:[#allocation18_spill] sm:$0xff] %v6536_v12 }
  0xb4   :  { %9601 = vst [vmem:[#allocation19_spill] sm:$0xff] %v6538_v13 }
  0xb5   :  { %v6580_v24 = vpop.f32.mrf.mxu1 }
  0xba   :  { %v6560_v19 = vpop.f32.mrf.mxu2  ;;  %v6562_v20 = vpop.f32.mrf.mxu3 }
  0xbb   :  { %v6426_v43 = vpop.f32.mrf.mxu0  ;;  %9604 = vst [vmem:[#allocation22_spill] sm:$0xff] %v6560_v19 }
  0xbc   :  { %9605 = vst [vmem:[#allocation23_spill] sm:$0xff] %v6562_v20  ;;  %v6765_v20 = vpop.permute.xlu2 %75 }
  0xbd   :  { %v6606_v32 = vpop.f32.mrf.mxu1  ;;  %9631 = vst [vmem:[#allocation49_spill] sm:$0xff] %v6765_v20 }
  0xbe   :  { %5030 = vmatmul.msk.bf16.gmra.mxu0 %vm201_vm1, %v6303_v17  ;;  %9610 = vst [vmem:[#allocation28_spill] sm:$0xff] %v6606_v32 }
  0xbf   :  { %5046 = vmatmul.msk.bf16.gmra.mxu2 %vm201_vm1, %v6303_v17  ;;  %5054 = vmatmul.msk.bf16.gmra.mxu3 %vm201_vm1, %v6303_v17 }
  0xc0   :  { %5038 = vmatmul.msk.bf16.gmra.mxu1 %vm201_vm1, %v6303_v17 }
  0xc2   :  { %v6592_v28 = vpop.f32.mrf.mxu3 }
  0xc3   :  { %v6430_v44 = vpop.f32.mrf.mxu0  ;;  %9608 = vst [vmem:[#allocation26_spill] sm:$0xff] %v6592_v28 }
  0xc4   :  { %v6775_v19 = vpop.permute.xlu2 %95 }
  0xc5   :  { %v6639_v51 = vpop.f32.mrf.mxu1  ;;  %9634 = vst [vmem:[#allocation52_spill] sm:$0xff] %v6775_v19  ;;  %v265_v11 = vadd.f32 %v6418_v42, %v6775_v19 }
  0xc6   :  { %9614 = vst [vmem:[#allocation32_spill] sm:$0xff] %v6639_v51 }
  0xca   :  { %v6615_v35 = vpop.f32.mrf.mxu3 }
  0xcb   :  { %v6438_v49 = vpop.f32.mrf.mxu0  ;;  %9612 = vst [vmem:[#allocation30_spill] sm:$0xff] %v6615_v35 }
  0xcd   :  { %v6757_v8 = vpop.f32.mrf.mxu1 }
  0xce   :  { %5031 = vmatmul.msk.bf16.gmra.mxu0 %vm201_vm1, %v6322_v25  ;;  %9627 = vst [vmem:[#allocation45_spill] sm:$0xff] %v6757_v8 }
  0xcf   :  { %5047 = vmatmul.msk.bf16.gmra.mxu2 %vm201_vm1, %v6322_v25  ;;  %5055 = vmatmul.msk.bf16.gmra.mxu3 %vm201_vm1, %v6322_v25 }
  0xd0   :  { %5039 = vmatmul.msk.bf16.gmra.mxu1 %vm201_vm1, %v6322_v25  ;;  %v2710_v25 = vld [vmem:[%s9482_s6 + $0x10] sm:$0xff] }
  0xd1   :  { %2736 = vperm.xlu0 %5455, %v2710_v25   ;;  %v6648_v25 = vld [vmem:[%s9478_s2 + $0x38] sm:$0xff] }
  0xd3   :  { %v6445_v52 = vpop.f32.mrf.mxu0 }
  0xd5   :  { %v6763_v63 = vpop.f32.mrf.mxu1 }
  0xd6   :  { %9630 = vst [vmem:[#allocation48_spill] sm:$0xff] %v6763_v63 }
  0xd9   :  { %2751 = vperm.xlu0 %5455, %v2713_v31   ;;  %v2716_v31 = vld [vmem:[%s9482_s6 + $0x40] sm:$0xff] }
  0xdb   :  { %v6451_v53 = vpop.f32.mrf.mxu0 }
  0xdd   :  { %v6777_v57 = vpop.f32.mrf.mxu1 }
  0xde   :  { %5032 = vmatmul.msk.bf16.gmra.mxu0 %vm201_vm1, %v6338_v27  ;;  %9635 = vst [vmem:[#allocation53_spill] sm:$0xff] %v6777_v57 }
  0xdf   :  { %5048 = vmatmul.msk.bf16.gmra.mxu2 %vm201_vm1, %v6338_v27  ;;  %5056 = vmatmul.msk.bf16.gmra.mxu3 %vm201_vm1, %v6338_v27 }
  0xe0   :  { %5040 = vmatmul.msk.bf16.gmra.mxu1 %vm201_vm1, %v6338_v27  ;;  %v6590_v27 = vpop.f32.mrf.mxu2 }
  0xe1   :  { %9607 = vst [vmem:[#allocation25_spill] sm:$0xff] %v6590_v27  ;;  %2781 = vperm.xlu0 %5455, %v2719_v47   ;;  %v6666_v47 = vld [vmem:[%s9478_s2 + $0x40] sm:$0xff] }
  0xe3   :  { %v6457_v54 = vpop.f32.mrf.mxu0 }
  0xe8   :  { %v6613_v34 = vpop.f32.mrf.mxu2 }
  0xe9   :  { %9611 = vst [vmem:[#allocation29_spill] sm:$0xff] %v6613_v34  ;;  %2801 = vperm.xlu0 %5455, %v2723_v26   ;;  %v2712_v26 = vld [vmem:[%s9482_s6 + $0x20] sm:$0xff] }
  0xeb   :  { %v6464_v56 = vpop.f32.mrf.mxu0 }
  0xee   :  { %5033 = vmatmul.msk.bf16.gmra.mxu0 %vm201_vm1, %v6361_v33 }
  0xef   :  { %5049 = vmatmul.msk.bf16.gmra.mxu2 %vm201_vm1, %v6361_v33  ;;  %5057 = vmatmul.msk.bf16.gmra.mxu3 %vm201_vm1, %v6361_v33 }
  0xf0   :  { %5041 = vmatmul.msk.bf16.gmra.mxu1 %vm201_vm1, %v6361_v33  ;;  %v2708_v33 = vld [vmem:[%s9482_s6] sm:$0xff] }
  0xf1   :  { %2726 = vperm.xlu1 %5456, %v2708_v33  }
  0xf3   :  { %v6474_v59 = vpop.f32.mrf.mxu0 }
  0xf9   :  { %2776 = vperm.xlu1 %5456, %v2718_v48   ;;  %v2721_v48 = vld [vmem:[%s9482_s6 + $0x68] sm:$0xff] }
  0xfa   :  { %2791 = vperm.xlu0 %5455, %v2721_v48   ;;  %v2717_v48 = vld [vmem:[%s9482_s6 + $0x48] sm:$0xff] }
  0xfb   :  { %v6482_v61 = vpop.f32.mrf.mxu0 }
  0xfe   :  { %5034 = vmatmul.msk.bf16.gmra.mxu0 %vm201_vm1, %v6380_v36 }
  0xff   :  { %5050 = vmatmul.msk.bf16.gmra.mxu2 %vm201_vm1, %v6380_v36  ;;  %5058 = vmatmul.msk.bf16.gmra.mxu3 %vm201_vm1, %v6380_v36 }
 0x100   :  { %5042 = vmatmul.msk.bf16.gmra.mxu1 %vm201_vm1, %v6380_v36  ;;  %v2709_v36 = vld [vmem:[%s9482_s6 + $0x8] sm:$0xff] }
 0x101   :  { %2766 = vperm.xlu1 %5456, %v2716_v31   ;;  %2731 = vperm.xlu2 %5457, %v2709_v36   ;;  %v6684_v36 = vld [vmem:[%s9478_s2 + $0x48] sm:$0xff] }
 0x103   :  { %v6492_v0 = vpop.f32.mrf.mxu0 }
 0x109   :  { %2786 = vperm.xlu1 %5456, %v2720_v50   ;;  %2746 = vperm.xlu2 %5457, %v2712_v26   ;;  %v6696_v50 = vld [vmem:[%s9478_s2 + $0x50] sm:$0xff] }
 0x10a   :  { %v2722_v26 = vld [vmem:[%s9482_s6 + $0x70] sm:$0xff] }
 0x10b   :  { %v6504_v4 = vpop.f32.mrf.mxu0 }
 0x10c   :  { %9595 = vst [vmem:[#allocation13_spill] sm:$0xff] %v6504_v4 }
 0x10e   :  { %5059 = vmatmul.msk.f32.vlgmr.msra.gmra.mxu0 %vm795_vm2, %v6509_v5 }
 0x111   :  { %2771 = vperm.xlu2 %5457, %v2717_v48   ;;  %v6708_v48 = vld [vmem:[%s9478_s2 + $0x58] sm:$0xff] }
 0x113   :  { %v6521_v9 = vpop.f32.mrf.mxu0 }
 0x114   :  { %9598 = vst [vmem:[#allocation16_spill] sm:$0xff] %v6521_v9 }
 0x116   :  { %5060 = vmatmul.msk.f32.gmra.mxu0 %vm795_vm2, %v6526_v10 }
 0x119   :  { %2796 = vperm.xlu2 %5457, %v2722_v26   ;;  %v6720_v26 = vld [vmem:[%s9478_s2 + $0x60] sm:$0xff] }
 0x11b   :  { %v6540_v14 = vpop.f32.mrf.mxu0 }
 0x11c   :  { %9602 = vst [vmem:[#allocation20_spill] sm:$0xff] %v6540_v14  ;;  %v6751_v14 = vpop.permute.xlu0 %85 }
 0x11d   :  { %9624 = vst [vmem:[#allocation42_spill] sm:$0xff] %v6751_v14 }
 0x11e   :  { %5061 = vmatmul.msk.f32.gmra.mxu0 %vm795_vm2, %v6545_v15 }
 0x123   :  { %v6553_v17 = vpop.f32.mrf.mxu0 }
 0x124   :  { %9603 = vst [vmem:[#allocation21_spill] sm:$0xff] %v6553_v17  ;;  %v6755_v9 = vpop.permute.xlu0 %105 }
 0x125   :  { %9626 = vst [vmem:[#allocation44_spill] sm:$0xff] %v6755_v9 }
 0x126   :  { %5062 = vmatmul.msk.f32.gmra.mxu0 %vm795_vm2, %v6558_v18 }
 0x12b   :  { %v6573_v22 = vpop.f32.mrf.mxu0 }
 0x12c   :  { %9606 = vst [vmem:[#allocation24_spill] sm:$0xff] %v6573_v22  ;;  %v6729_v22 = vld [vmem:[%s9478_s2 + $0x68] sm:$0xff]  ;;  %v6761_v3 = vpop.permute.xlu0 %70 }
 0x12d   :  { %9629 = vst [vmem:[#allocation47_spill] sm:$0xff] %v6761_v3  ;;  %v253_v34 = vadd.f32 %v6390_v37, %v6761_v3 }
 0x12e   :  { %5063 = vmatmul.msk.f32.gmra.mxu0 %vm795_vm2, %v6578_v23 }
 0x133   :  { %v6596_v29 = vpop.f32.mrf.mxu0 }
 0x134   :  { %9609 = vst [vmem:[#allocation27_spill] sm:$0xff] %v6596_v29  ;;  %v6773_v2 = vpop.permute.xlu0 %120 }
 0x135   :  { %9633 = vst [vmem:[#allocation51_spill] sm:$0xff] %v6773_v2 }
 0x136   :  { %5064 = vmatmul.msk.f32.gmra.mxu0 %vm795_vm2, %v6601_v30 }
 0x13b   :  { %v6621_v45 = vpop.f32.mrf.mxu0 }
 0x13c   :  { %9613 = vst [vmem:[#allocation31_spill] sm:$0xff] %v6621_v45 }
 0x13e   :  { %5065 = vmatmul.msk.f32.gmra.mxu0 %vm795_vm2, %v6626_v46 }
 0x143   :  { %v6643_v21 = vpop.f32.mrf.mxu0 }
 0x144   :  { %9615 = vst [vmem:[#allocation33_spill] sm:$0xff] %v6643_v21  ;;  %v6753_v21 = vpop.permute.xlu1 %80 }
 0x145   :  { %9625 = vst [vmem:[#allocation43_spill] sm:$0xff] %v6753_v21 }
 0x146   :  { %5066 = vmatmul.msk.f32.gmra.mxu0 %vm795_vm2, %v6648_v25 }
 0x14b   :  { %v6661_v33 = vpop.f32.mrf.mxu0 }
 0x14c   :  { %9616 = vst [vmem:[#allocation34_spill] sm:$0xff] %v6661_v33  ;;  %v6759_v35 = vpop.permute.xlu1 %100 }
 0x14d   :  { %9628 = vst [vmem:[#allocation46_spill] sm:$0xff] %v6759_v35  ;;  %v268_v42 = vadd.f32 %v6426_v43, %v6759_v35  ;;  %v270_v43 = vadd.f32 %v6430_v44, %v6755_v9 }
 0x14e   :  { %5067 = vmatmul.msk.f32.gmra.mxu0 %vm795_vm2, %v6666_v47 }
 0x153   :  { %v6679_v31 = vpop.f32.mrf.mxu0 }
 0x154   :  { %9617 = vst [vmem:[#allocation35_spill] sm:$0xff] %v6679_v31  ;;  %v4917_v31 = vld [vmem:[%s9484_s8] sm:$0x3]  ;;  %v6767_v58 = vpop.permute.xlu1 %90 }
 0x155   :  { %4920 = vperm.xlu2 %5457, %v4917_v31   ;;  %9632 = vst [vmem:[#allocation50_spill] sm:$0xff] %v6767_v58  ;;  %v263_v13 = vadd.f32 %v6414_v41, %v6767_v58  ;;  %v255_v41 = vadd.f32 %v6394_v38, %v6765_v20 }
 0x156   :  { %5068 = vmatmul.msk.f32.gmra.mxu0 %vm795_vm2, %v6684_v36 }
 0x15b   :  { %v6691_v55 = vpop.f32.mrf.mxu0 }
 0x15c   :  { %9618 = vst [vmem:[#allocation36_spill] sm:$0xff] %v6691_v55 }
 0x15e   :  { %5069 = vmatmul.msk.f32.gmra.mxu0 %vm795_vm2, %v6696_v50 }
 0x163   :  { %v6703_v33 = vpop.f32.mrf.mxu0 }
 0x164   :  { %9619 = vst [vmem:[#allocation37_spill] sm:$0xff] %v6703_v33 }
 0x166   :  { %5070 = vmatmul.msk.f32.gmra.mxu0 %vm795_vm2, %v6708_v48 }
 0x16b   :  { %v6715_v55 = vpop.f32.mrf.mxu0 }
 0x16c   :  { %9620 = vst [vmem:[#allocation38_spill] sm:$0xff] %v6715_v55  ;;  %v6738_v55 = vld [vmem:[%s9478_s2 + $0x70] sm:$0xff] }
 0x16e   :  { %5071 = vmatmul.msk.f32.gmra.mxu0 %vm795_vm2, %v6720_v26 }
 0x173   :  { %v6724_v33 = vpop.f32.mrf.mxu0 }
 0x174   :  { %9621 = vst [vmem:[#allocation39_spill] sm:$0xff] %v6724_v33  ;;  %v6747_v33 = vld [vmem:[%s9478_s2 + $0x78] sm:$0xff] }
 0x176   :  { %5072 = vmatmul.msk.f32.gmra.mxu0 %vm795_vm2, %v6729_v22 }
 0x17b   :  { %v6733_v31 = vpop.f32.mrf.mxu0 }
 0x17c   :  { %9622 = vst [vmem:[#allocation40_spill] sm:$0xff] %v6733_v31 }
 0x17e   :  { %5073 = vmatmul.msk.f32.gmra.mxu0 %vm795_vm2, %v6738_v55 }
 0x183   :  { %v6742_v4 = vpop.f32.mrf.mxu0 }
 0x184   :  { %9623 = vst [vmem:[#allocation41_spill] sm:$0xff] %v6742_v4 }
 0x186   :  { %5074 = vmatmul.msk.f32.gmra.mxu0 %vm795_vm2, %v6747_v33 }
 0x18b   :  { %v861_v29 = vpop.f32.mrf.mxu0 }
 0x18c   :  { %v909_v62 = vadd.f32 %v861_v29, %v253_v34  ;;  %v258_v29 = vadd.f32 %v6402_v39, %v6753_v21  ;;  %v6787_v34 = vpop.f32.mrf.mxu1  ;;  %v6793_v39 = vpop.permute.xlu1 %115 }
 0x18d   :  { %9637 = vst [vmem:[#allocation55_spill] sm:$0xff] %v6787_v34 }
 0x18e   :  { %v925_v63 = vmul.f32 0.5, %v909_v62  ;;  %9638 = vst [vmem:[#allocation56_spill] sm:$0xff] %v6793_v39 }
 0x193   :  { %v864_v31 = vpop.f32.mrf.mxu0 }
 0x194   :  { %v910_v37 = vadd.f32 %v864_v31, %v255_v41 }
 0x19b   :  { %v867_v45 = vpop.f32.mrf.mxu0 }
 0x19c   :  { %v911_v62 = vadd.f32 %v867_v45, %v258_v29 }
 0x19e   :  { %v927_v41 = vmul.f32 0.5, %v911_v62 }
 0x1a3   :  { %v870_v17 = vpop.f32.mrf.mxu0 }
 0x1ab   :  { %v873_v4 = vpop.f32.mrf.mxu0 }
 0x1ac   :  { %v913_v27 = vadd.f32 %v873_v4, %v263_v13  ;;  %v6783_v4 = vpop.permute.xlu0 %110 }
 0x1ad   :  { %9636 = vst [vmem:[#allocation54_spill] sm:$0xff] %v6783_v4  ;;  %v273_v38 = vadd.f32 %v6438_v49, %v6783_v4  ;;  %v275_v49 = vadd.f32 %v6445_v52, %v6793_v39 }
 0x1ae   :  { %v941_v12 = vmul.f32 0.5, %v913_v27  ;;  %v926_v27 = vmul.f32 0.5, %v910_v37 }
 0x1b0   :  { %5458 = vtanh.f32 %v941_v12 }
 0x1b1   :  { %5460 = vtanh.f32 %v925_v63 }
 0x1b3   :  { %v876_v28 = vpop.f32.mrf.mxu0 }
 0x1b4   :  { %v914_v8 = vadd.f32 %v876_v28, %v265_v11 }
 0x1b6   :  { %v942_v13 = vmul.f32 0.5, %v914_v8  ;;  %v5459_v57 = vpop.eup %5458 }
 0x1b7   :  { %v5461_v12 = vpop.eup %5460  ;;  %v949_v8 = vmul.f32 0.5, %v5459_v57 }
 0x1b8   :  { %5462 = vtanh.f32 %v942_v13  ;;  %v933_v31 = vmul.f32 0.5, %v5461_v12  ;;  %v6801_v13 = vpop.f32.mrf.mxu1 }
 0x1b9   :  { %5464 = vtanh.f32 %v926_v27  ;;  %v953_v34 = vadd.f32 0.5, %v949_v8  ;;  %9639 = vst [vmem:[#allocation57_spill] sm:$0xff] %v6801_v13 }
 0x1ba   :  { %v937_v57 = vadd.f32 0.5, %v933_v31  ;;  %v278_v31 = vadd.f32 %v6451_v53, %v6773_v2 }
 0x1bb   :  { %v879_v7 = vpop.f32.mrf.mxu0 }
 0x1bc   :  { %v915_v63 = vadd.f32 %v879_v7, %v268_v42  ;;  %v260_v7 = vadd.f32 %v6406_v40, %v6751_v14 }
 0x1be   :  { %v943_v37 = vmul.f32 0.5, %v915_v63  ;;  %v5463_v32 = vpop.eup %5462  ;;  %v912_v62 = vadd.f32 %v870_v17, %v260_v7 }
 0x1bf   :  { %v5465_v45 = vpop.eup %5464  ;;  %v950_v12 = vmul.f32 0.5, %v5463_v32 }
 0x1c0   :  { %v934_v63 = vmul.f32 0.5, %v5465_v45  ;;  %v928_v40 = vmul.f32 0.5, %v912_v62  ;;  %v6809_v45 = vpop.permute.xlu2 %125 }
 0x1c1   :  { %v954_v14 = vadd.f32 0.5, %v950_v12  ;;  %v280_v53 = vadd.f32 %v6457_v54, %v6809_v45 }
 0x1c3   :  { %v882_v51 = vpop.f32.mrf.mxu0  ;;  %v978_v32 = vmul.f32 0.0, %v954_v14 }
 0x1c4   :  { %v916_v42 = vadd.f32 %v882_v51, %v270_v43 }
 0x1cb   :  { %v885_v11 = vpop.f32.mrf.mxu0 }
 0x1cc   :  { %v917_v28 = vadd.f32 %v885_v11, %v273_v38  ;;  %v977_v11 = vmul.f32 0.0, %v953_v34  ;;  %v6807_v34 = vpop.f32.mrf.mxu1 }
 0x1ce   :  { %5466 = vtanh.f32 %v917_v28  ;;  %v944_v28 = vmul.f32 0.5, %v916_v42 }
 0x1cf   :  { %5468 = vtanh.f32 %v927_v41  ;;  %v938_v41 = vadd.f32 0.5, %v934_v63 }
 0x1d0   :  { %5470 = vtanh.f32 %v943_v37 }
 0x1d3   :  { %v888_v29 = vpop.f32.mrf.mxu0 }
 0x1d4   :  { %v5467_v27 = vpop.eup %5466  ;;  %v918_v38 = vadd.f32 %v888_v29, %v275_v49  ;;  %v6815_v63 = vpop.f32.mrf.mxu1 }
 0x1d5   :  { %v981_v44 = vmul.f32 %v5467_v27, %v937_v57  ;;  %v5469_v8 = vpop.eup %5468 }
 0x1d6   :  { %5472 = vtanh.f32 %v918_v38  ;;  %v5471_v13 = vpop.eup %5470  ;;  %v935_v7 = vmul.f32 0.5, %v5469_v8 }
 0x1d7   :  { %v6803_v52 = vadd.f32 %v981_v44, %v977_v11  ;;  %5474 = vtanh.f32 %v944_v28  ;;  %v951_v43 = vmul.f32 0.5, %v5471_v13 }
 0x1d8   :  { %5476 = vtanh.f32 %v928_v40  ;;  %v939_v38 = vadd.f32 0.5, %v935_v7  ;;  %v6825_v7 = vpop.permute.xlu1 %140 }
 0x1d9   :  { %v955_v29 = vadd.f32 0.5, %v951_v43  ;;  %9640 = vst [vmem:[#allocation58_spill] sm:$0xff] %v6825_v7 }
 0x1db   :  { %v891_v37 = vpop.f32.mrf.mxu0  ;;  %v979_v44 = vmul.f32 0.0, %v955_v29 }
 0x1dc   :  { %v5473_v51 = vpop.eup %5472  ;;  %v919_v17 = vadd.f32 %v891_v37, %v278_v31  ;;  %v6823_v43 = vpop.f32.mrf.mxu1 }
 0x1dd   :  { %v982_v49 = vmul.f32 %v5473_v51, %v938_v41  ;;  %v5475_v27 = vpop.eup %5474 }
 0x1de   :  { %5478 = vtanh.f32 %v919_v17  ;;  %v5477_v42 = vpop.eup %5476  ;;  %v952_v14 = vmul.f32 0.5, %v5475_v27  ;;  %v6819_v17 = vpop.permute.xlu2 %145 }
 0x1df   :  { %v6811_v57 = vadd.f32 %v982_v49, %v978_v32  ;;  %v936_v28 = vmul.f32 0.5, %v5477_v42  ;;  %v6829_v27 = vpop.permute.xlu0 %130 }
 0x1e0   :  { %v956_v40 = vadd.f32 0.5, %v952_v14  ;;  %9642 = vst [vmem:[#allocation60_spill] sm:$0xff] %v6829_v27 }
 0x1e1   :  { %v940_v31 = vadd.f32 0.5, %v936_v28  ;;  %v290_v28 = vadd.f32 %v6492_v0, %v6819_v17 }
 0x1e2   :  { %v980_v51 = vmul.f32 0.0, %v956_v40 }
 0x1e3   :  { %v894_v62 = vpop.f32.mrf.mxu0 }
 0x1e4   :  { %v5479_v11 = vpop.eup %5478  ;;  %v920_v12 = vadd.f32 %v894_v62, %v280_v53  ;;  %v288_v53 = vadd.f32 %v6482_v61, %v6825_v7  ;;  %v6833_v42 = vpop.f32.mrf.mxu1 }
 0x1e5   :  { %v983_v13 = vmul.f32 %v5479_v11, %v939_v38  ;;  %9643 = vst [vmem:[#allocation61_spill] sm:$0xff] %v6833_v42 }
 0x1e6   :  { %5480 = vtanh.f32 %v920_v12  ;;  %v6827_v29 = vpop.permute.xlu2 %135  ;;  %v283_v12 = vadd.f32 %v6464_v56, %v6829_v27 }
 0x1e7   :  { %v6817_v8 = vadd.f32 %v983_v13, %v979_v44  ;;  %9641 = vst [vmem:[#allocation59_spill] sm:$0xff] %v6827_v29  ;;  %v285_v62 = vadd.f32 %v6474_v59, %v6827_v29 }
 0x1eb   :  { %v897_v41 = vpop.f32.mrf.mxu0 }
 0x1ec   :  { %v5481_v37 = vpop.eup %5480  ;;  %v921_v14 = vadd.f32 %v897_v41, %v283_v12 }
 0x1ed   :  { %v984_v54 = vmul.f32 %v5481_v37, %v940_v31 }
 0x1ee   :  { %v961_v31 = vmul.f32 0.5, %v921_v14 }
 0x1ef   :  { %v6821_v32 = vadd.f32 %v984_v54, %v980_v51  ;;  %v6841_v51 = vpop.f32.mrf.mxu1 }
 0x1f0   :  { %9644 = vst [vmem:[#allocation62_spill] sm:$0xff] %v6841_v51 }
 0x1f3   :  { %v900_v49 = vpop.f32.mrf.mxu0 }
 0x1f4   :  { %v922_v44 = vadd.f32 %v900_v49, %v285_v62 }
 0x1f6   :  { %v962_v40 = vmul.f32 0.5, %v922_v44 }
 0x1f7   :  { %v6845_v0 = vpop.f32.mrf.mxu1 }
 0x1f8   :  { %9645 = vst [vmem:[#allocation63_spill] sm:$0xff] %v6845_v0  ;;  %v304_v0 = vadd.f32 %v6494_v1, %v6765_v20 }
 0x1fb   :  { %v903_v38 = vpop.f32.mrf.mxu0 }
 0x1fc   :  { %v923_v11 = vadd.f32 %v903_v38, %v288_v53 }
 0x1fe   :  { %v963_v13 = vmul.f32 0.5, %v923_v11 }
 0x200   :  { %5482 = vtanh.f32 %v963_v13 }
 0x201   :  { %5484 = vtanh.f32 %v962_v40 }
 0x202   :  { %5486 = vtanh.f32 %v961_v31 }
 0x203   :  { %v906_v37 = vpop.f32.mrf.mxu0 }
 0x204   :  { %v924_v61 = vadd.f32 %v906_v37, %v290_v28 }
 0x206   :  { %v964_v54 = vmul.f32 0.5, %v924_v61  ;;  %v5483_v59 = vpop.eup %5482 }
 0x207   :  { %v5485_v53 = vpop.eup %5484  ;;  %v971_v41 = vmul.f32 0.5, %v5483_v59 }
 0x208   :  { %5488 = vtanh.f32 %v964_v54  ;;  %v5487_v56 = vpop.eup %5486  ;;  %v970_v38 = vmul.f32 0.5, %v5485_v53  ;;  %v6857_v53 = vpop.f32.mrf.mxu1 }
 0x209   :  { %5490 = vtanh.f32 %v6821_v32  ;;  %v969_v11 = vmul.f32 0.5, %v5487_v56  ;;  %v975_v12 = vadd.f32 0.5, %v971_v41  ;;  %9649 = vst [vmem:[#allocation67_spill] sm:$0xff] %v6857_v53 }
 0x20a   :  { %5492 = vtanh.f32 %v6817_v8  ;;  %v974_v13 = vadd.f32 0.5, %v970_v38 }
 0x20b   :  { %5494 = vtanh.f32 %v6811_v57  ;;  %v973_v31 = vadd.f32 0.5, %v969_v11 }
 0x20c   :  { %5496 = vtanh.f32 %v6803_v52 }
 0x20e   :  { %v5489_v49 = vpop.eup %5488 }
 0x20f   :  { %v972_v62 = vmul.f32 0.5, %v5489_v49  ;;  %v5491_v14 = vpop.eup %5490 }
 0x210   :  { %v5493_v40 = vpop.eup %5492  ;;  %v6865_v41 = vpop.f32.mrf.mxu1 }
 0x211   :  { %v976_v44 = vadd.f32 0.5, %v972_v62  ;;  %v6852_v37 = vmul.f32 %v5493_v40, %v975_v12  ;;  %v5495_v61 = vpop.eup %5494  ;;  %9651 = vst [vmem:[#allocation69_spill] sm:$0xff] %v6865_v41 }
 0x212   :  { %v6855_v54 = vmul.f32 %v5495_v61, %v974_v13  ;;  %v5497_v59 = vpop.eup %5496 }
 0x213   :  { %v6849_v28 = vmul.f32 %v5491_v14, %v976_v44  ;;  %9647 = vst [vmem:[#allocation65_spill] sm:$0xff] %v6852_v37  ;;  %v6860_v56 = vmul.f32 %v5497_v59, %v973_v31 }
 0x214   :  { %9648 = vst [vmem:[#allocation66_spill] sm:$0xff] %v6855_v54 }
 0x215   :  { %9646 = vst [vmem:[#allocation64_spill] sm:$0xff] %v6849_v28  ;;  %1093 = vmatpush.msra.mxu1 %v6849_v28 }
 0x216   :  { %9650 = vst [vmem:[#allocation68_spill] sm:$0xff] %v6860_v56 }
 0x217   :  { %1094 = vmatpush.msra.mxu1 %v6852_v37 }
 0x218   :  { %v6871_v49 = vpop.f32.mrf.mxu1 }
 0x219   :  { %1095 = vmatpush.msra.mxu1 %v6855_v54  ;;  %9652 = vst [vmem:[#allocation70_spill] sm:$0xff] %v6871_v49  ;;  %v314_v49 = vadd.f32 %v6580_v24, %v6775_v19 }
 0x21b   :  { %1096 = vmatpush.msra.mxu1 %v6860_v56 }
 0x21c   :  { %5075 = vmatmul.msk.f32.vlgmr.msra.gmra.mxu1 %vm795_vm2, %v6509_v5 }
 0x220   :  { %v6875_v38 = vpop.f32.mrf.mxu1 }
 0x221   :  { %9653 = vst [vmem:[#allocation71_spill] sm:$0xff] %v6875_v38 }
 0x224   :  { %5076 = vmatmul.msk.f32.gmra.mxu1 %vm795_vm2, %v6526_v10 }
 0x228   :  { %v6879_v62 = vpop.f32.mrf.mxu1 }
 0x229   :  { %9654 = vst [vmem:[#allocation72_spill] sm:$0xff] %v6879_v62 }
 0x22c   :  { %5077 = vmatmul.msk.f32.gmra.mxu1 %vm795_vm2, %v6545_v15 }
 0x230   :  { %v6883_v5 = vpop.f32.mrf.mxu1 }
 0x231   :  { %9655 = vst [vmem:[#allocation73_spill] sm:$0xff] %v6883_v5  ;;  %v6919_v5 = vpop.f32.mrf.mxu2 }
 0x234   :  { %5078 = vmatmul.msk.f32.gmra.mxu1 %vm795_vm2, %v6558_v18 }
 0x238   :  { %v6889_v10 = vpop.f32.mrf.mxu1 }
 0x239   :  { %9656 = vst [vmem:[#allocation74_spill] sm:$0xff] %v6889_v10  ;;  %v312_v10 = vadd.f32 %v6551_v16, %v6767_v58 }
 0x23c   :  { %5079 = vmatmul.msk.f32.gmra.mxu1 %vm795_vm2, %v6578_v23 }
 0x240   :  { %v6893_v15 = vpop.f32.mrf.mxu1 }
 0x241   :  { %9657 = vst [vmem:[#allocation75_spill] sm:$0xff] %v6893_v15 }
 0x244   :  { %5080 = vmatmul.msk.f32.gmra.mxu1 %vm795_vm2, %v6601_v30 }
 0x248   :  { %v6897_v11 = vpop.f32.mrf.mxu1 }
 0x249   :  { %9658 = vst [vmem:[#allocation76_spill] sm:$0xff] %v6897_v11 }
 0x24c   :  { %5081 = vmatmul.msk.f32.gmra.mxu1 %vm795_vm2, %v6626_v46 }
 0x250   :  { %v6901_v12 = vpop.f32.mrf.mxu1 }
 0x251   :  { %9659 = vst [vmem:[#allocation77_spill] sm:$0xff] %v6901_v12 }
 0x254   :  { %5082 = vmatmul.msk.f32.gmra.mxu1 %vm795_vm2, %v6648_v25 }
 0x258   :  { %v6907_v44 = vpop.f32.mrf.mxu1 }
 0x259   :  { %9660 = vst [vmem:[#allocation78_spill] sm:$0xff] %v6907_v44 }
 0x25c   :  { %5083 = vmatmul.msk.f32.gmra.mxu1 %vm795_vm2, %v6666_v47 }
 0x260   :  { %v6911_v14 = vpop.f32.mrf.mxu1 }
 0x261   :  { %9661 = vst [vmem:[#allocation79_spill] sm:$0xff] %v6911_v14  ;;  %v6923_v14 = vpop.f32.mrf.mxu2 }
 0x264   :  { %5084 = vmatmul.msk.f32.gmra.mxu1 %vm795_vm2, %v6684_v36 }
 0x268   :  { %v6915_v13 = vpop.f32.mrf.mxu1 }
 0x269   :  { %9662 = vst [vmem:[#allocation80_spill] sm:$0xff] %v6915_v13  ;;  %v302_v13 = vadd.f32 %v6480_v60, %v6761_v3  ;;  %v6931_v16 = vpop.f32.mrf.mxu2  ;;  %v307_v60 = vadd.f32 %v6511_v6, %v6753_v21 }
 0x26a   :  { %9663 = vst [vmem:[#allocation81_spill] sm:$0xff] %v6931_v16 }
 0x26c   :  { %5085 = vmatmul.msk.f32.gmra.mxu1 %vm795_vm2, %v6696_v50 }
 0x274   :  { %5086 = vmatmul.msk.f32.gmra.mxu1 %vm795_vm2, %v6708_v48 }
 0x27c   :  { %5087 = vmatmul.msk.f32.gmra.mxu1 %vm795_vm2, %v6720_v26 }
 0x284   :  { %5088 = vmatmul.msk.f32.gmra.mxu1 %vm795_vm2, %v6729_v22 }
 0x28c   :  { %5089 = vmatmul.msk.f32.gmra.mxu1 %vm795_vm2, %v6738_v55 }
 0x294   :  { %5090 = vmatmul.msk.f32.gmra.mxu1 %vm795_vm2, %v6747_v33 }
 0x299   :  { %v1098_v40 = vpop.f32.mrf.mxu1 }
 0x29a   :  { %v1146_v41 = vadd.f32 %v1098_v40, %v302_v13 }
 0x29c   :  { %v1162_v38 = vmul.f32 0.5, %v1146_v41  ;;  %v9665_v41 = vld [vmem:[#allocation45_spill] sm:$0xff] }
 0x29d   :  { %v322_v13 = vadd.f32 %v9665_v41, %v6783_v4 }
 0x2a1   :  { %v1101_v31 = vpop.f32.mrf.mxu1 }
 0x2a2   :  { %v1147_v51 = vadd.f32 %v1101_v31, %v304_v0 }
 0x2a9   :  { %v1104_v61 = vpop.f32.mrf.mxu1 }
 0x2aa   :  { %v1148_v1 = vadd.f32 %v1104_v61, %v307_v60  ;;  %v9668_v61 = vld [vmem:[#allocation48_spill] sm:$0xff] }
 0x2ab   :  { %v324_v60 = vadd.f32 %v9668_v61, %v6793_v39 }
 0x2b1   :  { %v1107_v59 = vpop.f32.mrf.mxu1 }
 0x2b9   :  { %v1110_v12 = vpop.f32.mrf.mxu1 }
 0x2ba   :  { %v1150_v11 = vadd.f32 %v1110_v12, %v312_v10  ;;  %v1163_v10 = vmul.f32 0.5, %v1147_v51  ;;  %v9664_v12 = vld [vmem:[#allocation28_spill] sm:$0xff]  ;;  %v1164_v51 = vmul.f32 0.5, %v1148_v1 }
 0x2bb   :  { %v317_v24 = vadd.f32 %v9664_v12, %v6759_v35  ;;  %v9667_v12 = vld [vmem:[#allocation32_spill] sm:$0xff] }
 0x2bc   :  { %v1178_v42 = vmul.f32 0.5, %v1150_v11  ;;  %v319_v37 = vadd.f32 %v9667_v12, %v6755_v9 }
 0x2be   :  { %5498 = vtanh.f32 %v1178_v42 }
 0x2bf   :  { %5500 = vtanh.f32 %v1162_v38 }
 0x2c1   :  { %v1113_v44 = vpop.f32.mrf.mxu1 }
 0x2c2   :  { %v1151_v53 = vadd.f32 %v1113_v44, %v314_v49 }
 0x2c4   :  { %v1179_v56 = vmul.f32 0.5, %v1151_v53  ;;  %v5499_v11 = vpop.eup %5498  ;;  %v6939_v53 = vpop.f32.mrf.mxu2 }
 0x2c5   :  { %v5501_v42 = vpop.eup %5500  ;;  %v1186_v0 = vmul.f32 0.5, %v5499_v11  ;;  %9666 = vst [vmem:[#allocation28_spill] sm:$0xff] %v6939_v53 }
 0x2c6   :  { %5502 = vtanh.f32 %v1179_v56  ;;  %v1170_v6 = vmul.f32 0.5, %v5501_v42  ;;  %v9669_v56 = vld [vmem:[#allocation42_spill] sm:$0xff] }
 0x2c7   :  { %5504 = vtanh.f32 %v1163_v10  ;;  %v1190_v31 = vadd.f32 0.5, %v1186_v0 }
 0x2c8   :  { %v1174_v10 = vadd.f32 0.5, %v1170_v6 }
 0x2c9   :  { %v1116_v15 = vpop.f32.mrf.mxu1 }
 0x2ca   :  { %v1152_v49 = vadd.f32 %v1116_v15, %v317_v24  ;;  %v9670_v15 = vld [vmem:[#allocation17_spill] sm:$0xff] }
 0x2cb   :  { %v309_v24 = vadd.f32 %v9670_v15, %v9669_v56 }
 0x2cc   :  { %v1180_v38 = vmul.f32 0.5, %v1152_v49  ;;  %v5503_v54 = vpop.eup %5502  ;;  %v1214_v49 = vmul.f32 %v1190_v31, %v6803_v52  ;;  %v6950_v16 = vpop.f32.mrf.mxu2 }
 0x2cd   :  { %v5505_v41 = vpop.eup %5504  ;;  %v1149_v42 = vadd.f32 %v1107_v59, %v309_v24 }
 0x2ce   :  { %v1171_v12 = vmul.f32 0.5, %v5505_v41 }
 0x2cf   :  { %v1165_v6 = vmul.f32 0.5, %v1149_v42 }
 0x2d1   :  { %v1119_v62 = vpop.f32.mrf.mxu1 }
 0x2d9   :  { %v1122_v40 = vpop.f32.mrf.mxu1 }
 0x2da   :  { %v1154_v44 = vadd.f32 %v1122_v40, %v322_v13  ;;  %v1153_v40 = vadd.f32 %v1119_v62, %v319_v37  ;;  %v1175_v62 = vadd.f32 0.5, %v1171_v12 }
 0x2dc   :  { %5506 = vtanh.f32 %v1154_v44  ;;  %v1187_v44 = vmul.f32 0.5, %v5503_v54  ;;  %v1181_v61 = vmul.f32 0.5, %v1153_v40  ;;  %v9672_v40 = vld [vmem:[#allocation55_spill] sm:$0xff] }
 0x2dd   :  { %5508 = vtanh.f32 %v1164_v51 }
 0x2de   :  { %5510 = vtanh.f32 %v1180_v38  ;;  %v1191_v51 = vadd.f32 0.5, %v1187_v44  ;;  %v9671_v38 = vld [vmem:[#allocation53_spill] sm:$0xff] }
 0x2df   :  { %v327_v37 = vadd.f32 %v9671_v38, %v6773_v2 }
 0x2e0   :  { %v1215_v54 = vmul.f32 %v1191_v51, %v6811_v57 }
 0x2e1   :  { %v1125_v11 = vpop.f32.mrf.mxu1 }
 0x2e2   :  { %v5507_v13 = vpop.eup %5506  ;;  %v1155_v1 = vadd.f32 %v1125_v11, %v324_v60 }
 0x2e3   :  { %v1218_v0 = vmul.f32 %v5507_v13, %v1174_v10  ;;  %v5509_v53 = vpop.eup %5508 }
 0x2e4   :  { %5512 = vtanh.f32 %v1155_v1  ;;  %v5511_v15 = vpop.eup %5510  ;;  %v1172_v24 = vmul.f32 0.5, %v5509_v53  ;;  %v329_v1 = vadd.f32 %v9672_v40, %v6809_v45 }
 0x2e5   :  { %v6948_v28 = vadd.f32 %v1218_v0, %v1214_v49  ;;  %5514 = vtanh.f32 %v1181_v61  ;;  %v1188_v31 = vmul.f32 0.5, %v5511_v15  ;;  %v6959_v49 = vpop.f32.mrf.mxu2 }
 0x2e6   :  { %5516 = vtanh.f32 %v1165_v6  ;;  %v1176_v44 = vadd.f32 0.5, %v1172_v24 }
 0x2e7   :  { %v1192_v11 = vadd.f32 0.5, %v1188_v31 }
 0x2e9   :  { %v1128_v59 = vpop.f32.mrf.mxu1  ;;  %v1216_v57 = vmul.f32 %v1192_v11, %v6817_v8  ;;  %v337_v8 = vadd.f32 %v6815_v63, %v6825_v7 }
 0x2ea   :  { %v5513_v60 = vpop.eup %5512  ;;  %v1156_v52 = vadd.f32 %v1128_v59, %v327_v37 }
 0x2eb   :  { %v1219_v41 = vmul.f32 %v5513_v60, %v1175_v62  ;;  %v5515_v13 = vpop.eup %5514 }
 0x2ec   :  { %5518 = vtanh.f32 %v1156_v52  ;;  %v5517_v42 = vpop.eup %5516  ;;  %v1189_v6 = vmul.f32 0.5, %v5515_v13  ;;  %v334_v13 = vadd.f32 %v6807_v34, %v6827_v29 }
 0x2ed   :  { %v6955_v10 = vadd.f32 %v1219_v41, %v1215_v54  ;;  %v1173_v53 = vmul.f32 0.5, %v5517_v42  ;;  %v6964_v60 = vpop.f32.mrf.mxu2 }
 0x2ee   :  { %v1193_v38 = vadd.f32 0.5, %v1189_v6 }
 0x2ef   :  { %v1177_v37 = vadd.f32 0.5, %v1173_v53 }
 0x2f0   :  { %v1217_v52 = vmul.f32 %v1193_v38, %v6821_v32 }
 0x2f1   :  { %v1131_v0 = vpop.f32.mrf.mxu1 }
 0x2f2   :  { %v5519_v12 = vpop.eup %5518  ;;  %v1157_v61 = vadd.f32 %v1131_v0, %v329_v1  ;;  %v9673_v1 = vld [vmem:[#allocation57_spill] sm:$0xff] }
 0x2f3   :  { %v1220_v51 = vmul.f32 %v5519_v12, %v1176_v44  ;;  %v332_v42 = vadd.f32 %v9673_v1, %v6829_v27 }
 0x2f4   :  { %5520 = vtanh.f32 %v1157_v61  ;;  %v339_v61 = vadd.f32 %v6823_v43, %v6819_v17 }
 0x2f5   :  { %v6962_v15 = vadd.f32 %v1220_v51, %v1216_v57  ;;  %v6969_v24 = vpop.f32.mrf.mxu2 }
 0x2f9   :  { %v1134_v62 = vpop.f32.mrf.mxu1 }
 0x2fa   :  { %v5521_v59 = vpop.eup %5520  ;;  %v1158_v0 = vadd.f32 %v1134_v62, %v332_v42 }
 0x2fb   :  { %v1221_v54 = vmul.f32 %v5521_v59, %v1177_v37 }
 0x2fc   :  { %v1198_v6 = vmul.f32 0.5, %v1158_v0 }
 0x2fd   :  { %v6967_v31 = vadd.f32 %v1221_v54, %v1217_v52  ;;  %v6977_v12 = vpop.f32.mrf.mxu2 }
 0x2fe   :  { %9674 = vst [vmem:[#allocation45_spill] sm:$0xff] %v6977_v12 }
 0x301   :  { %v1137_v41 = vpop.f32.mrf.mxu1 }
 0x302   :  { %v1159_v44 = vadd.f32 %v1137_v41, %v334_v13 }
 0x304   :  { %v1199_v57 = vmul.f32 0.5, %v1159_v44 }
 0x305   :  { %v6981_v38 = vpop.f32.mrf.mxu2 }
 0x306   :  { %9675 = vst [vmem:[#allocation32_spill] sm:$0xff] %v6981_v38 }
 0x309   :  { %v1140_v11 = vpop.f32.mrf.mxu1 }
 0x30a   :  { %v1160_v40 = vadd.f32 %v1140_v11, %v337_v8 }
 0x30c   :  { %v1200_v32 = vmul.f32 0.5, %v1160_v40 }
 0x30d   :  { %v6989_v44 = vpop.f32.mrf.mxu2 }
 0x30e   :  { %5522 = vtanh.f32 %v1200_v32  ;;  %9677 = vst [vmem:[#allocation17_spill] sm:$0xff] %v6989_v44 }
 0x30f   :  { %5524 = vtanh.f32 %v1199_v57 }
 0x310   :  { %5526 = vtanh.f32 %v1198_v6 }
 0x311   :  { %v1143_v51 = vpop.f32.mrf.mxu1 }
 0x312   :  { %v1161_v63 = vadd.f32 %v1143_v51, %v339_v61 }
 0x314   :  { %v1201_v53 = vmul.f32 0.5, %v1161_v63  ;;  %v5523_v34 = vpop.eup %5522  ;;  %v7003_v63 = vld [vmem:[%s9478_s2] sm:$0xff] }
 0x315   :  { %v5525_v37 = vpop.eup %5524  ;;  %v1208_v59 = vmul.f32 0.5, %v5523_v34  ;;  %v7013_v34 = vld [vmem:[%s9478_s2 + $0x8] sm:$0xff] }
 0x316   :  { %5528 = vtanh.f32 %v1201_v53  ;;  %v5527_v62 = vpop.eup %5526  ;;  %v1207_v43 = vmul.f32 0.5, %v5525_v37  ;;  %v7008_v53 = vpop.f32.mrf.mxu2 }
 0x317   :  { %5530 = vtanh.f32 %v6967_v31  ;;  %v1206_v41 = vmul.f32 0.5, %v5527_v62  ;;  %v1212_v8 = vadd.f32 0.5, %v1208_v59  ;;  %9681 = vst [vmem:[#allocation82_spill] sm:$0xff] %v7008_v53  ;;  %v7022_v62 = vld [vmem:[%s9478_s2 + $0x10] sm:$0xff] }
 0x318   :  { %5532 = vtanh.f32 %v6962_v15  ;;  %v1211_v40 = vadd.f32 0.5, %v1207_v43 }
 0x319   :  { %5534 = vtanh.f32 %v6955_v10  ;;  %v1210_v0 = vadd.f32 0.5, %v1206_v41 }
 0x31a   :  { %5536 = vtanh.f32 %v6948_v28 }
 0x31c   :  { %v5529_v52 = vpop.eup %5528 }
 0x31d   :  { %v1209_v54 = vmul.f32 0.5, %v5529_v52  ;;  %v5531_v13 = vpop.eup %5530 }
 0x31e   :  { %v5533_v42 = vpop.eup %5532  ;;  %v7017_v37 = vpop.f32.mrf.mxu2 }
 0x31f   :  { %v1213_v11 = vadd.f32 0.5, %v1209_v54  ;;  %v6992_v32 = vmul.f32 %v5533_v42, %v1212_v8  ;;  %v5535_v61 = vpop.eup %5534  ;;  %9682 = vst [vmem:[#allocation83_spill] sm:$0xff] %v7017_v37 }
 0x320   :  { %v6995_v57 = vmul.f32 %v5535_v61, %v1211_v40  ;;  %v5537_v6 = vpop.eup %5536 }
 0x321   :  { %v6987_v1 = vmul.f32 %v5531_v13, %v1213_v11  ;;  %9678 = vst [vmem:[#allocation53_spill] sm:$0xff] %v6992_v32  ;;  %v6998_v51 = vmul.f32 %v5537_v6, %v1210_v0  ;;  %v7074_v11 = vpop.f32.mrf.mxu3  ;;  %v9695_v0 = vld [vmem:[#allocation7_spill] sm:$0xff] }
 0x322   :  { %9679 = vst [vmem:[#allocation55_spill] sm:$0xff] %v6995_v57  ;;  %v351_v61 = vadd.f32 %v9695_v0, %v6761_v3  ;;  %v9698_v0 = vld [vmem:[#allocation11_spill] sm:$0xff] }
 0x323   :  { %9676 = vst [vmem:[#allocation48_spill] sm:$0xff] %v6987_v1  ;;  %1330 = vmatpush.msra.mxu2 %v6987_v1 }
 0x324   :  { %9680 = vst [vmem:[#allocation57_spill] sm:$0xff] %v6998_v51 }
 0x325   :  { %1331 = vmatpush.msra.mxu2 %v6992_v32 }
 0x326   :  { %v7026_v59 = vpop.f32.mrf.mxu2 }
 0x327   :  { %1332 = vmatpush.msra.mxu2 %v6995_v57  ;;  %9683 = vst [vmem:[#allocation84_spill] sm:$0xff] %v7026_v59 }
 0x329   :  { %1333 = vmatpush.msra.mxu2 %v6998_v51  ;;  %v7078_v42 = vpop.f32.mrf.mxu3  ;;  %v9732_v51 = vld [vmem:[#allocation10_spill] sm:$0xff] }
 0x32a   :  { %5091 = vmatmul.msk.f32.vlgmr.msra.gmra.mxu2 %vm795_vm2, %v7003_v63  ;;  %v402_v57 = vadd.f32 %v9732_v51, %v6765_v20 }
 0x32e   :  { %v7032_v52 = vpop.f32.mrf.mxu2 }
 0x32f   :  { %9684 = vst [vmem:[#allocation85_spill] sm:$0xff] %v7032_v52 }
 0x332   :  { %5092 = vmatmul.msk.f32.gmra.mxu2 %vm795_vm2, %v7013_v34 }
 0x336   :  { %v7036_v43 = vpop.f32.mrf.mxu2 }
 0x337   :  { %9685 = vst [vmem:[#allocation86_spill] sm:$0xff] %v7036_v43 }
 0x33a   :  { %5093 = vmatmul.msk.f32.gmra.mxu2 %vm795_vm2, %v7022_v62 }
 0x33e   :  { %v7040_v54 = vpop.f32.mrf.mxu2 }
 0x33f   :  { %9686 = vst [vmem:[#allocation87_spill] sm:$0xff] %v7040_v54 }
 0x342   :  { %5094 = vmatmul.msk.f32.gmra.mxu2 %vm795_vm2, %v6558_v18 }
 0x346   :  { %v7044_v41 = vpop.f32.mrf.mxu2 }
 0x347   :  { %9687 = vst [vmem:[#allocation88_spill] sm:$0xff] %v7044_v41 }
 0x34a   :  { %5095 = vmatmul.msk.f32.gmra.mxu2 %vm795_vm2, %v6578_v23 }
 0x34e   :  { %v7050_v18 = vpop.f32.mrf.mxu2 }
 0x34f   :  { %9688 = vst [vmem:[#allocation89_spill] sm:$0xff] %v7050_v18  ;;  %v9697_v18 = vld [vmem:[#allocation9_spill] sm:$0xff] }
 0x352   :  { %5096 = vmatmul.msk.f32.gmra.mxu2 %vm795_vm2, %v6601_v30 }
 0x356   :  { %v7054_v23 = vpop.f32.mrf.mxu2 }
 0x357   :  { %9689 = vst [vmem:[#allocation90_spill] sm:$0xff] %v7054_v23  ;;  %v353_v23 = vadd.f32 %v9697_v18, %v6765_v20 }
 0x35a   :  { %5097 = vmatmul.msk.f32.gmra.mxu2 %vm795_vm2, %v6626_v46 }
 0x35e   :  { %v7058_v30 = vpop.f32.mrf.mxu2 }
 0x35f   :  { %9690 = vst [vmem:[#allocation91_spill] sm:$0xff] %v7058_v30  ;;  %v9696_v30 = vld [vmem:[#allocation22_spill] sm:$0xff] }
 0x362   :  { %5098 = vmatmul.msk.f32.gmra.mxu2 %vm795_vm2, %v6648_v25 }
 0x366   :  { %v7062_v46 = vpop.f32.mrf.mxu2 }
 0x367   :  { %9691 = vst [vmem:[#allocation92_spill] sm:$0xff] %v7062_v46  ;;  %v363_v46 = vadd.f32 %v9696_v30, %v6775_v19 }
 0x36a   :  { %5099 = vmatmul.msk.f32.gmra.mxu2 %vm795_vm2, %v6666_v47 }
 0x36e   :  { %v7068_v25 = vpop.f32.mrf.mxu2 }
 0x36f   :  { %9692 = vst [vmem:[#allocation93_spill] sm:$0xff] %v7068_v25 }
 0x372   :  { %5100 = vmatmul.msk.f32.gmra.mxu2 %vm795_vm2, %v6684_v36 }
 0x376   :  { %v7072_v47 = vpop.f32.mrf.mxu2 }
 0x377   :  { %9693 = vst [vmem:[#allocation94_spill] sm:$0xff] %v7072_v47 }
 0x37a   :  { %5101 = vmatmul.msk.f32.gmra.mxu2 %vm795_vm2, %v6696_v50 }
 0x382   :  { %5102 = vmatmul.msk.f32.gmra.mxu2 %vm795_vm2, %v6708_v48 }
 0x38a   :  { %5103 = vmatmul.msk.f32.gmra.mxu2 %vm795_vm2, %v6720_v26 }
 0x392   :  { %5104 = vmatmul.msk.f32.gmra.mxu2 %vm795_vm2, %v6729_v22  ;;  %v9694_v22 = vld [vmem:[#allocation18_spill] sm:$0xff] }
 0x393   :  { %v361_v40 = vadd.f32 %v9694_v22, %v6767_v58  ;;  %v7086_v22 = vpop.f32.mrf.mxu3 }
 0x39a   :  { %5105 = vmatmul.msk.f32.gmra.mxu2 %vm795_vm2, %v6738_v55 }
 0x3a2   :  { %5106 = vmatmul.msk.f32.gmra.mxu2 %vm795_vm2, %v6747_v33 }
 0x3ad   :  { %v1335_v36 = vpop.f32.mrf.mxu2 }
 0x3ae   :  { %v1383_v6 = vadd.f32 %v1335_v36, %v351_v61  ;;  %v9699_v61 = vld [vmem:[#allocation25_spill] sm:$0xff] }
 0x3af   :  { %v366_v30 = vadd.f32 %v9699_v61, %v6759_v35  ;;  %v9700_v61 = vld [vmem:[#allocation29_spill] sm:$0xff] }
 0x3b0   :  { %v1399_v25 = vmul.f32 0.5, %v1383_v6  ;;  %v368_v54 = vadd.f32 %v9700_v61, %v6755_v9 }
 0x3b5   :  { %v1338_v50 = vpop.f32.mrf.mxu2 }
 0x3b6   :  { %v1384_v43 = vadd.f32 %v1338_v50, %v353_v23 }
 0x3b8   :  { %v1400_v36 = vmul.f32 0.5, %v1384_v43 }
 0x3bd   :  { %v1341_v48 = vpop.f32.mrf.mxu2 }
 0x3c5   :  { %v1344_v8 = vpop.f32.mrf.mxu2 }
 0x3cd   :  { %v1347_v26 = vpop.f32.mrf.mxu2 }
 0x3ce   :  { %v1387_v33 = vadd.f32 %v1347_v26, %v361_v40  ;;  %v356_v26 = vadd.f32 %v9698_v0, %v6753_v21 }
 0x3d0   :  { %v1415_v47 = vmul.f32 0.5, %v1387_v33  ;;  %v371_v33 = vadd.f32 %v6919_v5, %v6783_v4  ;;  %v1385_v18 = vadd.f32 %v1341_v48, %v356_v26  ;;  %v373_v5 = vadd.f32 %v6923_v14, %v6793_v39 }
 0x3d2   :  { %5538 = vtanh.f32 %v1415_v47  ;;  %v1401_v43 = vmul.f32 0.5, %v1385_v18 }
 0x3d3   :  { %5540 = vtanh.f32 %v1399_v25 }
 0x3d5   :  { %v1350_v13 = vpop.f32.mrf.mxu2 }
 0x3d6   :  { %v1388_v44 = vadd.f32 %v1350_v13, %v363_v46 }
 0x3d8   :  { %v1416_v53 = vmul.f32 0.5, %v1388_v44  ;;  %v5539_v40 = vpop.eup %5538  ;;  %v7094_v44 = vpop.f32.mrf.mxu3 }
 0x3d9   :  { %v5541_v47 = vpop.eup %5540  ;;  %v1423_v23 = vmul.f32 0.5, %v5539_v40 }
 0x3da   :  { %5542 = vtanh.f32 %v1416_v53  ;;  %v1407_v25 = vmul.f32 0.5, %v5541_v47  ;;  %v9701_v53 = vld [vmem:[#allocation14_spill] sm:$0xff] }
 0x3db   :  { %5544 = vtanh.f32 %v1400_v36  ;;  %v1427_v0 = vadd.f32 0.5, %v1423_v23 }
 0x3dc   :  { %v1411_v26 = vadd.f32 0.5, %v1407_v25 }
 0x3dd   :  { %v1353_v55 = vpop.f32.mrf.mxu2 }
 0x3de   :  { %v1389_v46 = vadd.f32 %v1353_v55, %v366_v30  ;;  %v358_v55 = vadd.f32 %v9701_v53, %v9669_v56 }
 0x3e0   :  { %v1417_v50 = vmul.f32 0.5, %v1389_v46  ;;  %v5543_v41 = vpop.eup %5542  ;;  %v1386_v18 = vadd.f32 %v1344_v8, %v358_v55  ;;  %v7105_v38 = vpop.f32.mrf.mxu3 }
 0x3e1   :  { %v5545_v48 = vpop.eup %5544  ;;  %v1424_v47 = vmul.f32 0.5, %v5543_v41 }
 0x3e2   :  { %v1402_v25 = vmul.f32 0.5, %v1386_v18 }
 0x3e5   :  { %v1356_v52 = vpop.f32.mrf.mxu2 }
 0x3e6   :  { %v1390_v30 = vadd.f32 %v1356_v52, %v368_v54 }
 0x3e8   :  { %v1418_v14 = vmul.f32 0.5, %v1390_v30  ;;  %v9703_v30 = vld [vmem:[#allocation28_spill] sm:$0xff] }
 0x3ed   :  { %v1359_v6 = vpop.f32.mrf.mxu2 }
 0x3ee   :  { %v1391_v13 = vadd.f32 %v1359_v6, %v371_v33  ;;  %v1451_v6 = vmul.f32 %v1427_v0, %v6948_v28 }
 0x3f0   :  { %5546 = vtanh.f32 %v1391_v13  ;;  %v1408_v13 = vmul.f32 0.5, %v5545_v48 }
 0x3f1   :  { %5548 = vtanh.f32 %v1401_v43  ;;  %v1428_v43 = vadd.f32 0.5, %v1424_v47 }
 0x3f2   :  { %5550 = vtanh.f32 %v1417_v50  ;;  %v9702_v50 = vld [vmem:[#allocation81_spill] sm:$0xff]  ;;  %v1412_v54 = vadd.f32 0.5, %v1408_v13 }
 0x3f3   :  { %v376_v52 = vadd.f32 %v9702_v50, %v6773_v2  ;;  %v1452_v41 = vmul.f32 %v1428_v43, %v6955_v10 }
 0x3f5   :  { %v1362_v36 = vpop.f32.mrf.mxu2 }
 0x3f6   :  { %v5547_v40 = vpop.eup %5546  ;;  %v1392_v33 = vadd.f32 %v1362_v36, %v373_v5 }
 0x3f7   :  { %v1455_v46 = vmul.f32 %v5547_v40, %v1411_v26  ;;  %v5549_v61 = vpop.eup %5548 }
 0x3f8   :  { %5552 = vtanh.f32 %v1392_v33  ;;  %v5551_v53 = vpop.eup %5550  ;;  %v1409_v55 = vmul.f32 0.5, %v5549_v61  ;;  %v378_v33 = vadd.f32 %v9703_v30, %v6809_v45 }
 0x3f9   :  { %v7103_v23 = vadd.f32 %v1455_v46, %v1451_v6  ;;  %5554 = vtanh.f32 %v1418_v14  ;;  %v1425_v0 = vmul.f32 0.5, %v5551_v53  ;;  %v7114_v6 = vpop.f32.mrf.mxu3 }
 0x3fa   :  { %5556 = vtanh.f32 %v1402_v25  ;;  %v1413_v47 = vadd.f32 0.5, %v1409_v55 }
 0x3fb   :  { %v1429_v36 = vadd.f32 0.5, %v1425_v0 }
 0x3fd   :  { %v1365_v8 = vpop.f32.mrf.mxu2  ;;  %v1453_v10 = vmul.f32 %v1429_v36, %v6962_v15  ;;  %v386_v15 = vadd.f32 %v6964_v60, %v6825_v7 }
 0x3fe   :  { %v5553_v5 = vpop.eup %5552  ;;  %v1393_v28 = vadd.f32 %v1365_v8, %v376_v52 }
 0x3ff   :  { %v1456_v48 = vmul.f32 %v5553_v5, %v1412_v54  ;;  %v5555_v40 = vpop.eup %5554 }
 0x400   :  { %5558 = vtanh.f32 %v1393_v28  ;;  %v5557_v18 = vpop.eup %5556  ;;  %v1426_v25 = vmul.f32 0.5, %v5555_v40  ;;  %v383_v40 = vadd.f32 %v6959_v49, %v6827_v29 }
 0x401   :  { %v7110_v26 = vadd.f32 %v1456_v48, %v1452_v41  ;;  %v1410_v61 = vmul.f32 0.5, %v5557_v18  ;;  %v7119_v5 = vpop.f32.mrf.mxu3 }
 0x402   :  { %v1430_v50 = vadd.f32 0.5, %v1426_v25 }
 0x403   :  { %v1414_v52 = vadd.f32 0.5, %v1410_v61 }
 0x404   :  { %v1454_v28 = vmul.f32 %v1430_v50, %v6967_v31 }
 0x405   :  { %v1368_v46 = vpop.f32.mrf.mxu2 }
 0x406   :  { %v5559_v13 = vpop.eup %5558  ;;  %v1394_v14 = vadd.f32 %v1368_v46, %v378_v33  ;;  %v381_v33 = vadd.f32 %v6950_v16, %v6829_v27 }
 0x407   :  { %v1457_v43 = vmul.f32 %v5559_v13, %v1413_v47  ;;  %v388_v13 = vadd.f32 %v6969_v24, %v6819_v17 }
 0x408   :  { %5560 = vtanh.f32 %v1394_v14 }
 0x409   :  { %v7117_v53 = vadd.f32 %v1457_v43, %v1453_v10  ;;  %v7124_v55 = vpop.f32.mrf.mxu3 }
 0x40d   :  { %v1371_v54 = vpop.f32.mrf.mxu2 }
 0x40e   :  { %v5561_v8 = vpop.eup %5560  ;;  %v1395_v47 = vadd.f32 %v1371_v54, %v381_v33 }
 0x40f   :  { %v1458_v41 = vmul.f32 %v5561_v8, %v1414_v52 }
 0x410   :  { %v1435_v10 = vmul.f32 0.5, %v1395_v47 }
 0x411   :  { %v7122_v0 = vadd.f32 %v1458_v41, %v1454_v28  ;;  %v7132_v46 = vpop.f32.mrf.mxu3 }
 0x412   :  { %9704 = vst [vmem:[#allocation18_spill] sm:$0xff] %v7132_v46 }
 0x415   :  { %v1374_v48 = vpop.f32.mrf.mxu2 }
 0x416   :  { %v1396_v18 = vadd.f32 %v1374_v48, %v383_v40 }
 0x418   :  { %v1436_v14 = vmul.f32 0.5, %v1396_v18 }
 0x419   :  { %v7136_v61 = vpop.f32.mrf.mxu3 }
 0x41a   :  { %9705 = vst [vmem:[#allocation7_spill] sm:$0xff] %v7136_v61 }
 0x41d   :  { %v1377_v36 = vpop.f32.mrf.mxu2 }
 0x41e   :  { %v1397_v30 = vadd.f32 %v1377_v36, %v386_v15 }
 0x420   :  { %v1437_v31 = vmul.f32 0.5, %v1397_v30 }
 0x421   :  { %v7144_v33 = vpop.f32.mrf.mxu3 }
 0x422   :  { %5562 = vtanh.f32 %v1437_v31  ;;  %9707 = vst [vmem:[#allocation9_spill] sm:$0xff] %v7144_v33 }
 0x423   :  { %5564 = vtanh.f32 %v1436_v14 }
 0x424   :  { %5566 = vtanh.f32 %v1435_v10 }
 0x425   :  { %v1380_v25 = vpop.f32.mrf.mxu2 }
 0x426   :  { %v1398_v60 = vadd.f32 %v1380_v25, %v388_v13 }
 0x428   :  { %v1438_v43 = vmul.f32 0.5, %v1398_v60  ;;  %v5563_v49 = vpop.eup %5562 }
 0x429   :  { %v5565_v16 = vpop.eup %5564  ;;  %v1445_v52 = vmul.f32 0.5, %v5563_v49  ;;  %v7158_v25 = vpop.f32.mrf.mxu3 }
 0x42a   :  { %5568 = vtanh.f32 %v1438_v43  ;;  %v5567_v50 = vpop.eup %5566  ;;  %v1444_v24 = vmul.f32 0.5, %v5565_v16  ;;  %9711 = vst [vmem:[#allocation14_spill] sm:$0xff] %v7158_v25  ;;  %v7169_v43 = vld [vmem:[%s9478_s2 + $0x18] sm:$0xff]  ;;  %v7178_v16 = vld [vmem:[%s9478_s2 + $0x20] sm:$0xff] }
 0x42b   :  { %5570 = vtanh.f32 %v7122_v0  ;;  %v1443_v28 = vmul.f32 0.5, %v5567_v50  ;;  %v1449_v41 = vadd.f32 0.5, %v1445_v52  ;;  %v7187_v52 = vld [vmem:[%s9478_s2 + $0x28] sm:$0xff] }
 0x42c   :  { %5572 = vtanh.f32 %v7117_v53  ;;  %v1448_v36 = vadd.f32 0.5, %v1444_v24  ;;  %v7196_v24 = vld [vmem:[%s9478_s2 + $0x30] sm:$0xff] }
 0x42d   :  { %5574 = vtanh.f32 %v7110_v26  ;;  %v1447_v18 = vadd.f32 0.5, %v1443_v28  ;;  %v7205_v28 = vld [vmem:[%s9478_s2 + $0x38] sm:$0xff] }
 0x42e   :  { %5576 = vtanh.f32 %v7103_v23 }
 0x430   :  { %v5569_v54 = vpop.eup %5568 }
 0x431   :  { %v1446_v8 = vmul.f32 0.5, %v5569_v54  ;;  %v5571_v15 = vpop.eup %5570  ;;  %v7162_v60 = vpop.f32.mrf.mxu3 }
 0x432   :  { %v5573_v30 = vpop.eup %5572  ;;  %9712 = vst [vmem:[#allocation81_spill] sm:$0xff] %v7162_v60  ;;  %v9729_v60 = vld [vmem:[#allocation19_spill] sm:$0xff] }
 0x433   :  { %v1450_v48 = vadd.f32 0.5, %v1446_v8  ;;  %v7147_v47 = vmul.f32 %v5573_v30, %v1449_v41  ;;  %v5575_v31 = vpop.eup %5574  ;;  %v7212_v41 = vld [vmem:[%s9478_s2 + $0x40] sm:$0xff]  ;;  %v7230_v30 = vld [vmem:[%s9478_s2 + $0x50] sm:$0xff]  ;;  %v410_v59 = vadd.f32 %v9729_v60, %v6767_v58 }
 0x434   :  { %v7150_v13 = vmul.f32 %v5575_v31, %v1448_v36  ;;  %v5577_v14 = vpop.eup %5576  ;;  %9719 = vst [vmem:[#allocation100_spill] sm:$0xff] %v7230_v30  ;;  %v7239_v31 = vld [vmem:[%s9478_s2 + $0x58] sm:$0xff] }
 0x435   :  { %v7142_v40 = vmul.f32 %v5571_v15, %v1450_v48  ;;  %9708 = vst [vmem:[#allocation11_spill] sm:$0xff] %v7147_v47  ;;  %v7153_v10 = vmul.f32 %v5577_v14, %v1447_v18  ;;  %v7221_v15 = vld [vmem:[%s9478_s2 + $0x48] sm:$0xff]  ;;  %v9733_v58 = vld [vmem:[#allocation12_spill] sm:$0xff] }
 0x436   :  { %9709 = vst [vmem:[#allocation25_spill] sm:$0xff] %v7150_v13 }
 0x437   :  { %9706 = vst [vmem:[#allocation22_spill] sm:$0xff] %v7142_v40  ;;  %1567 = vmatpush.msra.mxu3 %v7142_v40 }
 0x438   :  { %9710 = vst [vmem:[#allocation29_spill] sm:$0xff] %v7153_v10 }
 0x439   :  { %1568 = vmatpush.msra.mxu3 %v7147_v47  ;;  %v7171_v49 = vpop.f32.mrf.mxu3  ;;  %9721 = vst [vmem:[#allocation102_spill] sm:$0xff] %v7239_v31 }
 0x43a   :  { %9713 = vst [vmem:[#allocation28_spill] sm:$0xff] %v7171_v49 }
 0x43b   :  { %1569 = vmatpush.msra.mxu3 %v7150_v13 }
 0x43d   :  { %1570 = vmatpush.msra.mxu3 %v7153_v10 }
 0x43e   :  { %5107 = vmatmul.msk.f32.vlgmr.msra.gmra.mxu3 %vm795_vm2, %v7003_v63 }
 0x441   :  { %v7182_v50 = vpop.f32.mrf.mxu3 }
 0x442   :  { %9714 = vst [vmem:[#allocation95_spill] sm:$0xff] %v7182_v50 }
 0x446   :  { %5108 = vmatmul.msk.f32.gmra.mxu3 %vm795_vm2, %v7013_v34 }
 0x449   :  { %v7191_v54 = vpop.f32.mrf.mxu3 }
 0x44a   :  { %9715 = vst [vmem:[#allocation96_spill] sm:$0xff] %v7191_v54  ;;  %v6098_v54 = vld [vmem:[%s9478_s2 + $0x78] sm:$0xff] }
 0x44e   :  { %5109 = vmatmul.msk.f32.gmra.mxu3 %vm795_vm2, %v7022_v62 }
 0x451   :  { %v7200_v8 = vpop.f32.mrf.mxu3 }
 0x452   :  { %9716 = vst [vmem:[#allocation97_spill] sm:$0xff] %v7200_v8 }
 0x456   :  { %5110 = vmatmul.msk.f32.gmra.mxu3 %vm795_vm2, %v7169_v43 }
 0x459   :  { %v7214_v48 = vpop.f32.mrf.mxu3 }
 0x45a   :  { %9717 = vst [vmem:[#allocation98_spill] sm:$0xff] %v7214_v48 }
 0x45e   :  { %5111 = vmatmul.msk.f32.gmra.mxu3 %vm795_vm2, %v7178_v16 }
 0x461   :  { %v7225_v36 = vpop.f32.mrf.mxu3 }
 0x462   :  { %9718 = vst [vmem:[#allocation99_spill] sm:$0xff] %v7225_v36  ;;  %v7248_v36 = vld [vmem:[%s9478_s2 + $0x60] sm:$0xff] }
 0x463   :  { %9723 = vst [vmem:[#allocation104_spill] sm:$0xff] %v7248_v36 }
 0x466   :  { %5112 = vmatmul.msk.f32.gmra.mxu3 %vm795_vm2, %v7187_v52 }
 0x469   :  { %v7234_v18 = vpop.f32.mrf.mxu3 }
 0x46a   :  { %9720 = vst [vmem:[#allocation101_spill] sm:$0xff] %v7234_v18  ;;  %v7255_v18 = vld [vmem:[%s9478_s2 + $0x68] sm:$0xff] }
 0x46b   :  { %9724 = vst [vmem:[#allocation105_spill] sm:$0xff] %v7255_v18 }
 0x46e   :  { %5113 = vmatmul.msk.f32.gmra.mxu3 %vm795_vm2, %v7196_v24 }
 0x471   :  { %v7243_v14 = vpop.f32.mrf.mxu3 }
 0x472   :  { %9722 = vst [vmem:[#allocation103_spill] sm:$0xff] %v7243_v14  ;;  %v7264_v14 = vld [vmem:[%s9478_s2 + $0x70] sm:$0xff] }
 0x473   :  { %9726 = vst [vmem:[#allocation107_spill] sm:$0xff] %v7264_v14 }
 0x476   :  { %5114 = vmatmul.msk.f32.gmra.mxu3 %vm795_vm2, %v7205_v28 }
 0x479   :  { %v7257_v50 = vpop.f32.mrf.mxu3 }
 0x47a   :  { %9725 = vst [vmem:[#allocation106_spill] sm:$0xff] %v7257_v50 }
 0x47e   :  { %5115 = vmatmul.msk.f32.gmra.mxu3 %vm795_vm2, %v7212_v41 }
 0x481   :  { %v7268_v33 = vpop.f32.mrf.mxu3 }
 0x482   :  { %9727 = vst [vmem:[#allocation108_spill] sm:$0xff] %v7268_v33  ;;  %v9730_v33 = vld [vmem:[#allocation8_spill] sm:$0xff] }
 0x483   :  { %v400_v37 = vadd.f32 %v9730_v33, %v6761_v3 }
 0x486   :  { %5116 = vmatmul.msk.f32.gmra.mxu3 %vm795_vm2, %v7221_v15 }
 0x489   :  { %v7274_v50 = vpop.f32.mrf.mxu3 }
 0x48a   :  { %9728 = vst [vmem:[#allocation109_spill] sm:$0xff] %v7274_v50 }
 0x48e   :  { %5117 = vmatmul.msk.f32.gmra.mxu3 %vm795_vm2, %v7230_v30 }
 0x496   :  { %5118 = vmatmul.msk.f32.gmra.mxu3 %vm795_vm2, %v7239_v31 }
 0x49e   :  { %5119 = vmatmul.msk.f32.gmra.mxu3 %vm795_vm2, %v7248_v36 }
 0x4a6   :  { %5120 = vmatmul.msk.f32.gmra.mxu3 %vm795_vm2, %v7255_v18  ;;  %v405_v18 = vadd.f32 %v9733_v58, %v6753_v21 }
 0x4ae   :  { %5121 = vmatmul.msk.f32.gmra.mxu3 %vm795_vm2, %v7264_v14 }
 0x4b6   :  { %5122 = vmatmul.msk.f32.gmra.mxu3 %vm795_vm2, %v6098_v54  ;;  %v9731_v54 = vld [vmem:[#allocation23_spill] sm:$0xff] }
 0x4b7   :  { %v412_v40 = vadd.f32 %v9731_v54, %v6775_v19 }
 0x4c1   :  { %v1572_v25 = vpop.f32.mrf.mxu3 }
 0x4c2   :  { %v1620_v13 = vadd.f32 %v1572_v25, %v400_v37  ;;  %v9734_v37 = vld [vmem:[#allocation26_spill] sm:$0xff] }
 0x4c4   :  { %v1636_v50 = vmul.f32 0.5, %v1620_v13  ;;  %v420_v13 = vadd.f32 %v7074_v11, %v6783_v4  ;;  %v422_v11 = vadd.f32 %v7078_v42, %v6793_v39 }
 0x4c9   :  { %v1575_v48 = vpop.f32.mrf.mxu3 }
 0x4ca   :  { %v1621_v14 = vadd.f32 %v1575_v48, %v402_v57 }
 0x4cc   :  { %v1637_v33 = vmul.f32 0.5, %v1621_v14  ;;  %v9735_v14 = vld [vmem:[#allocation30_spill] sm:$0xff] }
 0x4cd   :  { %v417_v54 = vadd.f32 %v9735_v14, %v6755_v9 }
 0x4d1   :  { %v1578_v8 = vpop.f32.mrf.mxu3 }
 0x4d2   :  { %v1622_v25 = vadd.f32 %v1578_v8, %v405_v18  ;;  %v9736_v18 = vld [vmem:[#allocation15_spill] sm:$0xff] }
 0x4d9   :  { %v1581_v61 = vpop.f32.mrf.mxu3 }
 0x4e1   :  { %v1584_v49 = vpop.f32.mrf.mxu3 }
 0x4e2   :  { %v1624_v10 = vadd.f32 %v1584_v49, %v410_v59 }
 0x4e4   :  { %v1652_v47 = vmul.f32 0.5, %v1624_v10  ;;  %v415_v10 = vadd.f32 %v9734_v37, %v6759_v35 }
 0x4e6   :  { %5578 = vtanh.f32 %v1652_v47 }
 0x4e7   :  { %5580 = vtanh.f32 %v1636_v50 }
 0x4e9   :  { %v1587_v46 = vpop.f32.mrf.mxu3 }
 0x4ea   :  { %v1625_v1 = vadd.f32 %v1587_v46, %v412_v40  ;;  %v1638_v40 = vmul.f32 0.5, %v1622_v25 }
 0x4ec   :  { %v1653_v60 = vmul.f32 0.5, %v1625_v1  ;;  %v5579_v59 = vpop.eup %5578 }
 0x4ed   :  { %v5581_v51 = vpop.eup %5580  ;;  %v1660_v57 = vmul.f32 0.5, %v5579_v59 }
 0x4ee   :  { %5582 = vtanh.f32 %v1653_v60  ;;  %v1644_v1 = vmul.f32 0.5, %v5581_v51  ;;  %v407_v60 = vadd.f32 %v9736_v18, %v9669_v56 }
 0x4ef   :  { %5584 = vtanh.f32 %v1637_v33  ;;  %v1664_v50 = vadd.f32 0.5, %v1660_v57 }
 0x4f1   :  { %v1590_v12 = vpop.f32.mrf.mxu3  ;;  %v1688_v25 = vmul.f32 %v1664_v50, %v7103_v23 }
 0x4f2   :  { %v1626_v47 = vadd.f32 %v1590_v12, %v415_v10  ;;  %v1648_v12 = vadd.f32 0.5, %v1644_v1 }
 0x4f4   :  { %v1654_v58 = vmul.f32 0.5, %v1626_v47  ;;  %v5583_v48 = vpop.eup %5582 }
 0x4f5   :  { %v5585_v8 = vpop.eup %5584 }
 0x4f6   :  { %v1645_v47 = vmul.f32 0.5, %v5585_v8 }
 0x4f9   :  { %v1593_v32 = vpop.f32.mrf.mxu3 }
 0x4fa   :  { %v1627_v37 = vadd.f32 %v1593_v32, %v417_v54 }
 0x4fc   :  { %v1655_v42 = vmul.f32 0.5, %v1627_v37 }
 0x501   :  { %v1596_v49 = vpop.f32.mrf.mxu3 }
 0x502   :  { %v1628_v46 = vadd.f32 %v1596_v49, %v420_v13  ;;  %v1623_v13 = vadd.f32 %v1581_v61, %v407_v60  ;;  %v1661_v49 = vmul.f32 0.5, %v5583_v48 }
 0x504   :  { %5586 = vtanh.f32 %v1628_v46  ;;  %v1639_v14 = vmul.f32 0.5, %v1623_v13  ;;  %v1665_v18 = vadd.f32 0.5, %v1661_v49 }
 0x505   :  { %5588 = vtanh.f32 %v1638_v40  ;;  %v425_v40 = vadd.f32 %v7086_v22, %v6773_v2 }
 0x506   :  { %5590 = vtanh.f32 %v1654_v58  ;;  %v1649_v58 = vadd.f32 0.5, %v1645_v47  ;;  %v1689_v23 = vmul.f32 %v1665_v18, %v7110_v26 }
 0x509   :  { %v1599_v33 = vpop.f32.mrf.mxu3 }
 0x50a   :  { %v5587_v59 = vpop.eup %5586  ;;  %v1629_v10 = vadd.f32 %v1599_v33, %v422_v11  ;;  %v427_v33 = vadd.f32 %v7094_v44, %v6809_v45 }
 0x50b   :  { %v1692_v51 = vmul.f32 %v5587_v59, %v1648_v12  ;;  %v5589_v57 = vpop.eup %5588 }
 0x50c   :  { %5592 = vtanh.f32 %v1629_v10  ;;  %v5591_v1 = vpop.eup %5590  ;;  %v1646_v11 = vmul.f32 0.5, %v5589_v57 }
 0x50d   :  { %v7297_v46 = vadd.f32 %v1692_v51, %v1688_v25  ;;  %5594 = vtanh.f32 %v1655_v42  ;;  %v1662_v50 = vmul.f32 0.5, %v5591_v1 }
 0x50e   :  { %5596 = vtanh.f32 %v1639_v14  ;;  %v1650_v59 = vadd.f32 0.5, %v1646_v11 }
 0x50f   :  { %v1666_v60 = vadd.f32 0.5, %v1662_v50 }
 0x511   :  { %v1602_v32 = vpop.f32.mrf.mxu3  ;;  %v1690_v25 = vmul.f32 %v1666_v60, %v7117_v53 }
 0x512   :  { %v5593_v54 = vpop.eup %5592  ;;  %v1630_v61 = vadd.f32 %v1602_v32, %v425_v40  ;;  %v435_v32 = vadd.f32 %v7119_v5, %v6825_v7 }
 0x513   :  { %v1693_v48 = vmul.f32 %v5593_v54, %v1649_v58  ;;  %v5595_v12 = vpop.eup %5594  ;;  %v432_v54 = vadd.f32 %v7114_v6, %v6827_v29 }
 0x514   :  { %5598 = vtanh.f32 %v1630_v61  ;;  %v5597_v22 = vpop.eup %5596  ;;  %v1663_v49 = vmul.f32 0.5, %v5595_v12 }
 0x515   :  { %v7302_v8 = vadd.f32 %v1693_v48, %v1689_v23  ;;  %v1647_v51 = vmul.f32 0.5, %v5597_v22  ;;  %v430_v23 = vadd.f32 %v7105_v38, %v6829_v27 }
 0x516   :  { %v1667_v42 = vadd.f32 0.5, %v1663_v49 }
 0x517   :  { %v1651_v57 = vadd.f32 0.5, %v1647_v51 }
 0x518   :  { %v1691_v1 = vmul.f32 %v1667_v42, %v7122_v0  ;;  %v437_v0 = vadd.f32 %v7124_v55, %v6819_v17 }
 0x519   :  { %v1605_v37 = vpop.f32.mrf.mxu3 }
 0x51a   :  { %v5599_v10 = vpop.eup %5598  ;;  %v1631_v13 = vadd.f32 %v1605_v37, %v427_v33 }
 0x51b   :  { %v1694_v26 = vmul.f32 %v5599_v10, %v1650_v59 }
 0x51c   :  { %5600 = vtanh.f32 %v1631_v13 }
 0x51d   :  { %v7307_v47 = vadd.f32 %v1694_v26, %v1690_v25 }
 0x521   :  { %v1608_v14 = vpop.f32.mrf.mxu3 }
 0x522   :  { %v5601_v18 = vpop.eup %5600  ;;  %v1632_v48 = vadd.f32 %v1608_v14, %v430_v23  ;;  %v9743_v23 = vld [vmem:[#allocation66_spill] sm:$0xff] }
 0x523   :  { %v1695_v44 = vmul.f32 %v5601_v18, %v1651_v57 }
 0x524   :  { %v1672_v12 = vmul.f32 0.5, %v1632_v48 }
 0x525   :  { %v7310_v40 = vadd.f32 %v1695_v44, %v1691_v1 }
 0x529   :  { %v1611_v58 = vpop.f32.mrf.mxu3 }
 0x52a   :  { %v1633_v50 = vadd.f32 %v1611_v58, %v432_v54  ;;  %v9741_v54 = vld [vmem:[#allocation64_spill] sm:$0xff] }
 0x52c   :  { %v1673_v60 = vmul.f32 0.5, %v1633_v50  ;;  %v9744_v50 = vld [vmem:[#allocation68_spill] sm:$0xff] }
 0x531   :  { %v1614_v53 = vpop.f32.mrf.mxu3 }
 0x532   :  { %v1634_v61 = vadd.f32 %v1614_v53, %v435_v32 }
 0x534   :  { %v1674_v11 = vmul.f32 0.5, %v1634_v61  ;;  %v9742_v61 = vld [vmem:[#allocation65_spill] sm:$0xff] }
 0x536   :  { %5602 = vtanh.f32 %v1674_v11  ;;  %v7380_v11 = vld [vmem:[%s9480_s4] sm:$0xff] }
 0x537   :  { %5604 = vtanh.f32 %v1673_v60  ;;  %v7387_v60 = vld [vmem:[%s9480_s4 + $0x8] sm:$0xff] }
 0x538   :  { %5606 = vtanh.f32 %v1672_v12 }
 0x539   :  { %v1617_v33 = vpop.f32.mrf.mxu3 }
 0x53a   :  { %v1635_v22 = vadd.f32 %v1617_v33, %v437_v0  ;;  %v7394_v33 = vld [vmem:[%s9480_s4 + $0x10] sm:$0xff] }
 0x53c   :  { %v1675_v5 = vmul.f32 0.5, %v1635_v22  ;;  %v5603_v6 = vpop.eup %5602 }
 0x53d   :  { %v5605_v59 = vpop.eup %5604  ;;  %v1682_v37 = vmul.f32 0.5, %v5603_v6 }
 0x53e   :  { %5608 = vtanh.f32 %v1675_v5  ;;  %v5607_v38 = vpop.eup %5606  ;;  %v1681_v13 = vmul.f32 0.5, %v5605_v59  ;;  %v7401_v5 = vld [vmem:[%s9480_s4 + $0x18] sm:$0xff]  ;;  %v7408_v59 = vld [vmem:[%s9480_s4 + $0x20] sm:$0xff] }
 0x53f   :  { %5610 = vtanh.f32 %v7310_v40  ;;  %v1680_v25 = vmul.f32 0.5, %v5607_v38  ;;  %v1686_v49 = vadd.f32 0.5, %v1682_v37  ;;  %v7415_v37 = vld [vmem:[%s9480_s4 + $0x28] sm:$0xff] }
 0x540   :  { %5612 = vtanh.f32 %v7307_v47  ;;  %v1685_v42 = vadd.f32 0.5, %v1681_v13  ;;  %v7422_v13 = vld [vmem:[%s9480_s4 + $0x30] sm:$0xff] }
 0x541   :  { %5614 = vtanh.f32 %v7302_v8  ;;  %v1684_v18 = vadd.f32 0.5, %v1680_v25  ;;  %v7429_v25 = vld [vmem:[%s9480_s4 + $0x38] sm:$0xff] }
 0x542   :  { %5616 = vtanh.f32 %v7297_v46 }
 0x544   :  { %v5609_v10 = vpop.eup %5608 }
 0x545   :  { %v1683_v55 = vmul.f32 0.5, %v5609_v10  ;;  %v5611_v51 = vpop.eup %5610 }
 0x546   :  { %v5613_v14 = vpop.eup %5612 }
 0x547   :  { %v1687_v26 = vadd.f32 0.5, %v1683_v55  ;;  %v7327_v1 = vmul.f32 %v5613_v14, %v1686_v49  ;;  %v5615_v44 = vpop.eup %5614 }
 0x548   :  { %v7330_v58 = vmul.f32 %v5615_v44, %v1685_v42  ;;  %v5617_v32 = vpop.eup %5616  ;;  %v7445_v42 = vld [vmem:[%s9480_s4 + $0x48] sm:$0xff] }
 0x549   :  { %v7324_v57 = vmul.f32 %v5611_v51, %v1687_v26  ;;  %9738 = vst [vmem:[#allocation8_spill] sm:$0xff] %v7327_v1  ;;  %v7333_v53 = vmul.f32 %v5617_v32, %v1684_v18  ;;  %v7438_v26 = vld [vmem:[%s9480_s4 + $0x40] sm:$0xff]  ;;  %v7452_v18 = vld [vmem:[%s9480_s4 + $0x50] sm:$0xff]  ;;  %v7459_v32 = vld [vmem:[%s9480_s4 + $0x58] sm:$0xff] }
 0x54a   :  { %9739 = vst [vmem:[#allocation23_spill] sm:$0xff] %v7330_v58 }
 0x54b   :  { %9737 = vst [vmem:[#allocation19_spill] sm:$0xff] %v7324_v57  ;;  %1804 = vmatpush.msrb.mxu0 %v7324_v57 }
 0x54c   :  { %9740 = vst [vmem:[#allocation10_spill] sm:$0xff] %v7333_v53 }
 0x54d   :  { %1805 = vmatpush.msrb.mxu0 %v7327_v1  ;;  %9748 = vst [vmem:[#allocation26_spill] sm:$0xff] %v7452_v18 }
 0x54e   :  { %9749 = vst [vmem:[#allocation30_spill] sm:$0xff] %v7459_v32 }
 0x54f   :  { %1806 = vmatpush.msrb.mxu0 %v7330_v58 }
 0x551   :  { %1807 = vmatpush.msrb.mxu0 %v7333_v53  ;;  %v9752_v53 = vld [vmem:[#allocation33_spill] sm:$0xff] }
 0x552   :  { %5123 = vmatmul.msk.f32.vlgmr.msrb.gmra.mxu0 %vm795_vm2, %v7003_v63  ;;  %v9745_v63 = vld [vmem:[#allocation105_spill] sm:$0xff]  ;;  %v466_v58 = vadd.f32 %v9752_v53, %v6755_v9 }
 0x553   :  { %2864 = vmatpush.msra.mxu0 %v9741_v54  ;;  %v9750_v54 = vld [vmem:[#allocation16_spill] sm:$0xff] }
 0x555   :  { %2865 = vmatpush.msra.mxu0 %v9742_v61  ;;  %v451_v61 = vadd.f32 %v9750_v54, %v6765_v20  ;;  %v9754_v54 = vld [vmem:[#allocation31_spill] sm:$0xff] }
 0x556   :  { %v464_v20 = vadd.f32 %v9754_v54, %v6759_v35 }
 0x557   :  { %2866 = vmatpush.msra.mxu0 %v9743_v23  ;;  %v9751_v23 = vld [vmem:[#allocation21_spill] sm:$0xff] }
 0x559   :  { %2867 = vmatpush.msra.mxu0 %v9744_v50  ;;  %v456_v50 = vadd.f32 %v9751_v23, %v9669_v56  ;;  %v9755_v23 = vld [vmem:[#allocation27_spill] sm:$0xff] }
 0x55a   :  { %5124 = vmatmul.msk.f32.gmra.mxu0 %vm795_vm2, %v7013_v34  ;;  %v9746_v34 = vld [vmem:[#allocation107_spill] sm:$0xff]  ;;  %v461_v56 = vadd.f32 %v9755_v23, %v6775_v19 }
 0x562   :  { %5125 = vmatmul.msk.f32.gmra.mxu0 %vm795_vm2, %v7022_v62  ;;  %v7373_v62 = vld [vmem:[%s9478_s2 + $0x78] sm:$0xff] }
 0x563   :  { %9747 = vst [vmem:[#allocation12_spill] sm:$0xff] %v7373_v62 }
 0x56a   :  { %5126 = vmatmul.msk.f32.gmra.mxu0 %vm795_vm2, %v7169_v43 }
 0x572   :  { %5127 = vmatmul.msk.f32.gmra.mxu0 %vm795_vm2, %v7178_v16 }
 0x57a   :  { %5128 = vmatmul.msk.f32.gmra.mxu0 %vm795_vm2, %v7187_v52 }
 0x582   :  { %5129 = vmatmul.msk.f32.gmra.mxu0 %vm795_vm2, %v7196_v24 }
 0x58a   :  { %5130 = vmatmul.msk.f32.gmra.mxu0 %vm795_vm2, %v7205_v28 }
 0x592   :  { %5131 = vmatmul.msk.f32.gmra.mxu0 %vm795_vm2, %v7212_v41 }
 0x59a   :  { %5132 = vmatmul.msk.f32.gmra.mxu0 %vm795_vm2, %v7221_v15 }
 0x5a2   :  { %5133 = vmatmul.msk.f32.gmra.mxu0 %vm795_vm2, %v7230_v30  ;;  %v9758_v30 = vld [vmem:[#allocation24_spill] sm:$0xff] }
 0x5aa   :  { %5134 = vmatmul.msk.f32.gmra.mxu0 %vm795_vm2, %v7239_v31 }
 0x5b2   :  { %5135 = vmatmul.msk.f32.gmra.mxu0 %vm795_vm2, %v7248_v36 }
 0x5ba   :  { %5136 = vmatmul.msk.f32.gmra.mxu0 %vm795_vm2, %v9745_v63 }
 0x5c2   :  { %5137 = vmatmul.msk.f32.gmra.mxu0 %vm795_vm2, %v9746_v34  ;;  %v9753_v34 = vld [vmem:[#allocation20_spill] sm:$0xff] }
 0x5c3   :  { %v454_v63 = vadd.f32 %v9753_v34, %v6753_v21 }
 0x5ca   :  { %5138 = vmatmul.msk.f32.gmra.mxu0 %vm795_vm2, %v7373_v62  ;;  %v7474_v62 = vld [vmem:[%s9480_s4 + $0x60] sm:$0xff] }
 0x5cf   :  { %v1809_v48 = vpop.f32.mrf.mxu0 }
 0x5d2   :  { %5187 = vmatmul.msk.f32.vlgmr.msra.gmra.mxu0 %vm795_vm2, %v7380_v11 }
 0x5d7   :  { %v1812_v0 = vpop.f32.mrf.mxu0 }
 0x5d8   :  { %v1858_v1 = vadd.f32 %v1812_v0, %v451_v61  ;;  %v9756_v0 = vld [vmem:[#allocation13_spill] sm:$0xff] }
 0x5d9   :  { %v449_v61 = vadd.f32 %v9756_v0, %v6761_v3 }
 0x5da   :  { %5188 = vmatmul.msk.f32.gmra.mxu0 %vm795_vm2, %v7387_v60  ;;  %v1874_v9 = vmul.f32 0.5, %v1858_v1 }
 0x5db   :  { %v1857_v21 = vadd.f32 %v1809_v48, %v449_v61 }
 0x5dc   :  { %5618 = vtanh.f32 %v1874_v9  ;;  %v9760_v9 = vld [vmem:[#allocation36_spill] sm:$0xff] }
 0x5df   :  { %v1815_v12 = vpop.f32.mrf.mxu0 }
 0x5e0   :  { %v1859_v53 = vadd.f32 %v1815_v12, %v454_v63  ;;  %v7491_v12 = vld [vmem:[%s9480_s4 + $0x68] sm:$0xff] }
 0x5e2   :  { %5189 = vmatmul.msk.f32.gmra.mxu0 %vm795_vm2, %v7394_v33  ;;  %v5619_v48 = vpop.eup %5618 }
 0x5e7   :  { %v1818_v22 = vpop.f32.mrf.mxu0 }
 0x5e8   :  { %v1860_v36 = vadd.f32 %v1818_v22, %v456_v50 }
 0x5ea   :  { %5190 = vmatmul.msk.f32.gmra.mxu0 %vm795_vm2, %v7401_v5  ;;  %v1876_v22 = vmul.f32 0.5, %v1860_v36  ;;  %v474_v36 = vadd.f32 %v9760_v9, %v6773_v2 }
 0x5ec   :  { %5620 = vtanh.f32 %v1876_v22 }
 0x5ef   :  { %v1821_v6 = vpop.f32.mrf.mxu0 }
 0x5f2   :  { %5191 = vmatmul.msk.f32.gmra.mxu0 %vm795_vm2, %v7408_v59 }
 0x5f7   :  { %v1824_v38 = vpop.f32.mrf.mxu0 }
 0x5f8   :  { %v1862_v50 = vadd.f32 %v1824_v38, %v461_v56 }
 0x5fa   :  { %5192 = vmatmul.msk.f32.gmra.mxu0 %vm795_vm2, %v7415_v37  ;;  %v1890_v1 = vmul.f32 0.5, %v1862_v50 }
 0x5ff   :  { %v1827_v10 = vpop.f32.mrf.mxu0 }
 0x600   :  { %v1863_v31 = vadd.f32 %v1827_v10, %v464_v20  ;;  %v9759_v20 = vld [vmem:[#allocation37_spill] sm:$0xff] }
 0x601   :  { %v476_v10 = vadd.f32 %v9759_v20, %v6809_v45  ;;  %v9765_v20 = vld [vmem:[#allocation38_spill] sm:$0xff] }
 0x602   :  { %5193 = vmatmul.msk.f32.gmra.mxu0 %vm795_vm2, %v7422_v13  ;;  %v1891_v23 = vmul.f32 0.5, %v1863_v31 }
 0x607   :  { %v1830_v55 = vpop.f32.mrf.mxu0 }
 0x60a   :  { %5194 = vmatmul.msk.f32.gmra.mxu0 %vm795_vm2, %v7429_v25 }
 0x60f   :  { %v7433_v49 = vpop.f32.mrf.mxu0 }
 0x612   :  { %5195 = vmatmul.msk.f32.gmra.mxu0 %vm795_vm2, %v7438_v26 }
 0x617   :  { %v1836_v51 = vpop.f32.mrf.mxu0 }
 0x61a   :  { %5196 = vmatmul.msk.f32.gmra.mxu0 %vm795_vm2, %v7445_v42 }
 0x61f   :  { %v1839_v14 = vpop.f32.mrf.mxu0 }
 0x622   :  { %5197 = vmatmul.msk.f32.gmra.mxu0 %vm795_vm2, %v7452_v18  ;;  %v9757_v18 = vld [vmem:[#allocation50_spill] sm:$0xff] }
 0x623   :  { %v459_v34 = vadd.f32 %v9758_v30, %v9757_v18  ;;  %v1873_v30 = vmul.f32 0.5, %v1857_v21  ;;  %v9762_v21 = vld [vmem:[#allocation40_spill] sm:$0xff] }
 0x624   :  { %v484_v0 = vadd.f32 %v9762_v21, %v6825_v7 }
 0x627   :  { %v1842_v44 = vpop.f32.mrf.mxu0 }
 0x628   :  { %v1868_v31 = vadd.f32 %v1842_v44, %v476_v10  ;;  %v7508_v44 = vld [vmem:[%s9480_s4 + $0x70] sm:$0xff]  ;;  %v479_v10 = vadd.f32 %v9765_v20, %v6829_v27 }
 0x62a   :  { %5198 = vmatmul.msk.f32.gmra.mxu0 %vm795_vm2, %v7459_v32  ;;  %v1864_v32 = vadd.f32 %v1830_v55, %v466_v58  ;;  %v1875_v58 = vmul.f32 0.5, %v1859_v53  ;;  %v1861_v55 = vadd.f32 %v1821_v6, %v459_v34  ;;  %v9761_v6 = vld [vmem:[#allocation35_spill] sm:$0xff]  ;;  %v5621_v53 = vpop.eup %5620  ;;  %v9763_v34 = vld [vmem:[#allocation34_spill] sm:$0xff] }
 0x62b   :  { %v471_v38 = vadd.f32 %v9761_v6, %v6793_v39  ;;  %v469_v22 = vadd.f32 %v9763_v34, %v6783_v4 }
 0x62c   :  { %v1892_v54 = vmul.f32 0.5, %v1864_v32  ;;  %v1889_v56 = vmul.f32 0.5, %v1861_v55  ;;  %v1867_v32 = vadd.f32 %v1839_v14, %v474_v36  ;;  %v9764_v14 = vld [vmem:[#allocation39_spill] sm:$0xff] }
 0x62d   :  { %v1866_v50 = vadd.f32 %v1836_v51, %v471_v38  ;;  %v481_v55 = vadd.f32 %v9764_v14, %v6827_v29  ;;  %v1882_v14 = vmul.f32 0.5, %v5619_v48 }
 0x62e   :  { %5622 = vtanh.f32 %v1892_v54 }
 0x62f   :  { %v7469_v57 = vpop.f32.mrf.mxu0  ;;  %5624 = vtanh.f32 %v1875_v58 }
 0x630   :  { %5626 = vtanh.f32 %v1891_v23  ;;  %v1869_v38 = vadd.f32 %v7469_v57, %v479_v10  ;;  %v7523_v57 = vld [vmem:[%s9480_s4 + $0x78] sm:$0xff] }
 0x631   :  { %5628 = vtanh.f32 %v1890_v1 }
 0x632   :  { %5199 = vmatmul.msk.f32.gmra.mxu0 %vm795_vm2, %v7474_v62  ;;  %5630 = vtanh.f32 %v1873_v30  ;;  %v1865_v30 = vadd.f32 %v7433_v49, %v469_v22  ;;  %v9766_v49 = vld [vmem:[#allocation41_spill] sm:$0xff] }
 0x633   :  { %5632 = vtanh.f32 %v1889_v56  ;;  %v1884_v56 = vmul.f32 0.5, %v5621_v53 }
 0x634   :  { %v5623_v61 = vpop.eup %5622  ;;  %5634 = vtanh.f32 %v1868_v31 }
 0x635   :  { %v5625_v58 = vpop.eup %5624  ;;  %5636 = vtanh.f32 %v1867_v32  ;;  %v1900_v9 = vmul.f32 0.5, %v5623_v61  ;;  %v486_v32 = vadd.f32 %v9766_v49, %v6819_v17  ;;  %v1888_v53 = vadd.f32 0.5, %v1884_v56 }
 0x636   :  { %v5627_v1 = vpop.eup %5626  ;;  %v1883_v6 = vmul.f32 0.5, %v5625_v58  ;;  %5638 = vtanh.f32 %v1866_v50  ;;  %v1909_v50 = vmul.f32 0.5, %v1869_v38 }
 0x637   :  { %v1848_v63 = vpop.f32.mrf.mxu0  ;;  %v5629_v51 = vpop.eup %5628  ;;  %5640 = vtanh.f32 %v1865_v30  ;;  %v1886_v30 = vadd.f32 0.5, %v1882_v14 }
 0x638   :  { %v1870_v36 = vadd.f32 %v1848_v63, %v481_v55  ;;  %v5631_v31 = vpop.eup %5630  ;;  %v1898_v20 = vmul.f32 0.5, %v5629_v51  ;;  %v1904_v63 = vadd.f32 0.5, %v1900_v9  ;;  %v1887_v27 = vadd.f32 0.5, %v1883_v6 }
 0x639   :  { %v5633_v21 = vpop.eup %5632  ;;  %v1881_v55 = vmul.f32 0.5, %v5631_v31 }
 0x63a   :  { %5200 = vmatmul.msk.f32.gmra.mxu0 %vm795_vm2, %v7491_v12  ;;  %v1910_v61 = vmul.f32 0.5, %v1870_v36  ;;  %v1897_v58 = vmul.f32 0.5, %v5633_v21  ;;  %v1902_v51 = vadd.f32 0.5, %v1898_v20  ;;  %v1928_v56 = vmul.f32 %v1904_v63, %v7310_v40 }
 0x63b   :  { %v1885_v6 = vadd.f32 0.5, %v1881_v55 }
 0x63c   :  { %v1901_v38 = vadd.f32 0.5, %v1897_v58 }
 0x63e   :  { %v1925_v49 = vmul.f32 %v1901_v38, %v7297_v46  ;;  %v6099_v38 = vld [vmem:[%s9478_s2] sm:$0xff] }
 0x63f   :  { %v1851_v54 = vpop.f32.mrf.mxu0 }
 0x640   :  { %v1871_v23 = vadd.f32 %v1851_v54, %v484_v0  ;;  %v1899_v0 = vmul.f32 0.5, %v5627_v1  ;;  %v5635_v54 = vpop.eup %5634 }
 0x641   :  { %v5637_v22 = vpop.eup %5636 }
 0x642   :  { %5201 = vmatmul.msk.f32.gmra.mxu0 %vm795_vm2, %v7508_v44  ;;  %v1911_v34 = vmul.f32 0.5, %v1871_v23  ;;  %v1903_v48 = vadd.f32 0.5, %v1899_v0  ;;  %v1932_v23 = vmul.f32 %v5635_v54, %v1888_v53  ;;  %v5639_v10 = vpop.eup %5638  ;;  %v1931_v9 = vmul.f32 %v5637_v22, %v1887_v27 }
 0x643   :  { %v5641_v31 = vpop.eup %5640  ;;  %v1930_v0 = vmul.f32 %v5639_v10, %v1886_v30  ;;  %v1926_v54 = vmul.f32 %v1902_v51, %v7302_v8 }
 0x644   :  { %5642 = vtanh.f32 %v1911_v34  ;;  %v1927_v21 = vmul.f32 %v1903_v48, %v7307_v47  ;;  %v7529_v34 = vadd.f32 %v1932_v23, %v1928_v56  ;;  %v1929_v40 = vmul.f32 %v5641_v31, %v1885_v6 }
 0x645   :  { %5644 = vtanh.f32 %v1910_v61 }
 0x646   :  { %5646 = vtanh.f32 %v1909_v50  ;;  %v7532_v27 = vadd.f32 %v1931_v9, %v1927_v21  ;;  %v7540_v61 = vadd.f32 %v1929_v40, %v1925_v49  ;;  %v9768_v21 = vld [vmem:[#allocation48_spill] sm:$0xff]  ;;  %v9772_v40 = vld [vmem:[#allocation57_spill] sm:$0xff]  ;;  %v6100_v49 = vld [vmem:[%s9478_s2 + $0x8] sm:$0xff] }
 0x647   :  { %v1854_v29 = vpop.f32.mrf.mxu0 }
 0x648   :  { %v1872_v1 = vadd.f32 %v1854_v29, %v486_v32  ;;  %v7537_v32 = vadd.f32 %v1930_v0, %v1926_v54  ;;  %v9769_v0 = vmov 0.0   ;;  %v9771_v54 = vld [vmem:[#allocation55_spill] sm:$0xff] }
 0x64a   :  { %v1912_v36 = vmul.f32 0.5, %v1872_v1  ;;  %5202 = vmatmul.msk.f32.gmra.mxu0 %vm795_vm2, %v7523_v57  ;;  %v5643_v29 = vpop.eup %5642 }
 0x64b   :  { %v5645_v20 = vpop.eup %5644  ;;  %v1919_v53 = vmul.f32 0.5, %v5643_v29  ;;  %v9770_v29 = vld [vmem:[#allocation53_spill] sm:$0xff] }
 0x64c   :  { %5648 = vtanh.f32 %v1912_v36  ;;  %v5647_v47 = vpop.eup %5646  ;;  %v1918_v8 = vmul.f32 0.5, %v5645_v20 }
 0x64d   :  { %5650 = vtanh.f32 %v7529_v34  ;;  %v1917_v55 = vmul.f32 0.5, %v5647_v47  ;;  %v1923_v58 = vadd.f32 0.5, %v1919_v53  ;;  %v6101_v53 = vld [vmem:[%s9478_s2 + $0x10] sm:$0xff] }
 0x64e   :  { %5652 = vtanh.f32 %v7532_v27  ;;  %v1922_v46 = vadd.f32 0.5, %v1918_v8 }
 0x64f   :  { %v7534_v14 = vpop.f32.mrf.mxu0  ;;  %5654 = vtanh.f32 %v7537_v32  ;;  %v1921_v30 = vadd.f32 0.5, %v1917_v55  ;;  %v9779_v55 = vld [vmem:[#allocation26_spill] sm:$0xff] }
 0x650   :  { %9767 = vst [vmem:[#allocation15_spill] sm:$0xff] %v7534_v14  ;;  %5656 = vtanh.f32 %v7540_v61 }
 0x652   :  { %v5649_v63 = vpop.eup %5648 }
 0x653   :  { %v1920_v22 = vmul.f32 0.5, %v5649_v63  ;;  %v5651_v48 = vpop.eup %5650 }
 0x654   :  { %v5653_v10 = vpop.eup %5652 }
 0x655   :  { %v1924_v50 = vadd.f32 0.5, %v1920_v22  ;;  %v1943_v51 = vmul.f32 %v5653_v10, %v1923_v58  ;;  %v5655_v56 = vpop.eup %5654  ;;  %v9781_v58 = vld [vmem:[#allocation102_spill] sm:$0xff]  ;;  %v9787_v10 = vld [vmem:[#allocation107_spill] sm:$0xff] }
 0x656   :  { %v1942_v9 = vmul.f32 %v5655_v56, %v1922_v46  ;;  %v5657_v36 = vpop.eup %5656  ;;  %v9785_v46 = vld [vmem:[#allocation105_spill] sm:$0xff] }
 0x657   :  { %v1944_v23 = vmul.f32 %v5651_v48, %v1924_v50  ;;  %v7545_v1 = vpop.f32.mrf.mxu0  ;;  %v1941_v31 = vmul.f32 %v5657_v36, %v1921_v30  ;;  %v9782_v50 = vld [vmem:[#allocation30_spill] sm:$0xff] }
 0x658   :  { %v7657_v36 = vld [vmem:[%s9481_s5] sm:$0xff] }
 0x659   :  { %2041 = vmatpush.msrb.mxu1 %v1944_v23  ;;  %3124 = vmatpush.msrb.mxu0 %v1944_v23  ;;  %9791 = vst [vmem:[#allocation13_spill] sm:$0xff] %v7657_v36 }
 0x65b   :  { %2042 = vmatpush.msrb.mxu1 %v1943_v51  ;;  %3125 = vmatpush.msrb.mxu0 %v1943_v51  ;;  %v9789_v51 = vld [vmem:[#allocation12_spill] sm:$0xff] }
 0x65d   :  { %2043 = vmatpush.msrb.mxu1 %v1942_v9  ;;  %3126 = vmatpush.msrb.mxu0 %v1942_v9 }
 0x65f   :  { %2044 = vmatpush.msrb.mxu1 %v1941_v31  ;;  %v7547_v6 = vpop.f32.mrf.mxu0  ;;  %3127 = vmatpush.msrb.mxu0 %v1941_v31 }
 0x660   :  { %5139 = vmatmul.msk.f32.vlgmr.msrb.gmra.mxu1 %vm795_vm2, %v6099_v38  ;;  %5251 = vmatmul.msk.f32.vlgmr.msrb.gmra.mxu0 %vm795_vm2, %v7380_v11 }
 0x661   :  { %2929 = vmatpush.msra.mxu1 %v9768_v21  ;;  %3595 = vmatpush.msra.mxu0 %v9769_v0  ;;  %v7668_v21 = vld [vmem:[%s9481_s5 + $0x8] sm:$0xff] }
 0x662   :  { %9793 = vst [vmem:[#allocation37_spill] sm:$0xff] %v7668_v21 }
 0x663   :  { %2930 = vmatpush.msra.mxu1 %v9770_v29 }
 0x665   :  { %2931 = vmatpush.msra.mxu1 %v9771_v54  ;;  %v7679_v54 = vld [vmem:[%s9481_s5 + $0x10] sm:$0xff] }
 0x666   :  { %9795 = vst [vmem:[#allocation35_spill] sm:$0xff] %v7679_v54 }
 0x667   :  { %2932 = vmatpush.msra.mxu1 %v9772_v40  ;;  %v7560_v20 = vpop.f32.mrf.mxu0 }
 0x668   :  { %5140 = vmatmul.msk.f32.gmra.mxu1 %vm795_vm2, %v6100_v49  ;;  %5252 = vmatmul.msk.f32.gmra.mxu0 %vm795_vm2, %v7387_v60 }
 0x66f   :  { %v7568_v47 = vpop.f32.mrf.mxu0 }
 0x670   :  { %9773 = vst [vmem:[#allocation64_spill] sm:$0xff] %v7568_v47  ;;  %5141 = vmatmul.msk.f32.gmra.mxu1 %vm795_vm2, %v6101_v53  ;;  %5253 = vmatmul.msk.f32.gmra.mxu0 %vm795_vm2, %v7394_v33  ;;  %v7690_v53 = vld [vmem:[%s9481_s5 + $0x18] sm:$0xff] }
 0x671   :  { %9797 = vst [vmem:[#allocation34_spill] sm:$0xff] %v7690_v53 }
 0x677   :  { %v7576_v63 = vpop.f32.mrf.mxu0 }
 0x678   :  { %5142 = vmatmul.msk.f32.gmra.mxu1 %vm795_vm2, %v7169_v43  ;;  %5254 = vmatmul.msk.f32.gmra.mxu0 %vm795_vm2, %v7401_v5 }
 0x67f   :  { %v7582_v8 = vpop.f32.mrf.mxu0 }
 0x680   :  { %5143 = vmatmul.msk.f32.gmra.mxu1 %vm795_vm2, %v7178_v16  ;;  %5255 = vmatmul.msk.f32.gmra.mxu0 %vm795_vm2, %v7408_v59 }
 0x687   :  { %v7588_v22 = vpop.f32.mrf.mxu0 }
 0x688   :  { %5144 = vmatmul.msk.f32.gmra.mxu1 %vm795_vm2, %v7187_v52  ;;  %5256 = vmatmul.msk.f32.gmra.mxu0 %vm795_vm2, %v7415_v37 }
 0x68f   :  { %v7594_v43 = vpop.f32.mrf.mxu0 }
 0x690   :  { %9774 = vst [vmem:[#allocation65_spill] sm:$0xff] %v7594_v43  ;;  %5145 = vmatmul.msk.f32.gmra.mxu1 %vm795_vm2, %v7196_v24  ;;  %5257 = vmatmul.msk.f32.gmra.mxu0 %vm795_vm2, %v7422_v13  ;;  %v9819_v43 = vld [vmem:[#allocation72_spill] sm:$0xff] }
 0x697   :  { %v7604_v16 = vpop.f32.mrf.mxu0 }
 0x698   :  { %5146 = vmatmul.msk.f32.gmra.mxu1 %vm795_vm2, %v7205_v28  ;;  %5258 = vmatmul.msk.f32.gmra.mxu0 %vm795_vm2, %v7429_v25  ;;  %9775 = vst [vmem:[#allocation66_spill] sm:$0xff] %v7604_v16  ;;  %v9778_v28 = vld [vmem:[#allocation100_spill] sm:$0xff] }
 0x69f   :  { %v7610_v52 = vpop.f32.mrf.mxu0 }
 0x6a0   :  { %5147 = vmatmul.msk.f32.gmra.mxu1 %vm795_vm2, %v7212_v41  ;;  %5259 = vmatmul.msk.f32.gmra.mxu0 %vm795_vm2, %v7438_v26  ;;  %9776 = vst [vmem:[#allocation68_spill] sm:$0xff] %v7610_v52 }
 0x6a7   :  { %v7616_v24 = vpop.f32.mrf.mxu0 }
 0x6a8   :  { %5148 = vmatmul.msk.f32.gmra.mxu1 %vm795_vm2, %v7221_v15  ;;  %5260 = vmatmul.msk.f32.gmra.mxu0 %vm795_vm2, %v7445_v42  ;;  %9777 = vst [vmem:[#allocation16_spill] sm:$0xff] %v7616_v24  ;;  %v9783_v15 = vld [vmem:[#allocation104_spill] sm:$0xff]  ;;  %v9822_v24 = vld [vmem:[#allocation63_spill] sm:$0xff] }
 0x6af   :  { %v7622_v41 = vpop.f32.mrf.mxu0 }
 0x6b0   :  { %5149 = vmatmul.msk.f32.gmra.mxu1 %vm795_vm2, %v9778_v28  ;;  %5261 = vmatmul.msk.f32.gmra.mxu0 %vm795_vm2, %v9779_v55  ;;  %9780 = vst [vmem:[#allocation21_spill] sm:$0xff] %v7622_v41  ;;  %v9817_v41 = vld [vmem:[#allocation67_spill] sm:$0xff] }
 0x6b7   :  { %v7632_v48 = vpop.f32.mrf.mxu0 }
 0x6b8   :  { %5150 = vmatmul.msk.f32.gmra.mxu1 %vm795_vm2, %v9781_v58  ;;  %5262 = vmatmul.msk.f32.gmra.mxu0 %vm795_vm2, %v9782_v50  ;;  %9784 = vst [vmem:[#allocation33_spill] sm:$0xff] %v7632_v48  ;;  %v9818_v48 = vld [vmem:[#allocation44_spill] sm:$0xff] }
 0x6bf   :  { %v7638_v23 = vpop.f32.mrf.mxu0 }
 0x6c0   :  { %5151 = vmatmul.msk.f32.gmra.mxu1 %vm795_vm2, %v9783_v15  ;;  %5263 = vmatmul.msk.f32.gmra.mxu0 %vm795_vm2, %v7474_v62  ;;  %9786 = vst [vmem:[#allocation20_spill] sm:$0xff] %v7638_v23  ;;  %v7703_v15 = vld [vmem:[%s9481_s5 + $0x20] sm:$0xff] }
 0x6c1   :  { %9799 = vst [vmem:[#allocation38_spill] sm:$0xff] %v7703_v15 }
 0x6c7   :  { %v7644_v30 = vpop.f32.mrf.mxu0 }
 0x6c8   :  { %5152 = vmatmul.msk.f32.gmra.mxu1 %vm795_vm2, %v9785_v46  ;;  %5264 = vmatmul.msk.f32.gmra.mxu0 %vm795_vm2, %v7491_v12  ;;  %9788 = vst [vmem:[#allocation31_spill] sm:$0xff] %v7644_v30  ;;  %v9816_v30 = vld [vmem:[#allocation42_spill] sm:$0xff] }
 0x6d0   :  { %5153 = vmatmul.msk.f32.gmra.mxu1 %vm795_vm2, %v9787_v10  ;;  %5265 = vmatmul.msk.f32.gmra.mxu0 %vm795_vm2, %v7508_v44 }
 0x6d8   :  { %5154 = vmatmul.msk.f32.gmra.mxu1 %vm795_vm2, %v9789_v51  ;;  %5266 = vmatmul.msk.f32.gmra.mxu0 %vm795_vm2, %v7523_v57  ;;  %v7714_v51 = vld [vmem:[%s9481_s5 + $0x28] sm:$0xff] }
 0x6d9   :  { %9801 = vst [vmem:[#allocation48_spill] sm:$0xff] %v7714_v51 }
 0x6dd   :  { %v7650_v56 = vpop.f32.mrf.mxu1  ;;  %v7652_v9 = vpop.f32.mrf.mxu0 }
 0x6de   :  { %9790 = vst [vmem:[#allocation27_spill] sm:$0xff] %v7652_v9 }
 0x6e0   :  { %5203 = vmatmul.msk.f32.vlgmr.msra.gmra.mxu1 %vm795_vm2, %v7380_v11  ;;  %5315 = vmatmul.msk.f32.vlgmr.msra.gmra.mxu0 %vm795_vm2, %v7657_v36 }
 0x6e5   :  { %v2049_v31 = vpop.f32.mrf.mxu1  ;;  %v7663_v38 = vpop.f32.mrf.mxu0 }
 0x6e6   :  { %9792 = vst [vmem:[#allocation24_spill] sm:$0xff] %v7663_v38  ;;  %v7725_v38 = vld [vmem:[%s9481_s5 + $0x30] sm:$0xff] }
 0x6e7   :  { %9803 = vst [vmem:[#allocation55_spill] sm:$0xff] %v7725_v38 }
 0x6e8   :  { %5204 = vmatmul.msk.f32.gmra.mxu1 %vm795_vm2, %v7387_v60  ;;  %5316 = vmatmul.msk.f32.gmra.mxu0 %vm795_vm2, %v7668_v21  ;;  %v9815_v21 = vld [vmem:[#allocation62_spill] sm:$0xff] }
 0x6ed   :  { %v2052_v0 = vpop.f32.mrf.mxu1  ;;  %v7674_v29 = vpop.f32.mrf.mxu0 }
 0x6ee   :  { %9794 = vst [vmem:[#allocation36_spill] sm:$0xff] %v7674_v29 }
 0x6f0   :  { %5205 = vmatmul.msk.f32.gmra.mxu1 %vm795_vm2, %v7394_v33  ;;  %5317 = vmatmul.msk.f32.gmra.mxu0 %vm795_vm2, %v7679_v54 }
 0x6f5   :  { %v2055_v40 = vpop.f32.mrf.mxu1  ;;  %v7685_v49 = vpop.f32.mrf.mxu0 }
 0x6f6   :  { %9796 = vst [vmem:[#allocation40_spill] sm:$0xff] %v7685_v49 }
 0x6f8   :  { %5206 = vmatmul.msk.f32.gmra.mxu1 %vm795_vm2, %v7401_v5  ;;  %5318 = vmatmul.msk.f32.gmra.mxu0 %vm795_vm2, %v7690_v53 }
 0x6fd   :  { %v7696_v28 = vpop.f32.mrf.mxu1  ;;  %v7698_v58 = vpop.f32.mrf.mxu0 }
 0x6fe   :  { %9798 = vst [vmem:[#allocation39_spill] sm:$0xff] %v7698_v58  ;;  %v7736_v58 = vld [vmem:[%s9481_s5 + $0x38] sm:$0xff] }
 0x6ff   :  { %9805 = vst [vmem:[#allocation100_spill] sm:$0xff] %v7736_v58 }
 0x700   :  { %5207 = vmatmul.msk.f32.gmra.mxu1 %vm795_vm2, %v7408_v59  ;;  %5319 = vmatmul.msk.f32.gmra.mxu0 %vm795_vm2, %v7703_v15 }
 0x705   :  { %v2061_v46 = vpop.f32.mrf.mxu1  ;;  %v7709_v10 = vpop.f32.mrf.mxu0 }
 0x706   :  { %9800 = vst [vmem:[#allocation41_spill] sm:$0xff] %v7709_v10 }
 0x708   :  { %5208 = vmatmul.msk.f32.gmra.mxu1 %vm795_vm2, %v7415_v37  ;;  %5320 = vmatmul.msk.f32.gmra.mxu0 %vm795_vm2, %v7714_v51 }
 0x70d   :  { %v2064_v29 = vpop.f32.mrf.mxu1  ;;  %v7720_v49 = vpop.f32.mrf.mxu0 }
 0x70e   :  { %9802 = vst [vmem:[#allocation53_spill] sm:$0xff] %v7720_v49 }
 0x710   :  { %5209 = vmatmul.msk.f32.gmra.mxu1 %vm795_vm2, %v7422_v13  ;;  %5321 = vmatmul.msk.f32.gmra.mxu0 %vm795_vm2, %v7725_v38  ;;  %v7749_v38 = vld [vmem:[%s9481_s5 + $0x40] sm:$0xff] }
 0x711   :  { %9807 = vst [vmem:[#allocation102_spill] sm:$0xff] %v7749_v38 }
 0x715   :  { %v2067_v10 = vpop.f32.mrf.mxu1  ;;  %v7731_v9 = vpop.f32.mrf.mxu0 }
 0x716   :  { %9804 = vst [vmem:[#allocation57_spill] sm:$0xff] %v7731_v9 }
 0x718   :  { %5210 = vmatmul.msk.f32.gmra.mxu1 %vm795_vm2, %v7429_v25  ;;  %5322 = vmatmul.msk.f32.gmra.mxu0 %vm795_vm2, %v7736_v58  ;;  %v7762_v58 = vld [vmem:[%s9481_s5 + $0x48] sm:$0xff] }
 0x719   :  { %9809 = vst [vmem:[#allocation104_spill] sm:$0xff] %v7762_v58 }
 0x71d   :  { %v7742_v49 = vpop.f32.mrf.mxu1  ;;  %v7744_v51 = vpop.f32.mrf.mxu0 }
 0x71e   :  { %9806 = vst [vmem:[#allocation26_spill] sm:$0xff] %v7744_v51 }
 0x720   :  { %5211 = vmatmul.msk.f32.gmra.mxu1 %vm795_vm2, %v7438_v26  ;;  %5323 = vmatmul.msk.f32.gmra.mxu0 %vm795_vm2, %v7749_v38  ;;  %v7773_v38 = vld [vmem:[%s9481_s5 + $0x50] sm:$0xff] }
 0x721   :  { %9811 = vst [vmem:[#allocation107_spill] sm:$0xff] %v7773_v38 }
 0x725   :  { %v7755_v9 = vpop.f32.mrf.mxu1  ;;  %v7757_v15 = vpop.f32.mrf.mxu0 }
 0x726   :  { %9808 = vst [vmem:[#allocation30_spill] sm:$0xff] %v7757_v15 }
 0x728   :  { %5212 = vmatmul.msk.f32.gmra.mxu1 %vm795_vm2, %v7445_v42  ;;  %5324 = vmatmul.msk.f32.gmra.mxu0 %vm795_vm2, %v7762_v58  ;;  %v7784_v58 = vld [vmem:[%s9481_s5 + $0x58] sm:$0xff] }
 0x729   :  { %9813 = vst [vmem:[#allocation110_spill] sm:$0xff] %v7784_v58 }
 0x72d   :  { %v2076_v51 = vpop.f32.mrf.mxu1  ;;  %v7768_v53 = vpop.f32.mrf.mxu0 }
 0x72e   :  { %9810 = vst [vmem:[#allocation105_spill] sm:$0xff] %v7768_v53  ;;  %v9814_v53 = vld [vmem:[#allocation49_spill] sm:$0xff] }
 0x72f   :  { %v500_v36 = vadd.f32 %v9815_v21, %v9814_v53  ;;  %v9823_v53 = vld [vmem:[#allocation71_spill] sm:$0xff] }
 0x730   :  { %5213 = vmatmul.msk.f32.gmra.mxu1 %vm795_vm2, %v9779_v55  ;;  %5325 = vmatmul.msk.f32.gmra.mxu0 %vm795_vm2, %v7773_v38  ;;  %v505_v38 = vadd.f32 %v9817_v41, %v9816_v30  ;;  %v513_v41 = vadd.f32 %v9823_v53, %v6759_v35 }
 0x731   :  { %v2095_v23 = vadd.f32 %v2049_v31, %v500_v36 }
 0x732   :  { %v2097_v21 = vadd.f32 %v2055_v40, %v505_v38  ;;  %v9826_v38 = vld [vmem:[#allocation69_spill] sm:$0xff] }
 0x733   :  { %v2111_v14 = vmul.f32 0.5, %v2095_v23  ;;  %v508_v40 = vadd.f32 %v9826_v38, %v9757_v18  ;;  %v9831_v38 = vld [vmem:[#allocation79_spill] sm:$0xff] }
 0x734   :  { %v2113_v53 = vmul.f32 0.5, %v2097_v21 }
 0x735   :  { %v2079_v15 = vpop.f32.mrf.mxu1  ;;  %v7779_v54 = vpop.f32.mrf.mxu0  ;;  %5658 = vtanh.f32 %v2111_v14  ;;  %v9829_v14 = vld [vmem:[#allocation75_spill] sm:$0xff] }
 0x736   :  { %9812 = vst [vmem:[#allocation12_spill] sm:$0xff] %v7779_v54  ;;  %v515_v54 = vadd.f32 %v9819_v43, %v9818_v48  ;;  %v9824_v43 = vld [vmem:[#allocation70_spill] sm:$0xff]  ;;  %5660 = vtanh.f32 %v2113_v53  ;;  %v9832_v53 = vld [vmem:[#allocation73_spill] sm:$0xff] }
 0x737   :  { %v510_v36 = vadd.f32 %v9824_v43, %v6775_v19 }
 0x738   :  { %5214 = vmatmul.msk.f32.gmra.mxu1 %vm795_vm2, %v9782_v50  ;;  %5326 = vmatmul.msk.f32.gmra.mxu0 %vm795_vm2, %v7784_v58  ;;  %v7803_v50 = vld [vmem:[%s9481_s5 + $0x60] sm:$0xff]  ;;  %v9821_v58 = vld [vmem:[#allocation43_spill] sm:$0xff]  ;;  %v2101_v30 = vadd.f32 %v2067_v10, %v515_v54 }
 0x739   :  { %v503_v47 = vadd.f32 %v9822_v24, %v9821_v58  ;;  %v2100_v24 = vadd.f32 %v2064_v29, %v513_v41  ;;  %v2099_v54 = vadd.f32 %v2061_v46, %v510_v36  ;;  %v9828_v29 = vld [vmem:[#allocation76_spill] sm:$0xff]  ;;  %v9830_v41 = vld [vmem:[#allocation74_spill] sm:$0xff] }
 0x73a   :  { %v2129_v43 = vmul.f32 0.5, %v2101_v30  ;;  %v525_v46 = vadd.f32 %v9828_v29, %v6809_v45  ;;  %v520_v36 = vadd.f32 %v9830_v41, %v6793_v39 }
 0x73b   :  { %v2096_v31 = vadd.f32 %v2052_v0, %v503_v47  ;;  %v2098_v0 = vadd.f32 %v7696_v28, %v508_v40  ;;  %v2127_v23 = vmul.f32 0.5, %v2099_v54  ;;  %v5659_v21 = vpop.eup %5658  ;;  %v533_v40 = vadd.f32 %v9831_v38, %v6825_v7 }
 0x73c   :  { %5662 = vtanh.f32 %v2129_v43  ;;  %v2105_v28 = vadd.f32 %v2079_v15, %v525_v46  ;;  %v518_v54 = vadd.f32 %v9832_v53, %v6783_v4 }
 0x73d   :  { %v7796_v16 = vpop.f32.mrf.mxu1  ;;  %v7798_v52 = vpop.f32.mrf.mxu0  ;;  %v2112_v47 = vmul.f32 0.5, %v2096_v31  ;;  %v2126_v30 = vmul.f32 0.5, %v2098_v0  ;;  %v9834_v0 = vld [vmem:[#allocation59_spill] sm:$0xff] }
 0x73e   :  { %9820 = vst [vmem:[#allocation62_spill] sm:$0xff] %v7798_v52  ;;  %v9825_v52 = vld [vmem:[#allocation61_spill] sm:$0xff] }
 0x73f   :  { %v498_v48 = vadd.f32 %v9825_v52, %v6761_v3  ;;  %v7826_v52 = vld [vmem:[%s9481_s5 + $0x68] sm:$0xff]  ;;  %5664 = vtanh.f32 %v2112_v47  ;;  %v7848_v47 = vld [vmem:[%s9481_s5 + $0x70] sm:$0xff] }
 0x740   :  { %5215 = vmatmul.msk.f32.gmra.mxu1 %vm795_vm2, %v7474_v62  ;;  %5327 = vmatmul.msk.f32.gmra.mxu0 %vm795_vm2, %v7803_v50  ;;  %v2128_v62 = vmul.f32 0.5, %v2100_v24  ;;  %v5661_v24 = vpop.eup %5660 }
 0x741   :  { %v2094_v10 = vadd.f32 %v7650_v56, %v498_v48  ;;  %v523_v56 = vadd.f32 %v9829_v14, %v6773_v2 }
 0x742   :  { %5666 = vtanh.f32 %v2128_v62  ;;  %v9835_v62 = vld [vmem:[#allocation78_spill] sm:$0xff] }
 0x743   :  { %v2110_v48 = vmul.f32 0.5, %v2094_v10  ;;  %5668 = vtanh.f32 %v2127_v23  ;;  %v2104_v31 = vadd.f32 %v2076_v51, %v523_v56  ;;  %v2103_v10 = vadd.f32 %v7755_v9, %v520_v36 }
 0x744   :  { %v530_v23 = vadd.f32 %v9835_v62, %v9834_v0  ;;  %v2102_v9 = vadd.f32 %v7742_v49, %v518_v54 }
 0x745   :  { %v2085_v35 = vpop.f32.mrf.mxu1  ;;  %v7821_v58 = vpop.f32.mrf.mxu0  ;;  %5670 = vtanh.f32 %v2110_v48  ;;  %v9836_v48 = vld [vmem:[#allocation60_spill] sm:$0xff] }
 0x746   :  { %9827 = vst [vmem:[#allocation67_spill] sm:$0xff] %v7821_v58  ;;  %5672 = vtanh.f32 %v2126_v30  ;;  %v9837_v30 = vld [vmem:[#allocation77_spill] sm:$0xff]  ;;  %v2107_v36 = vadd.f32 %v2085_v35, %v530_v23  ;;  %v9838_v35 = vld [vmem:[#allocation80_spill] sm:$0xff] }
 0x747   :  { %5674 = vtanh.f32 %v2105_v28  ;;  %v528_v14 = vadd.f32 %v9837_v30, %v9836_v48  ;;  %v2121_v28 = vmul.f32 0.5, %v5661_v24  ;;  %v535_v24 = vadd.f32 %v9838_v35, %v6819_v17 }
 0x748   :  { %5216 = vmatmul.msk.f32.gmra.mxu1 %vm795_vm2, %v7491_v12  ;;  %5328 = vmatmul.msk.f32.gmra.mxu0 %vm795_vm2, %v7826_v52  ;;  %v5663_v12 = vpop.eup %5662  ;;  %5676 = vtanh.f32 %v2104_v31  ;;  %v2119_v31 = vmul.f32 0.5, %v5659_v21  ;;  %v2147_v23 = vmul.f32 0.5, %v2107_v36  ;;  %v7867_v21 = vld [vmem:[%s9481_s5 + $0x78] sm:$0xff] }
 0x749   :  { %v5665_v51 = vpop.eup %5664  ;;  %v2137_v41 = vmul.f32 0.5, %v5663_v12  ;;  %5678 = vtanh.f32 %v2103_v10  ;;  %v2125_v12 = vadd.f32 0.5, %v2121_v28 }
 0x74a   :  { %v5667_v46 = vpop.eup %5666  ;;  %v2120_v53 = vmul.f32 0.5, %v5665_v51  ;;  %5680 = vtanh.f32 %v2102_v9 }
 0x74b   :  { %v5669_v56 = vpop.eup %5668  ;;  %v2136_v62 = vmul.f32 0.5, %v5667_v46 }
 0x74c   :  { %v5671_v38 = vpop.eup %5670  ;;  %v2135_v54 = vmul.f32 0.5, %v5669_v56  ;;  %v2124_v48 = vadd.f32 0.5, %v2120_v53  ;;  %v2123_v56 = vadd.f32 0.5, %v2119_v31 }
 0x74d   :  { %v2088_v15 = vpop.f32.mrf.mxu1  ;;  %v7843_v43 = vpop.f32.mrf.mxu0 }
 0x74e   :  { %9833 = vst [vmem:[#allocation72_spill] sm:$0xff] %v7843_v43  ;;  %v2108_v29 = vadd.f32 %v2088_v15, %v533_v40  ;;  %v2106_v40 = vadd.f32 %v7796_v16, %v528_v14  ;;  %v5673_v15 = vpop.eup %5672  ;;  %v2118_v43 = vmul.f32 0.5, %v5671_v38  ;;  %v2139_v28 = vadd.f32 0.5, %v2135_v54 }
 0x74f   :  { %v5675_v49 = vpop.eup %5674  ;;  %v2134_v51 = vmul.f32 0.5, %v5673_v15 }
 0x750   :  { %5217 = vmatmul.msk.f32.gmra.mxu1 %vm795_vm2, %v7508_v44  ;;  %5329 = vmatmul.msk.f32.gmra.mxu0 %vm795_vm2, %v7848_v47  ;;  %v2148_v30 = vmul.f32 0.5, %v2108_v29  ;;  %v2141_v44 = vadd.f32 0.5, %v2137_v41  ;;  %v5677_v58 = vpop.eup %5676  ;;  %v2146_v10 = vmul.f32 0.5, %v2106_v40  ;;  %v2140_v29 = vadd.f32 0.5, %v2136_v62 }
 0x751   :  { %v2169_v46 = vmul.f32 %v5675_v49, %v2125_v12  ;;  %v5679_v9 = vpop.eup %5678  ;;  %v2168_v36 = vmul.f32 %v5677_v58, %v2124_v48  ;;  %v2122_v40 = vadd.f32 0.5, %v2118_v43  ;;  %v2138_v15 = vadd.f32 0.5, %v2134_v51 }
 0x752   :  { %5682 = vtanh.f32 %v2148_v30  ;;  %v2165_v41 = vmul.f32 %v2141_v44, %v7529_v34  ;;  %v5681_v53 = vpop.eup %5680  ;;  %v2167_v62 = vmul.f32 %v5679_v9, %v2123_v56  ;;  %v2163_v58 = vmul.f32 %v2139_v28, %v7537_v32 }
 0x753   :  { %5684 = vtanh.f32 %v2147_v23  ;;  %v2166_v48 = vmul.f32 %v5681_v53, %v2122_v40  ;;  %v2162_v43 = vmul.f32 %v2138_v15, %v7540_v61 }
 0x754   :  { %5686 = vtanh.f32 %v2146_v10  ;;  %v7875_v30 = vadd.f32 %v2169_v46, %v2165_v41  ;;  %v7885_v35 = vadd.f32 %v2167_v62, %v2163_v58  ;;  %v9842_v58 = vld [vmem:[#allocation22_spill] sm:$0xff] }
 0x755   :  { %v2091_v0 = vpop.f32.mrf.mxu1  ;;  %v7862_v16 = vpop.f32.mrf.mxu0  ;;  %v7888_v44 = vadd.f32 %v2166_v48, %v2162_v43  ;;  %v9843_v48 = vld [vmem:[#allocation11_spill] sm:$0xff] }
 0x756   :  { %9839 = vst [vmem:[#allocation63_spill] sm:$0xff] %v7862_v16  ;;  %v2109_v14 = vadd.f32 %v2091_v0, %v535_v24  ;;  %v2164_v0 = vmul.f32 %v2140_v29, %v7532_v27  ;;  %v7916_v43 = vld [vmem:[%s9478_s2 + $0x8] sm:$0xff] }
 0x758   :  { %v2149_v38 = vmul.f32 0.5, %v2109_v14  ;;  %5218 = vmatmul.msk.f32.gmra.mxu1 %vm795_vm2, %v7523_v57  ;;  %5330 = vmatmul.msk.f32.gmra.mxu0 %vm795_vm2, %v7867_v21  ;;  %v5683_v34 = vpop.eup %5682  ;;  %v7878_v49 = vadd.f32 %v2168_v36, %v2164_v0  ;;  %v7900_v0 = vld [vmem:[%s9478_s2] sm:$0xff] }
 0x759   :  { %v5685_v54 = vpop.eup %5684  ;;  %v2156_v24 = vmul.f32 0.5, %v5683_v34 }
 0x75a   :  { %5688 = vtanh.f32 %v2149_v38  ;;  %v5687_v27 = vpop.eup %5686  ;;  %v2155_v32 = vmul.f32 0.5, %v5685_v54  ;;  %v9844_v54 = vld [vmem:[#allocation25_spill] sm:$0xff] }
 0x75b   :  { %5690 = vtanh.f32 %v7875_v30  ;;  %v2154_v51 = vmul.f32 0.5, %v5687_v27  ;;  %v2160_v10 = vadd.f32 0.5, %v2156_v24  ;;  %v9845_v27 = vld [vmem:[#allocation29_spill] sm:$0xff] }
 0x75c   :  { %5692 = vtanh.f32 %v7878_v49  ;;  %v2159_v61 = vadd.f32 0.5, %v2155_v32 }
 0x75d   :  { %v7880_v57 = vpop.f32.mrf.mxu1  ;;  %v7882_v31 = vpop.f32.mrf.mxu0  ;;  %5694 = vtanh.f32 %v7885_v35  ;;  %v2158_v41 = vadd.f32 0.5, %v2154_v51  ;;  %v7941_v51 = vld [vmem:[%s9478_s2 + $0x18] sm:$0xff] }
 0x75e   :  { %9840 = vst [vmem:[#allocation71_spill] sm:$0xff] %v7880_v57  ;;  %5696 = vtanh.f32 %v7888_v44 }
 0x760   :  { %v5689_v12 = vpop.eup %5688 }
 0x761   :  { %v2157_v23 = vmul.f32 0.5, %v5689_v12  ;;  %v5691_v46 = vpop.eup %5690 }
 0x762   :  { %v5693_v28 = vpop.eup %5692 }
 0x763   :  { %v2161_v29 = vadd.f32 0.5, %v2157_v23  ;;  %v2180_v36 = vmul.f32 %v5693_v28, %v2160_v10  ;;  %v5695_v38 = vpop.eup %5694  ;;  %v7976_v28 = vld [vmem:[%s9478_s2 + $0x30] sm:$0xff] }
 0x764   :  { %v2179_v53 = vmul.f32 %v5695_v38, %v2159_v61  ;;  %v5697_v40 = vpop.eup %5696  ;;  %v7965_v61 = vld [vmem:[%s9478_s2 + $0x28] sm:$0xff]  ;;  %v7988_v38 = vpop.permute.xlu2 %2761 }
 0x765   :  { %v2181_v14 = vmul.f32 %v5691_v46, %v2161_v29  ;;  %v7893_v9 = vpop.f32.mrf.mxu1  ;;  %v7895_v56 = vpop.f32.mrf.mxu0  ;;  %v2178_v15 = vmul.f32 %v5697_v40, %v2158_v41  ;;  %v7954_v29 = vld [vmem:[%s9478_s2 + $0x20] sm:$0xff]  ;;  %9853 = vst [vmem:[#allocation78_spill] sm:$0xff] %v7988_v38 }
 0x767   :  { %2278 = vmatpush.msrb.mxu2 %v2181_v14  ;;  %3189 = vmatpush.msrb.mxu1 %v2181_v14 }
 0x769   :  { %2279 = vmatpush.msrb.mxu2 %v2180_v36  ;;  %3190 = vmatpush.msrb.mxu1 %v2180_v36 }
 0x76b   :  { %2280 = vmatpush.msrb.mxu2 %v2179_v53  ;;  %3191 = vmatpush.msrb.mxu1 %v2179_v53  ;;  %v7995_v53 = vpop.permute.xlu0 %2736 }
 0x76c   :  { %9854 = vst [vmem:[#allocation77_spill] sm:$0xff] %v7995_v53 }
 0x76d   :  { %2281 = vmatpush.msrb.mxu2 %v2178_v15  ;;  %v7902_v62 = vpop.f32.mrf.mxu1  ;;  %3192 = vmatpush.msrb.mxu1 %v2178_v15  ;;  %v7904_v34 = vpop.f32.mrf.mxu0 }
 0x76e   :  { %9841 = vst [vmem:[#allocation70_spill] sm:$0xff] %v7902_v62  ;;  %5155 = vmatmul.msk.f32.vlgmr.msrb.gmra.mxu2 %vm795_vm2, %v7900_v0  ;;  %5267 = vmatmul.msk.f32.vlgmr.msrb.gmra.mxu1 %vm795_vm2, %v7380_v11  ;;  %v7928_v11 = vld [vmem:[%s9478_s2 + $0x10] sm:$0xff] }
 0x76f   :  { %2994 = vmatpush.msra.mxu2 %v9842_v58  ;;  %v8010_v58 = vld [vmem:[%s9478_s2 + $0x40] sm:$0xff] }
 0x771   :  { %2995 = vmatpush.msra.mxu2 %v9843_v48  ;;  %v8012_v48 = vpop.permute.xlu2 %2731 }
 0x773   :  { %2996 = vmatpush.msra.mxu2 %v9844_v54 }
 0x775   :  { %2997 = vmatpush.msra.mxu2 %v9845_v27  ;;  %v7919_v24 = vpop.f32.mrf.mxu1  ;;  %v3606_v12 = vpop.f32.mrf.mxu0 }
 0x776   :  { %9846 = vst [vmem:[#allocation61_spill] sm:$0xff] %v7919_v24  ;;  %5156 = vmatmul.msk.f32.gmra.mxu2 %vm795_vm2, %v7916_v43  ;;  %5268 = vmatmul.msk.f32.gmra.mxu1 %vm795_vm2, %v7387_v60  ;;  %v8020_v27 = vpop.permute.xlu0 %2751 }
 0x77d   :  { %v7930_v32 = vpop.f32.mrf.mxu1  ;;  %v7932_v23 = vpop.f32.mrf.mxu0 }
 0x77e   :  { %9847 = vst [vmem:[#allocation69_spill] sm:$0xff] %v7930_v32  ;;  %5157 = vmatmul.msk.f32.gmra.mxu2 %vm795_vm2, %v7928_v11  ;;  %5269 = vmatmul.msk.f32.gmra.mxu1 %vm795_vm2, %v7394_v33  ;;  %v8035_v32 = vpop.permute.xlu2 %2746 }
 0x77f   :  { %9858 = vst [vmem:[#allocation25_spill] sm:$0xff] %v8035_v32 }
 0x785   :  { %v7943_v60 = vpop.f32.mrf.mxu1  ;;  %v7945_v10 = vpop.f32.mrf.mxu0 }
 0x786   :  { %9848 = vst [vmem:[#allocation76_spill] sm:$0xff] %v7943_v60  ;;  %5158 = vmatmul.msk.f32.gmra.mxu2 %vm795_vm2, %v7941_v51  ;;  %5270 = vmatmul.msk.f32.gmra.mxu1 %vm795_vm2, %v7401_v5 }
 0x78d   :  { %v7956_v33 = vpop.f32.mrf.mxu1  ;;  %v3615_v46 = vpop.f32.mrf.mxu0 }
 0x78e   :  { %9849 = vst [vmem:[#allocation75_spill] sm:$0xff] %v7956_v33  ;;  %5159 = vmatmul.msk.f32.gmra.mxu2 %vm795_vm2, %v7954_v29  ;;  %5271 = vmatmul.msk.f32.gmra.mxu1 %vm795_vm2, %v7408_v59  ;;  %v7978_v59 = vpop.permute.xlu1 %2741  ;;  %v8048_v33 = vld [vmem:[%s9478_s2 + $0x50] sm:$0xff] }
 0x78f   :  { %9851 = vst [vmem:[#allocation79_spill] sm:$0xff] %v7978_v59  ;;  %v2879_v62 = vadd.f32 %v7560_v20, %v7978_v59 }
 0x790   :  { %9862 = vst [vmem:[#allocation113_spill] sm:$0xff] %v8048_v33 }
 0x791   :  { %v3648_v24 = vadd.f32 %v3606_v12, %v2879_v62 }
 0x795   :  { %v7967_v5 = vpop.f32.mrf.mxu1  ;;  %v3618_v14 = vpop.f32.mrf.mxu0 }
 0x796   :  { %9850 = vst [vmem:[#allocation74_spill] sm:$0xff] %v7967_v5  ;;  %5160 = vmatmul.msk.f32.gmra.mxu2 %vm795_vm2, %v7965_v61  ;;  %5272 = vmatmul.msk.f32.gmra.mxu1 %vm795_vm2, %v7415_v37  ;;  %v7993_v37 = vld [vmem:[%s9478_s2 + $0x38] sm:$0xff]  ;;  %v7999_v15 = vpop.permute.xlu1 %2756 }
 0x797   :  { %v2888_v20 = vadd.f32 %v7582_v8, %v7999_v15 }
 0x79d   :  { %v7980_v41 = vpop.f32.mrf.mxu1  ;;  %v7982_v36 = vpop.f32.mrf.mxu0 }
 0x79e   :  { %9852 = vst [vmem:[#allocation73_spill] sm:$0xff] %v7980_v41  ;;  %5161 = vmatmul.msk.f32.gmra.mxu2 %vm795_vm2, %v7976_v28  ;;  %5273 = vmatmul.msk.f32.gmra.mxu1 %vm795_vm2, %v7422_v13  ;;  %v8029_v41 = vld [vmem:[%s9478_s2 + $0x48] sm:$0xff] }
 0x79f   :  { %9857 = vst [vmem:[#allocation11_spill] sm:$0xff] %v8029_v41 }
 0x7a5   :  { %v7997_v40 = vpop.f32.mrf.mxu0  ;;  %v8005_v13 = vpop.f32.mrf.mxu1 }
 0x7a6   :  { %5162 = vmatmul.msk.f32.gmra.mxu2 %vm795_vm2, %v7993_v37  ;;  %5274 = vmatmul.msk.f32.gmra.mxu1 %vm795_vm2, %v7429_v25  ;;  %9855 = vst [vmem:[#allocation80_spill] sm:$0xff] %v8005_v13  ;;  %v8022_v25 = vpop.permute.xlu1 %2726 }
 0x7ad   :  { %v8014_v54 = vpop.f32.mrf.mxu0  ;;  %v8024_v16 = vpop.f32.mrf.mxu1 }
 0x7ae   :  { %5163 = vmatmul.msk.f32.gmra.mxu2 %vm795_vm2, %v8010_v58  ;;  %5275 = vmatmul.msk.f32.gmra.mxu1 %vm795_vm2, %v7438_v26  ;;  %9856 = vst [vmem:[#allocation22_spill] sm:$0xff] %v8024_v16  ;;  %v8037_v26 = vpop.permute.xlu0 %2781  ;;  %v8039_v57 = vpop.permute.xlu1 %2776  ;;  %v2873_v16 = vadd.f32 %v7545_v1, %v8012_v48  ;;  %v2876_v1 = vadd.f32 %v7547_v6, %v7995_v53  ;;  %v9864_v6 = vld [vmem:[#allocation15_spill] sm:$0xff] }
 0x7af   :  { %9859 = vst [vmem:[#allocation29_spill] sm:$0xff] %v8037_v26  ;;  %v2870_v62 = vadd.f32 %v9864_v6, %v8022_v25  ;;  %v3651_v53 = vadd.f32 %v3615_v46, %v2888_v20 }
 0x7b0   :  { %9860 = vst [vmem:[#allocation111_spill] sm:$0xff] %v8039_v57  ;;  %v3646_v5 = vadd.f32 %v7895_v56, %v2873_v16  ;;  %v3647_v16 = vadd.f32 %v7904_v34, %v2876_v1  ;;  %v8068_v56 = vpop.permute.xlu2 %2771  ;;  %v8081_v34 = vld [vmem:[%s9478_s2 + $0x58] sm:$0xff] }
 0x7b1   :  { %9863 = vst [vmem:[#allocation114_spill] sm:$0xff] %v8068_v56 }
 0x7b2   :  { %v3662_v12 = vmul.f32 0.5, %v3646_v5  ;;  %v3663_v5 = vmul.f32 0.5, %v3647_v16 }
 0x7b4   :  { %5698 = vtanh.f32 %v3662_v12 }
 0x7b5   :  { %v3630_v13 = vpop.f32.mrf.mxu0  ;;  %v8043_v60 = vpop.f32.mrf.mxu1 }
 0x7b6   :  { %5164 = vmatmul.msk.f32.gmra.mxu2 %vm795_vm2, %v8029_v41  ;;  %5276 = vmatmul.msk.f32.gmra.mxu1 %vm795_vm2, %v7445_v42  ;;  %9861 = vst [vmem:[#allocation112_spill] sm:$0xff] %v8043_v60  ;;  %v2891_v42 = vadd.f32 %v7588_v22, %v7988_v38  ;;  %v2885_v22 = vadd.f32 %v7576_v63, %v8020_v27  ;;  %v8075_v8 = vpop.permute.xlu0 %2801 }
 0x7b7   :  { %9866 = vst [vmem:[#allocation15_spill] sm:$0xff] %v8075_v8 }
 0x7b8   :  { %v3652_v60 = vadd.f32 %v3618_v14, %v2891_v42  ;;  %v3650_v59 = vadd.f32 %v7945_v10, %v2885_v22  ;;  %v3645_v14 = vadd.f32 %v7882_v31, %v2870_v62  ;;  %v8083_v42 = vpop.permute.xlu1 %2766  ;;  %v8093_v31 = vld [vmem:[%s9480_s4 + $0x58] sm:$0xff]  ;;  %v8101_v6 = vpop.permute.xlu2 %2796  ;;  %v9873_v62 = vld [vmem:[#allocation66_spill] sm:$0xff] }
 0x7b9   :  { %9868 = vst [vmem:[#allocation115_spill] sm:$0xff] %v8083_v42  ;;  %v2897_v12 = vadd.f32 %v9873_v62, %v8068_v56 }
 0x7ba   :  { %v3680_v63 = vmul.f32 0.5, %v3652_v60  ;;  %v3678_v1 = vmul.f32 0.5, %v3650_v59  ;;  %v9871_v59 = vld [vmem:[#allocation68_spill] sm:$0xff]  ;;  %v5699_v16 = vpop.eup %5698 }
 0x7bb   :  { %v2900_v20 = vadd.f32 %v9871_v59, %v8039_v57 }
 0x7bd   :  { %v8055_v41 = vpop.f32.mrf.mxu0 }
 0x7be   :  { %5165 = vmatmul.msk.f32.gmra.mxu2 %vm795_vm2, %v8048_v33  ;;  %5277 = vmatmul.msk.f32.gmra.mxu1 %vm795_vm2, %v9779_v55  ;;  %v9865_v33 = vld [vmem:[#allocation64_spill] sm:$0xff]  ;;  %v3664_v55 = vmul.f32 0.5, %v3648_v24  ;;  %v8086_v24 = vpop.f32.mrf.mxu1 }
 0x7bf   :  { %v2882_v38 = vadd.f32 %v9865_v33, %v8035_v32  ;;  %9867 = vst [vmem:[#allocation64_spill] sm:$0xff] %v8081_v34  ;;  %v3679_v33 = vmul.f32 0.5, %v3651_v53  ;;  %v3670_v32 = vmul.f32 0.5, %v5699_v16 }
 0x7c0   :  { %9869 = vst [vmem:[#allocation116_spill] sm:$0xff] %v8086_v24  ;;  %5700 = vtanh.f32 %v3664_v55  ;;  %v3655_v55 = vadd.f32 %v8014_v54, %v2900_v20  ;;  %v8118_v59 = vpop.permute.xlu1 %2786  ;;  %v9879_v20 = vld [vmem:[#allocation33_spill] sm:$0xff] }
 0x7c1   :  { %v3649_v46 = vadd.f32 %v7932_v23, %v2882_v38  ;;  %v9870_v23 = vld [vmem:[#allocation16_spill] sm:$0xff]  ;;  %v3661_v38 = vmul.f32 0.5, %v3645_v14  ;;  %5702 = vtanh.f32 %v3680_v63  ;;  %v8109_v14 = vld [vmem:[%s9478_s2 + $0x60] sm:$0xff] }
 0x7c2   :  { %v2903_v60 = vadd.f32 %v9870_v23, %v8037_v26  ;;  %5704 = vtanh.f32 %v3663_v5  ;;  %9872 = vst [vmem:[#allocation16_spill] sm:$0xff] %v8101_v6  ;;  %v9875_v5 = vld [vmem:[#allocation20_spill] sm:$0xff] }
 0x7c3   :  { %v3677_v53 = vmul.f32 0.5, %v3649_v46  ;;  %5706 = vtanh.f32 %v3679_v33  ;;  %9874 = vst [vmem:[#allocation68_spill] sm:$0xff] %v8109_v14  ;;  %v2912_v46 = vadd.f32 %v9875_v5, %v8101_v6  ;;  %v8113_v33 = vpop.permute.xlu0 %2791 }
 0x7c4   :  { %v3656_v22 = vadd.f32 %v3630_v13, %v2903_v60  ;;  %5708 = vtanh.f32 %v3678_v1  ;;  %9876 = vst [vmem:[#allocation66_spill] sm:$0xff] %v8113_v33  ;;  %v9877_v1 = vld [vmem:[#allocation65_spill] sm:$0xff]  ;;  %v3654_v60 = vadd.f32 %v7997_v40, %v2897_v12  ;;  %v2909_v62 = vadd.f32 %v9879_v20, %v8113_v33 }
 0x7c5   :  { %v3636_v10 = vpop.f32.mrf.mxu0  ;;  %5710 = vtanh.f32 %v3661_v38  ;;  %v2894_v23 = vadd.f32 %v9877_v1, %v8083_v42  ;;  %9878 = vst [vmem:[#allocation20_spill] sm:$0xff] %v8118_v59 }
 0x7c6   :  { %5166 = vmatmul.msk.f32.gmra.mxu2 %vm795_vm2, %v8081_v34  ;;  %5278 = vmatmul.msk.f32.gmra.mxu1 %vm795_vm2, %v8093_v31  ;;  %v5701_v63 = vpop.eup %5700  ;;  %5712 = vtanh.f32 %v3677_v53  ;;  %v8127_v53 = vld [vmem:[%s9480_s4 + $0x60] sm:$0xff]  ;;  %v8134_v1 = vpop.f32.mrf.mxu1 }
 0x7c7   :  { %v5703_v13 = vpop.eup %5702  ;;  %5714 = vtanh.f32 %v3656_v22  ;;  %v9880_v22 = vld [vmem:[#allocation21_spill] sm:$0xff]  ;;  %v3653_v5 = vadd.f32 %v7982_v36, %v2894_v23  ;;  %9881 = vst [vmem:[#allocation65_spill] sm:$0xff] %v8134_v1  ;;  %v8140_v36 = vld [vmem:[%s9478_s2 + $0x68] sm:$0xff] }
 0x7c8   :  { %v5705_v38 = vpop.eup %5704  ;;  %v2906_v12 = vadd.f32 %v9880_v22, %v8118_v59  ;;  %5716 = vtanh.f32 %v3655_v55  ;;  %v3688_v20 = vmul.f32 0.5, %v5703_v13  ;;  %9882 = vst [vmem:[#allocation33_spill] sm:$0xff] %v8140_v36  ;;  %v9883_v55 = vld [vmem:[#allocation31_spill] sm:$0xff] }
 0x7c9   :  { %v5707_v40 = vpop.eup %5706  ;;  %v3671_v42 = vmul.f32 0.5, %v5705_v38  ;;  %5718 = vtanh.f32 %v3654_v60 }
 0x7ca   :  { %v3657_v34 = vadd.f32 %v8055_v41, %v2906_v12  ;;  %v3687_v56 = vmul.f32 0.5, %v5707_v40  ;;  %5720 = vtanh.f32 %v3653_v5  ;;  %v3692_v13 = vadd.f32 0.5, %v3688_v20 }
 0x7cb   :  { %v3675_v38 = vadd.f32 0.5, %v3671_v42  ;;  %v3674_v42 = vadd.f32 0.5, %v3670_v32  ;;  %v8160_v32 = vld [vmem:[%s9478_s2 + $0x70] sm:$0xff] }
 0x7cc   :  { %v3691_v16 = vadd.f32 0.5, %v3687_v56  ;;  %9886 = vst [vmem:[#allocation117_spill] sm:$0xff] %v8160_v32 }
 0x7cd   :  { %v3639_v54 = vpop.f32.mrf.mxu0 }
 0x7ce   :  { %v3659_v24 = vadd.f32 %v3639_v54, %v2912_v46  ;;  %5167 = vmatmul.msk.f32.gmra.mxu2 %vm795_vm2, %v8109_v14  ;;  %5279 = vmatmul.msk.f32.gmra.mxu1 %vm795_vm2, %v8127_v53  ;;  %v5709_v46 = vpop.eup %5708  ;;  %v3672_v54 = vmul.f32 0.5, %v5701_v63  ;;  %v3658_v14 = vadd.f32 %v3636_v10, %v2909_v62  ;;  %v2915_v10 = vadd.f32 %v9883_v55, %v8075_v8  ;;  %v8153_v20 = vpop.f32.mrf.mxu1 }
 0x7cf   :  { %v5711_v33 = vpop.eup %5710  ;;  %v3686_v22 = vmul.f32 0.5, %v5709_v46  ;;  %v8149_v46 = vld [vmem:[%s9480_s4 + $0x68] sm:$0xff]  ;;  %9884 = vst [vmem:[#allocation21_spill] sm:$0xff] %v8153_v20  ;;  %v3715_v55 = vmul.f32 0.0, %v3691_v16 }
 0x7d0   :  { %v5713_v6 = vpop.eup %5712  ;;  %v3699_v57 = vmul.f32 0.5, %v3659_v24  ;;  %v3676_v63 = vadd.f32 0.5, %v3672_v54  ;;  %v3698_v23 = vmul.f32 0.5, %v3658_v14  ;;  %v3669_v41 = vmul.f32 0.5, %v5711_v33 }
 0x7d1   :  { %v5715_v26 = vpop.eup %5714  ;;  %v3685_v62 = vmul.f32 0.5, %v5713_v6  ;;  %v3697_v24 = vmul.f32 0.5, %v3657_v34  ;;  %v3690_v6 = vadd.f32 0.5, %v3686_v22  ;;  %v3716_v34 = vmul.f32 0.0, %v3692_v13 }
 0x7d2   :  { %v5717_v60 = vpop.eup %5716  ;;  %v3720_v12 = vmul.f32 %v5715_v26, %v3676_v63  ;;  %5722 = vtanh.f32 %v3699_v57  ;;  %v3673_v56 = vadd.f32 0.5, %v3669_v41 }
 0x7d3   :  { %v5719_v14 = vpop.eup %5718  ;;  %v3719_v33 = vmul.f32 %v5717_v60, %v3675_v38  ;;  %5724 = vtanh.f32 %v3698_v23  ;;  %v3689_v54 = vadd.f32 0.5, %v3685_v62  ;;  %v3714_v13 = vmul.f32 0.0, %v3690_v6 }
 0x7d4   :  { %v5721_v57 = vpop.eup %5720  ;;  %5726 = vtanh.f32 %v3697_v24  ;;  %v8155_v63 = vadd.f32 %v3720_v12, %v3716_v34  ;;  %v8172_v24 = vld [vmem:[%s9480_s4 + $0x70] sm:$0xff] }
 0x7d5   :  { %v3642_v40 = vpop.f32.mrf.mxu0  ;;  %v3717_v23 = vmul.f32 %v5721_v57, %v3673_v56  ;;  %v8162_v60 = vadd.f32 %v3719_v33, %v3715_v55  ;;  %v3713_v38 = vmul.f32 0.0, %v3689_v54  ;;  %v8185_v57 = vld [vmem:[%s9478_s2 + $0x78] sm:$0xff] }
 0x7d6   :  { %v3660_v5 = vadd.f32 %v3642_v40, %v2915_v10  ;;  %5168 = vmatmul.msk.f32.gmra.mxu2 %vm795_vm2, %v8140_v36  ;;  %5280 = vmatmul.msk.f32.gmra.mxu1 %vm795_vm2, %v8149_v46  ;;  %v3718_v10 = vmul.f32 %v5719_v14, %v3674_v42  ;;  %9885 = vst [vmem:[#allocation31_spill] sm:$0xff] %v8155_v63  ;;  %v8180_v33 = vpop.f32.mrf.mxu1 }
 0x7d7   :  { %9887 = vst [vmem:[#allocation118_spill] sm:$0xff] %v8162_v60 }
 0x7d8   :  { %v3700_v26 = vmul.f32 0.5, %v3660_v5  ;;  %v5723_v22 = vpop.eup %5722  ;;  %v8164_v62 = vadd.f32 %v3718_v10, %v3714_v13  ;;  %v8176_v5 = vadd.f32 %v3717_v23, %v3713_v38  ;;  %9890 = vst [vmem:[#allocation121_spill] sm:$0xff] %v8180_v33  ;;  %v8289_v33 = vld [vmem:[%s9480_s4 + $0x38] sm:$0xff] }
 0x7d9   :  { %v5725_v41 = vpop.eup %5724  ;;  %v3707_v16 = vmul.f32 0.5, %v5723_v22  ;;  %9891 = vst [vmem:[#allocation122_spill] sm:$0xff] %v8185_v57  ;;  %v8193_v22 = vld [vmem:[%s9480_s4 + $0x78] sm:$0xff] }
 0x7da   :  { %5728 = vtanh.f32 %v3700_v26  ;;  %9888 = vst [vmem:[#allocation119_spill] sm:$0xff] %v8164_v62  ;;  %v5727_v40 = vpop.eup %5726  ;;  %v3706_v14 = vmul.f32 0.5, %v5725_v41 }
 0x7db   :  { %5730 = vtanh.f32 %v8155_v63  ;;  %9889 = vst [vmem:[#allocation120_spill] sm:$0xff] %v8176_v5  ;;  %v3705_v6 = vmul.f32 0.5, %v5727_v40  ;;  %v3711_v34 = vadd.f32 0.5, %v3707_v16 }
 0x7dc   :  { %5732 = vtanh.f32 %v8162_v60  ;;  %v3710_v54 = vadd.f32 0.5, %v3706_v14  ;;  %v8202_v14 = vld [vmem:[%s9480_s4] sm:$0xff] }
 0x7dd   :  { %5734 = vtanh.f32 %v8164_v62  ;;  %v3709_v13 = vadd.f32 0.5, %v3705_v6 }
 0x7de   :  { %5169 = vmatmul.msk.f32.gmra.mxu2 %vm795_vm2, %v8160_v32  ;;  %5281 = vmatmul.msk.f32.gmra.mxu1 %vm795_vm2, %v8172_v24  ;;  %5736 = vtanh.f32 %v8176_v5 }
 0x7e0   :  { %v5729_v12 = vpop.eup %5728 }
 0x7e1   :  { %v3708_v42 = vmul.f32 0.5, %v5729_v12  ;;  %v5731_v56 = vpop.eup %5730 }
 0x7e2   :  { %v5733_v10 = vpop.eup %5732 }
 0x7e3   :  { %v3712_v26 = vadd.f32 0.5, %v3708_v42  ;;  %v3731_v23 = vmul.f32 %v5733_v10, %v3711_v34  ;;  %v5735_v41 = vpop.eup %5734  ;;  %v9893_v42 = vld [vmem:[#allocation13_spill] sm:$0xff]  ;;  %v8224_v10 = vld [vmem:[%s9480_s4 + $0x10] sm:$0xff] }
 0x7e4   :  { %v3730_v38 = vmul.f32 %v5735_v41, %v3710_v54  ;;  %v5737_v40 = vpop.eup %5736 }
 0x7e5   :  { %v3732_v55 = vmul.f32 %v5731_v56, %v3712_v26  ;;  %v3729_v12 = vmul.f32 %v5737_v40, %v3709_v13  ;;  %v8213_v26 = vld [vmem:[%s9480_s4 + $0x8] sm:$0xff]  ;;  %v9895_v56 = vld [vmem:[#allocation37_spill] sm:$0xff] }
 0x7e6   :  { %5170 = vmatmul.msk.f32.gmra.mxu2 %vm795_vm2, %v8185_v57  ;;  %5282 = vmatmul.msk.f32.gmra.mxu1 %vm795_vm2, %v8193_v22  ;;  %v9897_v13 = vld [vmem:[#allocation35_spill] sm:$0xff]  ;;  %v9899_v40 = vld [vmem:[#allocation34_spill] sm:$0xff] }
 0x7e7   :  { %3761 = vmatpush.msra.mxu1 %v3732_v55  ;;  %v9906_v57 = vld [vmem:[#allocation83_spill] sm:$0xff] }
 0x7e8   :  { %v557_v32 = vadd.f32 %v9906_v57, %v9757_v18  ;;  %v9910_v57 = vld [vmem:[#allocation84_spill] sm:$0xff] }
 0x7e9   :  { %3762 = vmatpush.msra.mxu1 %v3731_v23  ;;  %v559_v18 = vadd.f32 %v9910_v57, %v6775_v19 }
 0x7eb   :  { %v8197_v16 = vpop.f32.mrf.mxu1  ;;  %3763 = vmatpush.msra.mxu1 %v3730_v38  ;;  %v8237_v38 = vld [vmem:[%s9480_s4 + $0x18] sm:$0xff] }
 0x7ec   :  { %9892 = vst [vmem:[#allocation123_spill] sm:$0xff] %v8197_v16 }
 0x7ed   :  { %3764 = vmatpush.msra.mxu1 %v3729_v12 }
 0x7ee   :  { %5219 = vmatmul.msk.f32.vlgmr.msra.gmra.mxu2 %vm795_vm2, %v8202_v14  ;;  %5331 = vmatmul.msk.f32.vlgmr.msra.gmra.mxu1 %vm795_vm2, %v9893_v42 }
 0x7f1   :  { %v2283_v6 = vpop.f32.mrf.mxu2 }
 0x7f3   :  { %v8208_v34 = vpop.f32.mrf.mxu1 }
 0x7f4   :  { %9894 = vst [vmem:[#allocation13_spill] sm:$0xff] %v8208_v34  ;;  %v9903_v34 = vld [vmem:[#allocation48_spill] sm:$0xff] }
 0x7f6   :  { %5220 = vmatmul.msk.f32.gmra.mxu2 %vm795_vm2, %v8213_v26  ;;  %5332 = vmatmul.msk.f32.gmra.mxu1 %vm795_vm2, %v9895_v56  ;;  %v8250_v56 = vld [vmem:[%s9480_s4 + $0x20] sm:$0xff] }
 0x7f9   :  { %v2286_v54 = vpop.f32.mrf.mxu2 }
 0x7fb   :  { %v8219_v55 = vpop.f32.mrf.mxu1 }
 0x7fc   :  { %9896 = vst [vmem:[#allocation37_spill] sm:$0xff] %v8219_v55 }
 0x7fe   :  { %5221 = vmatmul.msk.f32.gmra.mxu2 %vm795_vm2, %v8224_v10  ;;  %5333 = vmatmul.msk.f32.gmra.mxu1 %vm795_vm2, %v9897_v13  ;;  %v9901_v13 = vld [vmem:[#allocation38_spill] sm:$0xff] }
 0x801   :  { %v8230_v23 = vpop.f32.mrf.mxu2 }
 0x803   :  { %v8232_v41 = vpop.f32.mrf.mxu1 }
 0x804   :  { %9898 = vst [vmem:[#allocation35_spill] sm:$0xff] %v8232_v41 }
 0x806   :  { %5222 = vmatmul.msk.f32.gmra.mxu2 %vm795_vm2, %v8237_v38  ;;  %5334 = vmatmul.msk.f32.gmra.mxu1 %vm795_vm2, %v9899_v40  ;;  %v8261_v40 = vld [vmem:[%s9480_s4 + $0x28] sm:$0xff] }
 0x809   :  { %v8243_v12 = vpop.f32.mrf.mxu2 }
 0x80b   :  { %v8245_v42 = vpop.f32.mrf.mxu1 }
 0x80c   :  { %9900 = vst [vmem:[#allocation34_spill] sm:$0xff] %v8245_v42 }
 0x80e   :  { %5223 = vmatmul.msk.f32.gmra.mxu2 %vm795_vm2, %v8250_v56  ;;  %5335 = vmatmul.msk.f32.gmra.mxu1 %vm795_vm2, %v9901_v13  ;;  %v8272_v13 = vld [vmem:[%s9480_s4 + $0x30] sm:$0xff] }
 0x811   :  { %v2295_v55 = vpop.f32.mrf.mxu2 }
 0x813   :  { %v8256_v41 = vpop.f32.mrf.mxu1 }
 0x814   :  { %9902 = vst [vmem:[#allocation38_spill] sm:$0xff] %v8256_v41  ;;  %v9905_v41 = vld [vmem:[#allocation55_spill] sm:$0xff] }
 0x816   :  { %5224 = vmatmul.msk.f32.gmra.mxu2 %vm795_vm2, %v8261_v40  ;;  %5336 = vmatmul.msk.f32.gmra.mxu1 %vm795_vm2, %v9903_v34  ;;  %v9907_v34 = vld [vmem:[#allocation45_spill] sm:$0xff] }
 0x817   :  { %v547_v36 = vadd.f32 %v9907_v34, %v6761_v3 }
 0x819   :  { %v2298_v16 = vpop.f32.mrf.mxu2  ;;  %v2331_v60 = vadd.f32 %v2283_v6, %v547_v36 }
 0x81a   :  { %v2336_v6 = vadd.f32 %v2298_v16, %v559_v18  ;;  %v9915_v18 = vld [vmem:[#allocation87_spill] sm:$0xff] }
 0x81b   :  { %v8267_v42 = vpop.f32.mrf.mxu1  ;;  %v2347_v34 = vmul.f32 0.5, %v2331_v60  ;;  %v9914_v60 = vld [vmem:[#allocation102_spill] sm:$0xff] }
 0x81c   :  { %9904 = vst [vmem:[#allocation48_spill] sm:$0xff] %v8267_v42  ;;  %v2335_v42 = vadd.f32 %v2295_v55, %v557_v32  ;;  %v9911_v32 = vld [vmem:[#allocation49_spill] sm:$0xff]  ;;  %v9912_v55 = vld [vmem:[#allocation32_spill] sm:$0xff]  ;;  %v2364_v8 = vmul.f32 0.5, %v2336_v6 }
 0x81e   :  { %5225 = vmatmul.msk.f32.gmra.mxu2 %vm795_vm2, %v8272_v13  ;;  %5337 = vmatmul.msk.f32.gmra.mxu1 %vm795_vm2, %v9905_v41  ;;  %v2363_v63 = vmul.f32 0.5, %v2335_v42  ;;  %v9909_v41 = vld [vmem:[#allocation100_spill] sm:$0xff] }
 0x820   :  { %5738 = vtanh.f32 %v2363_v63  ;;  %v567_v63 = vadd.f32 %v9915_v18, %v6783_v4 }
 0x821   :  { %v8280_v5 = vpop.f32.mrf.mxu2  ;;  %5740 = vtanh.f32 %v2347_v34 }
 0x822   :  { %5742 = vtanh.f32 %v2364_v8 }
 0x823   :  { %v8284_v62 = vpop.f32.mrf.mxu1 }
 0x824   :  { %9908 = vst [vmem:[#allocation55_spill] sm:$0xff] %v8284_v62  ;;  %v549_v62 = vadd.f32 %v9912_v55, %v9911_v32  ;;  %v8319_v32 = vld [vmem:[%s9480_s4 + $0x48] sm:$0xff] }
 0x826   :  { %5226 = vmatmul.msk.f32.gmra.mxu2 %vm795_vm2, %v8289_v33  ;;  %5338 = vmatmul.msk.f32.gmra.mxu1 %vm795_vm2, %v9909_v41  ;;  %v2332_v42 = vadd.f32 %v2286_v54, %v549_v62  ;;  %v8306_v41 = vld [vmem:[%s9480_s4 + $0x40] sm:$0xff]  ;;  %v5739_v55 = vpop.eup %5738 }
 0x827   :  { %v5741_v16 = vpop.eup %5740  ;;  %v2371_v34 = vmul.f32 0.5, %v5739_v55 }
 0x828   :  { %v2348_v57 = vmul.f32 0.5, %v2332_v42  ;;  %v9917_v42 = vld [vmem:[#allocation104_spill] sm:$0xff]  ;;  %v5743_v8 = vpop.eup %5742 }
 0x829   :  { %v8299_v36 = vpop.f32.mrf.mxu2  ;;  %v2372_v4 = vmul.f32 0.5, %v5743_v8 }
 0x82a   :  { %5744 = vtanh.f32 %v2348_v57  ;;  %v9918_v57 = vld [vmem:[#allocation88_spill] sm:$0xff] }
 0x82b   :  { %v8301_v3 = vpop.f32.mrf.mxu1  ;;  %v569_v55 = vadd.f32 %v9918_v57, %v6793_v39 }
 0x82c   :  { %9913 = vst [vmem:[#allocation83_spill] sm:$0xff] %v8301_v3  ;;  %v2355_v3 = vmul.f32 0.5, %v5741_v16 }
 0x82e   :  { %5227 = vmatmul.msk.f32.gmra.mxu2 %vm795_vm2, %v8306_v41  ;;  %5339 = vmatmul.msk.f32.gmra.mxu1 %vm795_vm2, %v9914_v60  ;;  %v2375_v60 = vadd.f32 0.5, %v2371_v34  ;;  %v8335_v34 = vld [vmem:[%s9480_s4 + $0x50] sm:$0xff] }
 0x830   :  { %v5745_v18 = vpop.eup %5744 }
 0x831   :  { %v2307_v62 = vpop.f32.mrf.mxu2  ;;  %v2356_v1 = vmul.f32 0.5, %v5745_v18  ;;  %v9922_v18 = vld [vmem:[#allocation110_spill] sm:$0xff] }
 0x832   :  { %v2339_v54 = vadd.f32 %v2307_v62, %v567_v63  ;;  %v2359_v63 = vadd.f32 0.5, %v2355_v3  ;;  %v9920_v3 = vld [vmem:[#allocation107_spill] sm:$0xff] }
 0x833   :  { %v8314_v6 = vpop.f32.mrf.mxu1 }
 0x834   :  { %9916 = vst [vmem:[#allocation45_spill] sm:$0xff] %v8314_v6  ;;  %5746 = vtanh.f32 %v2339_v54  ;;  %v2399_v6 = vmul.f32 %v2375_v60, %v7888_v44  ;;  %v2376_v44 = vadd.f32 0.5, %v2372_v4  ;;  %v9924_v4 = vld [vmem:[#allocation42_spill] sm:$0xff] }
 0x836   :  { %5228 = vmatmul.msk.f32.gmra.mxu2 %vm795_vm2, %v8319_v32  ;;  %5340 = vmatmul.msk.f32.gmra.mxu1 %vm795_vm2, %v9917_v42  ;;  %v2360_v42 = vadd.f32 0.5, %v2356_v1  ;;  %v2400_v57 = vmul.f32 %v2376_v44, %v7885_v35  ;;  %v9925_v35 = vld [vmem:[#allocation82_spill] sm:$0xff] }
 0x837   :  { %v554_v1 = vadd.f32 %v9925_v35, %v9924_v4 }
 0x839   :  { %v2310_v62 = vpop.f32.mrf.mxu2 }
 0x83a   :  { %v5747_v16 = vpop.eup %5746  ;;  %v2340_v54 = vadd.f32 %v2310_v62, %v569_v55 }
 0x83b   :  { %v2403_v19 = vmul.f32 %v5747_v16, %v2359_v63  ;;  %v8328_v59 = vpop.f32.mrf.mxu1  ;;  %v9926_v16 = vld [vmem:[#allocation44_spill] sm:$0xff] }
 0x83c   :  { %9919 = vst [vmem:[#allocation100_spill] sm:$0xff] %v8328_v59  ;;  %5748 = vtanh.f32 %v2340_v54  ;;  %v9927_v54 = vld [vmem:[#allocation86_spill] sm:$0xff] }
 0x83d   :  { %v8330_v20 = vadd.f32 %v2403_v19, %v2399_v6 }
 0x83e   :  { %5229 = vmatmul.msk.f32.gmra.mxu2 %vm795_vm2, %v8335_v34  ;;  %5341 = vmatmul.msk.f32.gmra.mxu1 %vm795_vm2, %v9920_v3  ;;  %v564_v3 = vadd.f32 %v9927_v54, %v9926_v16 }
 0x841   :  { %v2313_v60 = vpop.f32.mrf.mxu2 }
 0x842   :  { %v5749_v8 = vpop.eup %5748 }
 0x843   :  { %v2404_v55 = vmul.f32 %v5749_v8, %v2360_v42  ;;  %v8342_v19 = vpop.f32.mrf.mxu1  ;;  %v9928_v42 = vld [vmem:[#allocation43_spill] sm:$0xff]  ;;  %v9929_v8 = vld [vmem:[#allocation17_spill] sm:$0xff] }
 0x844   :  { %9921 = vst [vmem:[#allocation84_spill] sm:$0xff] %v8342_v19  ;;  %v2338_v19 = vadd.f32 %v8299_v36, %v564_v3  ;;  %v9933_v36 = vld [vmem:[#allocation90_spill] sm:$0xff] }
 0x845   :  { %v8344_v6 = vadd.f32 %v2404_v55, %v2400_v57  ;;  %v552_v57 = vadd.f32 %v9929_v8, %v9928_v42  ;;  %v2334_v55 = vadd.f32 %v8243_v12, %v554_v1 }
 0x846   :  { %5230 = vmatmul.msk.f32.gmra.mxu2 %vm795_vm2, %v8093_v31  ;;  %5342 = vmatmul.msk.f32.gmra.mxu1 %vm795_vm2, %v9922_v18  ;;  %v9930_v18 = vld [vmem:[#allocation46_spill] sm:$0xff]  ;;  %v2366_v54 = vmul.f32 0.5, %v2338_v19 }
 0x847   :  { %v2350_v4 = vmul.f32 0.5, %v2334_v55 }
 0x849   :  { %v2316_v63 = vpop.f32.mrf.mxu2  ;;  %5750 = vtanh.f32 %v2350_v4  ;;  %v9936_v4 = vld [vmem:[#allocation93_spill] sm:$0xff] }
 0x84a   :  { %5752 = vtanh.f32 %v2366_v54  ;;  %v9937_v54 = vld [vmem:[#allocation59_spill] sm:$0xff] }
 0x84b   :  { %v8350_v62 = vpop.f32.mrf.mxu1 }
 0x84c   :  { %9923 = vst [vmem:[#allocation32_spill] sm:$0xff] %v8350_v62  ;;  %v9931_v62 = vld [vmem:[#allocation85_spill] sm:$0xff] }
 0x84d   :  { %v562_v59 = vadd.f32 %v9931_v62, %v9930_v18  ;;  %v574_v62 = vadd.f32 %v9933_v36, %v6809_v45 }
 0x84e   :  { %5231 = vmatmul.msk.f32.gmra.mxu2 %vm795_vm2, %v8127_v53  ;;  %5343 = vmatmul.msk.f32.gmra.mxu1 %vm795_vm2, %v7803_v50  ;;  %v2333_v50 = vadd.f32 %v8230_v23, %v552_v57  ;;  %v582_v57 = vadd.f32 %v9936_v4, %v6825_v7 }
 0x84f   :  { %v2337_v35 = vadd.f32 %v8280_v5, %v562_v59  ;;  %v9935_v59 = vld [vmem:[#allocation89_spill] sm:$0xff]  ;;  %v2342_v23 = vadd.f32 %v2316_v63, %v574_v62  ;;  %v5751_v19 = vpop.eup %5750  ;;  %v9939_v62 = vld [vmem:[#allocation60_spill] sm:$0xff] }
 0x850   :  { %v2349_v12 = vmul.f32 0.5, %v2333_v50  ;;  %v572_v5 = vadd.f32 %v9935_v59, %v6773_v2  ;;  %v5753_v55 = vpop.eup %5752  ;;  %v9940_v59 = vld [vmem:[#allocation91_spill] sm:$0xff] }
 0x851   :  { %v2319_v44 = vpop.f32.mrf.mxu2  ;;  %v2365_v1 = vmul.f32 0.5, %v2337_v35 }
 0x852   :  { %5754 = vtanh.f32 %v2349_v12  ;;  %v9938_v12 = vld [vmem:[#allocation92_spill] sm:$0xff] }
 0x853   :  { %v8366_v39 = vpop.f32.mrf.mxu1  ;;  %5756 = vtanh.f32 %v2365_v1  ;;  %v579_v36 = vadd.f32 %v9938_v12, %v9937_v54 }
 0x854   :  { %9932 = vst [vmem:[#allocation102_spill] sm:$0xff] %v8366_v39  ;;  %5758 = vtanh.f32 %v2342_v23  ;;  %v577_v39 = vadd.f32 %v9940_v59, %v9939_v62 }
 0x856   :  { %5232 = vmatmul.msk.f32.gmra.mxu2 %vm795_vm2, %v8149_v46  ;;  %5344 = vmatmul.msk.f32.gmra.mxu1 %vm795_vm2, %v7826_v52  ;;  %v2341_v52 = vadd.f32 %v2313_v60, %v572_v5  ;;  %v2374_v60 = vmul.f32 0.5, %v5753_v55  ;;  %v2343_v4 = vadd.f32 %v2319_v44, %v577_v39 }
 0x858   :  { %v5755_v35 = vpop.eup %5754  ;;  %5760 = vtanh.f32 %v2341_v52  ;;  %v2378_v59 = vadd.f32 0.5, %v2374_v60 }
 0x859   :  { %v2322_v8 = vpop.f32.mrf.mxu2  ;;  %v5757_v63 = vpop.eup %5756  ;;  %v2357_v2 = vmul.f32 0.5, %v5755_v35 }
 0x85a   :  { %v2344_v5 = vadd.f32 %v2322_v8, %v579_v36  ;;  %v2373_v7 = vmul.f32 0.5, %v5757_v63  ;;  %v2383_v8 = vmul.f32 0.5, %v2343_v4  ;;  %v2402_v63 = vmul.f32 %v2378_v59, %v7875_v30 }
 0x85b   :  { %v8376_v3 = vpop.f32.mrf.mxu1  ;;  %v2361_v55 = vadd.f32 0.5, %v2357_v2 }
 0x85c   :  { %9934 = vst [vmem:[#allocation87_spill] sm:$0xff] %v8376_v3  ;;  %v2377_v39 = vadd.f32 0.5, %v2373_v7 }
 0x85e   :  { %5233 = vmatmul.msk.f32.gmra.mxu2 %vm795_vm2, %v8172_v24  ;;  %5345 = vmatmul.msk.f32.gmra.mxu1 %vm795_vm2, %v7848_v47  ;;  %v2358_v47 = vmul.f32 0.5, %v5751_v19 }
 0x860   :  { %v2362_v52 = vadd.f32 0.5, %v2358_v47  ;;  %v2401_v47 = vmul.f32 %v2377_v39, %v7878_v49 }
 0x861   :  { %v2325_v50 = vpop.f32.mrf.mxu2 }
 0x862   :  { %v2345_v1 = vadd.f32 %v2325_v50, %v582_v57  ;;  %v5759_v57 = vpop.eup %5758  ;;  %v9942_v50 = vld [vmem:[#allocation94_spill] sm:$0xff] }
 0x863   :  { %v8390_v3 = vpop.f32.mrf.mxu1  ;;  %v584_v12 = vadd.f32 %v9942_v50, %v6819_v17  ;;  %v5761_v19 = vpop.eup %5760  ;;  %v2406_v44 = vmul.f32 %v5759_v57, %v2362_v52 }
 0x864   :  { %9941 = vst [vmem:[#allocation104_spill] sm:$0xff] %v8390_v3  ;;  %v2385_v23 = vmul.f32 0.5, %v2345_v1  ;;  %v2384_v3 = vmul.f32 0.5, %v2344_v5 }
 0x865   :  { %v8402_v60 = vadd.f32 %v2406_v44, %v2402_v63 }
 0x866   :  { %5234 = vmatmul.msk.f32.gmra.mxu2 %vm795_vm2, %v8193_v22  ;;  %5346 = vmatmul.msk.f32.gmra.mxu1 %vm795_vm2, %v7867_v21  ;;  %5762 = vtanh.f32 %v2385_v23  ;;  %v2405_v21 = vmul.f32 %v5761_v19, %v2361_v55 }
 0x867   :  { %5764 = vtanh.f32 %v2384_v3 }
 0x868   :  { %5766 = vtanh.f32 %v2383_v8  ;;  %v8404_v5 = vadd.f32 %v2405_v21, %v2401_v47 }
 0x869   :  { %v2328_v35 = vpop.f32.mrf.mxu2 }
 0x86a   :  { %v2346_v36 = vadd.f32 %v2328_v35, %v584_v12 }
 0x86b   :  { %v8398_v1 = vpop.f32.mrf.mxu1 }
 0x86c   :  { %v2386_v62 = vmul.f32 0.5, %v2346_v36  ;;  %v5763_v2 = vpop.eup %5762 }
 0x86d   :  { %v5765_v4 = vpop.eup %5764  ;;  %v2393_v57 = vmul.f32 0.5, %v5763_v2 }
 0x86e   :  { %5768 = vtanh.f32 %v2386_v62  ;;  %v5767_v23 = vpop.eup %5766  ;;  %v2392_v50 = vmul.f32 0.5, %v5765_v4 }
 0x86f   :  { %5770 = vtanh.f32 %v8402_v60  ;;  %v2391_v62 = vmul.f32 0.5, %v5767_v23  ;;  %v2397_v12 = vadd.f32 0.5, %v2393_v57  ;;  %v9945_v23 = vld [vmem:[#allocation19_spill] sm:$0xff] }
 0x870   :  { %5772 = vtanh.f32 %v8404_v5  ;;  %v2396_v19 = vadd.f32 0.5, %v2392_v50  ;;  %v9947_v50 = vld [vmem:[#allocation23_spill] sm:$0xff] }
 0x871   :  { %v8406_v7 = vpop.f32.mrf.mxu2  ;;  %5774 = vtanh.f32 %v8344_v6  ;;  %v2395_v39 = vadd.f32 0.5, %v2391_v62 }
 0x872   :  { %9943 = vst [vmem:[#allocation88_spill] sm:$0xff] %v8406_v7  ;;  %5776 = vtanh.f32 %v8330_v20 }
 0x873   :  { %v8409_v30 = vpop.f32.mrf.mxu1 }
 0x874   :  { %v5769_v3 = vpop.eup %5768 }
 0x875   :  { %v2394_v49 = vmul.f32 0.5, %v5769_v3  ;;  %v5771_v59 = vpop.eup %5770  ;;  %v9946_v3 = vld [vmem:[#allocation8_spill] sm:$0xff] }
 0x876   :  { %v5773_v35 = vpop.eup %5772 }
 0x877   :  { %v2398_v52 = vadd.f32 0.5, %v2394_v49  ;;  %v2417_v36 = vmul.f32 %v5773_v35, %v2397_v12  ;;  %v5775_v63 = vpop.eup %5774  ;;  %v9948_v49 = vld [vmem:[#allocation10_spill] sm:$0xff] }
 0x878   :  { %v2416_v21 = vmul.f32 %v5775_v63, %v2396_v19  ;;  %v5777_v47 = vpop.eup %5776  ;;  %v9956_v63 = vld [vmem:[#allocation79_spill] sm:$0xff] }
 0x879   :  { %v2418_v55 = vmul.f32 %v5771_v59, %v2398_v52  ;;  %v8414_v8 = vpop.f32.mrf.mxu2  ;;  %v2415_v2 = vmul.f32 %v5777_v47, %v2395_v39 }
 0x87b   :  { %2515 = vmatpush.msrb.mxu3 %v2418_v55  ;;  %3254 = vmatpush.msrb.mxu2 %v2418_v55  ;;  %v8416_v44 = vpop.f32.mrf.mxu1 }
 0x87d   :  { %2516 = vmatpush.msrb.mxu3 %v2417_v36  ;;  %3255 = vmatpush.msrb.mxu2 %v2417_v36  ;;  %v2938_v36 = vadd.f32 %v7893_v9, %v8012_v48 }
 0x87f   :  { %2517 = vmatpush.msrb.mxu3 %v2416_v21  ;;  %3256 = vmatpush.msrb.mxu2 %v2416_v21  ;;  %v9957_v21 = vld [vmem:[#allocation61_spill] sm:$0xff] }
 0x880   :  { %v2944_v47 = vadd.f32 %v9957_v21, %v9956_v63  ;;  %v9964_v21 = vld [vmem:[#allocation75_spill] sm:$0xff] }
 0x881   :  { %2518 = vmatpush.msrb.mxu3 %v2415_v2  ;;  %v8418_v4 = vpop.f32.mrf.mxu2  ;;  %3257 = vmatpush.msrb.mxu2 %v2415_v2  ;;  %v9959_v2 = vld [vmem:[#allocation78_spill] sm:$0xff]  ;;  %v2953_v7 = vadd.f32 %v9964_v21, %v7999_v15 }
 0x882   :  { %9944 = vst [vmem:[#allocation107_spill] sm:$0xff] %v8418_v4  ;;  %5171 = vmatmul.msk.f32.vlgmr.msrb.gmra.mxu3 %vm795_vm2, %v7900_v0  ;;  %5283 = vmatmul.msk.f32.vlgmr.msrb.gmra.mxu2 %vm795_vm2, %v8202_v14 }
 0x883   :  { %3059 = vmatpush.msra.mxu3 %v9945_v23  ;;  %v3775_v57 = vpop.f32.mrf.mxu1  ;;  %v9960_v23 = vld [vmem:[#allocation74_spill] sm:$0xff] }
 0x885   :  { %3060 = vmatpush.msra.mxu3 %v9946_v3  ;;  %v2956_v3 = vadd.f32 %v9960_v23, %v9959_v2  ;;  %v9966_v23 = vld [vmem:[#allocation71_spill] sm:$0xff]  ;;  %v9968_v2 = vld [vmem:[#allocation69_spill] sm:$0xff] }
 0x887   :  { %3061 = vmatpush.msra.mxu3 %v9947_v50 }
 0x889   :  { %3062 = vmatpush.msra.mxu3 %v9948_v49  ;;  %v8428_v62 = vpop.f32.mrf.mxu2 }
 0x88a   :  { %9949 = vst [vmem:[#allocation110_spill] sm:$0xff] %v8428_v62  ;;  %5172 = vmatmul.msk.f32.gmra.mxu3 %vm795_vm2, %v7916_v43  ;;  %5284 = vmatmul.msk.f32.gmra.mxu2 %vm795_vm2, %v8213_v26 }
 0x88b   :  { %v3778_v0 = vpop.f32.mrf.mxu1 }
 0x891   :  { %v8434_v12 = vpop.f32.mrf.mxu2 }
 0x892   :  { %9950 = vst [vmem:[#allocation82_spill] sm:$0xff] %v8434_v12  ;;  %5173 = vmatmul.msk.f32.gmra.mxu3 %vm795_vm2, %v7928_v11  ;;  %5285 = vmatmul.msk.f32.gmra.mxu2 %vm795_vm2, %v8224_v10  ;;  %v3817_v12 = vadd.f32 %v3775_v57, %v2944_v47 }
 0x893   :  { %v3781_v52 = vpop.f32.mrf.mxu1 }
 0x894   :  { %v3833_v63 = vmul.f32 0.5, %v3817_v12 }
 0x899   :  { %v8440_v59 = vpop.f32.mrf.mxu2 }
 0x89a   :  { %9951 = vst [vmem:[#allocation44_spill] sm:$0xff] %v8440_v59  ;;  %5174 = vmatmul.msk.f32.gmra.mxu3 %vm795_vm2, %v7941_v51  ;;  %5286 = vmatmul.msk.f32.gmra.mxu2 %vm795_vm2, %v8237_v38 }
 0x89b   :  { %v3784_v43 = vpop.f32.mrf.mxu1 }
 0x8a1   :  { %v8450_v11 = vpop.f32.mrf.mxu2 }
 0x8a2   :  { %5175 = vmatmul.msk.f32.gmra.mxu3 %vm795_vm2, %v7954_v29  ;;  %5287 = vmatmul.msk.f32.gmra.mxu2 %vm795_vm2, %v8250_v56  ;;  %9952 = vst [vmem:[#allocation86_spill] sm:$0xff] %v8450_v11 }
 0x8a3   :  { %v3787_v19 = vpop.f32.mrf.mxu1 }
 0x8a4   :  { %v3821_v59 = vadd.f32 %v3787_v19, %v2956_v3  ;;  %v9969_v3 = vld [vmem:[#allocation113_spill] sm:$0xff] }
 0x8a6   :  { %v3849_v47 = vmul.f32 0.5, %v3821_v59 }
 0x8a9   :  { %v8458_v55 = vpop.f32.mrf.mxu2 }
 0x8aa   :  { %5176 = vmatmul.msk.f32.gmra.mxu3 %vm795_vm2, %v7965_v61  ;;  %5288 = vmatmul.msk.f32.gmra.mxu2 %vm795_vm2, %v8261_v40  ;;  %9953 = vst [vmem:[#allocation43_spill] sm:$0xff] %v8458_v55  ;;  %v2935_v55 = vadd.f32 %v9966_v23, %v8022_v25 }
 0x8ab   :  { %v8456_v51 = vpop.f32.mrf.mxu1 }
 0x8ac   :  { %v3814_v57 = vadd.f32 %v8398_v1, %v2935_v55 }
 0x8b1   :  { %v8464_v35 = vpop.f32.mrf.mxu2 }
 0x8b2   :  { %5177 = vmatmul.msk.f32.gmra.mxu3 %vm795_vm2, %v7976_v28  ;;  %5289 = vmatmul.msk.f32.gmra.mxu2 %vm795_vm2, %v8272_v13  ;;  %9954 = vst [vmem:[#allocation17_spill] sm:$0xff] %v8464_v35  ;;  %v9962_v35 = vld [vmem:[#allocation77_spill] sm:$0xff] }
 0x8b3   :  { %v3793_v29 = vpop.f32.mrf.mxu1 }
 0x8b9   :  { %v8470_v39 = vpop.f32.mrf.mxu2 }
 0x8ba   :  { %5178 = vmatmul.msk.f32.gmra.mxu3 %vm795_vm2, %v7993_v37  ;;  %5290 = vmatmul.msk.f32.gmra.mxu2 %vm795_vm2, %v8289_v33  ;;  %9955 = vst [vmem:[#allocation46_spill] sm:$0xff] %v8470_v39  ;;  %v9958_v37 = vld [vmem:[#allocation11_spill] sm:$0xff]  ;;  %v9963_v39 = vld [vmem:[#allocation70_spill] sm:$0xff] }
 0x8bb   :  { %v3796_v61 = vpop.f32.mrf.mxu1  ;;  %v2941_v9 = vadd.f32 %v9963_v39, %v9962_v35 }
 0x8bd   :  { %v3816_v4 = vadd.f32 %v8416_v44, %v2941_v9  ;;  %v9975_v9 = vld [vmem:[#allocation114_spill] sm:$0xff] }
 0x8bf   :  { %v3832_v21 = vmul.f32 0.5, %v3816_v4 }
 0x8c1   :  { %v8487_v50 = vpop.f32.mrf.mxu2 }
 0x8c2   :  { %5179 = vmatmul.msk.f32.gmra.mxu3 %vm795_vm2, %v8010_v58  ;;  %5291 = vmatmul.msk.f32.gmra.mxu2 %vm795_vm2, %v8306_v41  ;;  %v3815_v58 = vadd.f32 %v8409_v30, %v2938_v36  ;;  %9961 = vst [vmem:[#allocation85_spill] sm:$0xff] %v8487_v50  ;;  %v3820_v36 = vadd.f32 %v3784_v43, %v2953_v7  ;;  %v9967_v50 = vld [vmem:[#allocation25_spill] sm:$0xff] }
 0x8c3   :  { %v3799_v28 = vpop.f32.mrf.mxu1  ;;  %v2947_v62 = vadd.f32 %v9968_v2, %v9967_v50  ;;  %v9970_v43 = vld [vmem:[#allocation29_spill] sm:$0xff]  ;;  %v9971_v2 = vld [vmem:[#allocation112_spill] sm:$0xff] }
 0x8c4   :  { %v3831_v30 = vmul.f32 0.5, %v3815_v58  ;;  %v3848_v44 = vmul.f32 0.5, %v3820_v36  ;;  %v2968_v12 = vadd.f32 %v9971_v2, %v9970_v43  ;;  %v9977_v36 = vld [vmem:[#allocation16_spill] sm:$0xff] }
 0x8c5   :  { %v3818_v19 = vadd.f32 %v3778_v0, %v2947_v62  ;;  %v9973_v62 = vld [vmem:[#allocation111_spill] sm:$0xff]  ;;  %v9974_v0 = vld [vmem:[#allocation22_spill] sm:$0xff] }
 0x8c6   :  { %5778 = vtanh.f32 %v3831_v30  ;;  %v2965_v59 = vadd.f32 %v9974_v0, %v9973_v62 }
 0x8c7   :  { %5780 = vtanh.f32 %v3833_v63  ;;  %v3846_v4 = vmul.f32 0.5, %v3818_v19  ;;  %v9981_v19 = vld [vmem:[#allocation73_spill] sm:$0xff] }
 0x8c8   :  { %5782 = vtanh.f32 %v3849_v47  ;;  %v3824_v23 = vadd.f32 %v3796_v61, %v2965_v59  ;;  %v9979_v47 = vld [vmem:[#allocation64_spill] sm:$0xff]  ;;  %v9982_v61 = vld [vmem:[#allocation66_spill] sm:$0xff] }
 0x8c9   :  { %v8507_v1 = vpop.f32.mrf.mxu2  ;;  %5784 = vtanh.f32 %v3832_v21 }
 0x8ca   :  { %5180 = vmatmul.msk.f32.gmra.mxu3 %vm795_vm2, %v9958_v37  ;;  %5292 = vmatmul.msk.f32.gmra.mxu2 %vm795_vm2, %v8319_v32  ;;  %v9965_v37 = vld [vmem:[#allocation76_spill] sm:$0xff]  ;;  %9972 = vst [vmem:[#allocation90_spill] sm:$0xff] %v8507_v1  ;;  %5786 = vtanh.f32 %v3848_v44 }
 0x8cb   :  { %v3802_v49 = vpop.f32.mrf.mxu1  ;;  %v2950_v11 = vadd.f32 %v9965_v37, %v8020_v27  ;;  %v9976_v37 = vld [vmem:[#allocation80_spill] sm:$0xff] }
 0x8cc   :  { %v5779_v55 = vpop.eup %5778  ;;  %v2962_v63 = vadd.f32 %v9976_v37, %v9975_v9  ;;  %v9985_v37 = vld [vmem:[#allocation116_spill] sm:$0xff] }
 0x8cd   :  { %v3819_v39 = vadd.f32 %v3781_v52, %v2950_v11  ;;  %v3830_v52 = vmul.f32 0.5, %v3814_v57  ;;  %v3825_v11 = vadd.f32 %v3799_v28, %v2968_v12  ;;  %v5781_v30 = vpop.eup %5780  ;;  %v9980_v28 = vld [vmem:[#allocation115_spill] sm:$0xff]  ;;  %v9983_v12 = vld [vmem:[#allocation65_spill] sm:$0xff] }
 0x8ce   :  { %v5783_v21 = vpop.eup %5782  ;;  %v3823_v44 = vadd.f32 %v3793_v29, %v2962_v63 }
 0x8cf   :  { %v3847_v7 = vmul.f32 0.5, %v3819_v39  ;;  %v9978_v39 = vld [vmem:[#allocation21_spill] sm:$0xff]  ;;  %v5785_v2 = vpop.eup %5784  ;;  %v3857_v9 = vmul.f32 0.5, %v5783_v21 }
 0x8d0   :  { %v2977_v57 = vadd.f32 %v9978_v39, %v9977_v36  ;;  %v5787_v59 = vpop.eup %5786  ;;  %v3841_v36 = vmul.f32 0.5, %v5781_v30  ;;  %v3840_v29 = vmul.f32 0.5, %v5785_v2 }
 0x8d1   :  { %5788 = vtanh.f32 %v3847_v7  ;;  %v8526_v63 = vpop.f32.mrf.mxu2  ;;  %v3861_v30 = vadd.f32 0.5, %v3857_v9 }
 0x8d2   :  { %5181 = vmatmul.msk.f32.gmra.mxu3 %vm795_vm2, %v9969_v3  ;;  %5293 = vmatmul.msk.f32.gmra.mxu2 %vm795_vm2, %v8335_v34  ;;  %5790 = vtanh.f32 %v3830_v52  ;;  %v2959_v3 = vadd.f32 %v9981_v19, %v9980_v28  ;;  %v2974_v52 = vadd.f32 %v9983_v12, %v9982_v61  ;;  %9986 = vst [vmem:[#allocation89_spill] sm:$0xff] %v8526_v63  ;;  %v3856_v12 = vmul.f32 0.5, %v5787_v59 }
 0x8d3   :  { %v3805_v58 = vpop.f32.mrf.mxu1  ;;  %5792 = vtanh.f32 %v3846_v4  ;;  %v9984_v4 = vld [vmem:[#allocation20_spill] sm:$0xff]  ;;  %v3839_v61 = vmul.f32 0.5, %v5779_v55  ;;  %v3844_v2 = vadd.f32 0.5, %v3840_v29 }
 0x8d4   :  { %5794 = vtanh.f32 %v3825_v11  ;;  %v2971_v39 = vadd.f32 %v9985_v37, %v9984_v4  ;;  %v3827_v62 = vadd.f32 %v3805_v58, %v2974_v52  ;;  %v9987_v37 = vld [vmem:[#allocation15_spill] sm:$0xff]  ;;  %v9989_v58 = vld [vmem:[#allocation68_spill] sm:$0xff]  ;;  %v3860_v59 = vadd.f32 0.5, %v3856_v12 }
 0x8d5   :  { %5796 = vtanh.f32 %v3824_v23 }
 0x8d6   :  { %5798 = vtanh.f32 %v3823_v44  ;;  %v3826_v11 = vadd.f32 %v3802_v49, %v2971_v39  ;;  %v3867_v21 = vmul.f32 0.5, %v3827_v62  ;;  %v9990_v62 = vld [vmem:[#allocation31_spill] sm:$0xff] }
 0x8d9   :  { %v8538_v12 = vpop.f32.mrf.mxu2 }
 0x8da   :  { %5182 = vmatmul.msk.f32.gmra.mxu3 %vm795_vm2, %v9979_v47  ;;  %5294 = vmatmul.msk.f32.gmra.mxu2 %vm795_vm2, %v8093_v31  ;;  %v3822_v47 = vadd.f32 %v8456_v51, %v2959_v3  ;;  %v5789_v31 = vpop.eup %5788  ;;  %v9988_v51 = vld [vmem:[#allocation121_spill] sm:$0xff]  ;;  %v3845_v3 = vadd.f32 0.5, %v3841_v36  ;;  %v3843_v36 = vadd.f32 0.5, %v3839_v61  ;;  %v9992_v61 = vld [vmem:[#allocation119_spill] sm:$0xff] }
 0x8db   :  { %v3808_v7 = vpop.f32.mrf.mxu1  ;;  %v5791_v19 = vpop.eup %5790  ;;  %v3855_v1 = vmul.f32 0.5, %v5789_v31  ;;  %v2980_v23 = vadd.f32 %v9988_v51, %v9987_v37  ;;  %v3885_v51 = vmul.f32 %v3861_v30, %v9990_v62 }
 0x8dc   :  { %v3828_v0 = vadd.f32 %v3808_v7, %v2977_v57  ;;  %v5793_v28 = vpop.eup %5792  ;;  %5800 = vtanh.f32 %v3822_v47  ;;  %v3838_v44 = vmul.f32 0.5, %v5791_v19  ;;  %v9991_v19 = vld [vmem:[#allocation118_spill] sm:$0xff] }
 0x8dd   :  { %v5795_v7 = vpop.eup %5794  ;;  %v3854_v52 = vmul.f32 0.5, %v5793_v28  ;;  %v3859_v9 = vadd.f32 0.5, %v3855_v1  ;;  %v3884_v28 = vmul.f32 %v3860_v59, %v9991_v19 }
 0x8de   :  { %v3868_v57 = vmul.f32 0.5, %v3828_v0  ;;  %v5797_v49 = vpop.eup %5796  ;;  %v3866_v0 = vmul.f32 0.5, %v3826_v11  ;;  %v3889_v39 = vmul.f32 %v5795_v7, %v3845_v3  ;;  %v9993_v3 = vld [vmem:[#allocation33_spill] sm:$0xff] }
 0x8df   :  { %v5799_v31 = vpop.eup %5798  ;;  %v3888_v37 = vmul.f32 %v5797_v49, %v3844_v2  ;;  %v3858_v4 = vadd.f32 0.5, %v3854_v52  ;;  %v3883_v1 = vmul.f32 %v3859_v9, %v9992_v61  ;;  %v8573_v61 = vld [vmem:[%s9481_s5] sm:$0xff] }
 0x8e0   :  { %5802 = vtanh.f32 %v3868_v57  ;;  %v3887_v29 = vmul.f32 %v5799_v31, %v3843_v36  ;;  %v8536_v11 = vadd.f32 %v3889_v39, %v3885_v51 }
 0x8e1   :  { %5804 = vtanh.f32 %v3867_v21  ;;  %v9994_v21 = vld [vmem:[#allocation120_spill] sm:$0xff]  ;;  %v8560_v36 = vpop.f32.mrf.mxu2 }
 0x8e2   :  { %5183 = vmatmul.msk.f32.gmra.mxu3 %vm795_vm2, %v9989_v58  ;;  %5295 = vmatmul.msk.f32.gmra.mxu2 %vm795_vm2, %v8127_v53  ;;  %v5801_v63 = vpop.eup %5800  ;;  %v3842_v53 = vadd.f32 0.5, %v3838_v44  ;;  %5806 = vtanh.f32 %v3866_v0  ;;  %v3882_v49 = vmul.f32 %v3858_v4, %v9994_v21  ;;  %v8548_v44 = vadd.f32 %v3887_v29, %v3883_v1  ;;  %v9995_v4 = vld [vmem:[#allocation117_spill] sm:$0xff] }
 0x8e3   :  { %v3811_v55 = vpop.f32.mrf.mxu1 }
 0x8e4   :  { %v3829_v47 = vadd.f32 %v3811_v55, %v2980_v23  ;;  %v3886_v7 = vmul.f32 %v5801_v63, %v3842_v53  ;;  %v8541_v23 = vadd.f32 %v3888_v37, %v3884_v28 }
 0x8e6   :  { %v3869_v58 = vmul.f32 0.5, %v3829_v47  ;;  %v5803_v57 = vpop.eup %5802  ;;  %v8551_v55 = vadd.f32 %v3886_v7, %v3882_v49  ;;  %v8608_v49 = vld [vmem:[%s9481_s5 + $0x18] sm:$0xff] }
 0x8e7   :  { %v5805_v30 = vpop.eup %5804  ;;  %v3876_v52 = vmul.f32 0.5, %v5803_v57  ;;  %v9996_v57 = vld [vmem:[#allocation122_spill] sm:$0xff] }
 0x8e8   :  { %5808 = vtanh.f32 %v3869_v58  ;;  %v5807_v2 = vpop.eup %5806  ;;  %v3875_v63 = vmul.f32 0.5, %v5805_v30  ;;  %v8595_v30 = vld [vmem:[%s9481_s5 + $0x10] sm:$0xff] }
 0x8e9   :  { %5810 = vtanh.f32 %v8536_v11  ;;  %v3874_v59 = vmul.f32 0.5, %v5807_v2 }
 0x8ea   :  { %5184 = vmatmul.msk.f32.gmra.mxu3 %vm795_vm2, %v9993_v3  ;;  %5296 = vmatmul.msk.f32.gmra.mxu2 %vm795_vm2, %v8149_v46  ;;  %5812 = vtanh.f32 %v8541_v23  ;;  %v3880_v46 = vadd.f32 0.5, %v3876_v52  ;;  %v3879_v31 = vadd.f32 0.5, %v3875_v63  ;;  %v8621_v52 = vld [vmem:[%s9481_s5 + $0x20] sm:$0xff]  ;;  %v8632_v63 = vld [vmem:[%s9481_s5 + $0x28] sm:$0xff] }
 0x8eb   :  { %5814 = vtanh.f32 %v8548_v44  ;;  %v3878_v51 = vadd.f32 0.5, %v3874_v59  ;;  %v8643_v59 = vld [vmem:[%s9481_s5 + $0x30] sm:$0xff] }
 0x8ec   :  { %5816 = vtanh.f32 %v8551_v55 }
 0x8ee   :  { %v5809_v0 = vpop.eup %5808 }
 0x8ef   :  { %v3877_v37 = vmul.f32 0.5, %v5809_v0  ;;  %v5811_v47 = vpop.eup %5810 }
 0x8f0   :  { %v5813_v62 = vpop.eup %5812 }
 0x8f1   :  { %v3881_v39 = vadd.f32 0.5, %v3877_v37  ;;  %v3900_v58 = vmul.f32 %v5813_v62, %v3880_v46  ;;  %v5815_v53 = vpop.eup %5814  ;;  %v10004_v46 = vld [vmem:[#allocation81_spill] sm:$0xff] }
 0x8f2   :  { %5185 = vmatmul.msk.f32.gmra.mxu3 %vm795_vm2, %v9995_v4  ;;  %5297 = vmatmul.msk.f32.gmra.mxu2 %vm795_vm2, %v8172_v24  ;;  %v3899_v19 = vmul.f32 %v5815_v53, %v3879_v31  ;;  %v5817_v28 = vpop.eup %5816  ;;  %v8566_v24 = vpop.f32.mrf.mxu2  ;;  %v10006_v31 = vld [vmem:[#allocation47_spill] sm:$0xff]  ;;  %v8660_v53 = vld [vmem:[%s9481_s5 + $0x38] sm:$0xff] }
 0x8f3   :  { %v3901_v9 = vmul.f32 %v5811_v47, %v3881_v39  ;;  %v3898_v29 = vmul.f32 %v5817_v28, %v3878_v51  ;;  %v10009_v28 = vld [vmem:[#allocation28_spill] sm:$0xff] }
 0x8f5   :  { %3930 = vmatpush.msra.mxu2 %v3901_v9  ;;  %v10007_v9 = vld [vmem:[#allocation18_spill] sm:$0xff] }
 0x8f6   :  { %v596_v62 = vadd.f32 %v10007_v9, %v10006_v31 }
 0x8f7   :  { %3931 = vmatpush.msra.mxu2 %v3900_v58 }
 0x8f9   :  { %3932 = vmatpush.msra.mxu2 %v3899_v19  ;;  %v10008_v19 = vld [vmem:[#allocation52_spill] sm:$0xff] }
 0x8fa   :  { %5186 = vmatmul.msk.f32.gmra.mxu3 %vm795_vm2, %v9996_v57  ;;  %5298 = vmatmul.msk.f32.gmra.mxu2 %vm795_vm2, %v8193_v22  ;;  %v8584_v22 = vld [vmem:[%s9481_s5 + $0x8] sm:$0xff] }
 0x8fb   :  { %3933 = vmatpush.msra.mxu2 %v3898_v29  ;;  %v608_v29 = vadd.f32 %v10009_v28, %v10008_v19  ;;  %v10013_v19 = vld [vmem:[#allocation54_spill] sm:$0xff]  ;;  %v10014_v28 = vld [vmem:[#allocation97_spill] sm:$0xff] }
 0x902   :  { %5235 = vmatmul.msk.f32.vlgmr.msra.gmra.mxu3 %vm795_vm2, %v8202_v14  ;;  %5347 = vmatmul.msk.f32.vlgmr.msra.gmra.mxu2 %vm795_vm2, %v8573_v61 }
 0x905   :  { %v2520_v1 = vpop.f32.mrf.mxu3  ;;  %v8577_v7 = vpop.f32.mrf.mxu2 }
 0x906   :  { %9997 = vst [vmem:[#allocation93_spill] sm:$0xff] %v8577_v7 }
 0x90a   :  { %5236 = vmatmul.msk.f32.gmra.mxu3 %vm795_vm2, %v8213_v26  ;;  %5348 = vmatmul.msk.f32.gmra.mxu2 %vm795_vm2, %v8584_v22 }
 0x90d   :  { %v2523_v14 = vpop.f32.mrf.mxu3  ;;  %v8588_v3 = vpop.f32.mrf.mxu2 }
 0x90e   :  { %9998 = vst [vmem:[#allocation59_spill] sm:$0xff] %v8588_v3 }
 0x912   :  { %5237 = vmatmul.msk.f32.gmra.mxu3 %vm795_vm2, %v8224_v10  ;;  %5349 = vmatmul.msk.f32.gmra.mxu2 %vm795_vm2, %v8595_v30 }
 0x915   :  { %v8599_v26 = vpop.f32.mrf.mxu3  ;;  %v8601_v21 = vpop.f32.mrf.mxu2 }
 0x916   :  { %9999 = vst [vmem:[#allocation92_spill] sm:$0xff] %v8601_v21 }
 0x91a   :  { %5238 = vmatmul.msk.f32.gmra.mxu3 %vm795_vm2, %v8237_v38  ;;  %5350 = vmatmul.msk.f32.gmra.mxu2 %vm795_vm2, %v8608_v49 }
 0x91d   :  { %v8612_v10 = vpop.f32.mrf.mxu3  ;;  %v8614_v2 = vpop.f32.mrf.mxu2 }
 0x91e   :  { %10000 = vst [vmem:[#allocation91_spill] sm:$0xff] %v8614_v2 }
 0x922   :  { %5239 = vmatmul.msk.f32.gmra.mxu3 %vm795_vm2, %v8250_v56  ;;  %5351 = vmatmul.msk.f32.gmra.mxu2 %vm795_vm2, %v8621_v52 }
 0x925   :  { %v2532_v38 = vpop.f32.mrf.mxu3  ;;  %v8625_v0 = vpop.f32.mrf.mxu2 }
 0x926   :  { %10001 = vst [vmem:[#allocation94_spill] sm:$0xff] %v8625_v0 }
 0x92a   :  { %5240 = vmatmul.msk.f32.gmra.mxu3 %vm795_vm2, %v8261_v40  ;;  %5352 = vmatmul.msk.f32.gmra.mxu2 %vm795_vm2, %v8632_v63  ;;  %v10003_v40 = vld [vmem:[#allocation50_spill] sm:$0xff] }
 0x92b   :  { %v606_v39 = vadd.f32 %v10004_v46, %v10003_v40  ;;  %v10010_v40 = vld [vmem:[#allocation49_spill] sm:$0xff]  ;;  %v10011_v46 = vld [vmem:[#allocation7_spill] sm:$0xff] }
 0x92d   :  { %v2535_v56 = vpop.f32.mrf.mxu3  ;;  %v8636_v37 = vpop.f32.mrf.mxu2  ;;  %v2572_v51 = vadd.f32 %v2532_v38, %v606_v39  ;;  %v598_v38 = vadd.f32 %v10011_v46, %v10010_v40  ;;  %v8690_v46 = vld [vmem:[%s9481_s5 + $0x48] sm:$0xff] }
 0x92e   :  { %10002 = vst [vmem:[#allocation19_spill] sm:$0xff] %v8636_v37 }
 0x92f   :  { %v2600_v58 = vmul.f32 0.5, %v2572_v51  ;;  %v2569_v31 = vadd.f32 %v2523_v14, %v598_v38 }
 0x931   :  { %5818 = vtanh.f32 %v2600_v58  ;;  %v2585_v51 = vmul.f32 0.5, %v2569_v31  ;;  %v616_v58 = vadd.f32 %v10014_v28, %v10013_v19  ;;  %v10016_v31 = vld [vmem:[#allocation56_spill] sm:$0xff] }
 0x932   :  { %5241 = vmatmul.msk.f32.gmra.mxu3 %vm795_vm2, %v8272_v13  ;;  %5353 = vmatmul.msk.f32.gmra.mxu2 %vm795_vm2, %v8643_v59  ;;  %v2568_v13 = vadd.f32 %v2520_v1, %v596_v62  ;;  %v8677_v62 = vld [vmem:[%s9481_s5 + $0x40] sm:$0xff] }
 0x934   :  { %v2584_v57 = vmul.f32 0.5, %v2568_v13 }
 0x935   :  { %v8649_v47 = vpop.f32.mrf.mxu3  ;;  %v8651_v4 = vpop.f32.mrf.mxu2 }
 0x936   :  { %10005 = vst [vmem:[#allocation8_spill] sm:$0xff] %v8651_v4  ;;  %5820 = vtanh.f32 %v2584_v57 }
 0x937   :  { %v5819_v13 = vpop.eup %5818 }
 0x93a   :  { %5242 = vmatmul.msk.f32.gmra.mxu3 %vm795_vm2, %v8289_v33  ;;  %5354 = vmatmul.msk.f32.gmra.mxu2 %vm795_vm2, %v8660_v53  ;;  %v2573_v33 = vadd.f32 %v2535_v56, %v608_v29 }
 0x93c   :  { %v2601_v9 = vmul.f32 0.5, %v2573_v33  ;;  %v5821_v29 = vpop.eup %5820 }
 0x93d   :  { %v8668_v1 = vpop.f32.mrf.mxu3  ;;  %v8670_v39 = vpop.f32.mrf.mxu2  ;;  %v2592_v40 = vmul.f32 0.5, %v5821_v29 }
 0x93e   :  { %10012 = vst [vmem:[#allocation23_spill] sm:$0xff] %v8670_v39  ;;  %5822 = vtanh.f32 %v2601_v9  ;;  %v10017_v9 = vld [vmem:[#allocation98_spill] sm:$0xff] }
 0x93f   :  { %5824 = vtanh.f32 %v2585_v51  ;;  %v618_v19 = vadd.f32 %v10017_v9, %v10016_v31 }
 0x942   :  { %5243 = vmatmul.msk.f32.gmra.mxu3 %vm795_vm2, %v8306_v41  ;;  %5355 = vmatmul.msk.f32.gmra.mxu2 %vm795_vm2, %v8677_v62  ;;  %v2608_v41 = vmul.f32 0.5, %v5819_v13  ;;  %v2596_v13 = vadd.f32 0.5, %v2592_v40 }
 0x944   :  { %v2612_v38 = vadd.f32 0.5, %v2608_v41  ;;  %v5823_v33 = vpop.eup %5822  ;;  %v8706_v41 = vld [vmem:[%s9481_s5 + $0x50] sm:$0xff] }
 0x945   :  { %v2544_v56 = vpop.f32.mrf.mxu3  ;;  %v8683_v14 = vpop.f32.mrf.mxu2 }
 0x946   :  { %10015 = vst [vmem:[#allocation10_spill] sm:$0xff] %v8683_v14  ;;  %v2576_v57 = vadd.f32 %v2544_v56, %v616_v58  ;;  %v5825_v51 = vpop.eup %5824  ;;  %v2636_v29 = vmul.f32 %v2612_v38, %v8330_v20 }
 0x947   :  { %v2593_v14 = vmul.f32 0.5, %v5825_v51 }
 0x948   :  { %5826 = vtanh.f32 %v2576_v57  ;;  %v2609_v57 = vmul.f32 0.5, %v5823_v33 }
 0x949   :  { %v2597_v31 = vadd.f32 0.5, %v2593_v14  ;;  %v8725_v14 = vld [vmem:[%s9481_s5 + $0x58] sm:$0xff] }
 0x94a   :  { %5244 = vmatmul.msk.f32.gmra.mxu3 %vm795_vm2, %v8319_v32  ;;  %5356 = vmatmul.msk.f32.gmra.mxu2 %vm795_vm2, %v8690_v46  ;;  %v2613_v40 = vadd.f32 0.5, %v2609_v57  ;;  %v10023_v57 = vld [vmem:[#allocation96_spill] sm:$0xff] }
 0x94d   :  { %v2547_v28 = vpop.f32.mrf.mxu3  ;;  %v8696_v58 = vpop.f32.mrf.mxu2 }
 0x94e   :  { %10018 = vst [vmem:[#allocation61_spill] sm:$0xff] %v8696_v58  ;;  %v5827_v56 = vpop.eup %5826  ;;  %v2577_v32 = vadd.f32 %v2547_v28, %v618_v19  ;;  %v8741_v28 = vld [vmem:[%s9481_s5 + $0x60] sm:$0xff] }
 0x94f   :  { %v2640_v39 = vmul.f32 %v5827_v56, %v2596_v13  ;;  %v8734_v13 = vld [vmem:[%s9480_s4 + $0x60] sm:$0xff] }
 0x950   :  { %5828 = vtanh.f32 %v2577_v32  ;;  %v10021_v56 = vld [vmem:[#allocation42_spill] sm:$0xff] }
 0x951   :  { %v8699_v4 = vadd.f32 %v2640_v39, %v2636_v29  ;;  %v2637_v39 = vmul.f32 %v2613_v40, %v8344_v6  ;;  %v10022_v32 = vld [vmem:[#allocation14_spill] sm:$0xff]  ;;  %v613_v40 = vadd.f32 %v10023_v57, %v9926_v16 }
 0x952   :  { %5245 = vmatmul.msk.f32.gmra.mxu3 %vm795_vm2, %v8335_v34  ;;  %5357 = vmatmul.msk.f32.gmra.mxu2 %vm795_vm2, %v8706_v41  ;;  %v8718_v34 = vld [vmem:[%s9480_s4 + $0x58] sm:$0xff]  ;;  %v603_v29 = vadd.f32 %v10022_v32, %v10021_v56  ;;  %v8762_v16 = vld [vmem:[%s9480_s4 + $0x68] sm:$0xff] }
 0x953   :  { %v2575_v37 = vadd.f32 %v8668_v1, %v613_v40 }
 0x955   :  { %v2550_v20 = vpop.f32.mrf.mxu3  ;;  %v8710_v38 = vpop.f32.mrf.mxu2 }
 0x956   :  { %10019 = vst [vmem:[#allocation11_spill] sm:$0xff] %v8710_v38  ;;  %v5829_v33 = vpop.eup %5828  ;;  %v10026_v38 = vld [vmem:[#allocation95_spill] sm:$0xff] }
 0x957   :  { %v2641_v9 = vmul.f32 %v5829_v33, %v2597_v31  ;;  %v611_v58 = vadd.f32 %v10026_v38, %v9930_v18  ;;  %v2603_v18 = vmul.f32 0.5, %v2575_v37  ;;  %v8782_v37 = vld [vmem:[%s9480_s4 + $0x70] sm:$0xff] }
 0x959   :  { %v8713_v19 = vadd.f32 %v2641_v9, %v2637_v39  ;;  %v10025_v39 = vld [vmem:[#allocation9_spill] sm:$0xff]  ;;  %v2574_v56 = vadd.f32 %v8649_v47, %v611_v58 }
 0x95a   :  { %5246 = vmatmul.msk.f32.gmra.mxu3 %vm795_vm2, %v8718_v34  ;;  %5358 = vmatmul.msk.f32.gmra.mxu2 %vm795_vm2, %v8725_v14  ;;  %v601_v9 = vadd.f32 %v10025_v39, %v9928_v42  ;;  %v8769_v42 = vld [vmem:[%s9481_s5 + $0x68] sm:$0xff]  ;;  %v10028_v58 = vld [vmem:[#allocation101_spill] sm:$0xff] }
 0x95b   :  { %v623_v38 = vadd.f32 %v10028_v58, %v6809_v45  ;;  %v10034_v58 = vld [vmem:[#allocation106_spill] sm:$0xff] }
 0x95c   :  { %v2570_v0 = vadd.f32 %v8599_v26, %v601_v9  ;;  %v10031_v9 = vld [vmem:[#allocation58_spill] sm:$0xff] }
 0x95d   :  { %v2553_v6 = vpop.f32.mrf.mxu3  ;;  %v8729_v51 = vpop.f32.mrf.mxu2 }
 0x95e   :  { %10020 = vst [vmem:[#allocation74_spill] sm:$0xff] %v8729_v51  ;;  %v2571_v51 = vadd.f32 %v8612_v10, %v603_v29  ;;  %v2586_v26 = vmul.f32 0.5, %v2570_v0  ;;  %v2602_v10 = vmul.f32 0.5, %v2574_v56  ;;  %v10030_v29 = vld [vmem:[#allocation99_spill] sm:$0xff]  ;;  %v2579_v40 = vadd.f32 %v2553_v6, %v623_v38  ;;  %v10032_v6 = vld [vmem:[#allocation108_spill] sm:$0xff] }
 0x95f   :  { %v8789_v0 = vld [vmem:[%s9481_s5 + $0x70] sm:$0xff]  ;;  %v631_v56 = vadd.f32 %v10032_v6, %v10031_v9  ;;  %v628_v38 = vadd.f32 %v10034_v58, %v9937_v54  ;;  %v8811_v54 = vld [vmem:[%s9481_s5 + $0x78] sm:$0xff] }
 0x960   :  { %v2587_v32 = vmul.f32 0.5, %v2571_v51  ;;  %v10029_v51 = vld [vmem:[#allocation51_spill] sm:$0xff]  ;;  %10037 = vst [vmem:[#allocation71_spill] sm:$0xff] %v8811_v54 }
 0x961   :  { %v621_v57 = vadd.f32 %v10030_v29, %v10029_v51 }
 0x962   :  { %5247 = vmatmul.msk.f32.gmra.mxu3 %vm795_vm2, %v8734_v13  ;;  %5359 = vmatmul.msk.f32.gmra.mxu2 %vm795_vm2, %v8741_v28  ;;  %5830 = vtanh.f32 %v2587_v32 }
 0x963   :  { %5832 = vtanh.f32 %v2603_v18  ;;  %v2578_v45 = vadd.f32 %v2550_v20, %v621_v57 }
 0x964   :  { %5834 = vtanh.f32 %v2586_v26 }
 0x965   :  { %v2556_v31 = vpop.f32.mrf.mxu3  ;;  %v8749_v33 = vpop.f32.mrf.mxu2  ;;  %5836 = vtanh.f32 %v2602_v10 }
 0x966   :  { %10024 = vst [vmem:[#allocation70_spill] sm:$0xff] %v8749_v33  ;;  %5838 = vtanh.f32 %v2579_v40  ;;  %v10035_v33 = vld [vmem:[#allocation60_spill] sm:$0xff] }
 0x967   :  { %5840 = vtanh.f32 %v2578_v45 }
 0x968   :  { %v5831_v39 = vpop.eup %5830 }
 0x969   :  { %v5833_v32 = vpop.eup %5832  ;;  %v2595_v20 = vmul.f32 0.5, %v5831_v39 }
 0x96a   :  { %5248 = vmatmul.msk.f32.gmra.mxu3 %vm795_vm2, %v8762_v16  ;;  %5360 = vmatmul.msk.f32.gmra.mxu2 %vm795_vm2, %v8769_v42  ;;  %v5835_v10 = vpop.eup %5834  ;;  %v2611_v57 = vmul.f32 0.5, %v5833_v32 }
 0x96b   :  { %v5837_v29 = vpop.eup %5836  ;;  %v2594_v3 = vmul.f32 0.5, %v5835_v10 }
 0x96c   :  { %v2610_v6 = vmul.f32 0.5, %v5837_v29 }
 0x96d   :  { %v2559_v47 = vpop.f32.mrf.mxu3  ;;  %v8773_v1 = vpop.f32.mrf.mxu2 }
 0x96e   :  { %10027 = vst [vmem:[#allocation75_spill] sm:$0xff] %v8773_v1  ;;  %v10036_v1 = vld [vmem:[#allocation103_spill] sm:$0xff]  ;;  %v2581_v21 = vadd.f32 %v2559_v47, %v628_v38  ;;  %v2599_v47 = vadd.f32 0.5, %v2595_v20  ;;  %v2614_v58 = vadd.f32 0.5, %v2610_v6 }
 0x96f   :  { %v626_v2 = vadd.f32 %v10036_v1, %v10035_v33  ;;  %v5839_v33 = vpop.eup %5838  ;;  %v2615_v1 = vadd.f32 0.5, %v2611_v57 }
 0x970   :  { %v2621_v45 = vmul.f32 0.5, %v2581_v21  ;;  %v5841_v39 = vpop.eup %5840  ;;  %v2643_v38 = vmul.f32 %v5839_v33, %v2599_v47 }
 0x971   :  { %v2580_v9 = vadd.f32 %v2556_v31, %v626_v2  ;;  %v10038_v2 = vld [vmem:[#allocation109_spill] sm:$0xff]  ;;  %v2639_v29 = vmul.f32 %v2615_v1, %v8402_v60 }
 0x972   :  { %5249 = vmatmul.msk.f32.gmra.mxu3 %vm795_vm2, %v8782_v37  ;;  %5361 = vmatmul.msk.f32.gmra.mxu2 %vm795_vm2, %v8789_v0  ;;  %v633_v31 = vadd.f32 %v10038_v2, %v6819_v17  ;;  %v2638_v17 = vmul.f32 %v2614_v58, %v8404_v5 }
 0x973   :  { %v2620_v32 = vmul.f32 0.5, %v2580_v9  ;;  %v2647_v20 = vadd.f32 %v2643_v38, %v2639_v29 }
 0x975   :  { %v2562_v18 = vpop.f32.mrf.mxu3  ;;  %v8795_v26 = vpop.f32.mrf.mxu2 }
 0x976   :  { %10033 = vst [vmem:[#allocation76_spill] sm:$0xff] %v8795_v26  ;;  %v2582_v51 = vadd.f32 %v2562_v18, %v631_v56  ;;  %v8804_v26 = vld [vmem:[%s9480_s4 + $0x78] sm:$0xff]  ;;  %v2598_v56 = vadd.f32 0.5, %v2594_v3 }
 0x978   :  { %v2622_v40 = vmul.f32 0.5, %v2582_v51  ;;  %v2642_v7 = vmul.f32 %v5841_v39, %v2598_v56 }
 0x97a   :  { %5250 = vmatmul.msk.f32.gmra.mxu3 %vm795_vm2, %v8804_v26  ;;  %5362 = vmatmul.msk.f32.gmra.mxu2 %vm795_vm2, %v8811_v54  ;;  %5842 = vtanh.f32 %v2622_v40  ;;  %v2646_v3 = vadd.f32 %v2642_v7, %v2638_v17 }
 0x97b   :  { %5844 = vtanh.f32 %v2621_v45 }
 0x97c   :  { %5846 = vtanh.f32 %v2620_v32 }
 0x97d   :  { %v2565_v18 = vpop.f32.mrf.mxu3  ;;  %v8817_v10 = vpop.f32.mrf.mxu2 }
 0x97e   :  { %10039 = vst [vmem:[#allocation25_spill] sm:$0xff] %v8817_v10  ;;  %v2583_v51 = vadd.f32 %v2565_v18, %v633_v31 }
 0x980   :  { %v2623_v54 = vmul.f32 0.5, %v2583_v51  ;;  %v5843_v21 = vpop.eup %5842 }
 0x981   :  { %v5845_v6 = vpop.eup %5844  ;;  %v2630_v33 = vmul.f32 0.5, %v5843_v21 }
 0x982   :  { %5848 = vtanh.f32 %v2623_v54  ;;  %v5847_v40 = vpop.eup %5846  ;;  %v2629_v60 = vmul.f32 0.5, %v5845_v6  ;;  %v6140_v6 = vld [vmem:[%s9480_s4 + $0x8] sm:$0xff] }
 0x983   :  { %5850 = vtanh.f32 %v2647_v20  ;;  %v2628_v47 = vmul.f32 0.5, %v5847_v40  ;;  %v2634_v5 = vadd.f32 0.5, %v2630_v33 }
 0x984   :  { %5852 = vtanh.f32 %v2646_v3  ;;  %v2633_v7 = vadd.f32 0.5, %v2629_v60 }
 0x985   :  { %v8821_v57 = vpop.f32.mrf.mxu3  ;;  %v8823_v9 = vpop.f32.mrf.mxu2  ;;  %5854 = vtanh.f32 %v8713_v19  ;;  %v2632_v18 = vadd.f32 0.5, %v2628_v47  ;;  %v6142_v47 = vld [vmem:[%s9480_s4 + $0x18] sm:$0xff] }
 0x986   :  { %10040 = vst [vmem:[#allocation69_spill] sm:$0xff] %v8821_v57  ;;  %5856 = vtanh.f32 %v8699_v4  ;;  %v6139_v4 = vld [vmem:[%s9480_s4] sm:$0xff] }
 0x988   :  { %v5849_v2 = vpop.eup %5848 }
 0x989   :  { %v2631_v31 = vmul.f32 0.5, %v5849_v2  ;;  %v5851_v54 = vpop.eup %5850  ;;  %v6141_v2 = vld [vmem:[%s9480_s4 + $0x10] sm:$0xff] }
 0x98a   :  { %v5853_v32 = vpop.eup %5852 }
 0x98b   :  { %v2635_v1 = vadd.f32 0.5, %v2631_v31  ;;  %v2654_v58 = vmul.f32 %v5853_v32, %v2634_v5  ;;  %v5855_v38 = vpop.eup %5854 }
 0x98c   :  { %v2653_v51 = vmul.f32 %v5855_v38, %v2633_v7  ;;  %v5857_v29 = vpop.eup %5856 }
 0x98d   :  { %v2655_v45 = vmul.f32 %v5851_v54, %v2635_v1  ;;  %v8827_v39 = vpop.f32.mrf.mxu3  ;;  %v3938_v56 = vpop.f32.mrf.mxu2  ;;  %v2652_v19 = vmul.f32 %v5857_v29, %v2632_v18  ;;  %v6143_v1 = vld [vmem:[%s9480_s4 + $0x20] sm:$0xff]  ;;  %v6146_v29 = vld [vmem:[%s9480_s4 + $0x38] sm:$0xff] }
 0x98e   :  { %10041 = vst [vmem:[#allocation113_spill] sm:$0xff] %v8827_v39 }
 0x98f   :  { %3319 = vmatpush.msrb.mxu3 %v2655_v45  ;;  %v6144_v45 = vld [vmem:[%s9480_s4 + $0x28] sm:$0xff] }
 0x991   :  { %3320 = vmatpush.msrb.mxu3 %v2654_v58  ;;  %v6145_v58 = vld [vmem:[%s9480_s4 + $0x30] sm:$0xff] }
 0x993   :  { %3321 = vmatpush.msrb.mxu3 %v2653_v51 }
 0x995   :  { %v8829_v17 = vpop.f32.mrf.mxu3  ;;  %3322 = vmatpush.msrb.mxu3 %v2652_v19  ;;  %v3941_v20 = vpop.f32.mrf.mxu2 }
 0x996   :  { %10042 = vst [vmem:[#allocation29_spill] sm:$0xff] %v8829_v17  ;;  %5299 = vmatmul.msk.f32.vlgmr.msrb.gmra.mxu3 %vm795_vm2, %v6139_v4 }
 0x99d   :  { %v8835_v21 = vpop.f32.mrf.mxu3  ;;  %v3944_v3 = vpop.f32.mrf.mxu2 }
 0x99e   :  { %10043 = vst [vmem:[#allocation112_spill] sm:$0xff] %v8835_v21  ;;  %5300 = vmatmul.msk.f32.gmra.mxu3 %vm795_vm2, %v6140_v6  ;;  %v6147_v6 = vld [vmem:[%s9480_s4 + $0x40] sm:$0xff] }
 0x9a5   :  { %v8841_v40 = vpop.f32.mrf.mxu3  ;;  %v3947_v33 = vpop.f32.mrf.mxu2 }
 0x9a6   :  { %10044 = vst [vmem:[#allocation22_spill] sm:$0xff] %v8841_v40  ;;  %5301 = vmatmul.msk.f32.gmra.mxu3 %vm795_vm2, %v6141_v2 }
 0x9ad   :  { %v8847_v60 = vpop.f32.mrf.mxu3  ;;  %v3950_v31 = vpop.f32.mrf.mxu2 }
 0x9ae   :  { %10045 = vst [vmem:[#allocation80_spill] sm:$0xff] %v8847_v60  ;;  %5302 = vmatmul.msk.f32.gmra.mxu3 %vm795_vm2, %v6142_v47  ;;  %v6148_v47 = vld [vmem:[%s9480_s4 + $0x48] sm:$0xff] }
 0x9af   :  { %v10055_v60 = vld [vmem:[#allocation107_spill] sm:$0xff] }
 0x9b5   :  { %v3953_v5 = vpop.f32.mrf.mxu2  ;;  %v8857_v54 = vpop.f32.mrf.mxu3 }
 0x9b6   :  { %5303 = vmatmul.msk.f32.gmra.mxu3 %vm795_vm2, %v6143_v1  ;;  %10046 = vst [vmem:[#allocation21_spill] sm:$0xff] %v8857_v54  ;;  %v3006_v54 = vadd.f32 %v10055_v60, %v9962_v35 }
 0x9bd   :  { %v3956_v7 = vpop.f32.mrf.mxu2  ;;  %v8863_v32 = vpop.f32.mrf.mxu3 }
 0x9be   :  { %5304 = vmatmul.msk.f32.gmra.mxu3 %vm795_vm2, %v6144_v45  ;;  %10047 = vst [vmem:[#allocation64_spill] sm:$0xff] %v8863_v32  ;;  %v3003_v45 = vadd.f32 %v8414_v8, %v8012_v48  ;;  %v10056_v8 = vld [vmem:[#allocation86_spill] sm:$0xff]  ;;  %v10057_v32 = vld [vmem:[#allocation44_spill] sm:$0xff] }
 0x9c0   :  { %v3984_v57 = vadd.f32 %v3938_v56, %v3003_v45  ;;  %v3985_v56 = vadd.f32 %v3941_v20, %v3006_v54  ;;  %v10058_v45 = vld [vmem:[#allocation88_spill] sm:$0xff] }
 0x9c2   :  { %v4000_v21 = vmul.f32 0.5, %v3984_v57  ;;  %v10060_v57 = vld [vmem:[#allocation90_spill] sm:$0xff] }
 0x9c4   :  { %5858 = vtanh.f32 %v4000_v21 }
 0x9c5   :  { %v8865_v18 = vpop.f32.mrf.mxu2  ;;  %v8871_v38 = vpop.f32.mrf.mxu3 }
 0x9c6   :  { %5305 = vmatmul.msk.f32.gmra.mxu3 %vm795_vm2, %v6145_v58  ;;  %10048 = vst [vmem:[#allocation73_spill] sm:$0xff] %v8871_v38  ;;  %v10051_v58 = vld [vmem:[#allocation79_spill] sm:$0xff]  ;;  %v10053_v38 = vld [vmem:[#allocation78_spill] sm:$0xff] }
 0x9ca   :  { %v5859_v21 = vpop.eup %5858 }
 0x9cd   :  { %v3962_v51 = vpop.f32.mrf.mxu2  ;;  %v8877_v19 = vpop.f32.mrf.mxu3 }
 0x9ce   :  { %5306 = vmatmul.msk.f32.gmra.mxu3 %vm795_vm2, %v6146_v29  ;;  %10049 = vst [vmem:[#allocation65_spill] sm:$0xff] %v8877_v19  ;;  %v10052_v29 = vld [vmem:[#allocation110_spill] sm:$0xff]  ;;  %v10054_v19 = vld [vmem:[#allocation43_spill] sm:$0xff] }
 0x9cf   :  { %v3009_v10 = vadd.f32 %v10052_v29, %v10051_v58  ;;  %v3021_v40 = vadd.f32 %v10054_v19, %v10053_v38  ;;  %v3015_v19 = vadd.f32 %v10057_v32, %v8020_v27  ;;  %v3000_v38 = vadd.f32 %v10058_v45, %v8022_v25  ;;  %v10066_v45 = vld [vmem:[#allocation16_spill] sm:$0xff] }
 0x9d1   :  { %v3986_v17 = vadd.f32 %v3944_v3, %v3009_v10  ;;  %v3990_v29 = vadd.f32 %v3956_v7, %v3021_v40  ;;  %v10059_v3 = vld [vmem:[#allocation82_spill] sm:$0xff]  ;;  %v3983_v39 = vadd.f32 %v8823_v9, %v3000_v38  ;;  %v4001_v40 = vmul.f32 0.5, %v3985_v56  ;;  %v10062_v9 = vld [vmem:[#allocation85_spill] sm:$0xff] }
 0x9d2   :  { %v3012_v35 = vadd.f32 %v10059_v3, %v9967_v50  ;;  %v10067_v3 = vld [vmem:[#allocation115_spill] sm:$0xff] }
 0x9d3   :  { %v4002_v58 = vmul.f32 0.5, %v3986_v17 }
 0x9d4   :  { %v3987_v7 = vadd.f32 %v3947_v33, %v3012_v35  ;;  %v10063_v33 = vld [vmem:[#allocation114_spill] sm:$0xff] }
 0x9d5   :  { %v3965_v4 = vpop.f32.mrf.mxu2  ;;  %v8887_v1 = vpop.f32.mrf.mxu3  ;;  %5860 = vtanh.f32 %v4002_v58  ;;  %v10064_v58 = vld [vmem:[#allocation46_spill] sm:$0xff] }
 0x9d6   :  { %5307 = vmatmul.msk.f32.gmra.mxu3 %vm795_vm2, %v6147_v6  ;;  %10050 = vst [vmem:[#allocation116_spill] sm:$0xff] %v8887_v1  ;;  %v3018_v1 = vadd.f32 %v10056_v8, %v7999_v15  ;;  %v4018_v8 = vmul.f32 0.5, %v3990_v29  ;;  %v4015_v17 = vmul.f32 0.5, %v3987_v7  ;;  %v3027_v29 = vadd.f32 %v10064_v58, %v10063_v33 }
 0x9d8   :  { %v3989_v60 = vadd.f32 %v3953_v5, %v3018_v1  ;;  %v3033_v5 = vadd.f32 %v10060_v57, %v9970_v43  ;;  %v3999_v1 = vmul.f32 0.5, %v3983_v39  ;;  %5862 = vtanh.f32 %v4018_v8 }
 0x9d9   :  { %5864 = vtanh.f32 %v4001_v40  ;;  %v3042_v39 = vadd.f32 %v8560_v36, %v10066_v45  ;;  %v3992_v40 = vadd.f32 %v3962_v51, %v3027_v29 }
 0x9da   :  { %v4017_v32 = vmul.f32 0.5, %v3989_v60 }
 0x9db   :  { %v5861_v56 = vpop.eup %5860 }
 0x9dc   :  { %5866 = vtanh.f32 %v4017_v32  ;;  %v10069_v32 = vld [vmem:[#allocation66_spill] sm:$0xff] }
 0x9dd   :  { %v3968_v2 = vpop.f32.mrf.mxu2  ;;  %v8909_v10 = vpop.f32.mrf.mxu3 }
 0x9de   :  { %5308 = vmatmul.msk.f32.gmra.mxu3 %vm795_vm2, %v6148_v47  ;;  %v6149_v47 = vld [vmem:[%s9480_s4 + $0x50] sm:$0xff]  ;;  %v3994_v35 = vadd.f32 %v3968_v2, %v3033_v5  ;;  %v5863_v60 = vpop.eup %5862 }
 0x9df   :  { %v5865_v7 = vpop.eup %5864  ;;  %v10070_v5 = vld [vmem:[#allocation20_spill] sm:$0xff]  ;;  %v4026_v51 = vmul.f32 0.5, %v5863_v60 }
 0x9e0   :  { %v4009_v29 = vmul.f32 0.5, %v5865_v7 }
 0x9e5   :  { %v8895_v6 = vpop.f32.mrf.mxu2 }
 0x9e6   :  { %5309 = vmatmul.msk.f32.gmra.mxu3 %vm795_vm2, %v6149_v47  ;;  %v3988_v47 = vadd.f32 %v3950_v31, %v3015_v19  ;;  %v10061_v31 = vld [vmem:[#allocation111_spill] sm:$0xff] }
 0x9e7   :  { %v3030_v38 = vadd.f32 %v10062_v9, %v10061_v31 }
 0x9e8   :  { %v4016_v54 = vmul.f32 0.5, %v3988_v47  ;;  %v10068_v47 = vld [vmem:[#allocation17_spill] sm:$0xff] }
 0x9e9   :  { %v3993_v19 = vadd.f32 %v3965_v4, %v3030_v38  ;;  %v3024_v8 = vadd.f32 %v10068_v47, %v10067_v3  ;;  %v5867_v4 = vpop.eup %5866  ;;  %v4010_v38 = vmul.f32 0.5, %v5861_v56 }
 0x9ea   :  { %5868 = vtanh.f32 %v4016_v54  ;;  %v3039_v54 = vadd.f32 %v8538_v12, %v10069_v32  ;;  %v4025_v47 = vmul.f32 0.5, %v5867_v4 }
 0x9eb   :  { %5870 = vtanh.f32 %v3999_v1  ;;  %v10071_v1 = vld [vmem:[#allocation89_spill] sm:$0xff] }
 0x9ec   :  { %5872 = vtanh.f32 %v4015_v17  ;;  %v3036_v36 = vadd.f32 %v10071_v1, %v10070_v5  ;;  %v3991_v17 = vadd.f32 %v8865_v18, %v3024_v8  ;;  %v10072_v1 = vld [vmem:[#allocation15_spill] sm:$0xff]  ;;  %v4030_v8 = vadd.f32 0.5, %v4026_v51 }
 0x9ed   :  { %v3974_v20 = vpop.f32.mrf.mxu2  ;;  %5874 = vtanh.f32 %v3994_v35  ;;  %v3045_v18 = vadd.f32 %v8566_v24, %v10072_v1  ;;  %v4029_v4 = vadd.f32 0.5, %v4025_v47 }
 0x9ee   :  { %5310 = vmatmul.msk.f32.gmra.mxu3 %vm795_vm2, %v8718_v34  ;;  %v8922_v34 = vpop.f32.mrf.mxu3  ;;  %5876 = vtanh.f32 %v3993_v19  ;;  %v3996_v35 = vadd.f32 %v3974_v20, %v3039_v54  ;;  %v3995_v12 = vadd.f32 %v8895_v6, %v3036_v36  ;;  %v4014_v19 = vadd.f32 0.5, %v4010_v38 }
 0x9ef   :  { %10065 = vst [vmem:[#allocation121_spill] sm:$0xff] %v8922_v34  ;;  %5878 = vtanh.f32 %v3992_v40  ;;  %v4008_v34 = vmul.f32 0.5, %v5859_v21  ;;  %v4013_v54 = vadd.f32 0.5, %v4009_v29 }
 0x9f0   :  { %v5869_v9 = vpop.eup %5868  ;;  %5880 = vtanh.f32 %v3991_v17  ;;  %v4036_v56 = vmul.f32 0.5, %v3996_v35  ;;  %v4035_v40 = vmul.f32 0.5, %v3995_v12  ;;  %v4053_v12 = vmul.f32 %v4029_v4, %v8541_v23 }
 0x9f1   :  { %v5871_v58 = vpop.eup %5870  ;;  %v4024_v32 = vmul.f32 0.5, %v5869_v9  ;;  %v4012_v24 = vadd.f32 0.5, %v4008_v34  ;;  %v4054_v9 = vmul.f32 %v4030_v8, %v8536_v11 }
 0x9f2   :  { %v4007_v20 = vmul.f32 0.5, %v5871_v58 }
 0x9f3   :  { %v4028_v17 = vadd.f32 0.5, %v4024_v32 }
 0x9f4   :  { %v4011_v58 = vadd.f32 0.5, %v4007_v20 }
 0x9f5   :  { %v3977_v2 = vpop.f32.mrf.mxu2 }
 0x9f6   :  { %v3997_v57 = vadd.f32 %v3977_v2, %v3042_v39  ;;  %5311 = vmatmul.msk.f32.gmra.mxu3 %vm795_vm2, %v8734_v13  ;;  %v5873_v39 = vpop.eup %5872  ;;  %v8938_v5 = vpop.f32.mrf.mxu3 }
 0x9f7   :  { %v5875_v13 = vpop.eup %5874  ;;  %v4023_v7 = vmul.f32 0.5, %v5873_v39 }
 0x9f8   :  { %v4037_v2 = vmul.f32 0.5, %v3997_v57  ;;  %v5877_v60 = vpop.eup %5876  ;;  %v4058_v57 = vmul.f32 %v5875_v13, %v4014_v19 }
 0x9f9   :  { %v5879_v36 = vpop.eup %5878  ;;  %v4057_v38 = vmul.f32 %v5877_v60, %v4013_v54  ;;  %v4027_v29 = vadd.f32 0.5, %v4023_v7 }
 0x9fa   :  { %5882 = vtanh.f32 %v4037_v2  ;;  %v5881_v35 = vpop.eup %5880  ;;  %v4056_v39 = vmul.f32 %v5879_v36, %v4012_v24  ;;  %v8944_v47 = vadd.f32 %v4058_v57, %v4054_v9 }
 0x9fb   :  { %5884 = vtanh.f32 %v4036_v56  ;;  %v4055_v34 = vmul.f32 %v5881_v35, %v4011_v58  ;;  %v8947_v32 = vadd.f32 %v4057_v38, %v4053_v12  ;;  %v4051_v13 = vmul.f32 %v4027_v29, %v8551_v55 }
 0x9fc   :  { %5886 = vtanh.f32 %v4035_v40 }
 0x9fd   :  { %v3980_v6 = vpop.f32.mrf.mxu2  ;;  %v8957_v60 = vadd.f32 %v4055_v34, %v4051_v13 }
 0x9fe   :  { %v3998_v21 = vadd.f32 %v3980_v6, %v3045_v18  ;;  %5312 = vmatmul.msk.f32.gmra.mxu3 %vm795_vm2, %v8762_v16  ;;  %v4052_v16 = vmul.f32 %v4028_v17, %v8548_v44  ;;  %v8955_v19 = vpop.f32.mrf.mxu3 }
 0xa00   :  { %v4038_v51 = vmul.f32 0.5, %v3998_v21  ;;  %v5883_v2 = vpop.eup %5882  ;;  %v8950_v18 = vadd.f32 %v4056_v39, %v4052_v16 }
 0xa01   :  { %v5885_v11 = vpop.eup %5884  ;;  %v4045_v8 = vmul.f32 0.5, %v5883_v2  ;;  %v10088_v2 = vld [vmem:[#allocation71_spill] sm:$0xff] }
 0xa02   :  { %5888 = vtanh.f32 %v4038_v51  ;;  %v5887_v23 = vpop.eup %5886  ;;  %v4044_v44 = vmul.f32 0.5, %v5885_v11 }
 0xa03   :  { %5890 = vtanh.f32 %v8944_v47  ;;  %v4043_v55 = vmul.f32 0.5, %v5887_v23  ;;  %v4049_v54 = vadd.f32 0.5, %v4045_v8 }
 0xa04   :  { %5892 = vtanh.f32 %v8947_v32 }
 0xa05   :  { %5894 = vtanh.f32 %v8950_v18  ;;  %v4047_v57 = vadd.f32 0.5, %v4043_v55 }
 0xa06   :  { %5313 = vmatmul.msk.f32.gmra.mxu3 %vm795_vm2, %v8782_v37  ;;  %5896 = vtanh.f32 %v8957_v60  ;;  %v4048_v37 = vadd.f32 0.5, %v4044_v44  ;;  %v8964_v24 = vpop.f32.mrf.mxu3 }
 0xa08   :  { %v5889_v56 = vpop.eup %5888 }
 0xa09   :  { %v4046_v20 = vmul.f32 0.5, %v5889_v56  ;;  %v5891_v40 = vpop.eup %5890 }
 0xa0a   :  { %v5893_v4 = vpop.eup %5892 }
 0xa0b   :  { %v4050_v7 = vadd.f32 0.5, %v4046_v20  ;;  %v4069_v21 = vmul.f32 %v5893_v4, %v4049_v54  ;;  %v5895_v36 = vpop.eup %5894  ;;  %v10091_v4 = vld [vmem:[#allocation79_spill] sm:$0xff] }
 0xa0c   :  { %v4068_v17 = vmul.f32 %v5895_v36, %v4048_v37  ;;  %v5897_v9 = vpop.eup %5896  ;;  %v10090_v37 = vld [vmem:[#allocation113_spill] sm:$0xff]  ;;  %v10093_v36 = vld [vmem:[#allocation78_spill] sm:$0xff] }
 0xa0d   :  { %v4070_v6 = vmul.f32 %v5891_v40, %v4050_v7  ;;  %v4067_v38 = vmul.f32 %v5897_v9, %v4047_v57  ;;  %v10092_v57 = vld [vmem:[#allocation112_spill] sm:$0xff] }
 0xa0e   :  { %5314 = vmatmul.msk.f32.gmra.mxu3 %vm795_vm2, %v8804_v26 }
 0xa0f   :  { %4099 = vmatpush.msra.mxu3 %v4070_v6  ;;  %v3068_v6 = vadd.f32 %v10090_v37, %v8012_v48 }
 0xa11   :  { %4100 = vmatpush.msra.mxu3 %v4069_v21  ;;  %v3074_v21 = vadd.f32 %v10092_v57, %v10091_v4 }
 0xa13   :  { %4101 = vmatpush.msra.mxu3 %v4068_v17  ;;  %v10094_v17 = vld [vmem:[#allocation64_spill] sm:$0xff] }
 0xa14   :  { %v3086_v9 = vadd.f32 %v10094_v17, %v10093_v36 }
 0xa15   :  { %4102 = vmatpush.msra.mxu3 %v4067_v38 }
 0xa16   :  { %5363 = vmatmul.msk.f32.vlgmr.msra.gmra.mxu3 %vm795_vm2, %v8573_v61 }
 0xa19   :  { %v8968_v51 = vpop.f32.mrf.mxu3 }
 0xa1a   :  { %10073 = vst [vmem:[#allocation68_spill] sm:$0xff] %v8968_v51 }
 0xa1e   :  { %5364 = vmatmul.msk.f32.gmra.mxu3 %vm795_vm2, %v8584_v22 }
 0xa21   :  { %v8972_v26 = vpop.f32.mrf.mxu3 }
 0xa22   :  { %10074 = vst [vmem:[#allocation31_spill] sm:$0xff] %v8972_v26 }
 0xa26   :  { %5365 = vmatmul.msk.f32.gmra.mxu3 %vm795_vm2, %v8595_v30 }
 0xa29   :  { %v8976_v35 = vpop.f32.mrf.mxu3 }
 0xa2a   :  { %10075 = vst [vmem:[#allocation118_spill] sm:$0xff] %v8976_v35 }
 0xa2e   :  { %5366 = vmatmul.msk.f32.gmra.mxu3 %vm795_vm2, %v8608_v49 }
 0xa31   :  { %v8980_v58 = vpop.f32.mrf.mxu3 }
 0xa32   :  { %10076 = vst [vmem:[#allocation119_spill] sm:$0xff] %v8980_v58 }
 0xa36   :  { %5367 = vmatmul.msk.f32.gmra.mxu3 %vm795_vm2, %v8621_v52 }
 0xa39   :  { %v8984_v61 = vpop.f32.mrf.mxu3 }
 0xa3a   :  { %10077 = vst [vmem:[#allocation33_spill] sm:$0xff] %v8984_v61 }
 0xa3e   :  { %5368 = vmatmul.msk.f32.gmra.mxu3 %vm795_vm2, %v8632_v63 }
 0xa41   :  { %v8988_v22 = vpop.f32.mrf.mxu3 }
 0xa42   :  { %10078 = vst [vmem:[#allocation120_spill] sm:$0xff] %v8988_v22  ;;  %v10099_v22 = vld [vmem:[#allocation69_spill] sm:$0xff] }
 0xa43   :  { %v3065_v57 = vadd.f32 %v10099_v22, %v8022_v25 }
 0xa46   :  { %5369 = vmatmul.msk.f32.gmra.mxu3 %vm795_vm2, %v8643_v59 }
 0xa49   :  { %v8992_v30 = vpop.f32.mrf.mxu3 }
 0xa4a   :  { %10079 = vst [vmem:[#allocation117_spill] sm:$0xff] %v8992_v30 }
 0xa4e   :  { %5370 = vmatmul.msk.f32.gmra.mxu3 %vm795_vm2, %v8660_v53 }
 0xa51   :  { %v8996_v49 = vpop.f32.mrf.mxu3 }
 0xa52   :  { %10080 = vst [vmem:[#allocation122_spill] sm:$0xff] %v8996_v49 }
 0xa56   :  { %5371 = vmatmul.msk.f32.gmra.mxu3 %vm795_vm2, %v8677_v62 }
 0xa59   :  { %v9000_v52 = vpop.f32.mrf.mxu3 }
 0xa5a   :  { %10081 = vst [vmem:[#allocation50_spill] sm:$0xff] %v9000_v52  ;;  %v10098_v52 = vld [vmem:[#allocation80_spill] sm:$0xff] }
 0xa5b   :  { %v3080_v30 = vadd.f32 %v10098_v52, %v8020_v27 }
 0xa5e   :  { %5372 = vmatmul.msk.f32.gmra.mxu3 %vm795_vm2, %v8690_v46 }
 0xa61   :  { %v9004_v63 = vpop.f32.mrf.mxu3 }
 0xa62   :  { %10082 = vst [vmem:[#allocation81_spill] sm:$0xff] %v9004_v63 }
 0xa66   :  { %5373 = vmatmul.msk.f32.gmra.mxu3 %vm795_vm2, %v8706_v41 }
 0xa69   :  { %v9008_v59 = vpop.f32.mrf.mxu3 }
 0xa6a   :  { %10083 = vst [vmem:[#allocation47_spill] sm:$0xff] %v9008_v59  ;;  %v10097_v59 = vld [vmem:[#allocation21_spill] sm:$0xff] }
 0xa6b   :  { %v3083_v63 = vadd.f32 %v10097_v59, %v7999_v15 }
 0xa6e   :  { %5374 = vmatmul.msk.f32.gmra.mxu3 %vm795_vm2, %v8725_v14 }
 0xa71   :  { %v9012_v53 = vpop.f32.mrf.mxu3 }
 0xa72   :  { %10084 = vst [vmem:[#allocation18_spill] sm:$0xff] %v9012_v53 }
 0xa76   :  { %5375 = vmatmul.msk.f32.gmra.mxu3 %vm795_vm2, %v8741_v28 }
 0xa79   :  { %v9016_v29 = vpop.f32.mrf.mxu3 }
 0xa7a   :  { %10085 = vst [vmem:[#allocation52_spill] sm:$0xff] %v9016_v29  ;;  %v10095_v29 = vld [vmem:[#allocation77_spill] sm:$0xff] }
 0xa7e   :  { %5376 = vmatmul.msk.f32.gmra.mxu3 %vm795_vm2, %v8769_v42 }
 0xa81   :  { %v9020_v12 = vpop.f32.mrf.mxu3 }
 0xa82   :  { %10086 = vst [vmem:[#allocation28_spill] sm:$0xff] %v9020_v12  ;;  %v10096_v12 = vld [vmem:[#allocation29_spill] sm:$0xff] }
 0xa86   :  { %5377 = vmatmul.msk.f32.gmra.mxu3 %vm795_vm2, %v8789_v0 }
 0xa89   :  { %v9024_v39 = vpop.f32.mrf.mxu3 }
 0xa8a   :  { %10087 = vst [vmem:[#allocation49_spill] sm:$0xff] %v9024_v39  ;;  %v3071_v39 = vadd.f32 %v10096_v12, %v10095_v29 }
 0xa8e   :  { %5378 = vmatmul.msk.f32.gmra.mxu3 %vm795_vm2, %v10088_v2 }
 0xa91   :  { %v9028_v16 = vpop.f32.mrf.mxu3 }
 0xa92   :  { %10089 = vst [vmem:[#allocation7_spill] sm:$0xff] %v9028_v16 }
 0xa99   :  { %v4104_v34 = vpop.f32.mrf.mxu3 }
 0xa9a   :  { %v4152_v12 = vadd.f32 %v4104_v34, %v3065_v57 }
 0xa9c   :  { %v4168_v22 = vmul.f32 0.5, %v4152_v12 }
 0xaa1   :  { %v4107_v11 = vpop.f32.mrf.mxu3 }
 0xaa2   :  { %v4153_v38 = vadd.f32 %v4107_v11, %v3068_v6  ;;  %v10100_v11 = vld [vmem:[#allocation22_spill] sm:$0xff] }
 0xaa3   :  { %v3077_v6 = vadd.f32 %v10100_v11, %v9967_v50 }
 0xaa4   :  { %v4169_v61 = vmul.f32 0.5, %v4153_v38  ;;  %v10104_v38 = vld [vmem:[#allocation66_spill] sm:$0xff] }
 0xaa6   :  { %5898 = vtanh.f32 %v4169_v61  ;;  %v10102_v61 = vld [vmem:[#allocation65_spill] sm:$0xff] }
 0xaa9   :  { %v4110_v13 = vpop.f32.mrf.mxu3 }
 0xaaa   :  { %v4154_v37 = vadd.f32 %v4110_v13, %v3071_v39  ;;  %v3098_v39 = vadd.f32 %v8909_v10, %v9970_v43  ;;  %v10101_v13 = vld [vmem:[#allocation116_spill] sm:$0xff]  ;;  %v3107_v10 = vadd.f32 %v8955_v19, %v10066_v45 }
 0xab1   :  { %v4113_v23 = vpop.f32.mrf.mxu3 }
 0xab2   :  { %v4155_v53 = vadd.f32 %v4113_v23, %v3074_v21  ;;  %v4170_v21 = vmul.f32 0.5, %v4154_v37  ;;  %v3104_v37 = vadd.f32 %v8938_v5, %v10104_v38 }
 0xab4   :  { %v4171_v17 = vmul.f32 0.5, %v4155_v53  ;;  %v3095_v53 = vadd.f32 %v10101_v13, %v10061_v31 }
 0xab6   :  { %5900 = vtanh.f32 %v4171_v17 }
 0xab9   :  { %v4116_v8 = vpop.f32.mrf.mxu3 }
 0xaba   :  { %v4156_v26 = vadd.f32 %v4116_v8, %v3077_v6  ;;  %v10105_v6 = vld [vmem:[#allocation20_spill] sm:$0xff] }
 0xac1   :  { %v4119_v56 = vpop.f32.mrf.mxu3 }
 0xac2   :  { %v4157_v35 = vadd.f32 %v4119_v56, %v3080_v30 }
 0xac4   :  { %v4185_v52 = vmul.f32 0.5, %v4157_v35 }
 0xac9   :  { %v4122_v44 = vpop.f32.mrf.mxu3 }
 0xaca   :  { %v4158_v58 = vadd.f32 %v4122_v44, %v3083_v63  ;;  %v4184_v63 = vmul.f32 0.5, %v4156_v26  ;;  %v10103_v26 = vld [vmem:[#allocation73_spill] sm:$0xff] }
 0xacb   :  { %v3089_v56 = vadd.f32 %v10103_v26, %v10067_v3 }
 0xacc   :  { %v4186_v59 = vmul.f32 0.5, %v4158_v58  ;;  %v3092_v58 = vadd.f32 %v10102_v61, %v10063_v33  ;;  %v3110_v61 = vadd.f32 %v8964_v24, %v10072_v1 }
 0xad1   :  { %v4125_v20 = vpop.f32.mrf.mxu3 }
 0xad2   :  { %v4159_v49 = vadd.f32 %v4125_v20, %v3086_v9 }
 0xad4   :  { %v4187_v23 = vmul.f32 0.5, %v4159_v49  ;;  %v5899_v49 = vpop.eup %5898 }
 0xad5   :  { %v5901_v35 = vpop.eup %5900  ;;  %v4177_v5 = vmul.f32 0.5, %v5899_v49 }
 0xad6   :  { %5902 = vtanh.f32 %v4187_v23  ;;  %v4179_v23 = vmul.f32 0.5, %v5901_v35 }
 0xad7   :  { %5904 = vtanh.f32 %v4170_v21  ;;  %v4181_v49 = vadd.f32 0.5, %v4177_v5 }
 0xad8   :  { %5906 = vtanh.f32 %v4186_v59 }
 0xad9   :  { %v4128_v55 = vpop.f32.mrf.mxu3  ;;  %5908 = vtanh.f32 %v4185_v52 }
 0xada   :  { %5910 = vtanh.f32 %v4168_v22  ;;  %v4160_v12 = vadd.f32 %v4128_v55, %v3089_v56  ;;  %v4183_v55 = vadd.f32 0.5, %v4179_v23 }
 0xadb   :  { %5912 = vtanh.f32 %v4184_v63 }
 0xadc   :  { %v5903_v8 = vpop.eup %5902 }
 0xadd   :  { %v4195_v21 = vmul.f32 0.5, %v5903_v8 }
 0xae1   :  { %v4131_v54 = vpop.f32.mrf.mxu3 }
 0xae2   :  { %v4161_v44 = vadd.f32 %v4131_v54, %v3092_v58  ;;  %v4199_v58 = vadd.f32 0.5, %v4195_v21 }
 0xae9   :  { %v4134_v7 = vpop.f32.mrf.mxu3 }
 0xaea   :  { %v4162_v34 = vadd.f32 %v4134_v7, %v3095_v53  ;;  %v10106_v7 = vld [vmem:[#allocation121_spill] sm:$0xff] }
 0xaeb   :  { %v3101_v17 = vadd.f32 %v10106_v7, %v10105_v6 }
 0xaf1   :  { %v4137_v40 = vpop.f32.mrf.mxu3 }
 0xaf2   :  { %v4163_v30 = vadd.f32 %v4137_v40, %v3098_v39  ;;  %v5905_v40 = vpop.eup %5904 }
 0xaf3   :  { %v5907_v11 = vpop.eup %5906  ;;  %v4178_v39 = vmul.f32 0.5, %v5905_v40 }
 0xaf4   :  { %5914 = vtanh.f32 %v4163_v30  ;;  %v5909_v19 = vpop.eup %5908  ;;  %v4194_v63 = vmul.f32 0.5, %v5907_v11 }
 0xaf5   :  { %5916 = vtanh.f32 %v4162_v34  ;;  %v5911_v52 = vpop.eup %5910  ;;  %v4193_v30 = vmul.f32 0.5, %v5909_v19 }
 0xaf6   :  { %5918 = vtanh.f32 %v4161_v44  ;;  %v5913_v22 = vpop.eup %5912 }
 0xaf7   :  { %5920 = vtanh.f32 %v4160_v12  ;;  %v4192_v8 = vmul.f32 0.5, %v5913_v22 }
 0xaf9   :  { %v4140_v16 = vpop.f32.mrf.mxu3  ;;  %v4196_v12 = vadd.f32 0.5, %v4192_v8 }
 0xafa   :  { %v4164_v54 = vadd.f32 %v4140_v16, %v3101_v17  ;;  %v5915_v53 = vpop.eup %5914  ;;  %v4198_v16 = vadd.f32 0.5, %v4194_v63 }
 0xafb   :  { %v5917_v35 = vpop.eup %5916  ;;  %v4227_v44 = vmul.f32 %v5915_v53, %v4183_v55  ;;  %v4220_v22 = vmul.f32 %v4196_v12, %v8957_v60 }
 0xafc   :  { %v4204_v26 = vmul.f32 0.5, %v4164_v54  ;;  %v5919_v40 = vpop.eup %5918  ;;  %v4222_v19 = vmul.f32 %v4198_v16, %v8947_v32 }
 0xafd   :  { %v5921_v7 = vpop.eup %5920  ;;  %v4225_v23 = vmul.f32 %v5919_v40, %v4181_v49  ;;  %v9088_v40 = vld [vmem:[%s9481_s5 + $0x8] sm:$0xff]  ;;  %v9095_v49 = vld [vmem:[%s9481_s5 + $0x10] sm:$0xff] }
 0xb01   :  { %v4143_v20 = vpop.f32.mrf.mxu3 }
 0xb02   :  { %v4165_v59 = vadd.f32 %v4143_v20, %v3104_v37  ;;  %v4182_v20 = vadd.f32 0.5, %v4178_v39  ;;  %v4197_v37 = vadd.f32 0.5, %v4193_v30 }
 0xb04   :  { %v4205_v34 = vmul.f32 0.5, %v4165_v59  ;;  %v4226_v11 = vmul.f32 %v5917_v35, %v4182_v20 }
 0xb06   :  { %v9067_v54 = vadd.f32 %v4226_v11, %v4222_v19  ;;  %v9116_v11 = vld [vmem:[%s9481_s5 + $0x28] sm:$0xff] }
 0xb09   :  { %v4146_v9 = vpop.f32.mrf.mxu3 }
 0xb0a   :  { %v4166_v57 = vadd.f32 %v4146_v9, %v3107_v10  ;;  %v4176_v10 = vmul.f32 0.5, %v5911_v52  ;;  %v4221_v52 = vmul.f32 %v4197_v37, %v8950_v18  ;;  %v9102_v37 = vld [vmem:[%s9481_s5 + $0x18] sm:$0xff] }
 0xb0c   :  { %v4206_v13 = vmul.f32 0.5, %v4166_v57  ;;  %v4223_v57 = vmul.f32 %v4199_v58, %v8944_v47  ;;  %v4180_v17 = vadd.f32 0.5, %v4176_v10  ;;  %v9070_v63 = vadd.f32 %v4225_v23, %v4221_v52 }
 0xb0e   :  { %5922 = vtanh.f32 %v4206_v13  ;;  %v9064_v21 = vadd.f32 %v4227_v44, %v4223_v57  ;;  %v4224_v39 = vmul.f32 %v5921_v7, %v4180_v17  ;;  %v9109_v57 = vld [vmem:[%s9481_s5 + $0x20] sm:$0xff]  ;;  %v9130_v7 = vld [vmem:[%s9481_s5 + $0x38] sm:$0xff] }
 0xb0f   :  { %5924 = vtanh.f32 %v4205_v34 }
 0xb10   :  { %5926 = vtanh.f32 %v4204_v26  ;;  %v9073_v5 = vadd.f32 %v4224_v39, %v4220_v22 }
 0xb11   :  { %v4149_v56 = vpop.f32.mrf.mxu3 }
 0xb12   :  { %v4167_v9 = vadd.f32 %v4149_v56, %v3110_v61 }
 0xb14   :  { %v4207_v24 = vmul.f32 0.5, %v4167_v9  ;;  %v5923_v59 = vpop.eup %5922  ;;  %v9081_v9 = vld [vmem:[%s9481_s5] sm:$0xff] }
 0xb15   :  { %v5925_v47 = vpop.eup %5924  ;;  %v4214_v53 = vmul.f32 0.5, %v5923_v59 }
 0xb16   :  { %5928 = vtanh.f32 %v4207_v24  ;;  %v5927_v13 = vpop.eup %5926  ;;  %v4213_v30 = vmul.f32 0.5, %v5925_v47  ;;  %v9123_v24 = vld [vmem:[%s9481_s5 + $0x30] sm:$0xff] }
 0xb17   :  { %5930 = vtanh.f32 %v9064_v21  ;;  %v4212_v18 = vmul.f32 0.5, %v5927_v13  ;;  %v4218_v55 = vadd.f32 0.5, %v4214_v53  ;;  %v10110_v13 = vld [vmem:[#allocation24_spill] sm:$0xff] }
 0xb18   :  { %5932 = vtanh.f32 %v9067_v54  ;;  %v4217_v60 = vadd.f32 0.5, %v4213_v30  ;;  %v3133_v53 = vadd.f32 %v10110_v13, %v8012_v48 }
 0xb19   :  { %5934 = vtanh.f32 %v9070_v63  ;;  %v4216_v20 = vadd.f32 0.5, %v4212_v18 }
 0xb1a   :  { %5936 = vtanh.f32 %v9073_v5 }
 0xb1c   :  { %v5929_v32 = vpop.eup %5928 }
 0xb1d   :  { %v4215_v61 = vmul.f32 0.5, %v5929_v32  ;;  %v5931_v34 = vpop.eup %5930 }
 0xb1e   :  { %v5933_v10 = vpop.eup %5932 }
 0xb1f   :  { %v4219_v58 = vadd.f32 0.5, %v4215_v61  ;;  %v4238_v8 = vmul.f32 %v5933_v10, %v4218_v55  ;;  %v5935_v26 = vpop.eup %5934 }
 0xb20   :  { %v4237_v56 = vmul.f32 %v5935_v26, %v4217_v60  ;;  %v5937_v16 = vpop.eup %5936 }
 0xb21   :  { %v4239_v35 = vmul.f32 %v5931_v34, %v4219_v58  ;;  %v4236_v44 = vmul.f32 %v5937_v16, %v4216_v20  ;;  %v10111_v34 = vld [vmem:[#allocation26_spill] sm:$0xff] }
 0xb22   :  { %v3154_v60 = vadd.f32 %v10111_v34, %v10067_v3 }
 0xb23   :  { %4268 = vmatpush.msrb.mxu0 %v4239_v35 }
 0xb25   :  { %4269 = vmatpush.msrb.mxu0 %v4238_v8 }
 0xb27   :  { %4270 = vmatpush.msrb.mxu0 %v4237_v56 }
 0xb29   :  { %4271 = vmatpush.msrb.mxu0 %v4236_v44  ;;  %v10112_v44 = vld [vmem:[#allocation30_spill] sm:$0xff] }
 0xb2a   :  { %5379 = vmatmul.msk.f32.vlgmr.msrb.gmra.mxu0 %vm795_vm2, %v9081_v9 }
 0xb32   :  { %5380 = vmatmul.msk.f32.gmra.mxu0 %vm795_vm2, %v9088_v40 }
 0xb3a   :  { %5381 = vmatmul.msk.f32.gmra.mxu0 %vm795_vm2, %v9095_v49 }
 0xb42   :  { %5382 = vmatmul.msk.f32.gmra.mxu0 %vm795_vm2, %v9102_v37 }
 0xb4a   :  { %5383 = vmatmul.msk.f32.gmra.mxu0 %vm795_vm2, %v9109_v57 }
 0xb52   :  { %5384 = vmatmul.msk.f32.gmra.mxu0 %vm795_vm2, %v9116_v11 }
 0xb5a   :  { %5385 = vmatmul.msk.f32.gmra.mxu0 %vm795_vm2, %v9123_v24 }
 0xb62   :  { %5386 = vmatmul.msk.f32.gmra.mxu0 %vm795_vm2, %v9130_v7 }
 0xb6a   :  { %5387 = vmatmul.msk.f32.gmra.mxu0 %vm795_vm2, %v8677_v62 }
 0xb72   :  { %5388 = vmatmul.msk.f32.gmra.mxu0 %vm795_vm2, %v8690_v46 }
 0xb7a   :  { %5389 = vmatmul.msk.f32.gmra.mxu0 %vm795_vm2, %v8706_v41 }
 0xb82   :  { %5390 = vmatmul.msk.f32.gmra.mxu0 %vm795_vm2, %v8725_v14  ;;  %v10107_v14 = vld [vmem:[#allocation39_spill] sm:$0xff] }
 0xb83   :  { %v3142_v23 = vadd.f32 %v10107_v14, %v9967_v50 }
 0xb8a   :  { %5391 = vmatmul.msk.f32.gmra.mxu0 %vm795_vm2, %v8741_v28  ;;  %v10108_v28 = vld [vmem:[#allocation27_spill] sm:$0xff] }
 0xb8b   :  { %v3130_v52 = vadd.f32 %v10108_v28, %v8022_v25 }
 0xb92   :  { %5392 = vmatmul.msk.f32.gmra.mxu0 %vm795_vm2, %v8769_v42 }
 0xb9a   :  { %5393 = vmatmul.msk.f32.gmra.mxu0 %vm795_vm2, %v8789_v0  ;;  %v10109_v0 = vld [vmem:[#allocation41_spill] sm:$0xff] }
 0xb9b   :  { %v3145_v22 = vadd.f32 %v10109_v0, %v8020_v27 }
 0xba2   :  { %5394 = vmatmul.msk.f32.gmra.mxu0 %vm795_vm2, %v10088_v2 }
 0xba7   :  { %v4273_v62 = vpop.f32.mrf.mxu0 }
 0xba8   :  { %v4321_v39 = vadd.f32 %v4273_v62, %v3130_v52  ;;  %v3157_v62 = vadd.f32 %v10112_v44, %v10063_v33 }
 0xbaa   :  { %v4337_v2 = vmul.f32 0.5, %v4321_v39 }
 0xbaf   :  { %v4276_v46 = vpop.f32.mrf.mxu0 }
 0xbb0   :  { %v4322_v61 = vadd.f32 %v4276_v46, %v3133_v53 }
 0xbb2   :  { %v4338_v55 = vmul.f32 0.5, %v4322_v61 }
 0xbb7   :  { %v4279_v17 = vpop.f32.mrf.mxu0 }
 0xbbf   :  { %v4282_v12 = vpop.f32.mrf.mxu0 }
 0xbc7   :  { %v4285_v41 = vpop.f32.mrf.mxu0 }
 0xbc8   :  { %v4325_v42 = vadd.f32 %v4285_v41, %v3142_v23 }
 0xbca   :  { %v4353_v47 = vmul.f32 0.5, %v4325_v42 }
 0xbcc   :  { %5938 = vtanh.f32 %v4353_v47 }
 0xbcd   :  { %5940 = vtanh.f32 %v4337_v2 }
 0xbcf   :  { %v4288_v19 = vpop.f32.mrf.mxu0 }
 0xbd0   :  { %v4326_v30 = vadd.f32 %v4288_v19, %v3145_v22 }
 0xbd2   :  { %v4354_v18 = vmul.f32 0.5, %v4326_v30  ;;  %v5939_v58 = vpop.eup %5938 }
 0xbd3   :  { %v5941_v10 = vpop.eup %5940  ;;  %v4361_v8 = vmul.f32 0.5, %v5939_v58 }
 0xbd4   :  { %5942 = vtanh.f32 %v4354_v18  ;;  %v4345_v26 = vmul.f32 0.5, %v5941_v10 }
 0xbd5   :  { %5944 = vtanh.f32 %v4338_v55  ;;  %v4365_v56 = vadd.f32 0.5, %v4361_v8  ;;  %v10113_v55 = vld [vmem:[#allocation40_spill] sm:$0xff]  ;;  %v10116_v8 = vld [vmem:[#allocation53_spill] sm:$0xff] }
 0xbd6   :  { %v4349_v41 = vadd.f32 0.5, %v4345_v26  ;;  %v3139_v58 = vadd.f32 %v10113_v55, %v10091_v4  ;;  %v3148_v26 = vadd.f32 %v10116_v8, %v7999_v15 }
 0xbd7   :  { %v4291_v59 = vpop.f32.mrf.mxu0  ;;  %v4389_v28 = vmul.f32 %v4365_v56, %v9073_v5  ;;  %v10114_v5 = vld [vmem:[#allocation57_spill] sm:$0xff] }
 0xbd8   :  { %v3151_v34 = vadd.f32 %v10114_v5, %v10093_v36 }
 0xbda   :  { %v5943_v16 = vpop.eup %5942 }
 0xbdb   :  { %v5945_v46 = vpop.eup %5944  ;;  %v4362_v52 = vmul.f32 0.5, %v5943_v16  ;;  %v4327_v16 = vadd.f32 %v4291_v59, %v3148_v26 }
 0xbdc   :  { %v4346_v39 = vmul.f32 0.5, %v5945_v46 }
 0xbdd   :  { %v4366_v0 = vadd.f32 0.5, %v4362_v52 }
 0xbde   :  { %v4350_v22 = vadd.f32 0.5, %v4346_v39 }
 0xbdf   :  { %v4294_v32 = vpop.f32.mrf.mxu0  ;;  %v4390_v53 = vmul.f32 %v4366_v0, %v9070_v63 }
 0xbe0   :  { %v4328_v56 = vadd.f32 %v4294_v32, %v3151_v34 }
 0xbe7   :  { %v4297_v35 = vpop.f32.mrf.mxu0 }
 0xbe8   :  { %v4329_v20 = vadd.f32 %v4297_v35, %v3154_v60  ;;  %v10115_v35 = vld [vmem:[#allocation36_spill] sm:$0xff] }
 0xbe9   :  { %v3136_v10 = vadd.f32 %v10115_v35, %v10095_v29 }
 0xbea   :  { %5946 = vtanh.f32 %v4329_v20  ;;  %v4324_v20 = vadd.f32 %v4282_v12, %v3139_v58  ;;  %v10121_v58 = vld [vmem:[#allocation62_spill] sm:$0xff] }
 0xbeb   :  { %v4323_v63 = vadd.f32 %v4279_v17, %v3136_v10  ;;  %v10119_v17 = vld [vmem:[#allocation72_spill] sm:$0xff]  ;;  %v3166_v5 = vadd.f32 %v10121_v58, %v10105_v6 }
 0xbec   :  { %v4340_v44 = vmul.f32 0.5, %v4324_v20  ;;  %v3172_v59 = vadd.f32 %v10119_v17, %v10066_v45 }
 0xbed   :  { %v4339_v46 = vmul.f32 0.5, %v4323_v63 }
 0xbef   :  { %v4300_v19 = vpop.f32.mrf.mxu0 }
 0xbf0   :  { %v5947_v14 = vpop.eup %5946  ;;  %v4330_v23 = vadd.f32 %v4300_v19, %v3157_v62  ;;  %v4356_v62 = vmul.f32 0.5, %v4328_v56  ;;  %v10122_v56 = vld [vmem:[#allocation63_spill] sm:$0xff] }
 0xbf1   :  { %v4393_v42 = vmul.f32 %v5947_v14, %v4349_v41  ;;  %v4355_v41 = vmul.f32 0.5, %v4327_v16  ;;  %v10117_v14 = vld [vmem:[#allocation12_spill] sm:$0xff]  ;;  %v3175_v63 = vadd.f32 %v10122_v56, %v10072_v1 }
 0xbf2   :  { %5948 = vtanh.f32 %v4330_v23  ;;  %v3163_v23 = vadd.f32 %v10117_v14, %v9970_v43 }
 0xbf3   :  { %v9163_v47 = vadd.f32 %v4393_v42, %v4389_v28  ;;  %5950 = vtanh.f32 %v4340_v44  ;;  %v10118_v28 = vld [vmem:[#allocation105_spill] sm:$0xff] }
 0xbf4   :  { %5952 = vtanh.f32 %v4356_v62  ;;  %v3160_v12 = vadd.f32 %v10118_v28, %v10061_v31 }
 0xbf5   :  { %5954 = vtanh.f32 %v4339_v46 }
 0xbf6   :  { %5956 = vtanh.f32 %v4355_v41 }
 0xbf7   :  { %v4303_v2 = vpop.f32.mrf.mxu0 }
 0xbf8   :  { %v5949_v13 = vpop.eup %5948  ;;  %v4331_v42 = vadd.f32 %v4303_v2, %v3160_v12 }
 0xbf9   :  { %v4394_v30 = vmul.f32 %v5949_v13, %v4350_v22  ;;  %v5951_v32 = vpop.eup %5950  ;;  %v10120_v13 = vld [vmem:[#allocation67_spill] sm:$0xff] }
 0xbfa   :  { %v5953_v39 = vpop.eup %5952  ;;  %v4348_v34 = vmul.f32 0.5, %v5951_v32 }
 0xbfb   :  { %v9166_v61 = vadd.f32 %v4394_v30, %v4390_v53  ;;  %v5955_v22 = vpop.eup %5954  ;;  %v3169_v53 = vadd.f32 %v10120_v13, %v10104_v38 }
 0xbfc   :  { %v5957_v55 = vpop.eup %5956  ;;  %v4347_v35 = vmul.f32 0.5, %v5955_v22  ;;  %v4352_v16 = vadd.f32 0.5, %v4348_v34 }
 0xbfd   :  { %v4363_v20 = vmul.f32 0.5, %v5957_v55 }
 0xbfe   :  { %v4351_v41 = vadd.f32 0.5, %v4347_v35 }
 0xbff   :  { %v4306_v18 = vpop.f32.mrf.mxu0  ;;  %v4367_v28 = vadd.f32 0.5, %v4363_v20 }
 0xc00   :  { %v4332_v52 = vadd.f32 %v4306_v18, %v3163_v23  ;;  %v4364_v18 = vmul.f32 0.5, %v5953_v39 }
 0xc01   :  { %v4391_v32 = vmul.f32 %v4367_v28, %v9067_v54 }
 0xc02   :  { %5958 = vtanh.f32 %v4332_v52  ;;  %v4368_v44 = vadd.f32 0.5, %v4364_v18 }
 0xc03   :  { %5960 = vtanh.f32 %v4331_v42 }
 0xc07   :  { %v4309_v60 = vpop.f32.mrf.mxu0 }
 0xc08   :  { %v4333_v10 = vadd.f32 %v4309_v60, %v3166_v5  ;;  %v5959_v26 = vpop.eup %5958 }
 0xc09   :  { %v5961_v46 = vpop.eup %5960  ;;  %v4396_v12 = vmul.f32 %v5959_v26, %v4352_v16  ;;  %v9224_v16 = vld [vmem:[%s9481_s5 + $0x48] sm:$0xff] }
 0xc0a   :  { %v4373_v14 = vmul.f32 0.5, %v4333_v10  ;;  %v4395_v60 = vmul.f32 %v5961_v46, %v4351_v41  ;;  %v9245_v46 = vld [vmem:[%s9481_s5 + $0x60] sm:$0xff]  ;;  %v9252_v41 = vld [vmem:[%s9481_s5 + $0x68] sm:$0xff] }
 0xc0c   :  { %v9192_v39 = vadd.f32 %v4395_v60, %v4391_v32  ;;  %v10123_v32 = vld [vmem:[#allocation34_spill] sm:$0xff] }
 0xc0f   :  { %v4312_v19 = vpop.f32.mrf.mxu0 }
 0xc10   :  { %v4334_v2 = vadd.f32 %v4312_v19, %v3169_v53  ;;  %v4392_v19 = vmul.f32 %v4368_v44, %v9064_v21  ;;  %v9231_v44 = vld [vmem:[%s9481_s5 + $0x50] sm:$0xff] }
 0xc12   :  { %v4374_v62 = vmul.f32 0.5, %v4334_v2  ;;  %v9190_v17 = vadd.f32 %v4396_v12, %v4392_v19 }
 0xc17   :  { %v4315_v0 = vpop.f32.mrf.mxu0 }
 0xc18   :  { %v4335_v30 = vadd.f32 %v4315_v0, %v3172_v59 }
 0xc1a   :  { %v4375_v8 = vmul.f32 0.5, %v4335_v30 }
 0xc1c   :  { %5962 = vtanh.f32 %v4375_v8 }
 0xc1d   :  { %5964 = vtanh.f32 %v4374_v62  ;;  %v9238_v62 = vld [vmem:[%s9481_s5 + $0x58] sm:$0xff] }
 0xc1e   :  { %5966 = vtanh.f32 %v4373_v14  ;;  %v9259_v14 = vld [vmem:[%s9481_s5 + $0x70] sm:$0xff] }
 0xc1f   :  { %v4318_v23 = vpop.f32.mrf.mxu0 }
 0xc20   :  { %v4336_v52 = vadd.f32 %v4318_v23, %v3175_v63  ;;  %v9217_v63 = vld [vmem:[%s9481_s5 + $0x40] sm:$0xff]  ;;  %v9266_v23 = vld [vmem:[%s9481_s5 + $0x78] sm:$0xff] }
 0xc22   :  { %v4376_v42 = vmul.f32 0.5, %v4336_v52  ;;  %v5963_v59 = vpop.eup %5962 }
 0xc23   :  { %v5965_v0 = vpop.eup %5964  ;;  %v4383_v13 = vmul.f32 0.5, %v5963_v59  ;;  %v3207_v59 = vadd.f32 %v10123_v32, %v9967_v50 }
 0xc24   :  { %5968 = vtanh.f32 %v4376_v42  ;;  %v5967_v22 = vpop.eup %5966  ;;  %v4382_v21 = vmul.f32 0.5, %v5965_v0 }
 0xc25   :  { %5970 = vtanh.f32 %v9190_v17  ;;  %v4381_v55 = vmul.f32 0.5, %v5967_v22  ;;  %v4387_v54 = vadd.f32 0.5, %v4383_v13  ;;  %v10124_v22 = vld [vmem:[#allocation123_spill] sm:$0xff] }
 0xc26   :  { %5972 = vtanh.f32 %v9192_v39  ;;  %v4386_v34 = vadd.f32 0.5, %v4382_v21  ;;  %v3195_v13 = vadd.f32 %v10124_v22, %v8022_v25 }
 0xc27   :  { %5974 = vtanh.f32 %v9166_v61  ;;  %v4385_v35 = vadd.f32 0.5, %v4381_v55  ;;  %v10125_v55 = vld [vmem:[#allocation38_spill] sm:$0xff] }
 0xc28   :  { %5976 = vtanh.f32 %v9163_v47 }
 0xc2a   :  { %v5969_v53 = vpop.eup %5968 }
 0xc2b   :  { %v4384_v30 = vmul.f32 0.5, %v5969_v53  ;;  %v5971_v5 = vpop.eup %5970 }
 0xc2c   :  { %v5973_v2 = vpop.eup %5972 }
 0xc2d   :  { %v4388_v58 = vadd.f32 0.5, %v4384_v30  ;;  %v4407_v10 = vmul.f32 %v5973_v2, %v4387_v54  ;;  %v5975_v20 = vpop.eup %5974  ;;  %v3210_v54 = vadd.f32 %v10125_v55, %v8020_v27 }
 0xc2e   :  { %v4406_v8 = vmul.f32 %v5975_v20, %v4386_v34  ;;  %v5977_v26 = vpop.eup %5976 }
 0xc2f   :  { %v4408_v18 = vmul.f32 %v5971_v5, %v4388_v58  ;;  %v4405_v56 = vmul.f32 %v5977_v26, %v4385_v35  ;;  %v10126_v5 = vld [vmem:[#allocation13_spill] sm:$0xff]  ;;  %v10127_v26 = vld [vmem:[#allocation83_spill] sm:$0xff] }
 0xc30   :  { %v3198_v34 = vadd.f32 %v10126_v5, %v8012_v48 }
 0xc31   :  { %4437 = vmatpush.msrb.mxu1 %v4408_v18 }
 0xc33   :  { %4438 = vmatpush.msrb.mxu1 %v4407_v10 }
 0xc35   :  { %4439 = vmatpush.msrb.mxu1 %v4406_v8 }
 0xc37   :  { %4440 = vmatpush.msrb.mxu1 %v4405_v56  ;;  %v3219_v56 = vadd.f32 %v10127_v26, %v10067_v3 }
 0xc38   :  { %5395 = vmatmul.msk.f32.vlgmr.msrb.gmra.mxu1 %vm795_vm2, %v9081_v9 }
 0xc40   :  { %5396 = vmatmul.msk.f32.gmra.mxu1 %vm795_vm2, %v9088_v40 }
 0xc48   :  { %5397 = vmatmul.msk.f32.gmra.mxu1 %vm795_vm2, %v9095_v49 }
 0xc50   :  { %5398 = vmatmul.msk.f32.gmra.mxu1 %vm795_vm2, %v9102_v37 }
 0xc58   :  { %5399 = vmatmul.msk.f32.gmra.mxu1 %vm795_vm2, %v9109_v57 }
 0xc60   :  { %5400 = vmatmul.msk.f32.gmra.mxu1 %vm795_vm2, %v9116_v11 }
 0xc68   :  { %5401 = vmatmul.msk.f32.gmra.mxu1 %vm795_vm2, %v9123_v24 }
 0xc70   :  { %5402 = vmatmul.msk.f32.gmra.mxu1 %vm795_vm2, %v9130_v7 }
 0xc78   :  { %5403 = vmatmul.msk.f32.gmra.mxu1 %vm795_vm2, %v9217_v63 }
 0xc80   :  { %5404 = vmatmul.msk.f32.gmra.mxu1 %vm795_vm2, %v9224_v16 }
 0xc88   :  { %5405 = vmatmul.msk.f32.gmra.mxu1 %vm795_vm2, %v9231_v44 }
 0xc90   :  { %5406 = vmatmul.msk.f32.gmra.mxu1 %vm795_vm2, %v9238_v62 }
 0xc98   :  { %5407 = vmatmul.msk.f32.gmra.mxu1 %vm795_vm2, %v9245_v46 }
 0xca0   :  { %5408 = vmatmul.msk.f32.gmra.mxu1 %vm795_vm2, %v9252_v41 }
 0xca8   :  { %5409 = vmatmul.msk.f32.gmra.mxu1 %vm795_vm2, %v9259_v14 }
 0xcb0   :  { %5410 = vmatmul.msk.f32.gmra.mxu1 %vm795_vm2, %v9266_v23 }
 0xcb5   :  { %v4442_v28 = vpop.f32.mrf.mxu1 }
 0xcb6   :  { %v4490_v21 = vadd.f32 %v4442_v28, %v3195_v13 }
 0xcb8   :  { %v4506_v58 = vmul.f32 0.5, %v4490_v21 }
 0xcbd   :  { %v4445_v12 = vpop.f32.mrf.mxu1 }
 0xcbe   :  { %v4491_v35 = vadd.f32 %v4445_v12, %v3198_v34 }
 0xcc0   :  { %v4507_v20 = vmul.f32 0.5, %v4491_v35 }
 0xcc5   :  { %v4448_v52 = vpop.f32.mrf.mxu1 }
 0xccd   :  { %v4451_v19 = vpop.f32.mrf.mxu1 }
 0xcd5   :  { %v4454_v60 = vpop.f32.mrf.mxu1 }
 0xcd6   :  { %v4494_v53 = vadd.f32 %v4454_v60, %v3207_v59 }
 0xcd8   :  { %v4522_v30 = vmul.f32 0.5, %v4494_v53 }
 0xcda   :  { %5978 = vtanh.f32 %v4522_v30 }
 0xcdb   :  { %5980 = vtanh.f32 %v4506_v58 }
 0xcdd   :  { %v4457_v42 = vpop.f32.mrf.mxu1 }
 0xcde   :  { %v4495_v2 = vadd.f32 %v4457_v42, %v3210_v54  ;;  %v10128_v42 = vld [vmem:[#allocation45_spill] sm:$0xff] }
 0xcdf   :  { %v3222_v12 = vadd.f32 %v10128_v42, %v10063_v33 }
 0xce0   :  { %v4523_v10 = vmul.f32 0.5, %v4495_v2  ;;  %v5979_v8 = vpop.eup %5978 }
 0xce1   :  { %v5981_v60 = vpop.eup %5980  ;;  %v4530_v59 = vmul.f32 0.5, %v5979_v8 }
 0xce2   :  { %5982 = vtanh.f32 %v4523_v10  ;;  %v4514_v22 = vmul.f32 0.5, %v5981_v60 }
 0xce3   :  { %5984 = vtanh.f32 %v4507_v20  ;;  %v4534_v13 = vadd.f32 0.5, %v4530_v59 }
 0xce4   :  { %v4518_v30 = vadd.f32 0.5, %v4514_v22  ;;  %v10129_v22 = vld [vmem:[#allocation35_spill] sm:$0xff] }
 0xce5   :  { %v4460_v0 = vpop.f32.mrf.mxu1  ;;  %v4558_v5 = vmul.f32 %v4534_v13, %v9163_v47  ;;  %v3204_v42 = vadd.f32 %v10129_v22, %v10091_v4  ;;  %v10130_v47 = vld [vmem:[#allocation55_spill] sm:$0xff] }
 0xce6   :  { %v3216_v13 = vadd.f32 %v10130_v47, %v10093_v36 }
 0xce8   :  { %v5983_v53 = vpop.eup %5982 }
 0xce9   :  { %v5985_v21 = vpop.eup %5984  ;;  %v4531_v34 = vmul.f32 0.5, %v5983_v53 }
 0xcea   :  { %v4515_v35 = vmul.f32 0.5, %v5985_v21 }
 0xceb   :  { %v4535_v20 = vadd.f32 0.5, %v4531_v34 }
 0xcec   :  { %v4519_v8 = vadd.f32 0.5, %v4515_v35 }
 0xced   :  { %v4463_v18 = vpop.f32.mrf.mxu1 }
 0xcf5   :  { %v4466_v28 = vpop.f32.mrf.mxu1 }
 0xcf6   :  { %v4498_v32 = vadd.f32 %v4466_v28, %v3219_v56  ;;  %v4559_v28 = vmul.f32 %v4535_v20, %v9166_v61 }
 0xcf8   :  { %5986 = vtanh.f32 %v4498_v32 }
 0xcfd   :  { %v4469_v55 = vpop.f32.mrf.mxu1 }
 0xcfe   :  { %v5987_v54 = vpop.eup %5986  ;;  %v4499_v58 = vadd.f32 %v4469_v55, %v3222_v12  ;;  %v10131_v12 = vld [vmem:[#allocation37_spill] sm:$0xff]  ;;  %v10132_v55 = vld [vmem:[#allocation48_spill] sm:$0xff] }
 0xcff   :  { %v4562_v2 = vmul.f32 %v5987_v54, %v4518_v30  ;;  %v3201_v21 = vadd.f32 %v10131_v12, %v10095_v29  ;;  %v4493_v30 = vadd.f32 %v4451_v19, %v3204_v42  ;;  %v3213_v54 = vadd.f32 %v10132_v55, %v7999_v15 }
 0xd00   :  { %5988 = vtanh.f32 %v4499_v58  ;;  %v4497_v58 = vadd.f32 %v4463_v18, %v3216_v13 }
 0xd01   :  { %v9283_v10 = vadd.f32 %v4562_v2, %v4558_v5  ;;  %v4492_v61 = vadd.f32 %v4448_v52, %v3201_v21  ;;  %v4496_v5 = vadd.f32 %v4460_v0, %v3213_v54  ;;  %v4509_v34 = vmul.f32 0.5, %v4493_v30  ;;  %v10135_v52 = vld [vmem:[#allocation87_spill] sm:$0xff]  ;;  %v10136_v21 = vld [vmem:[#allocation102_spill] sm:$0xff] }
 0xd02   :  { %v4525_v2 = vmul.f32 0.5, %v4497_v58  ;;  %v3237_v0 = vadd.f32 %v10135_v52, %v10066_v45  ;;  %v3234_v30 = vadd.f32 %v10136_v21, %v10104_v38  ;;  %v10137_v58 = vld [vmem:[#allocation32_spill] sm:$0xff] }
 0xd03   :  { %v4508_v35 = vmul.f32 0.5, %v4492_v61  ;;  %v4524_v20 = vmul.f32 0.5, %v4496_v5  ;;  %5990 = vtanh.f32 %v4509_v34  ;;  %v3231_v61 = vadd.f32 %v10137_v58, %v10105_v6 }
 0xd04   :  { %5992 = vtanh.f32 %v4525_v2 }
 0xd05   :  { %v4472_v26 = vpop.f32.mrf.mxu1  ;;  %5994 = vtanh.f32 %v4508_v35 }
 0xd06   :  { %v5989_v56 = vpop.eup %5988  ;;  %5996 = vtanh.f32 %v4524_v20 }
 0xd07   :  { %v4563_v60 = vmul.f32 %v5989_v56, %v4519_v8  ;;  %v10133_v56 = vld [vmem:[#allocation84_spill] sm:$0xff] }
 0xd09   :  { %v9286_v32 = vadd.f32 %v4563_v60, %v4559_v28  ;;  %v3228_v28 = vadd.f32 %v10133_v56, %v9970_v43  ;;  %v10134_v60 = vld [vmem:[#allocation100_spill] sm:$0xff]  ;;  %v5991_v18 = vpop.eup %5990 }
 0xd0a   :  { %v3225_v19 = vadd.f32 %v10134_v60, %v10061_v31  ;;  %v5993_v47 = vpop.eup %5992  ;;  %v4517_v5 = vmul.f32 0.5, %v5991_v18 }
 0xd0b   :  { %v5995_v12 = vpop.eup %5994 }
 0xd0c   :  { %v4500_v42 = vadd.f32 %v4472_v26, %v3225_v19  ;;  %v5997_v54 = vpop.eup %5996  ;;  %v4516_v34 = vmul.f32 0.5, %v5995_v12  ;;  %v4521_v19 = vadd.f32 0.5, %v4517_v5 }
 0xd0d   :  { %v4475_v59 = vpop.f32.mrf.mxu1  ;;  %v4532_v35 = vmul.f32 0.5, %v5997_v54 }
 0xd0e   :  { %v4501_v22 = vadd.f32 %v4475_v59, %v3228_v28  ;;  %v4533_v59 = vmul.f32 0.5, %v5993_v47  ;;  %v10138_v28 = vld [vmem:[#allocation104_spill] sm:$0xff] }
 0xd0f   :  { %v3240_v60 = vadd.f32 %v10138_v28, %v10072_v1  ;;  %v4536_v58 = vadd.f32 0.5, %v4532_v35 }
 0xd10   :  { %5998 = vtanh.f32 %v4501_v22  ;;  %v4537_v22 = vadd.f32 0.5, %v4533_v59 }
 0xd11   :  { %6000 = vtanh.f32 %v4500_v42  ;;  %v4560_v12 = vmul.f32 %v4536_v58, %v9192_v39 }
 0xd15   :  { %v4478_v53 = vpop.f32.mrf.mxu1 }
 0xd16   :  { %v4502_v2 = vadd.f32 %v4478_v53, %v3231_v61  ;;  %v5999_v56 = vpop.eup %5998 }
 0xd17   :  { %v4565_v42 = vmul.f32 %v5999_v56, %v4521_v19 }
 0xd18   :  { %v4542_v21 = vmul.f32 0.5, %v4502_v2 }
 0xd1d   :  { %v4481_v8 = vpop.f32.mrf.mxu1 }
 0xd1e   :  { %v4503_v26 = vadd.f32 %v4481_v8, %v3234_v30  ;;  %v4561_v8 = vmul.f32 %v4537_v22, %v9190_v17 }
 0xd20   :  { %v4543_v52 = vmul.f32 0.5, %v4503_v26  ;;  %v9310_v30 = vadd.f32 %v4565_v42, %v4561_v8  ;;  %v10140_v8 = vld [vmem:[#allocation59_spill] sm:$0xff] }
 0xd25   :  { %v4484_v13 = vpop.f32.mrf.mxu1 }
 0xd26   :  { %v4504_v55 = vadd.f32 %v4484_v13, %v3237_v0  ;;  %v6001_v0 = vpop.eup %6000  ;;  %v4520_v13 = vadd.f32 0.5, %v4516_v34 }
 0xd28   :  { %v4544_v20 = vmul.f32 0.5, %v4504_v55  ;;  %v4564_v53 = vmul.f32 %v6001_v0, %v4520_v13 }
 0xd2a   :  { %6002 = vtanh.f32 %v4544_v20  ;;  %v9312_v54 = vadd.f32 %v4564_v53, %v4560_v12  ;;  %v3263_v53 = vadd.f32 %v10140_v8, %v8012_v48  ;;  %v10145_v8 = vld [vmem:[#allocation8_spill] sm:$0xff] }
 0xd2b   :  { %6004 = vtanh.f32 %v4543_v52 }
 0xd2c   :  { %6006 = vtanh.f32 %v4542_v21  ;;  %v10139_v21 = vld [vmem:[#allocation93_spill] sm:$0xff] }
 0xd2d   :  { %v4487_v51 = vpop.f32.mrf.mxu1  ;;  %v3260_v58 = vadd.f32 %v10139_v21, %v8022_v25 }
 0xd2e   :  { %v4505_v18 = vadd.f32 %v4487_v51, %v3240_v60 }
 0xd30   :  { %v4545_v47 = vmul.f32 0.5, %v4505_v18  ;;  %v6003_v55 = vpop.eup %6002 }
 0xd31   :  { %v6005_v61 = vpop.eup %6004  ;;  %v4552_v59 = vmul.f32 0.5, %v6003_v55  ;;  %v10141_v55 = vld [vmem:[#allocation92_spill] sm:$0xff] }
 0xd32   :  { %6008 = vtanh.f32 %v4545_v47  ;;  %v6007_v5 = vpop.eup %6006  ;;  %v4551_v17 = vmul.f32 0.5, %v6005_v61  ;;  %v3266_v61 = vadd.f32 %v10141_v55, %v10095_v29 }
 0xd33   :  { %6010 = vtanh.f32 %v9310_v30  ;;  %v4550_v34 = vmul.f32 0.5, %v6007_v5  ;;  %v4556_v39 = vadd.f32 0.5, %v4552_v59 }
 0xd34   :  { %6012 = vtanh.f32 %v9312_v54  ;;  %v4555_v20 = vadd.f32 0.5, %v4551_v17 }
 0xd35   :  { %6014 = vtanh.f32 %v9286_v32  ;;  %v4554_v60 = vadd.f32 0.5, %v4550_v34 }
 0xd36   :  { %6016 = vtanh.f32 %v9283_v10 }
 0xd38   :  { %v6009_v51 = vpop.eup %6008 }
 0xd39   :  { %v4553_v26 = vmul.f32 0.5, %v6009_v51  ;;  %v6011_v35 = vpop.eup %6010  ;;  %v10142_v51 = vld [vmem:[#allocation91_spill] sm:$0xff] }
 0xd3a   :  { %v6013_v28 = vpop.eup %6012  ;;  %v3269_v17 = vadd.f32 %v10142_v51, %v10091_v4 }
 0xd3b   :  { %v4557_v2 = vadd.f32 0.5, %v4553_v26  ;;  %v4576_v19 = vmul.f32 %v6013_v28, %v4556_v39  ;;  %v6015_v22 = vpop.eup %6014  ;;  %v10143_v39 = vld [vmem:[#allocation94_spill] sm:$0xff] }
 0xd3c   :  { %v4575_v52 = vmul.f32 %v6015_v22, %v4555_v20  ;;  %v6017_v0 = vpop.eup %6016 }
 0xd3d   :  { %v4577_v56 = vmul.f32 %v6011_v35, %v4557_v2  ;;  %v4574_v13 = vmul.f32 %v6017_v0, %v4554_v60  ;;  %v3272_v2 = vadd.f32 %v10143_v39, %v9967_v50 }
 0xd3f   :  { %4606 = vmatpush.msrb.mxu2 %v4577_v56  ;;  %v10144_v56 = vld [vmem:[#allocation19_spill] sm:$0xff] }
 0xd40   :  { %v3275_v28 = vadd.f32 %v10144_v56, %v8020_v27 }
 0xd41   :  { %4607 = vmatpush.msrb.mxu2 %v4576_v19 }
 0xd43   :  { %4608 = vmatpush.msrb.mxu2 %v4575_v52 }
 0xd45   :  { %4609 = vmatpush.msrb.mxu2 %v4574_v13 }
 0xd46   :  { %5411 = vmatmul.msk.f32.vlgmr.msrb.gmra.mxu2 %vm795_vm2, %v9081_v9 }
 0xd4e   :  { %5412 = vmatmul.msk.f32.gmra.mxu2 %vm795_vm2, %v9088_v40 }
 0xd56   :  { %5413 = vmatmul.msk.f32.gmra.mxu2 %vm795_vm2, %v9095_v49 }
 0xd5e   :  { %5414 = vmatmul.msk.f32.gmra.mxu2 %vm795_vm2, %v9102_v37 }
 0xd66   :  { %5415 = vmatmul.msk.f32.gmra.mxu2 %vm795_vm2, %v9109_v57 }
 0xd6e   :  { %5416 = vmatmul.msk.f32.gmra.mxu2 %vm795_vm2, %v9116_v11 }
 0xd76   :  { %5417 = vmatmul.msk.f32.gmra.mxu2 %vm795_vm2, %v9123_v24 }
 0xd7e   :  { %5418 = vmatmul.msk.f32.gmra.mxu2 %vm795_vm2, %v9130_v7 }
 0xd86   :  { %5419 = vmatmul.msk.f32.gmra.mxu2 %vm795_vm2, %v9217_v63 }
 0xd8e   :  { %5420 = vmatmul.msk.f32.gmra.mxu2 %vm795_vm2, %v9224_v16 }
 0xd96   :  { %5421 = vmatmul.msk.f32.gmra.mxu2 %vm795_vm2, %v9231_v44 }
 0xd9e   :  { %5422 = vmatmul.msk.f32.gmra.mxu2 %vm795_vm2, %v9238_v62 }
 0xda6   :  { %5423 = vmatmul.msk.f32.gmra.mxu2 %vm795_vm2, %v9245_v46 }
 0xdae   :  { %5424 = vmatmul.msk.f32.gmra.mxu2 %vm795_vm2, %v9252_v41 }
 0xdb6   :  { %5425 = vmatmul.msk.f32.gmra.mxu2 %vm795_vm2, %v9259_v14 }
 0xdbe   :  { %5426 = vmatmul.msk.f32.gmra.mxu2 %vm795_vm2, %v9266_v23 }
 0xdc9   :  { %v4611_v42 = vpop.f32.mrf.mxu2 }
 0xdca   :  { %v4659_v18 = vadd.f32 %v4611_v42, %v3260_v58 }
 0xdcc   :  { %v4675_v0 = vmul.f32 0.5, %v4659_v18 }
 0xdd1   :  { %v4614_v47 = vpop.f32.mrf.mxu2 }
 0xdd2   :  { %v4660_v12 = vadd.f32 %v4614_v47, %v3263_v53  ;;  %v3278_v53 = vadd.f32 %v10145_v8, %v7999_v15  ;;  %v10146_v47 = vld [vmem:[#allocation10_spill] sm:$0xff] }
 0xdd3   :  { %v3284_v55 = vadd.f32 %v10146_v47, %v10067_v3 }
 0xdd4   :  { %v4676_v58 = vmul.f32 0.5, %v4660_v12 }
 0xdd9   :  { %v4617_v5 = vpop.f32.mrf.mxu2 }
 0xdda   :  { %v4661_v59 = vadd.f32 %v4617_v5, %v3266_v61 }
 0xde1   :  { %v4620_v26 = vpop.f32.mrf.mxu2 }
 0xde2   :  { %v4662_v34 = vadd.f32 %v4620_v26, %v3269_v17 }
 0xde9   :  { %v4623_v35 = vpop.f32.mrf.mxu2 }
 0xdea   :  { %v4663_v20 = vadd.f32 %v4623_v35, %v3272_v2  ;;  %v4677_v2 = vmul.f32 0.5, %v4661_v59 }
 0xdec   :  { %v4691_v52 = vmul.f32 0.5, %v4663_v20  ;;  %v10147_v20 = vld [vmem:[#allocation23_spill] sm:$0xff] }
 0xded   :  { %v3281_v56 = vadd.f32 %v10147_v20, %v10093_v36 }
 0xdee   :  { %6018 = vtanh.f32 %v4691_v52 }
 0xdef   :  { %6020 = vtanh.f32 %v4675_v0 }
 0xdf1   :  { %v4626_v60 = vpop.f32.mrf.mxu2 }
 0xdf2   :  { %v4664_v19 = vadd.f32 %v4626_v60, %v3275_v28  ;;  %v10148_v28 = vld [vmem:[#allocation61_spill] sm:$0xff] }
 0xdf3   :  { %v3287_v60 = vadd.f32 %v10148_v28, %v10063_v33 }
 0xdf4   :  { %v4692_v21 = vmul.f32 0.5, %v4664_v19  ;;  %v6019_v42 = vpop.eup %6018 }
 0xdf5   :  { %v6021_v5 = vpop.eup %6020  ;;  %v4699_v26 = vmul.f32 0.5, %v6019_v42 }
 0xdf6   :  { %6022 = vtanh.f32 %v4692_v21  ;;  %v4683_v18 = vmul.f32 0.5, %v6021_v5 }
 0xdf7   :  { %6024 = vtanh.f32 %v4676_v58  ;;  %v4703_v35 = vadd.f32 0.5, %v4699_v26 }
 0xdf8   :  { %v4687_v52 = vadd.f32 0.5, %v4683_v18 }
 0xdf9   :  { %v4629_v22 = vpop.f32.mrf.mxu2  ;;  %v4727_v42 = vmul.f32 %v4703_v35, %v9283_v10 }
 0xdfa   :  { %v4665_v51 = vadd.f32 %v4629_v22, %v3278_v53 }
 0xdfc   :  { %v4693_v39 = vmul.f32 0.5, %v4665_v51  ;;  %v6023_v12 = vpop.eup %6022 }
 0xdfd   :  { %v6025_v19 = vpop.eup %6024  ;;  %v4700_v8 = vmul.f32 0.5, %v6023_v12 }
 0xdfe   :  { %v4684_v53 = vmul.f32 0.5, %v6025_v19  ;;  %v10150_v19 = vld [vmem:[#allocation74_spill] sm:$0xff] }
 0xdff   :  { %v4704_v5 = vadd.f32 0.5, %v4700_v8 }
 0xe01   :  { %v4632_v13 = vpop.f32.mrf.mxu2  ;;  %v4728_v10 = vmul.f32 %v4704_v5, %v9286_v32 }
 0xe02   :  { %v4666_v22 = vadd.f32 %v4632_v13, %v3281_v56 }
 0xe09   :  { %v4635_v61 = vpop.f32.mrf.mxu2 }
 0xe0a   :  { %v4667_v17 = vadd.f32 %v4635_v61, %v3284_v55  ;;  %v4694_v55 = vmul.f32 0.5, %v4666_v22  ;;  %v4678_v61 = vmul.f32 0.5, %v4662_v34 }
 0xe0c   :  { %6026 = vtanh.f32 %v4667_v17  ;;  %v10149_v17 = vld [vmem:[#allocation11_spill] sm:$0xff] }
 0xe0d   :  { %6028 = vtanh.f32 %v4693_v39  ;;  %v3290_v26 = vadd.f32 %v10149_v17, %v10061_v31  ;;  %v4688_v39 = vadd.f32 0.5, %v4684_v53 }
 0xe0e   :  { %6030 = vtanh.f32 %v4677_v2 }
 0xe11   :  { %v4638_v0 = vpop.f32.mrf.mxu2 }
 0xe12   :  { %v6027_v21 = vpop.eup %6026  ;;  %v4668_v58 = vadd.f32 %v4638_v0, %v3287_v60 }
 0xe13   :  { %v4731_v59 = vmul.f32 %v6027_v21, %v4687_v52  ;;  %v6029_v51 = vpop.eup %6028  ;;  %v3293_v52 = vadd.f32 %v10150_v19, %v9970_v43 }
 0xe14   :  { %6032 = vtanh.f32 %v4668_v58  ;;  %v6031_v18 = vpop.eup %6030  ;;  %v4701_v35 = vmul.f32 0.5, %v6029_v51 }
 0xe15   :  { %v9371_v47 = vadd.f32 %v4731_v59, %v4727_v42  ;;  %6034 = vtanh.f32 %v4694_v55  ;;  %v4685_v56 = vmul.f32 0.5, %v6031_v18 }
 0xe16   :  { %6036 = vtanh.f32 %v4678_v61  ;;  %v4705_v34 = vadd.f32 0.5, %v4701_v35 }
 0xe17   :  { %v4689_v21 = vadd.f32 0.5, %v4685_v56  ;;  %v10153_v56 = vld [vmem:[#allocation70_spill] sm:$0xff] }
 0xe18   :  { %v4729_v8 = vmul.f32 %v4705_v34, %v9312_v54  ;;  %v3296_v34 = vadd.f32 %v10153_v56, %v10105_v6 }
 0xe19   :  { %v4641_v13 = vpop.f32.mrf.mxu2 }
 0xe1a   :  { %v6033_v20 = vpop.eup %6032  ;;  %v4669_v2 = vadd.f32 %v4641_v13, %v3290_v26 }
 0xe1b   :  { %v4732_v12 = vmul.f32 %v6033_v20, %v4688_v39  ;;  %v6035_v60 = vpop.eup %6034  ;;  %v10151_v20 = vld [vmem:[#allocation76_spill] sm:$0xff] }
 0xe1c   :  { %6038 = vtanh.f32 %v4669_v2  ;;  %v6037_v0 = vpop.eup %6036  ;;  %v4702_v59 = vmul.f32 0.5, %v6035_v60  ;;  %v3302_v2 = vadd.f32 %v10151_v20, %v10066_v45 }
 0xe1d   :  { %v9376_v28 = vadd.f32 %v4732_v12, %v4728_v10  ;;  %v4686_v53 = vmul.f32 0.5, %v6037_v0  ;;  %v10152_v10 = vld [vmem:[#allocation75_spill] sm:$0xff] }
 0xe1e   :  { %v4706_v61 = vadd.f32 0.5, %v4702_v59  ;;  %v3299_v35 = vadd.f32 %v10152_v10, %v10104_v38 }
 0xe1f   :  { %v4690_v5 = vadd.f32 0.5, %v4686_v53 }
 0xe20   :  { %v4730_v26 = vmul.f32 %v4706_v61, %v9310_v30  ;;  %v10154_v30 = vld [vmem:[#allocation25_spill] sm:$0xff] }
 0xe21   :  { %v4644_v22 = vpop.f32.mrf.mxu2  ;;  %v3305_v0 = vadd.f32 %v10154_v30, %v10072_v1 }
 0xe22   :  { %v6039_v58 = vpop.eup %6038  ;;  %v4670_v42 = vadd.f32 %v4644_v22, %v3293_v52 }
 0xe23   :  { %v4733_v32 = vmul.f32 %v6039_v58, %v4689_v21 }
 0xe24   :  { %6040 = vtanh.f32 %v4670_v42 }
 0xe25   :  { %v9381_v55 = vadd.f32 %v4733_v32, %v4729_v8 }
 0xe29   :  { %v4647_v51 = vpop.f32.mrf.mxu2 }
 0xe2a   :  { %v6041_v17 = vpop.eup %6040  ;;  %v4671_v19 = vadd.f32 %v4647_v51, %v3296_v34 }
 0xe2b   :  { %v4734_v18 = vmul.f32 %v6041_v17, %v4690_v5 }
 0xe2c   :  { %v4711_v22 = vmul.f32 0.5, %v4671_v19 }
 0xe2d   :  { %v9384_v39 = vadd.f32 %v4734_v18, %v4730_v26 }
 0xe31   :  { %v4650_v13 = vpop.f32.mrf.mxu2 }
 0xe32   :  { %v4672_v60 = vadd.f32 %v4650_v13, %v3299_v35 }
 0xe34   :  { %v4712_v21 = vmul.f32 0.5, %v4672_v60 }
 0xe39   :  { %v4653_v54 = vpop.f32.mrf.mxu2 }
 0xe3a   :  { %v4673_v12 = vadd.f32 %v4653_v54, %v3302_v2 }
 0xe3c   :  { %v4713_v52 = vmul.f32 0.5, %v4673_v12 }
 0xe3e   :  { %6042 = vtanh.f32 %v4713_v52  ;;  %v10159_v52 = vld [vmem:[#allocation33_spill] sm:$0xff] }
 0xe3f   :  { %6044 = vtanh.f32 %v4712_v21  ;;  %v10160_v21 = vld [vmem:[#allocation120_spill] sm:$0xff] }
 0xe40   :  { %6046 = vtanh.f32 %v4711_v22 }
 0xe41   :  { %v4656_v58 = vpop.f32.mrf.mxu2 }
 0xe42   :  { %v4674_v42 = vadd.f32 %v4656_v58, %v3305_v0 }
 0xe44   :  { %v4714_v8 = vmul.f32 0.5, %v4674_v42  ;;  %v6043_v59 = vpop.eup %6042 }
 0xe45   :  { %v6045_v32 = vpop.eup %6044  ;;  %v4721_v61 = vmul.f32 0.5, %v6043_v59 }
 0xe46   :  { %6048 = vtanh.f32 %v4714_v8  ;;  %v6047_v53 = vpop.eup %6046  ;;  %v4720_v51 = vmul.f32 0.5, %v6045_v32 }
 0xe47   :  { %6050 = vtanh.f32 %v9384_v39  ;;  %v4719_v26 = vmul.f32 0.5, %v6047_v53  ;;  %v4725_v18 = vadd.f32 0.5, %v4721_v61  ;;  %v10161_v61 = vld [vmem:[#allocation117_spill] sm:$0xff] }
 0xe48   :  { %6052 = vtanh.f32 %v9381_v55  ;;  %v4724_v2 = vadd.f32 0.5, %v4720_v51 }
 0xe49   :  { %6054 = vtanh.f32 %v9376_v28  ;;  %v4723_v35 = vadd.f32 0.5, %v4719_v26 }
 0xe4a   :  { %6056 = vtanh.f32 %v9371_v47 }
 0xe4c   :  { %v6049_v5 = vpop.eup %6048 }
 0xe4d   :  { %v4722_v17 = vmul.f32 0.5, %v6049_v5  ;;  %v6051_v20 = vpop.eup %6050  ;;  %v3343_v5 = vadd.f32 %v10161_v61, %v7999_v15  ;;  %v10164_v15 = vld [vmem:[#allocation81_spill] sm:$0xff] }
 0xe4e   :  { %v6053_v10 = vpop.eup %6052 }
 0xe4f   :  { %v4726_v13 = vadd.f32 0.5, %v4722_v17  ;;  %v4745_v12 = vmul.f32 %v6053_v10, %v4725_v18  ;;  %v6055_v56 = vpop.eup %6054 }
 0xe50   :  { %v4744_v34 = vmul.f32 %v6055_v56, %v4724_v2  ;;  %v6057_v60 = vpop.eup %6056 }
 0xe51   :  { %v4746_v54 = vmul.f32 %v6051_v20, %v4726_v13  ;;  %v4743_v19 = vmul.f32 %v6057_v60, %v4723_v35 }
 0xe53   :  { %4775 = vmatpush.msrb.mxu3 %v4746_v54 }
 0xe55   :  { %4776 = vmatpush.msrb.mxu3 %v4745_v12  ;;  %v10163_v12 = vld [vmem:[#allocation122_spill] sm:$0xff] }
 0xe56   :  { %v3346_v56 = vadd.f32 %v10163_v12, %v10093_v36  ;;  %v10169_v12 = vld [vmem:[#allocation52_spill] sm:$0xff] }
 0xe57   :  { %4777 = vmatpush.msrb.mxu3 %v4744_v34  ;;  %v3352_v34 = vadd.f32 %v10164_v15, %v10063_v33 }
 0xe59   :  { %4778 = vmatpush.msrb.mxu3 %v4743_v19 }
 0xe5a   :  { %5427 = vmatmul.msk.f32.vlgmr.msrb.gmra.mxu3 %vm795_vm2, %v9081_v9  ;;  %v10155_v9 = vld [vmem:[#allocation68_spill] sm:$0xff] }
 0xe62   :  { %5428 = vmatmul.msk.f32.gmra.mxu3 %vm795_vm2, %v9088_v40  ;;  %v3325_v40 = vadd.f32 %v10155_v9, %v8022_v25  ;;  %v3337_v25 = vadd.f32 %v10159_v52, %v9967_v50  ;;  %v10162_v50 = vld [vmem:[#allocation50_spill] sm:$0xff] }
 0xe63   :  { %v3349_v51 = vadd.f32 %v10162_v50, %v10067_v3 }
 0xe6a   :  { %5429 = vmatmul.msk.f32.gmra.mxu3 %vm795_vm2, %v9095_v49 }
 0xe72   :  { %5430 = vmatmul.msk.f32.gmra.mxu3 %vm795_vm2, %v9102_v37 }
 0xe7a   :  { %5431 = vmatmul.msk.f32.gmra.mxu3 %vm795_vm2, %v9109_v57  ;;  %v10156_v57 = vld [vmem:[#allocation31_spill] sm:$0xff] }
 0xe82   :  { %5432 = vmatmul.msk.f32.gmra.mxu3 %vm795_vm2, %v9116_v11  ;;  %v3328_v11 = vadd.f32 %v10156_v57, %v8012_v48  ;;  %v3340_v48 = vadd.f32 %v10160_v21, %v8020_v27 }
 0xe8a   :  { %5433 = vmatmul.msk.f32.gmra.mxu3 %vm795_vm2, %v9123_v24 }
 0xe92   :  { %5434 = vmatmul.msk.f32.gmra.mxu3 %vm795_vm2, %v9130_v7 }
 0xe9a   :  { %5435 = vmatmul.msk.f32.gmra.mxu3 %vm795_vm2, %v9217_v63  ;;  %v10157_v63 = vld [vmem:[#allocation118_spill] sm:$0xff] }
 0xea2   :  { %5436 = vmatmul.msk.f32.gmra.mxu3 %vm795_vm2, %v9224_v16  ;;  %v3331_v16 = vadd.f32 %v10157_v63, %v10095_v29 }
 0xeaa   :  { %5437 = vmatmul.msk.f32.gmra.mxu3 %vm795_vm2, %v9231_v44 }
 0xeb2   :  { %5438 = vmatmul.msk.f32.gmra.mxu3 %vm795_vm2, %v9238_v62 }
 0xeba   :  { %5439 = vmatmul.msk.f32.gmra.mxu3 %vm795_vm2, %v9245_v46  ;;  %v10158_v46 = vld [vmem:[#allocation119_spill] sm:$0xff] }
 0xec2   :  { %5440 = vmatmul.msk.f32.gmra.mxu3 %vm795_vm2, %v9252_v41  ;;  %v3334_v41 = vadd.f32 %v10158_v46, %v10091_v4 }
 0xeca   :  { %5441 = vmatmul.msk.f32.gmra.mxu3 %vm795_vm2, %v9259_v14 }
 0xed2   :  { %5442 = vmatmul.msk.f32.gmra.mxu3 %vm795_vm2, %v9266_v23 }
 0xedd   :  { %v4780_v49 = vpop.f32.mrf.mxu3 }
 0xede   :  { %v4828_v37 = vadd.f32 %v4780_v49, %v3325_v40 }
 0xee0   :  { %v4844_v29 = vmul.f32 0.5, %v4828_v37 }
 0xee5   :  { %v4783_v24 = vpop.f32.mrf.mxu3 }
 0xee6   :  { %v4829_v7 = vadd.f32 %v4783_v24, %v3328_v11 }
 0xee8   :  { %v4845_v4 = vmul.f32 0.5, %v4829_v7 }
 0xeed   :  { %v4786_v44 = vpop.f32.mrf.mxu3 }
 0xeee   :  { %v4830_v62 = vadd.f32 %v4786_v44, %v3331_v16  ;;  %v10165_v44 = vld [vmem:[#allocation47_spill] sm:$0xff] }
 0xef0   :  { %v4846_v54 = vmul.f32 0.5, %v4830_v62  ;;  %v3355_v62 = vadd.f32 %v10165_v44, %v10061_v31 }
 0xef5   :  { %v4789_v14 = vpop.f32.mrf.mxu3 }
 0xef6   :  { %v4831_v23 = vadd.f32 %v4789_v14, %v3334_v41 }
 0xef8   :  { %v4847_v63 = vmul.f32 0.5, %v4831_v23 }
 0xefd   :  { %v4792_v30 = vpop.f32.mrf.mxu3 }
 0xefe   :  { %v4832_v0 = vadd.f32 %v4792_v30, %v3337_v25 }
 0xf00   :  { %v4860_v8 = vmul.f32 0.5, %v4832_v0 }
 0xf02   :  { %6058 = vtanh.f32 %v4860_v8 }
 0xf03   :  { %6060 = vtanh.f32 %v4844_v29 }
 0xf05   :  { %v4795_v22 = vpop.f32.mrf.mxu3 }
 0xf06   :  { %v4833_v58 = vadd.f32 %v4795_v22, %v3340_v48 }
 0xf08   :  { %v4861_v32 = vmul.f32 0.5, %v4833_v58  ;;  %v6059_v53 = vpop.eup %6058  ;;  %v10166_v58 = vld [vmem:[#allocation18_spill] sm:$0xff] }
 0xf09   :  { %v6061_v26 = vpop.eup %6060  ;;  %v4868_v13 = vmul.f32 0.5, %v6059_v53 }
 0xf0a   :  { %6062 = vtanh.f32 %v4861_v32  ;;  %v4852_v20 = vmul.f32 0.5, %v6061_v26 }
 0xf0b   :  { %6064 = vtanh.f32 %v4845_v4  ;;  %v4872_v10 = vadd.f32 0.5, %v4868_v13 }
 0xf0c   :  { %v4856_v60 = vadd.f32 0.5, %v4852_v20  ;;  %v10167_v20 = vld [vmem:[#allocation49_spill] sm:$0xff] }
 0xf0d   :  { %v4798_v42 = vpop.f32.mrf.mxu3  ;;  %v4896_v37 = vmul.f32 %v4872_v10, %v9371_v47 }
 0xf0e   :  { %v4834_v27 = vadd.f32 %v4798_v42, %v3343_v5  ;;  %v3358_v42 = vadd.f32 %v10166_v58, %v9970_v43 }
 0xf10   :  { %v4862_v2 = vmul.f32 0.5, %v4834_v27  ;;  %v6063_v35 = vpop.eup %6062 }
 0xf11   :  { %v6065_v3 = vpop.eup %6064  ;;  %v4869_v57 = vmul.f32 0.5, %v6063_v35 }
 0xf12   :  { %v4853_v24 = vmul.f32 0.5, %v6065_v3 }
 0xf13   :  { %v4873_v16 = vadd.f32 0.5, %v4869_v57 }
 0xf14   :  { %v4857_v41 = vadd.f32 0.5, %v4853_v24 }
 0xf15   :  { %v4801_v59 = vpop.f32.mrf.mxu3  ;;  %v4897_v47 = vmul.f32 %v4873_v16, %v9376_v28 }
 0xf16   :  { %v4835_v40 = vadd.f32 %v4801_v59, %v3346_v56  ;;  %v3361_v56 = vadd.f32 %v10169_v12, %v10105_v6 }
 0xf18   :  { %v4863_v36 = vmul.f32 0.5, %v4835_v40 }
 0xf1d   :  { %v4804_v17 = vpop.f32.mrf.mxu3 }
 0xf1e   :  { %v4836_v18 = vadd.f32 %v4804_v17, %v3349_v51 }
 0xf20   :  { %6066 = vtanh.f32 %v4836_v18 }
 0xf21   :  { %6068 = vtanh.f32 %v4862_v2  ;;  %v3367_v2 = vadd.f32 %v10167_v20, %v10066_v45 }
 0xf22   :  { %6070 = vtanh.f32 %v4846_v54 }
 0xf25   :  { %v4807_v19 = vpop.f32.mrf.mxu3 }
 0xf26   :  { %v6067_v9 = vpop.eup %6066  ;;  %v4837_v49 = vadd.f32 %v4807_v19, %v3352_v34 }
 0xf27   :  { %v4900_v11 = vmul.f32 %v6067_v9, %v4856_v60  ;;  %v6069_v33 = vpop.eup %6068  ;;  %v10170_v60 = vld [vmem:[#allocation7_spill] sm:$0xff] }
 0xf28   :  { %6072 = vtanh.f32 %v4837_v49  ;;  %v6071_v46 = vpop.eup %6070  ;;  %v4870_v30 = vmul.f32 0.5, %v6069_v33 }
 0xf29   :  { %v9451_v7 = vadd.f32 %v4900_v11, %v4896_v37  ;;  %6074 = vtanh.f32 %v4863_v36  ;;  %v4854_v21 = vmul.f32 0.5, %v6071_v46 }
 0xf2a   :  { %6076 = vtanh.f32 %v4847_v63  ;;  %v4874_v23 = vadd.f32 0.5, %v4870_v30 }
 0xf2b   :  { %v4858_v8 = vadd.f32 0.5, %v4854_v21 }
 0xf2c   :  { %v4898_v4 = vmul.f32 %v4874_v23, %v9381_v55  ;;  %v10168_v55 = vld [vmem:[#allocation28_spill] sm:$0xff] }
 0xf2d   :  { %v4810_v14 = vpop.f32.mrf.mxu3  ;;  %v3364_v10 = vadd.f32 %v10168_v55, %v10104_v38 }
 0xf2e   :  { %v6073_v52 = vpop.eup %6072  ;;  %v4838_v25 = vadd.f32 %v4810_v14, %v3355_v62 }
 0xf2f   :  { %v4901_v0 = vmul.f32 %v6073_v52, %v4857_v41  ;;  %v6075_v22 = vpop.eup %6074 }
 0xf30   :  { %6078 = vtanh.f32 %v4838_v25  ;;  %v6077_v31 = vpop.eup %6076  ;;  %v4871_v53 = vmul.f32 0.5, %v6075_v22 }
 0xf31   :  { %v4905_v48 = vadd.f32 %v4901_v0, %v4897_v47  ;;  %v4855_v28 = vmul.f32 0.5, %v6077_v31  ;;  %v4916_v0 = vld [vmem:[%s9483_s7] sm:$0x3] }
 0xf32   :  { %v4875_v50 = vadd.f32 0.5, %v4871_v53 }
 0xf33   :  { %v4859_v51 = vadd.f32 0.5, %v4855_v28 }
 0xf34   :  { %v4899_v27 = vmul.f32 %v4875_v50, %v9384_v39  ;;  %v3370_v39 = vadd.f32 %v10170_v60, %v10072_v1 }
 0xf35   :  { %v4813_v29 = vpop.f32.mrf.mxu3 }
 0xf36   :  { %v6079_v59 = vpop.eup %6078  ;;  %v4839_v32 = vadd.f32 %v4813_v29, %v3358_v42 }
 0xf37   :  { %v4902_v61 = vmul.f32 %v6079_v59, %v4858_v8 }
 0xf38   :  { %6080 = vtanh.f32 %v4839_v32 }
 0xf39   :  { %v4906_v5 = vadd.f32 %v4902_v61, %v4898_v4 }
 0xf3d   :  { %v4816_v17 = vpop.f32.mrf.mxu3 }
 0xf3e   :  { %v6081_v26 = vpop.eup %6080  ;;  %v4840_v34 = vadd.f32 %v4816_v17, %v3361_v56 }
 0xf3f   :  { %v4903_v18 = vmul.f32 %v6081_v26, %v4859_v51 }
 0xf40   :  { %v4880_v9 = vmul.f32 0.5, %v4840_v34 }
 0xf41   :  { %v4907_v43 = vadd.f32 %v4903_v18, %v4899_v27 }
 0xf45   :  { %v4819_v13 = vpop.f32.mrf.mxu3 }
 0xf46   :  { %v4841_v15 = vadd.f32 %v4819_v13, %v3364_v10 }
 0xf48   :  { %v4881_v19 = vmul.f32 0.5, %v4841_v15 }
 0xf4d   :  { %v4822_v54 = vpop.f32.mrf.mxu3 }
 0xf4e   :  { %v4842_v35 = vadd.f32 %v4822_v54, %v3367_v2 }
 0xf50   :  { %v4882_v3 = vmul.f32 0.5, %v4842_v35 }
 0xf52   :  { %6082 = vtanh.f32 %v4882_v3 }
 0xf53   :  { %6084 = vtanh.f32 %v4881_v19 }
 0xf54   :  { %6086 = vtanh.f32 %v4880_v9 }
 0xf55   :  { %v4825_v40 = vpop.f32.mrf.mxu3 }
 0xf56   :  { %v4843_v49 = vadd.f32 %v4825_v40, %v3370_v39 }
 0xf58   :  { %v4883_v45 = vmul.f32 0.5, %v4843_v49  ;;  %v6083_v38 = vpop.eup %6082 }
 0xf59   :  { %v6085_v37 = vpop.eup %6084  ;;  %v4890_v6 = vmul.f32 0.5, %v6083_v38 }
 0xf5a   :  { %6088 = vtanh.f32 %v4883_v45  ;;  %v6087_v57 = vpop.eup %6086  ;;  %v4889_v24 = vmul.f32 0.5, %v6085_v37 }
 0xf5b   :  { %6090 = vtanh.f32 %v4907_v43  ;;  %v4888_v1 = vmul.f32 0.5, %v6087_v57  ;;  %v4894_v63 = vadd.f32 0.5, %v4890_v6 }
 0xf5c   :  { %6092 = vtanh.f32 %v4906_v5  ;;  %v4893_v44 = vadd.f32 0.5, %v4889_v24 }
 0xf5d   :  { %6094 = vtanh.f32 %v4905_v48  ;;  %v4892_v41 = vadd.f32 0.5, %v4888_v1 }
 0xf5e   :  { %6096 = vtanh.f32 %v9451_v7  ;;  %v4921_v7 = vpop.permute.xlu2 %4920 }
 0xf60   :  { %v6089_v11 = vpop.eup %6088 }
 0xf61   :  { %v4891_v36 = vmul.f32 0.5, %v6089_v11  ;;  %v6091_v33 = vpop.eup %6090 }
 0xf62   :  { %v6093_v46 = vpop.eup %6092 }
 0xf63   :  { %v4895_v16 = vadd.f32 0.5, %v4891_v36  ;;  %v4914_v14 = vmul.f32 %v6093_v46, %v4894_v63  ;;  %v6095_v52 = vpop.eup %6094 }
 0xf64   :  { %v4913_v25 = vmul.f32 %v6095_v52, %v4893_v44  ;;  %v6097_v47 = vpop.eup %6096 }
 0xf65   :  { %v4915_v62 = vmul.f32 %v6091_v33, %v4895_v16  ;;  %v4912_v30 = vmul.f32 %v6097_v47, %v4892_v41 }
 0xf67   :  { %4938 = vmatpush.msra.mxu0 %v4915_v62 }
 0xf69   :  { %4939 = vmatpush.msra.mxu0 %v4914_v14 }
 0xf6b   :  { %4940 = vmatpush.msra.mxu0 %v4913_v25 }
 0xf6d   :  { %4941 = vmatpush.msra.mxu0 %v4912_v30 }
 0xf6e   :  { %5443 = vmatmul.msk.f32.vlgmr.msra.gmra.mxu0 %vm795_vm2, %v4916_v0 }
 0xfeb   :  { %v4943_v21 = vpop.f32.mrf.mxu0 }
 0xfec   :  { %v4944_v48 = vadd.f32 %v4943_v21, %v4921_v7 }
 0xfee   :  { %4946 = vst [vmem:[#allocation4] sm:$0x3] %v4944_v48 }
 0xfef   :  { %4957 = dma.vmem_to_hbm [thread:$0]  %s4953_s10, 32, %s4955_s12, [#allocation5]  }
 0xff0   :  { %6190 = dma.done.wait [#allocation5], 32  }
 0xff1   :  { %6191 = vsyncadd [#allocation5], 4294967264 }
 0xff2   :  { %4962 = vsyncpa [#allocation5], 1 }

</bundles_post_ra>
